<compile_context>
chip_gen: v6e
topology: v6e:2x2x1
jax: 0.10.0
libtpu: 0.0.40
codegen_flags: <defaults>
</compile_context>

<pallas_src>
import jax
import jax.numpy as jnp
from jax.experimental import pallas as pl
from jax.experimental.pallas import tpu as pltpu

_NEG_BIG = -1e30  # finite large-negative mask penalty keeps softmax NaN-free


# --------------------------------------------------------------------------------------
# Kernels
# --------------------------------------------------------------------------------------
def _attn_cls_single_pass_kernel(x_ref, mask_ref, wa_ref, wc_ref, bc_ref, o_ref):
    """Whole-sequence masked attention pooling + classifier for one batch tile.

    x_ref    : (TB, S, H)   hidden-state tile (native dtype, f32 or bf16)
    mask_ref : (TB, S)      int32 padding mask (1 = pad)
    wa_ref   : (1, H)  f32  attention score vector
    wc_ref   : (H, Cp) f32  classifier weight (transposed, lane-padded)
    bc_ref   : (1, Cp) f32  classifier bias (lane-padded)
    o_ref    : (TB, Cp) f32 logits
    """
    x = x_ref[...]                                            # (TB, S, H)
    wa = wa_ref[...]                                          # (1, H)

    # Attention scores on the VPU (f32 accumulate) + in-kernel additive padding penalty.
    s = jnp.sum(x * wa[:, None, :], axis=-1)                  # (TB, S) f32
    s = s + mask_ref[...].astype(jnp.float32) * jnp.float32(_NEG_BIG)

    # Plain softmax over the full sequence (seq axis is not tiled on this path).
    m = jnp.max(s, axis=-1, keepdims=True)                    # (TB, 1)
    p = jnp.exp(s - m)                                        # (TB, S)
    l = jnp.sum(p, axis=-1, keepdims=True)                    # (TB, 1)

    # Attention pooling on the MXU: batched (1,S)@(S,H) per row, f32 accumulation.
    pooled = jnp.einsum("bqs,bsh->bqh", p[:, None, :].astype(x.dtype), x,
                        preferred_element_type=jnp.float32)[:, 0, :]   # (TB, H) f32
    pooled = pooled / l

    logits = jnp.dot(pooled, wc_ref[...], preferred_element_type=jnp.float32)
    o_ref[...] = (logits + bc_ref[...]).astype(o_ref.dtype)


def _attn_cls_flash_kernel(x_ref, mask_ref, wa_ref, wc_ref, bc_ref, o_ref,
                           m_ref, l_ref, acc_ref):
    """Seq-tiled (online-softmax) fallback for shapes where a whole row exceeds VMEM."""
    si = pl.program_id(1)

    @pl.when(si == 0)
    def _init():
        m_ref[...] = jnp.full_like(m_ref, -jnp.inf)
        l_ref[...] = jnp.zeros_like(l_ref)
        acc_ref[...] = jnp.zeros_like(acc_ref)

    x = x_ref[...]                                            # (TB, TS, H)
    wa = wa_ref[...]                                          # (1, H)

    s = jnp.sum(x * wa[:, None, :], axis=-1)                  # (TB, TS) f32
    s = s + mask_ref[...].astype(jnp.float32) * jnp.float32(_NEG_BIG)

    m_prev = m_ref[...]
    m_new = jnp.maximum(m_prev, jnp.max(s, axis=-1, keepdims=True))
    alpha = jnp.exp(m_prev - m_new)
    p = jnp.exp(s - m_new)

    l_ref[...] = alpha * l_ref[...] + jnp.sum(p, axis=-1, keepdims=True)
    acc_ref[...] = alpha * acc_ref[...] + jnp.einsum(
        "bqs,bsh->bqh", p[:, None, :].astype(x.dtype), x,
        preferred_element_type=jnp.float32)[:, 0, :]
    m_ref[...] = m_new

    @pl.when(si == pl.num_programs(1) - 1)
    def _finalize():
        pooled = acc_ref[...] / l_ref[...]
        logits = jnp.dot(pooled, wc_ref[...], preferred_element_type=jnp.float32)
        o_ref[...] = (logits + bc_ref[...]).astype(o_ref.dtype)


# --------------------------------------------------------------------------------------
# Wrapper: tile selection + pallas_call
# --------------------------------------------------------------------------------------
def _divisors_desc(n):
    return [d for d in range(n, 0, -1) if n % d == 0]


def _vmem_bytes_estimate(tb, ts, H, c_pad, itemsize, flash):
    """Rough per-step VMEM footprint: streams (double-buffered), residents, temps, scratch."""
    x_stream = 2 * tb * ts * H * itemsize                 # hidden tile, double-buffered
    mask_stream = 2 * tb * ts * 4                         # int32 mask tile
    weights = 2 * 4 * (H + H * c_pad + c_pad)             # resident wa / wc / bc
    out_buf = 2 * tb * c_pad * 4
    temps = tb * ts * H * 4 + 4 * tb * ts * 4 + 2 * tb * H * 4   # f32 score product + (s,p) + pooled
    scratch = (2 * tb + tb * H) * 4 if flash else 0
    return x_stream + mask_stream + weights + out_buf + temps + scratch


def attention_classifier_forward(hidden_states, pad_mask, attn_w, cls_w, cls_b,
                                 *, tb=None, ts=None):
    """AttentionClassifier head of BertModelChoice (eval mode).

    hidden_states : (N, S, H)  encoder output (f32 or bf16; bf16 halves HBM traffic)
    pad_mask      : (N, S)     bool, True where input_ids == 0 (padding)
    attn_w        : (H,)       Attention.fc weight (Linear(H, 1, bias=False))
    cls_w         : (C, H)     classifier weight (PyTorch Linear layout)
    cls_b         : (C,)       classifier bias
    tb, ts        : optional manual tiles (tb | N, ts | S; ts < S forces the flash path
                    and must be a multiple of 128). Default: auto-sized from VMEM capacity,
                    seq axis collapsed (ts = S) whenever a row tile fits.
    returns       : (N, C) float32 logits

    Note: rows that are entirely padding produce finite (uniform-softmax) logits, whereas
    the -inf reference produces NaN.
    """
    N, S, H = hidden_states.shape
    C = cls_w.shape[0]
    itemsize = jnp.dtype(hidden_states.dtype).itemsize
    c_pad = ((C + 127) // 128) * 128                      # lane-dense output / weights
    f32 = jnp.float32

    # Per-core VMEM capacity (v5e/v6e: 128 MiB, v7x: 64 MiB); conservative fallback.
    try:
        info = pltpu.get_tpu_info()
        vmem_cap = int(getattr(info, "vmem_capacity_bytes", 0)) or (64 << 20)
    except Exception:  # pragma: no cover - defensive
        vmem_cap = 64 << 20
    usable = int(0.4 * vmem_cap)                          # planning budget with headroom

    # ---------------- tile selection ----------------
    if ts is not None:
        assert S % ts == 0, "ts must divide S"
        assert ts == S or ts % 128 == 0, "seq-tiled blocks need ts % 128 == 0"
        ts_sel = ts
    else:
        ts_sel = S                                        # preferred: collapse seq axis

    def pick_tb(ts_, flash_):
        if tb is not None:
            assert N % tb == 0, "tb must divide N"
            return tb
        divs = _divisors_desc(N)
        # Prefer >= 2 batch tiles so both v7x TensorCores get work.
        for d in divs:
            if (N // d >= 2 or N == 1) and \
               _vmem_bytes_estimate(d, ts_, H, c_pad, itemsize, flash_) <= usable:
                return d
        for d in divs:
            if _vmem_bytes_estimate(d, ts_, H, c_pad, itemsize, flash_) <= usable:
                return d
        return None

    flash = ts_sel < S
    tb_sel = pick_tb(ts_sel, flash)
    if not flash and tb_sel is None:
        # Even a single (1, S, H) row does not fit: fall back to seq-tiled online softmax.
        flash = True
        for ts_try in _divisors_desc(S):
            if ts_try < S and ts_try % 128 == 0:
                tb_try = pick_tb(ts_try, True)
                if tb_try is not None:
                    ts_sel, tb_sel = ts_try, tb_try
                    break
    assert tb_sel is not None, "could not find a tile configuration that fits in VMEM"

    # ---------------- operand prep ----------------
    wa2 = attn_w.reshape(1, H).astype(f32)
    wc_t = jnp.zeros((H, c_pad), f32).at[:, :C].set(cls_w.T.astype(f32))
    bc = jnp.zeros((1, c_pad), f32).at[:, :C].set(cls_b.astype(f32))
    # TODO(synk): an int8 mask (or per-row lengths via scalar prefetch + in-kernel iota
    # compare, which can also skip fully-padded seq tiles) would shave the remaining
    # N*S*3 bytes of mask traffic; int32 is used here for layout robustness.
    mask_i32 = pad_mask.astype(jnp.int32)

    est = _vmem_bytes_estimate(tb_sel, ts_sel, H, c_pad, itemsize, flash)
    vmem_limit = int(min(0.9 * vmem_cap, max(32 << 20, int(1.5 * est))))

    n_seq = S // ts_sel
    cost = pl.CostEstimate(
        flops=4 * N * S * H + 2 * N * H * c_pad,
        transcendentals=N * S + N * n_seq,                # softmax exps + per-tile alpha
        bytes_accessed=(N * S * H * itemsize + N * S * 4
                        + (H + H * c_pad + c_pad) * 4 + N * c_pad * 4),
    )

    # ---------------- pallas_call ----------------
    if not flash:
        out_padded = pl.pallas_call(
            _attn_cls_single_pass_kernel,
            out_shape=jax.ShapeDtypeStruct((N, c_pad), f32),
            grid=(N // tb_sel,),
            in_specs=[
                pl.BlockSpec((tb_sel, S, H), lambda bi: (bi, 0, 0)),   # streamed hidden tile
                pl.BlockSpec((tb_sel, S), lambda bi: (bi, 0)),         # int32 mask tile
                pl.BlockSpec((1, H), lambda bi: (0, 0)),               # resident attn vector
                pl.BlockSpec((H, c_pad), lambda bi: (0, 0)),           # resident classifier W
                pl.BlockSpec((1, c_pad), lambda bi: (0, 0)),           # resident classifier b
            ],
            out_specs=pl.BlockSpec((tb_sel, c_pad), lambda bi: (bi, 0)),
            compiler_params=pltpu.CompilerParams(
                dimension_semantics=("parallel",),
                vmem_limit_bytes=vmem_limit),
            cost_estimate=cost,
        )(hidden_states, mask_i32, wa2, wc_t, bc)
    else:
        out_padded = pl.pallas_call(
            _attn_cls_flash_kernel,
            out_shape=jax.ShapeDtypeStruct((N, c_pad), f32),
            grid=(N // tb_sel, S // ts_sel),
            in_specs=[
                pl.BlockSpec((tb_sel, ts_sel, H), lambda bi, si: (bi, si, 0)),
                pl.BlockSpec((tb_sel, ts_sel), lambda bi, si: (bi, si)),
                pl.BlockSpec((1, H), lambda bi, si: (0, 0)),
                pl.BlockSpec((H, c_pad), lambda bi, si: (0, 0)),
                pl.BlockSpec((1, c_pad), lambda bi, si: (0, 0)),
            ],
            out_specs=pl.BlockSpec((tb_sel, c_pad), lambda bi, si: (bi, 0)),
            scratch_shapes=[
                pltpu.VMEM((tb_sel, 1), f32),    # running max
                pltpu.VMEM((tb_sel, 1), f32),    # running sum-exp
                pltpu.VMEM((tb_sel, H), f32),    # running weighted sum
            ],
            compiler_params=pltpu.CompilerParams(
                dimension_semantics=("parallel", "arbitrary"),
                vmem_limit_bytes=vmem_limit),
            cost_estimate=cost,
        )(hidden_states, mask_i32, wa2, wc_t, bc)

    return out_padded[:, :C]


# --------------------------------------------------------------------------------------
# Pure-JAX reference (intended PyTorch forward, eval mode)
# --------------------------------------------------------------------------------------
def attention_classifier_reference(hidden_states, pad_mask, attn_w, cls_w, cls_b):
    hp = jax.lax.Precision.HIGHEST
    h = hidden_states.astype(jnp.float32)
    scores = jnp.einsum("nsh,h->ns", h, attn_w.astype(jnp.float32), precision=hp)
    scores = jnp.where(pad_mask, -jnp.inf, scores)
    p = jax.nn.softmax(scores, axis=-1)
    pooled = jnp.einsum("ns,nsh->nh", p, h, precision=hp)
    return (jnp.einsum("nh,ch->nc", pooled, cls_w.astype(jnp.float32), precision=hp)
            + cls_b.astype(jnp.float32))


if __name__ == "__main__":
    # N = batch * num_choices flattened rows (as in BertModelChoice's view(-1, L)),
    # scaled-down BERT dims: S=256 tokens, H=64 hidden, C=4 choices.
    N, S, H, C = 16, 256, 64, 4

    key = jax.random.PRNGKey(0)
    kx, kl, kw1, kw2, kb = jax.random.split(key, 5)

    hidden_states = jax.random.normal(kx, (N, S, H), dtype=jnp.float32)
    # Simulated padding mask (input_ids == 0): each row has a valid prefix of random length.
    lengths = jax.random.randint(kl, (N, 1), S // 2, S + 1)
    pad_mask = jnp.arange(S, dtype=jnp.int32)[None, :] >= lengths      # (N, S) bool

    # Synthetic head parameters (no checkpoint load).
    attn_w = jax.random.normal(kw1, (H,), dtype=jnp.float32) * 0.05
    cls_w = jax.random.normal(kw2, (C, H), dtype=jnp.float32) * 0.05
    cls_b = jax.random.normal(kb, (C,), dtype=jnp.float32) * 0.05

    ref = attention_classifier_reference(hidden_states, pad_mask, attn_w, cls_w, cls_b)

    # 1) Auto-tiled single-pass path (seq axis collapsed, 1-D fully-parallel grid).
    out = attention_classifier_forward(hidden_states, pad_mask, attn_w, cls_w, cls_b)
    out = jax.block_until_ready(out)
    assert out.shape == (N, C)
    assert jnp.allclose(out, ref, atol=5e-3, rtol=5e-3), "single-pass mismatch vs reference"

    # 2) Forced seq-tiled (online-softmax) fallback path.
    out_flash = attention_classifier_forward(hidden_states, pad_mask, attn_w, cls_w, cls_b,
                                             tb=8, ts=128)
    out_flash = jax.block_until_ready(out_flash)
    assert jnp.allclose(out_flash, ref, atol=5e-3, rtol=5e-3), "flash path mismatch vs reference"

    # 3) bf16-streamed hidden states (production dtype: halves HBM traffic), looser tolerance.
    out_bf16 = attention_classifier_forward(hidden_states.astype(jnp.bfloat16), pad_mask,
                                            attn_w, cls_w, cls_b)
    out_bf16 = jax.block_until_ready(out_bf16)
    assert jnp.allclose(out_bf16, ref, atol=5e-2, rtol=5e-2), "bf16 path mismatch vs reference"

    print("KERNEL_OK")
</pallas_src>

<mosaic_0001>
module attributes {stable_mosaic.version = 11 : i64} {
  func.func @_attn_cls_single_pass_kernel(%arg0: i32, %arg1: memref<8x256x64xf32, #tpu.memory_space<vmem>>, %arg2: memref<8x256xi32, #tpu.memory_space<vmem>>, %arg3: memref<1x64xf32, #tpu.memory_space<vmem>>, %arg4: memref<64x128xf32, #tpu.memory_space<vmem>>, %arg5: memref<1x128xf32, #tpu.memory_space<vmem>>, %arg6: memref<8x128xf32, #tpu.memory_space<vmem>>) attributes {dimension_semantics = [#tpu.dimension_semantics<parallel>], iteration_bounds = array<i64: 2>, scalar_prefetch = 0 : i64, scratch_operands = 0 : i64, tpu.core_type = #tpu.core_type<tc>, window_params = [{transform_indices = @transform_0, window_bounds = array<i64: 8, 256, 64>}, {transform_indices = @transform_1, window_bounds = array<i64: 8, 256>}, {pipeline_mode = #tpu.pipeline_mode<synchronous>, transform_indices = @transform_2, window_bounds = array<i64: 1, 64>}, {pipeline_mode = #tpu.pipeline_mode<synchronous>, transform_indices = @transform_3, window_bounds = array<i64: 64, 128>}, {pipeline_mode = #tpu.pipeline_mode<synchronous>, transform_indices = @transform_4, window_bounds = array<i64: 1, 128>}, {transform_indices = @transform_5, window_bounds = array<i64: 8, 128>}]} {
    %c0 = arith.constant 0 : index
    %c0_0 = arith.constant 0 : index
    %c0_1 = arith.constant 0 : index
    %0 = vector.load %arg1[%c0, %c0_0, %c0_1] : memref<8x256x64xf32, #tpu.memory_space<vmem>>, vector<8x256x64xf32>
    %c0_2 = arith.constant 0 : index
    %c0_3 = arith.constant 0 : index
    %1 = vector.load %arg3[%c0_2, %c0_3] : memref<1x64xf32, #tpu.memory_space<vmem>>, vector<1x64xf32>
    %2 = vector.shape_cast %1 : vector<1x64xf32> to vector<1x1x64xf32>
    %3 = vector.broadcast %2 : vector<1x1x64xf32> to vector<8x256x64xf32>
    %4 = arith.mulf %0, %3 : vector<8x256x64xf32>
    %cst = arith.constant dense<0.000000e+00> : vector<8x256xf32>
    %5 = vector.multi_reduction <add>, %4, %cst [2] : vector<8x256x64xf32> to vector<8x256xf32>
    %c0_4 = arith.constant 0 : index
    %c0_5 = arith.constant 0 : index
    %6 = vector.load %arg2[%c0_4, %c0_5] : memref<8x256xi32, #tpu.memory_space<vmem>>, vector<8x256xi32>
    %7 = arith.sitofp %6 : vector<8x256xi32> to vector<8x256xf32>
    %cst_6 = arith.constant -1.000000e+30 : f32
    %8 = vector.broadcast %cst_6 : f32 to vector<8x256xf32>
    %9 = arith.mulf %7, %8 : vector<8x256xf32>
    %10 = arith.addf %5, %9 : vector<8x256xf32>
    %cst_7 = arith.constant dense<0xFF800000> : vector<8xf32>
    %11 = vector.multi_reduction <maximumf>, %10, %cst_7 [1] : vector<8x256xf32> to vector<8xf32>
    %12 = vector.shape_cast %11 : vector<8xf32> to vector<8x1xf32>
    %13 = vector.broadcast %12 : vector<8x1xf32> to vector<8x256xf32>
    %14 = arith.subf %10, %13 : vector<8x256xf32>
    %15 = math.exp %14 : vector<8x256xf32>
    %cst_8 = arith.constant dense<0.000000e+00> : vector<8xf32>
    %16 = vector.multi_reduction <add>, %15, %cst_8 [1] : vector<8x256xf32> to vector<8xf32>
    %17 = vector.shape_cast %16 : vector<8xf32> to vector<8x1xf32>
    %18 = vector.shape_cast %15 : vector<8x256xf32> to vector<8x1x256xf32>
    "tpu.trace_start"() <{level = 10 : i32, message = "bqs,bsh->bqh"}> : () -> ()
    %cst_9 = arith.constant dense<0.000000e+00> : vector<8x1x64xf32>
    %19 = tpu.matmul %18, %0, %cst_9 {dimension_numbers = #tpu.dot_dimension_numbers<[2], [1], [1], [2], [0, 0, 0, 1, 1, 2], [0], [0]>} : vector<8x1x256xf32>, vector<8x256x64xf32>, vector<8x1x64xf32> -> vector<8x1x64xf32>
    "tpu.trace_stop"() : () -> ()
    %20 = vector.shape_cast %19 : vector<8x1x64xf32> to vector<8x64xf32>
    %21 = vector.broadcast %17 : vector<8x1xf32> to vector<8x64xf32>
    %22 = arith.divf %20, %21 : vector<8x64xf32>
    %c0_10 = arith.constant 0 : index
    %c0_11 = arith.constant 0 : index
    %23 = vector.load %arg4[%c0_10, %c0_11] : memref<64x128xf32, #tpu.memory_space<vmem>>, vector<64x128xf32>
    %cst_12 = arith.constant dense<0.000000e+00> : vector<8x128xf32>
    %24 = tpu.matmul %22, %23, %cst_12 {dimension_numbers = #tpu.dot_dimension_numbers<[1], [0], [0], [1], [0, 0, 1, 1], [], []>} : vector<8x64xf32>, vector<64x128xf32>, vector<8x128xf32> -> vector<8x128xf32>
    %c0_13 = arith.constant 0 : index
    %c0_14 = arith.constant 0 : index
    %25 = vector.load %arg5[%c0_13, %c0_14] : memref<1x128xf32, #tpu.memory_space<vmem>>, vector<1x128xf32>
    %26 = vector.broadcast %25 : vector<1x128xf32> to vector<8x128xf32>
    %27 = arith.addf %24, %26 : vector<8x128xf32>
    %c0_15 = arith.constant 0 : index
    %c0_16 = arith.constant 0 : index
    %28 = vector.load %arg6[%c0_15, %c0_16] : memref<8x128xf32, #tpu.memory_space<vmem>>, vector<8x128xf32>
    tpu.vector_store %arg6[%c0_15, %c0_16], %27 {strides = array<i32>} : memref<8x128xf32, #tpu.memory_space<vmem>>, vector<8x128xf32>,
    return
  }
  func.func @transform_0(%arg0: i32) -> (i32, i32, i32) {
    %c0_i32 = arith.constant 0 : i32
    %c0_i32_0 = arith.constant 0 : i32
    %c0_i32_1 = arith.constant 0 : i32
    return %arg0, %c0_i32, %c0_i32_0 : i32, i32, i32
  }
  func.func @transform_1(%arg0: i32) -> (i32, i32) {
    %c0_i32 = arith.constant 0 : i32
    %c0_i32_0 = arith.constant 0 : i32
    return %arg0, %c0_i32 : i32, i32
  }
  func.func @transform_2(%arg0: i32) -> (i32, i32) {
    %c0_i32 = arith.constant 0 : i32
    %c0_i32_0 = arith.constant 0 : i32
    %c0_i32_1 = arith.constant 0 : i32
    return %c0_i32, %c0_i32_0 : i32, i32
  }
  func.func @transform_3(%arg0: i32) -> (i32, i32) {
    %c0_i32 = arith.constant 0 : i32
    %c0_i32_0 = arith.constant 0 : i32
    %c0_i32_1 = arith.constant 0 : i32
    return %c0_i32, %c0_i32_0 : i32, i32
  }
  func.func @transform_4(%arg0: i32) -> (i32, i32) {
    %c0_i32 = arith.constant 0 : i32
    %c0_i32_0 = arith.constant 0 : i32
    %c0_i32_1 = arith.constant 0 : i32
    return %c0_i32, %c0_i32_0 : i32, i32
  }
  func.func @transform_5(%arg0: i32) -> (i32, i32) {
    %c0_i32 = arith.constant 0 : i32
    %c0_i32_0 = arith.constant 0 : i32
    return %arg0, %c0_i32 : i32, i32
  }
}

</mosaic_0001>

<bundles_post_ra>
// kernel: tpu_custom_call.1
= control target key start
LH: loop header
LB: loop body
LE: loop exit
PB: predicated region body
PF: predicated region fallthrough
CT: control target
= control target key end

     0   :  { %10 = vsyncpa [#allocation3], 0  ;;  %s17154_s0 = inlined_call_operand.vmem [shape: f32[16,256,64], index: 0, kind: input, shape index: {}]   ;;  %s17155_s1 = inlined_call_operand.vmem [shape: s32[16,256], index: 1, kind: input, shape index: {}]   ;;  %s17156_s2 = inlined_call_operand.vmem [shape: f32[1,64], index: 2, kind: input, shape index: {}]   ;;  %s17157_s3 = inlined_call_operand.vmem [shape: f32[64,128], index: 3, kind: input, shape index: {}]   ;;  %s17158_s4 = inlined_call_operand.vmem [shape: f32[1,128], index: 4, kind: input, shape index: {}]   ;;  %s17159_s5 = inlined_call_operand.hbm [shape: f32[16,128], index: 5, kind: output, shape index: {}]  }
   0x1   :  { %12 = vsyncpa [#allocation3 + $0x1], 0  ;;  %s10580_s18 = smov 0   ;;  %s10582_s19 = smov 0  }
   0x2   :  { %s10584_s20 = smov 0   ;;  %s10586_s21 = smov 0  }
   0x3 LB: > { %s10601_s22 = sadd.s32 4294967295, %s10544_s21   ;;  %s9393_s23 = sadd.s32 4294967294, %s10544_s21   ;;  %s10544_s21 = sphi %s10586_s21, %s19328_s21   ;;  %s10540_s20 = sphi %s10584_s20, %s19327_s20   ;;  %s10536_s19 = sphi %s10582_s19, %s19326_s19   ;;  %s10532_s18 = sphi %s10580_s18, %s19325_s18  }
   0x4   : > { %s10605_s24 = sadd.s32 1, %s10544_s21   ;;  %s140_s25 = sadd.s32 1, %s10540_s20 }
   0x5   : > { %s137_s26 = ssub.s32 %s10544_s21, %s10605_s24  ;;  %p150_p0 = scmp.ne.s32.totalorder %s10540_s20, %s10536_s19 }
   0x6   : > { %p138_p1 = scmp.eq.s32.totalorder %s137_s26, 0  ;;  %p151_p2 = scmp.eq.s32.totalorder %s10601_s22, 1 }
   0x7   : > { %p156_p3 = scmp.ne.s32.totalorder %s10536_s19, %s10532_s18  ;;  %p157_p4 = scmp.eq.s32.totalorder %s9393_s23, 1 }
   0x8   : > { %s10616_s27 = scalar_select %p138_p1, %s10540_s20, %s140_s25  }
   0x9   : > { %p10618_p5 = por %p151_p2, %p150_p0  ;;  %p10622_p6 = por %p157_p4, %p156_p3 }
   0xa   : > { %p9396_p7 = scmp.ge.s32.totalorder %s10544_s21, 1  ;;  %p202_p8 = scmp.lt.s32.totalorder %s10544_s21, 3 }
   0xc   : > { %p203_p9 = pnand %p9396_p7, %p202_p8 }
   0xe   : > { %206 = sbr.rel (%p203_p9) target bundleno = 2942 (0xb7e), region = 40 }
  0x13   : > { %s9398_s30 = sshll.u32 %s10601_s22, 3  ;;  %v10632_v0 = vld [vmem:[%s17156_s2] ss:$0 sm:$0xff]  ;;  %vm17433_vm0 = vcmask 523264   ;;  %p243_p11 = scmp.lt.s32.totalorder %s10601_s22, 1  ;;  %vm17435_vm1 = vcmask 130112  }
  0x14   : > { %p237_p10 = scmp.lt.s32.totalorder %s9398_s30, 15  ;;  %vm17436_vm2 = vcmask 195712   ;;  %vm4177_vm3 = vcmask 261312   ;;  %vm4184_vm4 = vcmask 326912   ;;  %vm4191_vm5 = vcmask 392512   ;;  %s9407_s9 = sshll.u32 %s10601_s22, 7 }
  0x15   : > { %s244_s16 = scalar_select %p243_p11, %s10601_s22, 1  ;;  %vm4198_vm6 = vcmask 458112   ;;  %vm4205_vm7 = vcmask 523712   ;;  %vm4212_vm8 = vcmask 589312   ;;  %vm4219_vm9 = vcmask 654912  }
  0x16   : > { %s19330_s30 = smov (!%p237_p10, %s9398_s30), 15  ;;  %vm17443_vm10 = vcmask 720512   ;;  %vm17441_vm11 = vcmask 786112   ;;  %vm17442_vm12 = vcmask 851712   ;;  %vm4247_vm13 = vcmask 917312   ;;  %s17119_s14 = scalar_lea.hbm %s17159_s5, %s9407_s9 }
  0x17   : > { %s9410_s6 = sshll.u32 %s19330_s30, 8  ;;  %s9411_s17 = sshll.u32 %s244_s16, 4  ;;  %vm4254_vm14 = vcmask 982912   ;;  %vm17440_vm15 = vcmask 1048512  }
  0x18   : > { %s10637_s11 = scalar_lea.vmem %s17154_s0, %s9410_s6  ;;  %s11986_s26 = scalar_lea.vmem %s17155_s1, %s9411_s17 }
  0x19   : > { %v10640_v1 = vld [vmem:[%s10637_s11 + $0x10] sm:$0xff]  ;;  %v10643_v2 = vld [vmem:[%s10637_s11] sm:$0xff]  ;;  %v10646_v3 = vld [vmem:[%s10637_s11 + $0x18] sm:$0xff]  ;;  %s233_s30 = sand.u32 1, %s10536_s19   ;;  %s10549_s17 = smov [#allocation2]  }
  0x1a   : > { %v513_v4 = vmul.f32 %v10632_v0, %v10640_v1  ;;  %v511_v5 = vmul.f32 %v10632_v0, %v10643_v2  ;;  %v514_v6 = vmul.f32 %v10632_v0, %v10646_v3  ;;  %v10655_v7 = vld [vmem:[%s10637_s11 + $0x8] sm:$0xff]  ;;  %v10663_v10 = vld [vmem:[%s10637_s11 + $0x20] sm:$0xff]  ;;  %v10674_v17 = vld [vmem:[%s10637_s11 + $0x38] sm:$0xff]  ;;  %s9397_s6 = sshll.u32 %s233_s30, 3  ;;  %s9309_s15 = scalar_lea.sflag [#allocation3], %s233_s30 }
  0x1b   : > { %v512_v8 = vmul.f32 %v10632_v0, %v10655_v7  ;;  %v10660_v9 = vld [vmem:[%s10637_s11 + $0x28] sm:$0xff]  ;;  %v515_v16 = vmul.f32 %v10632_v0, %v10663_v10  ;;  %v10677_v18 = vld [vmem:[%s10637_s11 + $0x30] sm:$0xff]  ;;  %v518_v21 = vmul.f32 %v10632_v0, %v10674_v17  ;;  %v10689_v24 = vld [vmem:[%s10637_s11 + $0x40] sm:$0xff]  ;;  %s235_s10 = scalar_lea.vmem [#allocation2], %s9397_s6  ;;  %s10488_s22 = sshll.u32 %s10549_s17, 4  ;;  %s10489_s22 = int_to_ptr.vmem [resolvable:$false] %s10488_s22 }
  0x1c   : > { %v774_v11 = vsel %vm17433_vm0, %v513_v4, 0.0  ;;  %v768_v12 = vsel %vm17433_vm0, %v511_v5, 0.0  ;;  %v777_v13 = vsel %vm17433_vm0, %v514_v6, 0.0  ;;  %v516_v15 = vmul.f32 %v10632_v0, %v10660_v9  ;;  %v10686_v23 = vld [vmem:[%s10637_s11 + $0x48] sm:$0xff]  ;;  %v10692_v25 = vld [vmem:[%s10637_s11 + $0xf8] sm:$0xff]  ;;  %v10703_v31 = vld [vmem:[%s10637_s11 + $0xf0] sm:$0xff] }
  0x1d   : > { %775 = vadd.xlane.f32.xlu1 %v774_v11  ;;  %769 = vadd.xlane.f32.xlu0 %v768_v12  ;;  %v771_v14 = vsel %vm17433_vm0, %v512_v8, 0.0  ;;  %v780_v20 = vsel %vm17433_vm0, %v515_v16, 0.0  ;;  %v517_v22 = vmul.f32 %v10632_v0, %v10677_v18  ;;  %v263_v26 = vld [vmem:[%s10637_s11 + $0x78] sm:$0xff]  ;;  %v789_v27 = vsel %vm17433_vm0, %v518_v21, 0.0  ;;  %v258_v33 = vld [vmem:[%s10637_s11 + $0x50] sm:$0xff]  ;;  %v10710_v35 = vld [vmem:[%s10637_s11 + $0xe8] sm:$0xff] }
  0x1e   : > { %v783_v19 = vsel %vm17433_vm0, %v516_v15, 0.0  ;;  %9412 = vmatprep.subr.mxu0 %v10692_v25  ;;  %v520_v29 = vmul.f32 %v10632_v0, %v10686_v23  ;;  %v519_v30 = vmul.f32 %v10632_v0, %v10689_v24  ;;  %v259_v32 = vld [vmem:[%s10637_s11 + $0x58] sm:$0xff]  ;;  %v262_v34 = vld [vmem:[%s10637_s11 + $0x70] sm:$0xff]  ;;  %v521_v39 = vmul.f32 %v10632_v0, %v258_v33  ;;  %v261_v40 = vld [vmem:[%s10637_s11 + $0x68] sm:$0xff]  ;;  %s10490_s23 = scalar_lea.vmem %s10489_s22, 256 }
  0x1f   : > { %v786_v28 = vsel %vm17433_vm0, %v517_v22, 0.0  ;;  %9413 = vmatpush3.msra.mxu0 %v263_v26  ;;  %v522_v38 = vmul.f32 %v10632_v0, %v259_v32  ;;  %v260_v41 = vld [vmem:[%s10637_s11 + $0x60] sm:$0xff]  ;;  %v10724_v43 = vld [vmem:[%s10637_s11 + $0x1f8] sm:$0xff]  ;;  %v524_v46 = vmul.f32 %v10632_v0, %v261_v40  ;;  %v10738_v50 = vld [vmem:[%s10637_s11 + $0x1f0] sm:$0xff]  ;;  %v526_v55 = vmul.f32 %v10632_v0, %v263_v26 }
  0x20   : > { %9414 = vmatprep.subr.mxu0 %v10703_v31  ;;  %v795_v36 = vsel %vm17433_vm0, %v520_v29, 0.0  ;;  %v792_v37 = vsel %vm17433_vm0, %v519_v30, 0.0  ;;  %v10720_v42 = vld [vmem:[%s10637_s11 + $0xe0] sm:$0xff]  ;;  %v798_v45 = vsel %vm17433_vm0, %v521_v39, 0.0  ;;  %v523_v47 = vmul.f32 %v10632_v0, %v260_v41  ;;  %v10731_v48 = vld [vmem:[%s10637_s11 + $0xd8] sm:$0xff]  ;;  %9447 = vmatprep.subr.mxu1 %v10724_v43  ;;  %v10744_v51 = vld [vmem:[%s10637_s11 + $0xd0] sm:$0xff] }
  0x21   : > { %778 = vadd.xlane.f32.xlu1 %v777_v13  ;;  %772 = vadd.xlane.f32.xlu0 %v771_v14  ;;  %v801_v44 = vsel %vm17433_vm0, %v522_v38, 0.0  ;;  %v10734_v49 = vld [vmem:[%s10637_s11 + $0x178] sm:$0xff]  ;;  %v10747_v52 = vld [vmem:[%s10637_s11 + $0x170] sm:$0xff]  ;;  %v807_v53 = vsel %vm17433_vm0, %v524_v46, 0.0  ;;  %v525_v56 = vmul.f32 %v10632_v0, %v262_v34  ;;  %v10754_v57 = vld [vmem:[%s10637_s11 + $0x88] sm:$0xff]  ;;  %v813_v63 = vsel %vm17433_vm0, %v526_v55, 0.0 }
  0x22   : > { %9415 = vmatpush3.msra.mxu0 %v262_v34  ;;  %9448 = vmatpush3.msra.mxu1 %v10734_v49  ;;  %v804_v54 = vsel %vm17433_vm0, %v523_v47, 0.0  ;;  %v10757_v58 = vld [vmem:[%s10637_s11 + $0x1e8] sm:$0xff]  ;;  %v10762_v59 = vld [vmem:[%s10637_s11 + $0x80] sm:$0xff]  ;;  %v528_v5 = vmul.f32 %v10632_v0, %v10754_v57  ;;  %v267_v12 = vld [vmem:[%s10637_s11 + $0x98] sm:$0xff] }
  0x23   : > { %9416 = vmatprep.subr.mxu0 %v10710_v35  ;;  %9449 = vmatprep.subr.mxu1 %v10738_v50  ;;  %v10765_v60 = vld [vmem:[%s10637_s11 + $0xc8] sm:$0xff]  ;;  %v10774_v62 = vld [vmem:[%s10637_s11 + $0x1e0] sm:$0xff]  ;;  %v810_v4 = vsel %vm17433_vm0, %v525_v56, 0.0  ;;  %v527_v6 = vmul.f32 %v10632_v0, %v10762_v59  ;;  %v10792_v13 = vld [vmem:[%s10637_s11 + $0x90] sm:$0xff]  ;;  %v530_v21 = vmul.f32 %v10632_v0, %v267_v12 }
  0x24   : > { %9417 = vmatpush3.msra.mxu0 %v261_v40  ;;  %9450 = vmatpush3.msra.mxu1 %v10747_v52  ;;  %v10768_v61 = vld [vmem:[%s10637_s11 + $0x168] sm:$0xff]  ;;  %v10783_v8 = vld [vmem:[%s10637_s11 + $0xc0] sm:$0xff]  ;;  %v10795_v14 = vld [vmem:[%s10637_s11 + $0x1d8] sm:$0xff]  ;;  %v529_v22 = vmul.f32 %v10632_v0, %v10792_v13  ;;  %v536_v47 = vmul.f32 %v10632_v0, %v10765_v60 }
  0x25   : > { %784 = vadd.xlane.f32.xlu1 %v783_v19  ;;  %781 = vadd.xlane.f32.xlu0 %v780_v20  ;;  %v10786_v11 = vld [vmem:[%s10637_s11 + $0x160] sm:$0xff]  ;;  %v271_v15 = vld [vmem:[%s10637_s11 + $0xb8] sm:$0xff]  ;;  %v819_v19 = vsel %vm17433_vm0, %v528_v5, 0.0  ;;  %v816_v20 = vsel %vm17433_vm0, %v527_v6, 0.0  ;;  %v10824_v29 = vld [vmem:[%s10637_s11 + $0x1c8] sm:$0xff]  ;;  %v825_v30 = vsel %vm17433_vm0, %v530_v21, 0.0 }
  0x26   : > { %9418 = vmatprep.subr.mxu0 %v10720_v42  ;;  %9451 = vmatprep.subr.mxu1 %v10757_v58  ;;  %v10803_v16 = vld [vmem:[%s10637_s11 + $0x158] sm:$0xff]  ;;  %v268_v26 = vld [vmem:[%s10637_s11 + $0xa0] sm:$0xff]  ;;  %v534_v39 = vmul.f32 %v10632_v0, %v271_v15  ;;  %v285_v55 = vld [vmem:[%s10637_s11 + $0x128] sm:$0xff]  ;;  %v843_v56 = vsel %vm17433_vm0, %v536_v47, 0.0 }
  0x27   : > { %9419 = vmatpush3.msra.mxu0 %v260_v41  ;;  %9452 = vmatpush3.msra.mxu1 %v10768_v61  ;;  %v531_v34 = vmul.f32 %v10632_v0, %v268_v26  ;;  %v10849_v41 = vld [vmem:[%s10637_s11 + $0x1b8] sm:$0xff] }
  0x28   : > { %9420 = vmatprep.subr.mxu0 %v10731_v48  ;;  %9453 = vmatprep.subr.mxu1 %v10774_v62  ;;  %v283_v6 = vld [vmem:[%s10637_s11 + $0x118] sm:$0xff] }
  0x29   : > { %790 = vadd.xlane.f32.xlu1 %v789_v27  ;;  %787 = vadd.xlane.f32.xlu0 %v786_v28  ;;  %v270_v27 = vld [vmem:[%s10637_s11 + $0xb0] sm:$0xff]  ;;  %v10925_v21 = vld [vmem:[%s10637_s11 + $0x2f8] sm:$0xff] }
  0x2a   : > { %9421 = vmatpush3.msra.mxu0 %v259_v32  ;;  %9454 = vmatpush3.msra.mxu1 %v10786_v11  ;;  %v10818_v28 = vld [vmem:[%s10637_s11 + $0x150] sm:$0xff]  ;;  %v822_v32 = vsel %vm17433_vm0, %v529_v22, 0.0  ;;  %v533_v40 = vmul.f32 %v10632_v0, %v270_v27 }
  0x2b   : > { %9422 = vmatprep.subr.mxu0 %v10744_v51  ;;  %9455 = vmatprep.subr.mxu1 %v10795_v14 }
  0x2c   : > { %9423 = vmatpush3.msra.mxu0 %v258_v33  ;;  %9456 = vmatpush3.msra.mxu1 %v10803_v16  ;;  %v834_v46 = vsel %vm17433_vm0, %v533_v40, 0.0 }
  0x2d   : > { %796 = vadd.xlane.f32.xlu1 %v795_v36  ;;  %793 = vadd.xlane.f32.xlu0 %v792_v37  ;;  %v10836_v36 = vld [vmem:[%s10637_s11 + $0x1c0] sm:$0xff] }
  0x2e   : > { %9424 = vmatprep.subr.mxu0 %v10765_v60  ;;  %v10842_v37 = vld [vmem:[%s10637_s11 + $0x140] sm:$0xff]  ;;  %v538_v60 = vmul.f32 %v10632_v0, %v10731_v48  ;;  %v10895_v48 = vld [vmem:[%s10637_s11 + $0x198] sm:$0xff] }
  0x2f   : > { %9425 = vmatpush3.msra.mxu0 %v10686_v23  ;;  %v269_v23 = vld [vmem:[%s10637_s11 + $0xa8] sm:$0xff] }
  0x30   : > { %9426 = vmatprep.subr.mxu0 %v10783_v8  ;;  %v532_v33 = vmul.f32 %v10632_v0, %v269_v23 }
  0x31   : > { %802 = vadd.xlane.f32.xlu1 %v801_v44  ;;  %799 = vadd.xlane.f32.xlu0 %v798_v45  ;;  %v10859_v44 = vld [vmem:[%s10637_s11 + $0x1b0] sm:$0xff]  ;;  %v837_v45 = vsel %vm17433_vm0, %v534_v39, 0.0 }
  0x32   : > { %9427 = vmatpush3.msra.mxu0 %v10689_v24  ;;  %v10812_v24 = vld [vmem:[%s10637_s11 + $0x1d0] sm:$0xff]  ;;  %v831_v38 = vsel %vm17433_vm0, %v532_v33, 0.0 }
  0x33   : > { %9428 = vmatprep.subr.mxu0 %v271_v15  ;;  %9457 = vmatprep.subr.mxu1 %v10812_v24  ;;  %v281_v15 = vld [vmem:[%s10637_s11 + $0x108] sm:$0xff] }
  0x34   : > { %9429 = vmatpush3.msra.mxu0 %v10674_v17  ;;  %9458 = vmatpush3.msra.mxu1 %v10818_v28  ;;  %v10831_v17 = vld [vmem:[%s10637_s11 + $0x148] sm:$0xff] }
  0x35   : > { %808 = vadd.xlane.f32.xlu1 %v807_v53  ;;  %805 = vadd.xlane.f32.xlu0 %v804_v54  ;;  %v10868_v53 = vld [vmem:[%s10637_s11 + $0x130] sm:$0xff]  ;;  %v10873_v54 = vld [vmem:[%s10637_s11 + $0x1a8] sm:$0xff] }
  0x36   : > { %9430 = vmatprep.subr.mxu0 %v270_v27  ;;  %9459 = vmatprep.subr.mxu1 %v10824_v29 }
  0x37   : > { %9431 = vmatpush3.msra.mxu0 %v10677_v18  ;;  %9460 = vmatpush3.msra.mxu1 %v10831_v17  ;;  %v828_v18 = vsel %vm17433_vm0, %v531_v34, 0.0 }
  0x38   : > { %9432 = vmatprep.subr.mxu0 %v269_v23  ;;  %9461 = vmatprep.subr.mxu1 %v10836_v36  ;;  %v544_v23 = vmul.f32 %v10632_v0, %v281_v15 }
  0x39   : > { %814 = vadd.xlane.f32.xlu1 %v813_v63  ;;  %811 = vadd.xlane.f32.xlu0 %v810_v4  ;;  %v537_v63 = vmul.f32 %v10632_v0, %v10744_v51  ;;  %v10887_v4 = vld [vmem:[%s10637_s11 + $0x1a0] sm:$0xff]  ;;  %v849_v51 = vsel %vm17433_vm0, %v538_v60, 0.0  ;;  %v553_v60 = vmul.f32 %v10632_v0, %v10818_v28  ;;  %v558_v28 = vmul.f32 %v10632_v0, %v10734_v49 }
  0x3a   : > { %9433 = vmatpush3.msra.mxu0 %v10660_v9  ;;  %9462 = vmatpush3.msra.mxu1 %v10842_v37  ;;  %v10853_v9 = vld [vmem:[%s10637_s11 + $0x138] sm:$0xff] }
  0x3b   : > { %9434 = vmatprep.subr.mxu0 %v268_v26  ;;  %9463 = vmatprep.subr.mxu1 %v10849_v41  ;;  %v846_v5 = vsel %vm17433_vm0, %v537_v63, 0.0  ;;  %v867_v26 = vsel %vm17433_vm0, %v544_v23, 0.0  ;;  %v572_v23 = vmul.f32 %v10632_v0, %v10757_v58  ;;  %v11020_v58 = vld [vmem:[%s10637_s11 + $0x3f8] sm:$0xff] }
  0x3c   : > { %9435 = vmatpush3.msra.mxu0 %v10663_v10  ;;  %9464 = vmatpush3.msra.mxu1 %v10853_v9  ;;  %v535_v10 = vmul.f32 %v10632_v0, %v10783_v8 }
  0x3d   : > { %820 = vadd.xlane.f32.xlu1 %v819_v19  ;;  %817 = vadd.xlane.f32.xlu0 %v816_v20  ;;  %v280_v19 = vld [vmem:[%s10637_s11 + $0x100] sm:$0xff] }
  0x3e   : > { %9436 = vmatprep.subr.mxu0 %v267_v12  ;;  %9465 = vmatprep.subr.mxu1 %v10859_v44  ;;  %v542_v12 = vmul.f32 %v10632_v0, %v10692_v25  ;;  %v296_v20 = vld [vmem:[%s10637_s11 + $0x180] sm:$0xff] }
  0x3f   : > { %9437 = vmatpush3.msra.mxu0 %v10646_v3  ;;  %9466 = vmatpush3.msra.mxu1 %v10868_v53  ;;  %v840_v3 = vsel %vm17433_vm0, %v535_v10, 0.0 }
  0x40   : > { %9438 = vmatprep.subr.mxu0 %v10792_v13  ;;  %9467 = vmatprep.subr.mxu1 %v10873_v54  ;;  %v10918_v13 = vld [vmem:[%s10637_s11 + $0x188] sm:$0xff]  ;;  %v861_v22 = vsel %vm17433_vm0, %v542_v12, 0.0  ;;  %v564_v12 = vmul.f32 %v10632_v0, %v10873_v54 }
  0x41   : > { %826 = vadd.xlane.f32.xlu1 %v825_v30  ;;  %823 = vadd.xlane.f32.xlu0 %v822_v32  ;;  %v546_v30 = vmul.f32 %v10632_v0, %v283_v6 }
  0x42   : > { %9439 = vmatpush3.msra.mxu0 %v10640_v1  ;;  %9468 = vmatpush3.msra.mxu1 %v285_v55  ;;  %v284_v1 = vld [vmem:[%s10637_s11 + $0x120] sm:$0xff] }
  0x43   : > { %9440 = vmatprep.subr.mxu0 %v10754_v57  ;;  %9469 = vmatprep.subr.mxu1 %v10887_v4  ;;  %v540_v57 = vmul.f32 %v10632_v0, %v10710_v35  ;;  %v282_v35 = vld [vmem:[%s10637_s11 + $0x110] sm:$0xff]  ;;  %v873_v33 = vsel %vm17433_vm0, %v546_v30, 0.0  ;;  %v313_v30 = vld [vmem:[%s10637_s11 + $0x208] sm:$0xff] }
  0x44   : > { %9441 = vmatpush3.msra.mxu0 %v10655_v7  ;;  %9470 = vmatpush3.msra.mxu1 %v284_v1  ;;  %v539_v7 = vmul.f32 %v10632_v0, %v10720_v42  ;;  %v545_v32 = vmul.f32 %v10632_v0, %v282_v35 }
  0x45   : > { %832 = vadd.xlane.f32.xlu1 %v831_v38  ;;  %829 = vadd.xlane.f32.xlu0 %v828_v18  ;;  %v855_v8 = vsel %vm17433_vm0, %v540_v57, 0.0  ;;  %v548_v38 = vmul.f32 %v10632_v0, %v285_v55  ;;  %v547_v18 = vmul.f32 %v10632_v0, %v284_v1  ;;  %v552_v55 = vmul.f32 %v10632_v0, %v10831_v17 }
  0x46   : > { %9442 = vmatprep.subr.mxu0 %v10762_v59  ;;  %9471 = vmatprep.subr.mxu1 %v10895_v48  ;;  %v10907_v59 = vld [vmem:[%s10637_s11 + $0x190] sm:$0xff]  ;;  %v852_v42 = vsel %vm17433_vm0, %v539_v7, 0.0  ;;  %v870_v34 = vsel %vm17433_vm0, %v545_v32, 0.0  ;;  %v894_v17 = vsel %vm17433_vm0, %v553_v60, 0.0  ;;  %v555_v1 = vmul.f32 %v10632_v0, %v10786_v11  ;;  %v312_v32 = vld [vmem:[%s10637_s11 + $0x200] sm:$0xff] }
  0x47   : > { %9443 = vmatpush3.msra.mxu0 %v10643_v2  ;;  %9472 = vmatpush3.msra.mxu1 %v283_v6  ;;  %v541_v2 = vmul.f32 %v10632_v0, %v10703_v31  ;;  %v543_v31 = vmul.f32 %v10632_v0, %v280_v19  ;;  %v879_v39 = vsel %vm17433_vm0, %v548_v38, 0.0  ;;  %v876_v40 = vsel %vm17433_vm0, %v547_v18, 0.0 }
  0x48   : > { %9473 = vmatprep.subr.mxu1 %v10907_v59  ;;  %9482 = vmatprep.subr.mxu0 %v10925_v21  ;;  %v909_v57 = vsel %vm17433_vm0, %v558_v28, 0.0  ;;  %v560_v11 = vmul.f32 %v10632_v0, %v10918_v13  ;;  %v559_v7 = vmul.f32 %v10632_v0, %v296_v20  ;;  %v575_v38 = vmul.f32 %v10632_v0, %v312_v32 }
  0x49   : > { %838 = vadd.xlane.f32.xlu1 %v837_v45  ;;  %835 = vadd.xlane.f32.xlu0 %v834_v46  ;;  %v858_v25 = vsel %vm17433_vm0, %v541_v2, 0.0  ;;  %v864_v27 = vsel %vm17433_vm0, %v543_v31, 0.0  ;;  %v550_v45 = vmul.f32 %v10632_v0, %v10853_v9  ;;  %v549_v46 = vmul.f32 %v10632_v0, %v10868_v53 }
  0x4a   : > { %9474 = vmatpush3.msra.mxu1 %v282_v35  ;;  %v554_v53 = vmul.f32 %v10632_v0, %v10803_v16  ;;  %v900_v16 = vsel %vm17433_vm0, %v555_v1, 0.0  ;;  %v915_v6 = vsel %vm17433_vm0, %v560_v11, 0.0  ;;  %v912_v49 = vsel %vm17433_vm0, %v559_v7, 0.0  ;;  %v321_v1 = vld [vmem:[%s10637_s11 + $0x248] sm:$0xff]  ;;  %v323_v7 = vld [vmem:[%s10637_s11 + $0x258] sm:$0xff] }
  0x4b   : > { %9475 = vmatprep.subr.mxu1 %v10918_v13  ;;  %v885_v47 = vsel %vm17433_vm0, %v550_v45, 0.0  ;;  %v882_v10 = vsel %vm17433_vm0, %v549_v46, 0.0  ;;  %v561_v35 = vmul.f32 %v10632_v0, %v10907_v59  ;;  %v563_v2 = vmul.f32 %v10632_v0, %v10887_v4  ;;  %v317_v46 = vld [vmem:[%s10637_s11 + $0x228] sm:$0xff] }
  0x4c   : > { %9476 = vmatpush3.msra.mxu1 %v281_v15  ;;  %v897_v63 = vsel %vm17433_vm0, %v554_v53, 0.0  ;;  %v927_v13 = vsel %vm17433_vm0, %v564_v12, 0.0  ;;  %v566_v59 = vmul.f32 %v10632_v0, %v10849_v41  ;;  %v565_v15 = vmul.f32 %v10632_v0, %v10859_v44  ;;  %v318_v53 = vld [vmem:[%s10637_s11 + $0x230] sm:$0xff] }
  0x4d   : > { %844 = vadd.xlane.f32.xlu1 %v843_v56  ;;  %841 = vadd.xlane.f32.xlu0 %v840_v3  ;;  %v551_v56 = vmul.f32 %v10632_v0, %v10842_v37  ;;  %v891_v3 = vsel %vm17433_vm0, %v552_v55, 0.0  ;;  %v556_v37 = vmul.f32 %v10632_v0, %v10768_v61  ;;  %v568_v4 = vmul.f32 %v10632_v0, %v10824_v29 }
  0x4e   : > { %9477 = vmatprep.subr.mxu1 %v296_v20  ;;  %v930_v54 = vsel %vm17433_vm0, %v565_v15, 0.0  ;;  %v567_v20 = vmul.f32 %v10632_v0, %v10836_v36  ;;  %v570_v44 = vmul.f32 %v10632_v0, %v10795_v14  ;;  %v571_v31 = vmul.f32 %v10632_v0, %v10774_v62 }
  0x4f   : > { %9478 = vmatpush3.msra.mxu1 %v280_v19  ;;  %v888_v9 = vsel %vm17433_vm0, %v551_v56, 0.0  ;;  %v933_v19 = vsel %vm17433_vm0, %v566_v59, 0.0  ;;  %v951_v14 = vsel %vm17433_vm0, %v572_v23, 0.0  ;;  %v580_v56 = vmul.f32 %v10632_v0, %v317_v46  ;;  %v332_v46 = vld [vmem:[%s10637_s11 + $0x2a0] sm:$0xff] }
  0x50   : > { %v936_v41 = vsel %vm17433_vm0, %v567_v20, 0.0  ;;  %v945_v29 = vsel %vm17433_vm0, %v570_v44, 0.0  ;;  %9517 = vmatprep.subr.mxu1 %v11020_v58  ;;  %v327_v20 = vld [vmem:[%s10637_s11 + $0x278] sm:$0xff] }
  0x51   : > { %850 = vadd.xlane.f32.xlu1 %v849_v51  ;;  %847 = vadd.xlane.f32.xlu0 %v846_v5  ;;  %v903_v51 = vsel %vm17433_vm0, %v556_v37, 0.0  ;;  %v557_v5 = vmul.f32 %v10632_v0, %v10747_v52  ;;  %v562_v52 = vmul.f32 %v10632_v0, %v10895_v48  ;;  %v924_v48 = vsel %vm17433_vm0, %v563_v2, 0.0  ;;  %v325_v2 = vld [vmem:[%s10637_s11 + $0x268] sm:$0xff] }
  0x52   : > { %v975_v60 = vsel %vm17433_vm0, %v580_v56, 0.0  ;;  %v581_v37 = vmul.f32 %v10632_v0, %v318_v53  ;;  %v335_v53 = vld [vmem:[%s10637_s11 + $0x2b8] sm:$0xff] }
  0x53   : > { %v906_v61 = vsel %vm17433_vm0, %v557_v5, 0.0 }
  0x55   : > { %856 = vadd.xlane.f32.xlu1 %v855_v8  ;;  %853 = vadd.xlane.f32.xlu0 %v852_v42  ;;  %v921_v8 = vsel %vm17433_vm0, %v562_v52, 0.0  ;;  %v918_v42 = vsel %vm17433_vm0, %v561_v35, 0.0 }
  0x59   : > { %862 = vadd.xlane.f32.xlu1 %v861_v22  ;;  %859 = vadd.xlane.f32.xlu0 %v858_v25  ;;  %v939_v22 = vsel %vm17433_vm0, %v568_v4, 0.0  ;;  %v569_v25 = vmul.f32 %v10632_v0, %v10812_v24  ;;  %v948_v24 = vsel %vm17433_vm0, %v571_v31, 0.0  ;;  %v329_v31 = vld [vmem:[%s10637_s11 + $0x288] sm:$0xff] }
  0x5a   : > { %v592_v32 = vmul.f32 %v10632_v0, %v329_v31 }
  0x5b   : > { %v942_v36 = vsel %vm17433_vm0, %v569_v25, 0.0 }
  0x5d   : > { %868 = vadd.xlane.f32.xlu1 %v867_v26  ;;  %865 = vadd.xlane.f32.xlu0 %v864_v27  ;;  %v574_v26 = vmul.f32 %v10632_v0, %v10724_v43  ;;  %v573_v27 = vmul.f32 %v10632_v0, %v10738_v50  ;;  %v315_v43 = vld [vmem:[%s10637_s11 + $0x218] sm:$0xff]  ;;  %v314_v50 = vld [vmem:[%s10637_s11 + $0x210] sm:$0xff] }
  0x5e   : > { %v577_v45 = vmul.f32 %v10632_v0, %v314_v50  ;;  %v1011_v50 = vsel %vm17433_vm0, %v592_v32, 0.0 }
  0x5f   : > { %v957_v62 = vsel %vm17433_vm0, %v574_v26, 0.0 }
  0x60   : > { %v966_v55 = vsel %vm17433_vm0, %v577_v45, 0.0  ;;  %v333_v45 = vld [vmem:[%s10637_s11 + $0x2a8] sm:$0xff] }
  0x61   : > { %874 = vadd.xlane.f32.xlu1 %v873_v33  ;;  %871 = vadd.xlane.f32.xlu0 %v870_v34  ;;  %v954_v33 = vsel %vm17433_vm0, %v573_v27, 0.0  ;;  %v576_v34 = vmul.f32 %v10632_v0, %v313_v30 }
  0x63   : > { %v963_v18 = vsel %vm17433_vm0, %v576_v34, 0.0  ;;  %v330_v34 = vld [vmem:[%s10637_s11 + $0x290] sm:$0xff] }
  0x65   : > { %880 = vadd.xlane.f32.xlu1 %v879_v39  ;;  %877 = vadd.xlane.f32.xlu0 %v876_v40  ;;  %v960_v39 = vsel %vm17433_vm0, %v575_v38, 0.0  ;;  %v578_v40 = vmul.f32 %v10632_v0, %v315_v43 }
  0x69   : > { %886 = vadd.xlane.f32.xlu1 %v885_v47  ;;  %883 = vadd.xlane.f32.xlu0 %v882_v10  ;;  %v316_v47 = vld [vmem:[%s10637_s11 + $0x220] sm:$0xff]  ;;  %v969_v10 = vsel %vm17433_vm0, %v578_v40, 0.0  ;;  %v593_v40 = vmul.f32 %v10632_v0, %v330_v34 }
  0x6b   : > { %v1014_v56 = vsel %vm17433_vm0, %v593_v40, 0.0  ;;  %v344_v40 = vld [vmem:[%s10637_s11 + $0x300] sm:$0xff] }
  0x6d   : > { %892 = vadd.xlane.f32.xlu1 %v891_v3  ;;  %889 = vadd.xlane.f32.xlu0 %v888_v9  ;;  %v579_v3 = vmul.f32 %v10632_v0, %v316_v47  ;;  %v319_v9 = vld [vmem:[%s10637_s11 + $0x238] sm:$0xff] }
  0x71   : > { %898 = vadd.xlane.f32.xlu1 %v897_v63  ;;  %895 = vadd.xlane.f32.xlu0 %v894_v17  ;;  %v972_v63 = vsel %vm17433_vm0, %v579_v3, 0.0  ;;  %v582_v17 = vmul.f32 %v10632_v0, %v319_v9  ;;  %v596_v3 = vmul.f32 %v10632_v0, %v333_v45  ;;  %v595_v9 = vmul.f32 %v10632_v0, %v332_v46 }
  0x73   : > { %v981_v5 = vsel %vm17433_vm0, %v582_v17, 0.0 }
  0x75   : > { %904 = vadd.xlane.f32.xlu1 %v903_v51  ;;  %901 = vadd.xlane.f32.xlu0 %v900_v16  ;;  %v320_v51 = vld [vmem:[%s10637_s11 + $0x240] sm:$0xff] }
  0x76   : > { %v583_v11 = vmul.f32 %v10632_v0, %v320_v51  ;;  %v598_v51 = vmul.f32 %v10632_v0, %v335_v53  ;;  %v346_v53 = vld [vmem:[%s10637_s11 + $0x310] sm:$0xff] }
  0x79   : > { %910 = vadd.xlane.f32.xlu1 %v909_v57  ;;  %907 = vadd.xlane.f32.xlu0 %v906_v61  ;;  %v978_v57 = vsel %vm17433_vm0, %v581_v37, 0.0  ;;  %v584_v61 = vmul.f32 %v10632_v0, %v321_v1  ;;  %v1023_v37 = vsel %vm17433_vm0, %v596_v3, 0.0  ;;  %v1020_v1 = vsel %vm17433_vm0, %v595_v9, 0.0  ;;  %v347_v9 = vld [vmem:[%s10637_s11 + $0x318] sm:$0xff] }
  0x7b   : > { %v987_v35 = vsel %vm17433_vm0, %v584_v61, 0.0  ;;  %v336_v61 = vld [vmem:[%s10637_s11 + $0x2c0] sm:$0xff] }
  0x7d   : > { %916 = vadd.xlane.f32.xlu1 %v915_v6  ;;  %913 = vadd.xlane.f32.xlu0 %v912_v49  ;;  %v322_v6 = vld [vmem:[%s10637_s11 + $0x250] sm:$0xff] }
  0x7e   : > { %v585_v12 = vmul.f32 %v10632_v0, %v322_v6  ;;  %v1029_v6 = vsel %vm17433_vm0, %v598_v51, 0.0 }
  0x81   : > { %922 = vadd.xlane.f32.xlu1 %v921_v8  ;;  %919 = vadd.xlane.f32.xlu0 %v918_v42  ;;  %v984_v8 = vsel %vm17433_vm0, %v583_v11, 0.0  ;;  %v586_v42 = vmul.f32 %v10632_v0, %v323_v7 }
  0x83   : > { %v993_v15 = vsel %vm17433_vm0, %v586_v42, 0.0  ;;  %v599_v42 = vmul.f32 %v10632_v0, %v336_v61  ;;  %v349_v61 = vld [vmem:[%s10637_s11 + $0x328] sm:$0xff] }
  0x85   : > { %928 = vadd.xlane.f32.xlu1 %v927_v13  ;;  %925 = vadd.xlane.f32.xlu0 %v924_v48  ;;  %v324_v13 = vld [vmem:[%s10637_s11 + $0x260] sm:$0xff] }
  0x86   : > { %v587_v4 = vmul.f32 %v10632_v0, %v324_v13 }
  0x89   : > { %934 = vadd.xlane.f32.xlu1 %v933_v19  ;;  %931 = vadd.xlane.f32.xlu0 %v930_v54  ;;  %v990_v19 = vsel %vm17433_vm0, %v585_v12, 0.0  ;;  %v588_v54 = vmul.f32 %v10632_v0, %v325_v2  ;;  %v339_v12 = vld [vmem:[%s10637_s11 + $0x2d8] sm:$0xff]  ;;  %v338_v2 = vld [vmem:[%s10637_s11 + $0x2d0] sm:$0xff] }
  0x8b   : > { %v999_v25 = vsel %vm17433_vm0, %v588_v54, 0.0  ;;  %v1032_v54 = vsel %vm17433_vm0, %v599_v42, 0.0 }
  0x8d   : > { %940 = vadd.xlane.f32.xlu1 %v939_v22  ;;  %937 = vadd.xlane.f32.xlu0 %v936_v41  ;;  %v326_v22 = vld [vmem:[%s10637_s11 + $0x270] sm:$0xff] }
  0x8e   : > { %v589_v23 = vmul.f32 %v10632_v0, %v326_v22  ;;  %v341_v22 = vld [vmem:[%s10637_s11 + $0x2e8] sm:$0xff] }
  0x90   : > { %v1002_v30 = vsel %vm17433_vm0, %v589_v23, 0.0 }
  0x91   : > { %946 = vadd.xlane.f32.xlu1 %v945_v29  ;;  %943 = vadd.xlane.f32.xlu0 %v942_v36  ;;  %v996_v29 = vsel %vm17433_vm0, %v587_v4, 0.0  ;;  %v590_v36 = vmul.f32 %v10632_v0, %v327_v20  ;;  %v602_v4 = vmul.f32 %v10632_v0, %v339_v12  ;;  %v601_v20 = vmul.f32 %v10632_v0, %v338_v2 }
  0x92   : > { %v612_v2 = vmul.f32 %v10632_v0, %v349_v61 }
  0x93   : > { %v1005_v27 = vsel %vm17433_vm0, %v590_v36, 0.0  ;;  %v1041_v23 = vsel %vm17433_vm0, %v602_v4, 0.0  ;;  %v1038_v31 = vsel %vm17433_vm0, %v601_v20, 0.0  ;;  %v350_v4 = vld [vmem:[%s10637_s11 + $0x330] sm:$0xff] }
  0x95   : > { %952 = vadd.xlane.f32.xlu1 %v951_v14  ;;  %949 = vadd.xlane.f32.xlu0 %v948_v24  ;;  %v328_v14 = vld [vmem:[%s10637_s11 + $0x280] sm:$0xff] }
  0x99   : > { %958 = vadd.xlane.f32.xlu1 %v957_v62  ;;  %955 = vadd.xlane.f32.xlu0 %v954_v33  ;;  %v591_v62 = vmul.f32 %v10632_v0, %v328_v14  ;;  %v331_v33 = vld [vmem:[%s10637_s11 + $0x298] sm:$0xff]  ;;  %v604_v14 = vmul.f32 %v10632_v0, %v341_v22 }
  0x9d   : > { %964 = vadd.xlane.f32.xlu1 %v963_v18  ;;  %961 = vadd.xlane.f32.xlu0 %v960_v39  ;;  %v1008_v18 = vsel %vm17433_vm0, %v591_v62, 0.0  ;;  %v594_v39 = vmul.f32 %v10632_v0, %v331_v33  ;;  %v1047_v33 = vsel %vm17433_vm0, %v604_v14, 0.0  ;;  %v613_v14 = vmul.f32 %v10632_v0, %v350_v4  ;;  %v358_v4 = vld [vmem:[%s10637_s11 + $0x370] sm:$0xff] }
  0xa1   : > { %970 = vadd.xlane.f32.xlu1 %v969_v10  ;;  %967 = vadd.xlane.f32.xlu0 %v966_v55  ;;  %v1017_v55 = vsel %vm17433_vm0, %v594_v39, 0.0  ;;  %v345_v39 = vld [vmem:[%s10637_s11 + $0x308] sm:$0xff] }
  0xa2   : > { %v608_v3 = vmul.f32 %v10632_v0, %v345_v39  ;;  %v11216_v39 = vld [vmem:[%s17156_s2] ss:$0 sm:$0xff] }
  0xa5   : > { %976 = vadd.xlane.f32.xlu1 %v975_v60  ;;  %973 = vadd.xlane.f32.xlu0 %v972_v63  ;;  %v334_v60 = vld [vmem:[%s10637_s11 + $0x2b0] sm:$0xff] }
  0xa6   : > { %v11047_v16 = vpop.xlane.xlu1 %775  ;;  %v11049_v28 = vpop.xlane.xlu0 %769 }
  0xa9   : > { %982 = vadd.xlane.f32.xlu1 %v981_v5  ;;  %979 = vadd.xlane.f32.xlu0 %v978_v57  ;;  %v597_v5 = vmul.f32 %v10632_v0, %v334_v60  ;;  %v337_v57 = vld [vmem:[%s10637_s11 + $0x2c8] sm:$0xff] }
  0xaa   : > { %v11057_v49 = vpop.xlane.xlu1 %778  ;;  %v11059_v52 = vpop.xlane.xlu0 %772 }
  0xad   : > { %988 = vadd.xlane.f32.xlu1 %v987_v35  ;;  %985 = vadd.xlane.f32.xlu0 %v984_v8  ;;  %v1026_v35 = vsel %vm17433_vm0, %v597_v5, 0.0  ;;  %v600_v8 = vmul.f32 %v10632_v0, %v337_v57  ;;  %v610_v5 = vmul.f32 %v10632_v0, %v347_v9  ;;  %v609_v57 = vmul.f32 %v10632_v0, %v346_v53 }
  0xae   : > { %v11067_v48 = vpop.xlane.xlu1 %784  ;;  %v11069_v59 = vpop.xlane.xlu0 %781 }
  0xaf   : > { %v1065_v42 = vsel %vm17433_vm0, %v610_v5, 0.0  ;;  %v1062_v12 = vsel %vm17433_vm0, %v609_v57, 0.0  ;;  %v357_v5 = vld [vmem:[%s10637_s11 + $0x368] sm:$0xff]  ;;  %v356_v57 = vld [vmem:[%s10637_s11 + $0x360] sm:$0xff] }
  0xb1   : > { %994 = vadd.xlane.f32.xlu1 %v993_v15  ;;  %991 = vadd.xlane.f32.xlu0 %v990_v19  ;;  %v1035_v19 = vsel %vm17433_vm0, %v600_v8, 0.0 }
  0xb2   : > { %v11077_v41 = vpop.xlane.xlu1 %790  ;;  %v11079_v44 = vpop.xlane.xlu0 %787 }
  0xb5   : > { %1000 = vadd.xlane.f32.xlu1 %v999_v25  ;;  %997 = vadd.xlane.f32.xlu0 %v996_v29  ;;  %v340_v25 = vld [vmem:[%s10637_s11 + $0x2e0] sm:$0xff] }
  0xb6   : > { %v11087_v24 = vpop.xlane.xlu1 %796  ;;  %v11089_v26 = vpop.xlane.xlu0 %793 }
  0xb9   : > { %1006 = vadd.xlane.f32.xlu1 %v1005_v27  ;;  %1003 = vadd.xlane.f32.xlu0 %v1002_v30  ;;  %v603_v27 = vmul.f32 %v10632_v0, %v340_v25  ;;  %v342_v30 = vld [vmem:[%s10637_s11 + $0x2f0] sm:$0xff]  ;;  %v1071_v25 = vsel %vm17433_vm0, %v612_v2, 0.0  ;;  %v620_v2 = vmul.f32 %v11216_v39, %v357_v5 }
  0xba   : > { %v11097_v38 = vpop.xlane.xlu1 %802  ;;  %v11099_v43 = vpop.xlane.xlu0 %799 }
  0xbb   : > { %v1044_v34 = vsel %vm17433_vm0, %v603_v27, 0.0  ;;  %v353_v27 = vld [vmem:[%s10637_s11 + $0x348] sm:$0xff] }
  0xbd   : > { %1012 = vadd.xlane.f32.xlu1 %v1011_v50  ;;  %1009 = vadd.xlane.f32.xlu0 %v1008_v18  ;;  %v606_v50 = vmul.f32 %v10632_v0, %v10925_v21  ;;  %v605_v18 = vmul.f32 %v10632_v0, %v342_v30  ;;  %v607_v21 = vmul.f32 %v10632_v0, %v344_v40  ;;  %v352_v30 = vld [vmem:[%s10637_s11 + $0x340] sm:$0xff] }
  0xbe   : > { %v11107_v47 = vpop.xlane.xlu1 %808  ;;  %v11109_v10 = vpop.xlane.xlu0 %805  ;;  %v615_v40 = vmul.f32 %v11216_v39, %v352_v30  ;;  %v621_v30 = vmul.f32 %v11216_v39, %v358_v4  ;;  %v364_v4 = vld [vmem:[%s10637_s11 + $0x3a0] sm:$0xff] }
  0xbf   : > { %v1056_v51 = vsel %vm17433_vm0, %v607_v21, 0.0 }
  0xc0   : > { %v1080_v53 = vsel %vm17433_vm0, %v615_v40, 0.0 }
  0xc1   : > { %1018 = vadd.xlane.f32.xlu1 %v1017_v55  ;;  %1015 = vadd.xlane.f32.xlu0 %v1014_v56  ;;  %v1053_v55 = vsel %vm17433_vm0, %v606_v50, 0.0  ;;  %v1050_v56 = vsel %vm17433_vm0, %v605_v18, 0.0  ;;  %v1074_v18 = vsel %vm17433_vm0, %v613_v14, 0.0 }
  0xc2   : > { %v11117_v63 = vpop.xlane.xlu1 %814  ;;  %v11119_v17 = vpop.xlane.xlu0 %811 }
  0xc5   : > { %1024 = vadd.xlane.f32.xlu1 %v1023_v37  ;;  %1021 = vadd.xlane.f32.xlu0 %v1020_v1  ;;  %v1059_v1 = vsel %vm17433_vm0, %v608_v3, 0.0 }
  0xc6   : > { %v11127_v11 = vpop.xlane.xlu1 %820  ;;  %v11129_v7 = vpop.xlane.xlu0 %817 }
  0xc9   : > { %1030 = vadd.xlane.f32.xlu1 %v1029_v6  ;;  %1027 = vadd.xlane.f32.xlu0 %v1026_v35  ;;  %v348_v6 = vld [vmem:[%s10637_s11 + $0x320] sm:$0xff] }
  0xca   : > { %v11137_v13 = vpop.xlane.xlu1 %826  ;;  %v11139_v15 = vpop.xlane.xlu0 %823 }
  0xcd   : > { %1036 = vadd.xlane.f32.xlu1 %v1035_v19  ;;  %1033 = vadd.xlane.f32.xlu0 %v1032_v54  ;;  %v611_v19 = vmul.f32 %v10632_v0, %v348_v6  ;;  %v351_v54 = vld [vmem:[%s10637_s11 + $0x338] sm:$0xff] }
  0xce   : > { %v11147_v29 = vpop.xlane.xlu1 %832  ;;  %v11149_v36 = vpop.xlane.xlu0 %829 }
  0xd1   : > { %1042 = vadd.xlane.f32.xlu1 %v1041_v23  ;;  %1039 = vadd.xlane.f32.xlu0 %v1038_v31  ;;  %v1068_v23 = vsel %vm17433_vm0, %v611_v19, 0.0  ;;  %v614_v31 = vmul.f32 %v10632_v0, %v351_v54  ;;  %v616_v0 = vmul.f32 %v11216_v39, %v353_v27  ;;  %v619_v19 = vmul.f32 %v11216_v39, %v356_v57  ;;  %v359_v54 = vld [vmem:[%s10637_s11 + $0x378] sm:$0xff] }
  0xd2   : > { %v11156_v32 = vpop.xlane.xlu1 %838  ;;  %v11158_v62 = vpop.xlane.xlu0 %835  ;;  %v622_v27 = vmul.f32 %v11216_v39, %v359_v54  ;;  %v365_v54 = vld [vmem:[%s10637_s11 + $0x3a8] sm:$0xff] }
  0xd3   : > { %v1077_v50 = vsel %vm17433_vm0, %v614_v31, 0.0  ;;  %v1083_v9 = vsel %vm17433_vm0, %v616_v0, 0.0  ;;  %v1095_v31 = vsel %vm17433_vm0, %v620_v2, 0.0  ;;  %v1092_v14 = vsel %vm17433_vm0, %v619_v19, 0.0 }
  0xd5   : > { %1048 = vadd.xlane.f32.xlu1 %v1047_v33  ;;  %1045 = vadd.xlane.f32.xlu0 %v1044_v34 }
  0xd6   : > { %v11167_v45 = vpop.xlane.xlu1 %844  ;;  %v11169_v46 = vpop.xlane.xlu0 %841 }
  0xd9   : > { %1054 = vadd.xlane.f32.xlu1 %v1053_v55  ;;  %1051 = vadd.xlane.f32.xlu0 %v1050_v56  ;;  %v355_v55 = vld [vmem:[%s10637_s11 + $0x358] sm:$0xff]  ;;  %v354_v56 = vld [vmem:[%s10637_s11 + $0x350] sm:$0xff] }
  0xda   : > { %v11177_v60 = vpop.xlane.xlu1 %850  ;;  %v11179_v37 = vpop.xlane.xlu0 %847 }
  0xdb   : > { %17446 = vst [vmem:[#allocation5_spill] sm:$0xff] %v11177_v60  ;;  %17447 = vst [vmem:[#allocation6_spill] sm:$0xff] %v11179_v37 }
  0xdd   : > { %1060 = vadd.xlane.f32.xlu1 %v1059_v1  ;;  %1057 = vadd.xlane.f32.xlu0 %v1056_v51  ;;  %v618_v1 = vmul.f32 %v11216_v39, %v355_v55  ;;  %v617_v51 = vmul.f32 %v11216_v39, %v354_v56  ;;  %v1101_v55 = vsel %vm17433_vm0, %v622_v27, 0.0  ;;  %v1098_v56 = vsel %vm17433_vm0, %v621_v30, 0.0 }
  0xde   : > { %v11187_v35 = vpop.xlane.xlu1 %856  ;;  %v11189_v8 = vpop.xlane.xlu0 %853 }
  0xdf   : > { %17448 = vst [vmem:[#allocation7_spill] sm:$0xff] %v11187_v35  ;;  %17449 = vst [vmem:[#allocation8_spill] sm:$0xff] %v11189_v8 }
  0xe1   : > { %1066 = vadd.xlane.f32.xlu1 %v1065_v42  ;;  %1063 = vadd.xlane.f32.xlu0 %v1062_v12  ;;  %v1089_v42 = vsel %vm17433_vm0, %v618_v1, 0.0  ;;  %v1086_v12 = vsel %vm17433_vm0, %v617_v51, 0.0  ;;  %v363_v1 = vld [vmem:[%s10637_s11 + $0x398] sm:$0xff]  ;;  %v362_v51 = vld [vmem:[%s10637_s11 + $0x390] sm:$0xff] }
  0xe2   : > { %v11197_v20 = vpop.xlane.xlu1 %862  ;;  %v11199_v22 = vpop.xlane.xlu0 %859  ;;  %v626_v2 = vmul.f32 %v11216_v39, %v363_v1  ;;  %v625_v19 = vmul.f32 %v11216_v39, %v362_v51 }
  0xe3   : > { %17450 = vst [vmem:[#allocation9_spill] sm:$0xff] %v11197_v20  ;;  %17451 = vst [vmem:[#allocation10_spill] sm:$0xff] %v11199_v22 }
  0xe4   : > { %v1113_v27 = vsel %vm17433_vm0, %v626_v2, 0.0  ;;  %v1110_v30 = vsel %vm17433_vm0, %v625_v19, 0.0  ;;  %v369_v2 = vld [vmem:[%s10637_s11 + $0x3c8] sm:$0xff]  ;;  %v368_v19 = vld [vmem:[%s10637_s11 + $0x3c0] sm:$0xff] }
  0xe5   : > { %1072 = vadd.xlane.f32.xlu1 %v1071_v25  ;;  %1069 = vadd.xlane.f32.xlu0 %v1068_v23 }
  0xe6   : > { %v11207_v33 = vpop.xlane.xlu1 %868  ;;  %v11209_v34 = vpop.xlane.xlu0 %865 }
  0xe7   : > { %17452 = vst [vmem:[#allocation11_spill] sm:$0xff] %v11207_v33  ;;  %17453 = vst [vmem:[#allocation12_spill] sm:$0xff] %v11209_v34 }
  0xe9   : > { %1078 = vadd.xlane.f32.xlu1 %v1077_v50  ;;  %1075 = vadd.xlane.f32.xlu0 %v1074_v18  ;;  %v361_v50 = vld [vmem:[%s10637_s11 + $0x388] sm:$0xff]  ;;  %v360_v18 = vld [vmem:[%s10637_s11 + $0x380] sm:$0xff] }
  0xea   : > { %v11222_v3 = vpop.xlane.xlu1 %874  ;;  %v11224_v21 = vpop.xlane.xlu0 %871 }
  0xeb   : > { %17454 = vst [vmem:[#allocation13_spill] sm:$0xff] %v11222_v3  ;;  %17455 = vst [vmem:[#allocation14_spill] sm:$0xff] %v11224_v21 }
  0xed   : > { %1084 = vadd.xlane.f32.xlu1 %v1083_v9  ;;  %1081 = vadd.xlane.f32.xlu0 %v1080_v53  ;;  %v624_v9 = vmul.f32 %v11216_v39, %v361_v50  ;;  %v623_v53 = vmul.f32 %v11216_v39, %v360_v18  ;;  %v628_v50 = vmul.f32 %v11216_v39, %v365_v54 }
  0xee   : > { %v11232_v61 = vpop.xlane.xlu1 %880  ;;  %v11234_v6 = vpop.xlane.xlu0 %877  ;;  %v627_v18 = vmul.f32 %v11216_v39, %v364_v4 }
  0xef   : > { %17456 = vst [vmem:[#allocation15_spill] sm:$0xff] %v11232_v61  ;;  %17457 = vst [vmem:[#allocation16_spill] sm:$0xff] %v11234_v6  ;;  %v1119_v1 = vsel %vm17433_vm0, %v628_v50, 0.0  ;;  %v632_v50 = vmul.f32 %v11216_v39, %v369_v2  ;;  %v373_v2 = vld [vmem:[%s10637_s11 + $0x3e8] sm:$0xff] }
  0xf0   : > { %v1116_v51 = vsel %vm17433_vm0, %v627_v18, 0.0  ;;  %v631_v18 = vmul.f32 %v11216_v39, %v368_v19 }
  0xf1   : > { %1090 = vadd.xlane.f32.xlu1 %v1089_v42  ;;  %1087 = vadd.xlane.f32.xlu0 %v1086_v12  ;;  %v1107_v42 = vsel %vm17433_vm0, %v624_v9, 0.0  ;;  %v1104_v12 = vsel %vm17433_vm0, %v623_v53, 0.0 }
  0xf2   : > { %v11242_v25 = vpop.xlane.xlu1 %886  ;;  %v11244_v23 = vpop.xlane.xlu0 %883 }
  0xf3   : > { %17458 = vst [vmem:[#allocation17_spill] sm:$0xff] %v11242_v25  ;;  %17459 = vst [vmem:[#allocation18_spill] sm:$0xff] %v11244_v23 }
  0xf5   : > { %1096 = vadd.xlane.f32.xlu1 %v1095_v31  ;;  %1093 = vadd.xlane.f32.xlu0 %v1092_v14 }
  0xf6   : > { %v11252_v0 = vpop.xlane.xlu1 %892  ;;  %v11254_v40 = vpop.xlane.xlu0 %889 }
  0xf7   : > { %17460 = vst [vmem:[#allocation19_spill] sm:$0xff] %v11252_v0  ;;  %17461 = vst [vmem:[#allocation20_spill] sm:$0xff] %v11254_v40 }
  0xf9   : > { %1102 = vadd.xlane.f32.xlu1 %v1101_v55  ;;  %1099 = vadd.xlane.f32.xlu0 %v1098_v56  ;;  %v367_v55 = vld [vmem:[%s10637_s11 + $0x3b8] sm:$0xff]  ;;  %v366_v56 = vld [vmem:[%s10637_s11 + $0x3b0] sm:$0xff] }
  0xfa   : > { %v11262_v5 = vpop.xlane.xlu1 %898  ;;  %v11264_v57 = vpop.xlane.xlu0 %895 }
  0xfb   : > { %17462 = vst [vmem:[#allocation21_spill] sm:$0xff] %v11262_v5  ;;  %17463 = vst [vmem:[#allocation22_spill] sm:$0xff] %v11264_v57 }
  0xfd   : > { %1108 = vadd.xlane.f32.xlu1 %v1107_v42  ;;  %1105 = vadd.xlane.f32.xlu0 %v1104_v12  ;;  %v630_v42 = vmul.f32 %v11216_v39, %v367_v55  ;;  %v629_v12 = vmul.f32 %v11216_v39, %v366_v56  ;;  %v371_v55 = vld [vmem:[%s10637_s11 + $0x3d8] sm:$0xff]  ;;  %v370_v56 = vld [vmem:[%s10637_s11 + $0x3d0] sm:$0xff] }
  0xfe   : > { %v11272_v31 = vpop.xlane.xlu1 %904  ;;  %v11274_v14 = vpop.xlane.xlu0 %901 }
  0xff   : > { %17464 = vst [vmem:[#allocation23_spill] sm:$0xff] %v11272_v31  ;;  %17465 = vst [vmem:[#allocation24_spill] sm:$0xff] %v11274_v14 }
 0x101   : > { %1114 = vadd.xlane.f32.xlu1 %v1113_v27  ;;  %1111 = vadd.xlane.f32.xlu0 %v1110_v30  ;;  %v1125_v27 = vsel %vm17433_vm0, %v630_v42, 0.0  ;;  %v1122_v30 = vsel %vm17433_vm0, %v629_v12, 0.0  ;;  %v634_v42 = vmul.f32 %v11216_v39, %v371_v55  ;;  %v633_v12 = vmul.f32 %v11216_v39, %v370_v56 }
 0x102   : > { %v11282_v9 = vpop.xlane.xlu1 %910  ;;  %v11284_v53 = vpop.xlane.xlu0 %907 }
 0x103   : > { %17466 = vst [vmem:[#allocation25_spill] sm:$0xff] %v11282_v9  ;;  %17467 = vst [vmem:[#allocation26_spill] sm:$0xff] %v11284_v53  ;;  %v372_v53 = vld [vmem:[%s10637_s11 + $0x3e0] sm:$0xff] }
 0x104   : > { %v635_v55 = vmul.f32 %v11216_v39, %v372_v53  ;;  %v376_v53 = vld [vmem:[%s10637_s11 + $0x400] sm:$0xff] }
 0x105   : > { %1120 = vadd.xlane.f32.xlu1 %v1119_v1  ;;  %1117 = vadd.xlane.f32.xlu0 %v1116_v51 }
 0x106   : > { %v11292_v54 = vpop.xlane.xlu1 %916  ;;  %v11294_v4 = vpop.xlane.xlu0 %913 }
 0x107   : > { %17468 = vst [vmem:[#allocation27_spill] sm:$0xff] %v11292_v54  ;;  %17469 = vst [vmem:[#allocation28_spill] sm:$0xff] %v11294_v4  ;;  %v1131_v4 = vsel %vm17433_vm0, %v632_v50, 0.0  ;;  %v1128_v54 = vsel %vm17433_vm0, %v631_v18, 0.0  ;;  %v1134_v50 = vsel %vm17433_vm0, %v633_v12, 0.0  ;;  %v636_v18 = vmul.f32 %v11216_v39, %v373_v2  ;;  %v377_v2 = vld [vmem:[%s10637_s11 + $0x408] sm:$0xff] }
 0x109   : > { %1126 = vadd.xlane.f32.xlu1 %v1125_v27  ;;  %1123 = vadd.xlane.f32.xlu0 %v1122_v30  ;;  %v1137_v30 = vsel %vm17433_vm0, %v634_v42, 0.0  ;;  %v638_v42 = vmul.f32 %v11216_v39, %v11020_v58  ;;  %v639_v58 = vmul.f32 %v11216_v39, %v376_v53  ;;  %v380_v53 = vld [vmem:[%s10637_s11 + $0x420] sm:$0xff] }
 0x10a   : > { %v11302_v1 = vpop.xlane.xlu1 %922  ;;  %v11304_v51 = vpop.xlane.xlu0 %919 }
 0x10b   : > { %17470 = vst [vmem:[#allocation29_spill] sm:$0xff] %v11302_v1  ;;  %17471 = vst [vmem:[#allocation30_spill] sm:$0xff] %v11304_v51  ;;  %v374_v51 = vld [vmem:[%s10637_s11 + $0x3f0] sm:$0xff] }
 0x10c   : > { %v637_v12 = vmul.f32 %v11216_v39, %v374_v51  ;;  %v378_v51 = vld [vmem:[%s10637_s11 + $0x410] sm:$0xff] }
 0x10d   : > { %1132 = vadd.xlane.f32.xlu1 %v1131_v4  ;;  %1129 = vadd.xlane.f32.xlu0 %v1128_v54  ;;  %v1143_v4 = vsel %vm17433_vm0, %v636_v18, 0.0 }
 0x10e   : > { %v11312_v19 = vpop.xlane.xlu1 %928  ;;  %v11314_v27 = vpop.xlane.xlu0 %925  ;;  %v1146_v18 = vsel %vm17433_vm0, %v637_v12, 0.0 }
 0x10f   : > { %17472 = vst [vmem:[#allocation31_spill] sm:$0xff] %v11312_v19  ;;  %17473 = vst [vmem:[#allocation32_spill] sm:$0xff] %v11314_v27  ;;  %v1140_v27 = vsel %vm17433_vm0, %v635_v55, 0.0  ;;  %v640_v55 = vmul.f32 %v11216_v39, %v377_v2  ;;  %v641_v2 = vmul.f32 %v11216_v39, %v378_v51  ;;  %v382_v51 = vld [vmem:[%s10637_s11 + $0x430] sm:$0xff] }
 0x111   : > { %1138 = vadd.xlane.f32.xlu1 %v1137_v30  ;;  %1135 = vadd.xlane.f32.xlu0 %v1134_v50 }
 0x112   : > { %v11321_v56 = vpop.xlane.xlu1 %934  ;;  %v11323_v54 = vpop.xlane.xlu0 %931 }
 0x113   : > { %17474 = vst [vmem:[#allocation33_spill] sm:$0xff] %v11321_v56  ;;  %17475 = vst [vmem:[#allocation34_spill] sm:$0xff] %v11323_v54  ;;  %v1149_v54 = vsel %vm17433_vm0, %v638_v42, 0.0  ;;  %v379_v56 = vld [vmem:[%s10637_s11 + $0x418] sm:$0xff]  ;;  %v1152_v42 = vsel %vm17433_vm0, %v639_v58, 0.0 }
 0x114   : > { %v642_v12 = vmul.f32 %v11216_v39, %v379_v56  ;;  %v643_v56 = vmul.f32 %v11216_v39, %v380_v53  ;;  %v384_v53 = vld [vmem:[%s10637_s11 + $0x440] sm:$0xff] }
 0x115   : > { %1144 = vadd.xlane.f32.xlu1 %v1143_v4  ;;  %1141 = vadd.xlane.f32.xlu0 %v1140_v27 }
 0x116   : > { %v11332_v30 = vpop.xlane.xlu1 %940  ;;  %v11334_v50 = vpop.xlane.xlu0 %937 }
 0x117   : > { %17476 = vst [vmem:[#allocation35_spill] sm:$0xff] %v11332_v30  ;;  %17477 = vst [vmem:[#allocation36_spill] sm:$0xff] %v11334_v50  ;;  %v1155_v50 = vsel %vm17433_vm0, %v640_v55, 0.0  ;;  %v381_v30 = vld [vmem:[%s10637_s11 + $0x428] sm:$0xff]  ;;  %v1158_v55 = vsel %vm17433_vm0, %v641_v2, 0.0 }
 0x118   : > { %v644_v58 = vmul.f32 %v11216_v39, %v381_v30  ;;  %v645_v30 = vmul.f32 %v11216_v39, %v382_v51  ;;  %v386_v51 = vld [vmem:[%s10637_s11 + $0x450] sm:$0xff] }
 0x119   : > { %1150 = vadd.xlane.f32.xlu1 %v1149_v54  ;;  %1147 = vadd.xlane.f32.xlu0 %v1146_v18 }
 0x11a   : > { %v11342_v4 = vpop.xlane.xlu1 %946  ;;  %v11344_v27 = vpop.xlane.xlu0 %943 }
 0x11b   : > { %17478 = vst [vmem:[#allocation37_spill] sm:$0xff] %v11342_v4  ;;  %17479 = vst [vmem:[#allocation38_spill] sm:$0xff] %v11344_v27  ;;  %v1161_v27 = vsel %vm17433_vm0, %v642_v12, 0.0  ;;  %v383_v4 = vld [vmem:[%s10637_s11 + $0x438] sm:$0xff]  ;;  %v1164_v12 = vsel %vm17433_vm0, %v643_v56, 0.0 }
 0x11c   : > { %v646_v2 = vmul.f32 %v11216_v39, %v383_v4  ;;  %v647_v4 = vmul.f32 %v11216_v39, %v384_v53  ;;  %v388_v53 = vld [vmem:[%s10637_s11 + $0x460] sm:$0xff] }
 0x11d   : > { %1156 = vadd.xlane.f32.xlu1 %v1155_v50  ;;  %1153 = vadd.xlane.f32.xlu0 %v1152_v42 }
 0x11e   : > { %v11352_v54 = vpop.xlane.xlu1 %952  ;;  %v11354_v18 = vpop.xlane.xlu0 %949 }
 0x11f   : > { %17480 = vst [vmem:[#allocation39_spill] sm:$0xff] %v11352_v54  ;;  %17481 = vst [vmem:[#allocation40_spill] sm:$0xff] %v11354_v18  ;;  %v1167_v18 = vsel %vm17433_vm0, %v644_v58, 0.0  ;;  %v385_v54 = vld [vmem:[%s10637_s11 + $0x448] sm:$0xff]  ;;  %v1170_v58 = vsel %vm17433_vm0, %v645_v30, 0.0 }
 0x120   : > { %v648_v56 = vmul.f32 %v11216_v39, %v385_v54  ;;  %v649_v54 = vmul.f32 %v11216_v39, %v386_v51  ;;  %v390_v51 = vld [vmem:[%s10637_s11 + $0x470] sm:$0xff] }
 0x121   : > { %1162 = vadd.xlane.f32.xlu1 %v1161_v27  ;;  %1159 = vadd.xlane.f32.xlu0 %v1158_v55 }
 0x122   : > { %v11362_v50 = vpop.xlane.xlu1 %958  ;;  %v11364_v42 = vpop.xlane.xlu0 %955 }
 0x123   : > { %17482 = vst [vmem:[#allocation41_spill] sm:$0xff] %v11362_v50  ;;  %17483 = vst [vmem:[#allocation42_spill] sm:$0xff] %v11364_v42  ;;  %v1173_v42 = vsel %vm17433_vm0, %v646_v2, 0.0  ;;  %v387_v50 = vld [vmem:[%s10637_s11 + $0x458] sm:$0xff]  ;;  %v1176_v2 = vsel %vm17433_vm0, %v647_v4, 0.0 }
 0x124   : > { %v650_v30 = vmul.f32 %v11216_v39, %v387_v50  ;;  %v651_v50 = vmul.f32 %v11216_v39, %v388_v53  ;;  %v392_v53 = vld [vmem:[%s10637_s11 + $0x480] sm:$0xff] }
 0x125   : > { %1168 = vadd.xlane.f32.xlu1 %v1167_v18  ;;  %1165 = vadd.xlane.f32.xlu0 %v1164_v12 }
 0x126   : > { %v11372_v27 = vpop.xlane.xlu1 %964  ;;  %v11374_v55 = vpop.xlane.xlu0 %961 }
 0x127   : > { %17484 = vst [vmem:[#allocation43_spill] sm:$0xff] %v11372_v27  ;;  %17485 = vst [vmem:[#allocation44_spill] sm:$0xff] %v11374_v55  ;;  %v1179_v55 = vsel %vm17433_vm0, %v648_v56, 0.0  ;;  %v389_v27 = vld [vmem:[%s10637_s11 + $0x468] sm:$0xff]  ;;  %v1182_v56 = vsel %vm17433_vm0, %v649_v54, 0.0 }
 0x128   : > { %v652_v4 = vmul.f32 %v11216_v39, %v389_v27  ;;  %v653_v27 = vmul.f32 %v11216_v39, %v390_v51  ;;  %v394_v51 = vld [vmem:[%s10637_s11 + $0x490] sm:$0xff] }
 0x129   : > { %1174 = vadd.xlane.f32.xlu1 %v1173_v42  ;;  %1171 = vadd.xlane.f32.xlu0 %v1170_v58 }
 0x12a   : > { %v11382_v18 = vpop.xlane.xlu1 %970  ;;  %v11384_v12 = vpop.xlane.xlu0 %967 }
 0x12b   : > { %17486 = vst [vmem:[#allocation45_spill] sm:$0xff] %v11382_v18  ;;  %17487 = vst [vmem:[#allocation46_spill] sm:$0xff] %v11384_v12  ;;  %v1185_v12 = vsel %vm17433_vm0, %v650_v30, 0.0  ;;  %v391_v18 = vld [vmem:[%s10637_s11 + $0x478] sm:$0xff]  ;;  %v1188_v30 = vsel %vm17433_vm0, %v651_v50, 0.0 }
 0x12c   : > { %v654_v54 = vmul.f32 %v11216_v39, %v391_v18  ;;  %v655_v18 = vmul.f32 %v11216_v39, %v392_v53  ;;  %v396_v53 = vld [vmem:[%s10637_s11 + $0x4a0] sm:$0xff] }
 0x12d   : > { %1180 = vadd.xlane.f32.xlu1 %v1179_v55  ;;  %1177 = vadd.xlane.f32.xlu0 %v1176_v2 }
 0x12e   : > { %v11392_v42 = vpop.xlane.xlu1 %976  ;;  %v11394_v58 = vpop.xlane.xlu0 %973 }
 0x12f   : > { %17488 = vst [vmem:[#allocation47_spill] sm:$0xff] %v11392_v42  ;;  %17489 = vst [vmem:[#allocation48_spill] sm:$0xff] %v11394_v58  ;;  %v1191_v58 = vsel %vm17433_vm0, %v652_v4, 0.0  ;;  %v393_v42 = vld [vmem:[%s10637_s11 + $0x488] sm:$0xff]  ;;  %v1194_v4 = vsel %vm17433_vm0, %v653_v27, 0.0 }
 0x130   : > { %v656_v50 = vmul.f32 %v11216_v39, %v393_v42  ;;  %v657_v42 = vmul.f32 %v11216_v39, %v394_v51  ;;  %v398_v51 = vld [vmem:[%s10637_s11 + $0x4b0] sm:$0xff] }
 0x131   : > { %1186 = vadd.xlane.f32.xlu1 %v1185_v12  ;;  %1183 = vadd.xlane.f32.xlu0 %v1182_v56 }
 0x132   : > { %v11402_v55 = vpop.xlane.xlu1 %982  ;;  %v11404_v2 = vpop.xlane.xlu0 %979 }
 0x133   : > { %17490 = vst [vmem:[#allocation49_spill] sm:$0xff] %v11402_v55  ;;  %17491 = vst [vmem:[#allocation50_spill] sm:$0xff] %v11404_v2  ;;  %v1197_v2 = vsel %vm17433_vm0, %v654_v54, 0.0  ;;  %v395_v55 = vld [vmem:[%s10637_s11 + $0x498] sm:$0xff]  ;;  %v1200_v54 = vsel %vm17433_vm0, %v655_v18, 0.0 }
 0x134   : > { %v658_v27 = vmul.f32 %v11216_v39, %v395_v55  ;;  %v659_v55 = vmul.f32 %v11216_v39, %v396_v53  ;;  %v400_v53 = vld [vmem:[%s10637_s11 + $0x4c0] sm:$0xff] }
 0x135   : > { %1192 = vadd.xlane.f32.xlu1 %v1191_v58  ;;  %1189 = vadd.xlane.f32.xlu0 %v1188_v30 }
 0x136   : > { %v11412_v12 = vpop.xlane.xlu1 %988  ;;  %v11414_v56 = vpop.xlane.xlu0 %985 }
 0x137   : > { %17492 = vst [vmem:[#allocation51_spill] sm:$0xff] %v11412_v12  ;;  %17493 = vst [vmem:[#allocation52_spill] sm:$0xff] %v11414_v56  ;;  %v1203_v56 = vsel %vm17433_vm0, %v656_v50, 0.0  ;;  %v397_v12 = vld [vmem:[%s10637_s11 + $0x4a8] sm:$0xff]  ;;  %v1206_v50 = vsel %vm17433_vm0, %v657_v42, 0.0 }
 0x138   : > { %v660_v18 = vmul.f32 %v11216_v39, %v397_v12  ;;  %v661_v12 = vmul.f32 %v11216_v39, %v398_v51  ;;  %v402_v51 = vld [vmem:[%s10637_s11 + $0x4d0] sm:$0xff] }
 0x139   : > { %1198 = vadd.xlane.f32.xlu1 %v1197_v2  ;;  %1195 = vadd.xlane.f32.xlu0 %v1194_v4 }
 0x13a   : > { %v11422_v58 = vpop.xlane.xlu1 %994  ;;  %v11424_v30 = vpop.xlane.xlu0 %991 }
 0x13b   : > { %17494 = vst [vmem:[#allocation53_spill] sm:$0xff] %v11422_v58  ;;  %17495 = vst [vmem:[#allocation54_spill] sm:$0xff] %v11424_v30  ;;  %v1209_v30 = vsel %vm17433_vm0, %v658_v27, 0.0  ;;  %v399_v58 = vld [vmem:[%s10637_s11 + $0x4b8] sm:$0xff]  ;;  %v1212_v27 = vsel %vm17433_vm0, %v659_v55, 0.0 }
 0x13c   : > { %v662_v42 = vmul.f32 %v11216_v39, %v399_v58  ;;  %v663_v58 = vmul.f32 %v11216_v39, %v400_v53  ;;  %v404_v53 = vld [vmem:[%s10637_s11 + $0x4e0] sm:$0xff] }
 0x13d   : > { %1204 = vadd.xlane.f32.xlu1 %v1203_v56  ;;  %1201 = vadd.xlane.f32.xlu0 %v1200_v54 }
 0x13e   : > { %v11432_v2 = vpop.xlane.xlu1 %1000  ;;  %v11434_v4 = vpop.xlane.xlu0 %997 }
 0x13f   : > { %17496 = vst [vmem:[#allocation55_spill] sm:$0xff] %v11432_v2  ;;  %17497 = vst [vmem:[#allocation56_spill] sm:$0xff] %v11434_v4  ;;  %v1215_v4 = vsel %vm17433_vm0, %v660_v18, 0.0  ;;  %v401_v2 = vld [vmem:[%s10637_s11 + $0x4c8] sm:$0xff]  ;;  %v1218_v18 = vsel %vm17433_vm0, %v661_v12, 0.0 }
 0x140   : > { %v664_v55 = vmul.f32 %v11216_v39, %v401_v2  ;;  %v665_v2 = vmul.f32 %v11216_v39, %v402_v51  ;;  %v406_v51 = vld [vmem:[%s10637_s11 + $0x4f0] sm:$0xff] }
 0x141   : > { %1210 = vadd.xlane.f32.xlu1 %v1209_v30  ;;  %1207 = vadd.xlane.f32.xlu0 %v1206_v50 }
 0x142   : > { %v11442_v56 = vpop.xlane.xlu1 %1006  ;;  %v11444_v54 = vpop.xlane.xlu0 %1003 }
 0x143   : > { %17498 = vst [vmem:[#allocation57_spill] sm:$0xff] %v11442_v56  ;;  %17499 = vst [vmem:[#allocation58_spill] sm:$0xff] %v11444_v54  ;;  %v1221_v54 = vsel %vm17433_vm0, %v662_v42, 0.0  ;;  %v403_v56 = vld [vmem:[%s10637_s11 + $0x4d8] sm:$0xff]  ;;  %v1224_v42 = vsel %vm17433_vm0, %v663_v58, 0.0 }
 0x144   : > { %v666_v12 = vmul.f32 %v11216_v39, %v403_v56  ;;  %v667_v56 = vmul.f32 %v11216_v39, %v404_v53  ;;  %v408_v53 = vld [vmem:[%s10637_s11 + $0x500] sm:$0xff] }
 0x145   : > { %1216 = vadd.xlane.f32.xlu1 %v1215_v4  ;;  %1213 = vadd.xlane.f32.xlu0 %v1212_v27 }
 0x146   : > { %v11452_v30 = vpop.xlane.xlu1 %1012  ;;  %v11454_v50 = vpop.xlane.xlu0 %1009 }
 0x147   : > { %17500 = vst [vmem:[#allocation59_spill] sm:$0xff] %v11452_v30  ;;  %17501 = vst [vmem:[#allocation60_spill] sm:$0xff] %v11454_v50  ;;  %v1227_v50 = vsel %vm17433_vm0, %v664_v55, 0.0  ;;  %v405_v30 = vld [vmem:[%s10637_s11 + $0x4e8] sm:$0xff]  ;;  %v1230_v55 = vsel %vm17433_vm0, %v665_v2, 0.0 }
 0x148   : > { %v668_v58 = vmul.f32 %v11216_v39, %v405_v30  ;;  %v669_v30 = vmul.f32 %v11216_v39, %v406_v51  ;;  %v410_v51 = vld [vmem:[%s10637_s11 + $0x510] sm:$0xff] }
 0x149   : > { %1222 = vadd.xlane.f32.xlu1 %v1221_v54  ;;  %1219 = vadd.xlane.f32.xlu0 %v1218_v18 }
 0x14a   : > { %v11462_v4 = vpop.xlane.xlu1 %1018  ;;  %v11464_v27 = vpop.xlane.xlu0 %1015 }
 0x14b   : > { %17502 = vst [vmem:[#allocation61_spill] sm:$0xff] %v11462_v4  ;;  %17503 = vst [vmem:[#allocation62_spill] sm:$0xff] %v11464_v27  ;;  %v1233_v27 = vsel %vm17433_vm0, %v666_v12, 0.0  ;;  %v407_v4 = vld [vmem:[%s10637_s11 + $0x4f8] sm:$0xff]  ;;  %v1236_v12 = vsel %vm17433_vm0, %v667_v56, 0.0 }
 0x14c   : > { %v670_v2 = vmul.f32 %v11216_v39, %v407_v4  ;;  %v671_v4 = vmul.f32 %v11216_v39, %v408_v53  ;;  %v412_v53 = vld [vmem:[%s10637_s11 + $0x520] sm:$0xff] }
 0x14d   : > { %1228 = vadd.xlane.f32.xlu1 %v1227_v50  ;;  %1225 = vadd.xlane.f32.xlu0 %v1224_v42 }
 0x14e   : > { %v11472_v54 = vpop.xlane.xlu1 %1024  ;;  %v11474_v18 = vpop.xlane.xlu0 %1021 }
 0x14f   : > { %17504 = vst [vmem:[#allocation63_spill] sm:$0xff] %v11472_v54  ;;  %17505 = vst [vmem:[#allocation64_spill] sm:$0xff] %v11474_v18  ;;  %v1239_v18 = vsel %vm17433_vm0, %v668_v58, 0.0  ;;  %v409_v54 = vld [vmem:[%s10637_s11 + $0x508] sm:$0xff]  ;;  %v1242_v58 = vsel %vm17433_vm0, %v669_v30, 0.0 }
 0x150   : > { %v672_v56 = vmul.f32 %v11216_v39, %v409_v54  ;;  %v673_v54 = vmul.f32 %v11216_v39, %v410_v51  ;;  %v414_v51 = vld [vmem:[%s10637_s11 + $0x530] sm:$0xff] }
 0x151   : > { %1234 = vadd.xlane.f32.xlu1 %v1233_v27  ;;  %1231 = vadd.xlane.f32.xlu0 %v1230_v55 }
 0x152   : > { %v11482_v50 = vpop.xlane.xlu1 %1030  ;;  %v11484_v42 = vpop.xlane.xlu0 %1027 }
 0x153   : > { %17506 = vst [vmem:[#allocation65_spill] sm:$0xff] %v11482_v50  ;;  %17507 = vst [vmem:[#allocation66_spill] sm:$0xff] %v11484_v42  ;;  %v1245_v42 = vsel %vm17433_vm0, %v670_v2, 0.0  ;;  %v411_v50 = vld [vmem:[%s10637_s11 + $0x518] sm:$0xff]  ;;  %v1248_v2 = vsel %vm17433_vm0, %v671_v4, 0.0 }
 0x154   : > { %v674_v30 = vmul.f32 %v11216_v39, %v411_v50  ;;  %v675_v50 = vmul.f32 %v11216_v39, %v412_v53  ;;  %v416_v53 = vld [vmem:[%s10637_s11 + $0x540] sm:$0xff] }
 0x155   : > { %1240 = vadd.xlane.f32.xlu1 %v1239_v18  ;;  %1237 = vadd.xlane.f32.xlu0 %v1236_v12 }
 0x156   : > { %v11492_v27 = vpop.xlane.xlu1 %1036  ;;  %v11494_v55 = vpop.xlane.xlu0 %1033 }
 0x157   : > { %17508 = vst [vmem:[#allocation67_spill] sm:$0xff] %v11492_v27  ;;  %17509 = vst [vmem:[#allocation68_spill] sm:$0xff] %v11494_v55  ;;  %v1251_v55 = vsel %vm17433_vm0, %v672_v56, 0.0  ;;  %v413_v27 = vld [vmem:[%s10637_s11 + $0x528] sm:$0xff]  ;;  %v1254_v56 = vsel %vm17433_vm0, %v673_v54, 0.0 }
 0x158   : > { %v676_v4 = vmul.f32 %v11216_v39, %v413_v27  ;;  %v677_v27 = vmul.f32 %v11216_v39, %v414_v51  ;;  %v418_v51 = vld [vmem:[%s10637_s11 + $0x550] sm:$0xff] }
 0x159   : > { %1246 = vadd.xlane.f32.xlu1 %v1245_v42  ;;  %1243 = vadd.xlane.f32.xlu0 %v1242_v58 }
 0x15a   : > { %v11502_v18 = vpop.xlane.xlu1 %1042  ;;  %v11504_v12 = vpop.xlane.xlu0 %1039 }
 0x15b   : > { %17510 = vst [vmem:[#allocation69_spill] sm:$0xff] %v11502_v18  ;;  %17511 = vst [vmem:[#allocation70_spill] sm:$0xff] %v11504_v12  ;;  %v1257_v12 = vsel %vm17433_vm0, %v674_v30, 0.0  ;;  %v415_v18 = vld [vmem:[%s10637_s11 + $0x538] sm:$0xff]  ;;  %v1260_v30 = vsel %vm17433_vm0, %v675_v50, 0.0 }
 0x15c   : > { %v678_v54 = vmul.f32 %v11216_v39, %v415_v18  ;;  %v679_v18 = vmul.f32 %v11216_v39, %v416_v53  ;;  %v420_v53 = vld [vmem:[%s10637_s11 + $0x560] sm:$0xff] }
 0x15d   : > { %1252 = vadd.xlane.f32.xlu1 %v1251_v55  ;;  %1249 = vadd.xlane.f32.xlu0 %v1248_v2 }
 0x15e   : > { %v11512_v42 = vpop.xlane.xlu1 %1048  ;;  %v11514_v58 = vpop.xlane.xlu0 %1045 }
 0x15f   : > { %17512 = vst [vmem:[#allocation71_spill] sm:$0xff] %v11512_v42  ;;  %17513 = vst [vmem:[#allocation72_spill] sm:$0xff] %v11514_v58  ;;  %v1263_v58 = vsel %vm17433_vm0, %v676_v4, 0.0  ;;  %v417_v42 = vld [vmem:[%s10637_s11 + $0x548] sm:$0xff]  ;;  %v1266_v4 = vsel %vm17433_vm0, %v677_v27, 0.0 }
 0x160   : > { %v680_v50 = vmul.f32 %v11216_v39, %v417_v42  ;;  %v681_v42 = vmul.f32 %v11216_v39, %v418_v51  ;;  %v422_v51 = vld [vmem:[%s10637_s11 + $0x570] sm:$0xff] }
 0x161   : > { %1258 = vadd.xlane.f32.xlu1 %v1257_v12  ;;  %1255 = vadd.xlane.f32.xlu0 %v1254_v56 }
 0x162   : > { %v11522_v55 = vpop.xlane.xlu1 %1054  ;;  %v11524_v2 = vpop.xlane.xlu0 %1051 }
 0x163   : > { %17514 = vst [vmem:[#allocation73_spill] sm:$0xff] %v11522_v55  ;;  %17515 = vst [vmem:[#allocation74_spill] sm:$0xff] %v11524_v2  ;;  %v1269_v2 = vsel %vm17433_vm0, %v678_v54, 0.0  ;;  %v419_v55 = vld [vmem:[%s10637_s11 + $0x558] sm:$0xff]  ;;  %v1272_v54 = vsel %vm17433_vm0, %v679_v18, 0.0 }
 0x164   : > { %v682_v27 = vmul.f32 %v11216_v39, %v419_v55  ;;  %v683_v55 = vmul.f32 %v11216_v39, %v420_v53  ;;  %v424_v53 = vld [vmem:[%s10637_s11 + $0x580] sm:$0xff] }
 0x165   : > { %1264 = vadd.xlane.f32.xlu1 %v1263_v58  ;;  %1261 = vadd.xlane.f32.xlu0 %v1260_v30 }
 0x166   : > { %v11532_v12 = vpop.xlane.xlu1 %1060  ;;  %v11534_v56 = vpop.xlane.xlu0 %1057 }
 0x167   : > { %17516 = vst [vmem:[#allocation75_spill] sm:$0xff] %v11532_v12  ;;  %17517 = vst [vmem:[#allocation76_spill] sm:$0xff] %v11534_v56  ;;  %v1275_v56 = vsel %vm17433_vm0, %v680_v50, 0.0  ;;  %v421_v12 = vld [vmem:[%s10637_s11 + $0x568] sm:$0xff]  ;;  %v1278_v50 = vsel %vm17433_vm0, %v681_v42, 0.0 }
 0x168   : > { %v684_v18 = vmul.f32 %v11216_v39, %v421_v12  ;;  %v685_v12 = vmul.f32 %v11216_v39, %v422_v51  ;;  %v426_v51 = vld [vmem:[%s10637_s11 + $0x590] sm:$0xff] }
 0x169   : > { %1270 = vadd.xlane.f32.xlu1 %v1269_v2  ;;  %1267 = vadd.xlane.f32.xlu0 %v1266_v4 }
 0x16a   : > { %v11542_v58 = vpop.xlane.xlu1 %1066  ;;  %v11544_v30 = vpop.xlane.xlu0 %1063 }
 0x16b   : > { %17518 = vst [vmem:[#allocation77_spill] sm:$0xff] %v11542_v58  ;;  %17519 = vst [vmem:[#allocation78_spill] sm:$0xff] %v11544_v30  ;;  %v1281_v30 = vsel %vm17433_vm0, %v682_v27, 0.0  ;;  %v423_v58 = vld [vmem:[%s10637_s11 + $0x578] sm:$0xff]  ;;  %v1284_v27 = vsel %vm17433_vm0, %v683_v55, 0.0 }
 0x16c   : > { %v686_v42 = vmul.f32 %v11216_v39, %v423_v58  ;;  %v687_v58 = vmul.f32 %v11216_v39, %v424_v53  ;;  %v428_v53 = vld [vmem:[%s10637_s11 + $0x5a0] sm:$0xff] }
 0x16d   : > { %1276 = vadd.xlane.f32.xlu1 %v1275_v56  ;;  %1273 = vadd.xlane.f32.xlu0 %v1272_v54 }
 0x16e   : > { %v11552_v2 = vpop.xlane.xlu1 %1072  ;;  %v11554_v4 = vpop.xlane.xlu0 %1069 }
 0x16f   : > { %17520 = vst [vmem:[#allocation79_spill] sm:$0xff] %v11552_v2  ;;  %17521 = vst [vmem:[#allocation80_spill] sm:$0xff] %v11554_v4  ;;  %v1287_v4 = vsel %vm17433_vm0, %v684_v18, 0.0  ;;  %v425_v2 = vld [vmem:[%s10637_s11 + $0x588] sm:$0xff]  ;;  %v1290_v18 = vsel %vm17433_vm0, %v685_v12, 0.0 }
 0x170   : > { %v688_v55 = vmul.f32 %v11216_v39, %v425_v2  ;;  %v689_v2 = vmul.f32 %v11216_v39, %v426_v51  ;;  %v430_v51 = vld [vmem:[%s10637_s11 + $0x5b0] sm:$0xff] }
 0x171   : > { %1282 = vadd.xlane.f32.xlu1 %v1281_v30  ;;  %1279 = vadd.xlane.f32.xlu0 %v1278_v50 }
 0x172   : > { %v11562_v56 = vpop.xlane.xlu1 %1078  ;;  %v11564_v54 = vpop.xlane.xlu0 %1075 }
 0x173   : > { %17522 = vst [vmem:[#allocation81_spill] sm:$0xff] %v11562_v56  ;;  %17523 = vst [vmem:[#allocation82_spill] sm:$0xff] %v11564_v54  ;;  %v1293_v54 = vsel %vm17433_vm0, %v686_v42, 0.0  ;;  %v427_v56 = vld [vmem:[%s10637_s11 + $0x598] sm:$0xff]  ;;  %v1296_v42 = vsel %vm17433_vm0, %v687_v58, 0.0 }
 0x174   : > { %v690_v12 = vmul.f32 %v11216_v39, %v427_v56  ;;  %v691_v56 = vmul.f32 %v11216_v39, %v428_v53  ;;  %v432_v53 = vld [vmem:[%s10637_s11 + $0x5c0] sm:$0xff] }
 0x175   : > { %1288 = vadd.xlane.f32.xlu1 %v1287_v4  ;;  %1285 = vadd.xlane.f32.xlu0 %v1284_v27 }
 0x176   : > { %v11572_v30 = vpop.xlane.xlu1 %1084  ;;  %v11574_v50 = vpop.xlane.xlu0 %1081 }
 0x177   : > { %17524 = vst [vmem:[#allocation83_spill] sm:$0xff] %v11572_v30  ;;  %17525 = vst [vmem:[#allocation84_spill] sm:$0xff] %v11574_v50  ;;  %v1299_v50 = vsel %vm17433_vm0, %v688_v55, 0.0  ;;  %v429_v30 = vld [vmem:[%s10637_s11 + $0x5a8] sm:$0xff]  ;;  %v1302_v55 = vsel %vm17433_vm0, %v689_v2, 0.0 }
 0x178   : > { %v692_v58 = vmul.f32 %v11216_v39, %v429_v30  ;;  %v693_v30 = vmul.f32 %v11216_v39, %v430_v51  ;;  %v434_v51 = vld [vmem:[%s10637_s11 + $0x5d0] sm:$0xff] }
 0x179   : > { %1294 = vadd.xlane.f32.xlu1 %v1293_v54  ;;  %1291 = vadd.xlane.f32.xlu0 %v1290_v18 }
 0x17a   : > { %v11582_v4 = vpop.xlane.xlu1 %1090  ;;  %v11584_v27 = vpop.xlane.xlu0 %1087 }
 0x17b   : > { %17526 = vst [vmem:[#allocation85_spill] sm:$0xff] %v11582_v4  ;;  %17527 = vst [vmem:[#allocation86_spill] sm:$0xff] %v11584_v27  ;;  %v1305_v27 = vsel %vm17433_vm0, %v690_v12, 0.0  ;;  %v431_v4 = vld [vmem:[%s10637_s11 + $0x5b8] sm:$0xff]  ;;  %v1308_v12 = vsel %vm17433_vm0, %v691_v56, 0.0 }
 0x17c   : > { %v694_v2 = vmul.f32 %v11216_v39, %v431_v4  ;;  %v695_v4 = vmul.f32 %v11216_v39, %v432_v53  ;;  %v436_v53 = vld [vmem:[%s10637_s11 + $0x5e0] sm:$0xff] }
 0x17d   : > { %1300 = vadd.xlane.f32.xlu1 %v1299_v50  ;;  %1297 = vadd.xlane.f32.xlu0 %v1296_v42 }
 0x17e   : > { %v11592_v54 = vpop.xlane.xlu1 %1096  ;;  %v11594_v18 = vpop.xlane.xlu0 %1093 }
 0x17f   : > { %17528 = vst [vmem:[#allocation87_spill] sm:$0xff] %v11592_v54  ;;  %17529 = vst [vmem:[#allocation88_spill] sm:$0xff] %v11594_v18  ;;  %v1311_v18 = vsel %vm17433_vm0, %v692_v58, 0.0  ;;  %v433_v54 = vld [vmem:[%s10637_s11 + $0x5c8] sm:$0xff]  ;;  %v1314_v58 = vsel %vm17433_vm0, %v693_v30, 0.0 }
 0x180   : > { %v696_v56 = vmul.f32 %v11216_v39, %v433_v54  ;;  %v697_v54 = vmul.f32 %v11216_v39, %v434_v51  ;;  %v438_v51 = vld [vmem:[%s10637_s11 + $0x5f0] sm:$0xff] }
 0x181   : > { %1306 = vadd.xlane.f32.xlu1 %v1305_v27  ;;  %1303 = vadd.xlane.f32.xlu0 %v1302_v55 }
 0x182   : > { %v11602_v50 = vpop.xlane.xlu1 %1102  ;;  %v11604_v42 = vpop.xlane.xlu0 %1099 }
 0x183   : > { %17530 = vst [vmem:[#allocation89_spill] sm:$0xff] %v11602_v50  ;;  %17531 = vst [vmem:[#allocation90_spill] sm:$0xff] %v11604_v42  ;;  %v1317_v42 = vsel %vm17433_vm0, %v694_v2, 0.0  ;;  %v435_v50 = vld [vmem:[%s10637_s11 + $0x5d8] sm:$0xff]  ;;  %v1320_v2 = vsel %vm17433_vm0, %v695_v4, 0.0 }
 0x184   : > { %v698_v30 = vmul.f32 %v11216_v39, %v435_v50  ;;  %v699_v50 = vmul.f32 %v11216_v39, %v436_v53  ;;  %v440_v53 = vld [vmem:[%s10637_s11 + $0x600] sm:$0xff] }
 0x185   : > { %1312 = vadd.xlane.f32.xlu1 %v1311_v18  ;;  %1309 = vadd.xlane.f32.xlu0 %v1308_v12 }
 0x186   : > { %v11612_v27 = vpop.xlane.xlu1 %1108  ;;  %v11614_v55 = vpop.xlane.xlu0 %1105 }
 0x187   : > { %17532 = vst [vmem:[#allocation91_spill] sm:$0xff] %v11612_v27  ;;  %17533 = vst [vmem:[#allocation92_spill] sm:$0xff] %v11614_v55  ;;  %v1323_v55 = vsel %vm17433_vm0, %v696_v56, 0.0  ;;  %v437_v27 = vld [vmem:[%s10637_s11 + $0x5e8] sm:$0xff]  ;;  %v1326_v56 = vsel %vm17433_vm0, %v697_v54, 0.0 }
 0x188   : > { %v700_v4 = vmul.f32 %v11216_v39, %v437_v27  ;;  %v701_v27 = vmul.f32 %v11216_v39, %v438_v51  ;;  %v442_v51 = vld [vmem:[%s10637_s11 + $0x610] sm:$0xff] }
 0x189   : > { %1318 = vadd.xlane.f32.xlu1 %v1317_v42  ;;  %1315 = vadd.xlane.f32.xlu0 %v1314_v58 }
 0x18a   : > { %v11622_v18 = vpop.xlane.xlu1 %1114  ;;  %v11624_v12 = vpop.xlane.xlu0 %1111 }
 0x18b   : > { %17534 = vst [vmem:[#allocation93_spill] sm:$0xff] %v11622_v18  ;;  %17535 = vst [vmem:[#allocation94_spill] sm:$0xff] %v11624_v12  ;;  %v1329_v12 = vsel %vm17433_vm0, %v698_v30, 0.0  ;;  %v439_v18 = vld [vmem:[%s10637_s11 + $0x5f8] sm:$0xff]  ;;  %v1332_v30 = vsel %vm17433_vm0, %v699_v50, 0.0 }
 0x18c   : > { %v702_v54 = vmul.f32 %v11216_v39, %v439_v18  ;;  %v703_v18 = vmul.f32 %v11216_v39, %v440_v53  ;;  %v444_v53 = vld [vmem:[%s10637_s11 + $0x620] sm:$0xff] }
 0x18d   : > { %1324 = vadd.xlane.f32.xlu1 %v1323_v55  ;;  %1321 = vadd.xlane.f32.xlu0 %v1320_v2 }
 0x18e   : > { %v11632_v42 = vpop.xlane.xlu1 %1120  ;;  %v11634_v58 = vpop.xlane.xlu0 %1117 }
 0x18f   : > { %17536 = vst [vmem:[#allocation95_spill] sm:$0xff] %v11632_v42  ;;  %17537 = vst [vmem:[#allocation96_spill] sm:$0xff] %v11634_v58  ;;  %v1335_v58 = vsel %vm17433_vm0, %v700_v4, 0.0  ;;  %v441_v42 = vld [vmem:[%s10637_s11 + $0x608] sm:$0xff]  ;;  %v1338_v4 = vsel %vm17433_vm0, %v701_v27, 0.0 }
 0x190   : > { %v704_v50 = vmul.f32 %v11216_v39, %v441_v42  ;;  %v705_v42 = vmul.f32 %v11216_v39, %v442_v51  ;;  %v446_v51 = vld [vmem:[%s10637_s11 + $0x630] sm:$0xff] }
 0x191   : > { %1330 = vadd.xlane.f32.xlu1 %v1329_v12  ;;  %1327 = vadd.xlane.f32.xlu0 %v1326_v56 }
 0x192   : > { %v11642_v55 = vpop.xlane.xlu1 %1126  ;;  %v11644_v2 = vpop.xlane.xlu0 %1123 }
 0x193   : > { %17538 = vst [vmem:[#allocation97_spill] sm:$0xff] %v11642_v55  ;;  %17539 = vst [vmem:[#allocation98_spill] sm:$0xff] %v11644_v2  ;;  %v1341_v2 = vsel %vm17433_vm0, %v702_v54, 0.0  ;;  %v443_v55 = vld [vmem:[%s10637_s11 + $0x618] sm:$0xff]  ;;  %v1344_v54 = vsel %vm17433_vm0, %v703_v18, 0.0 }
 0x194   : > { %v706_v27 = vmul.f32 %v11216_v39, %v443_v55  ;;  %v707_v55 = vmul.f32 %v11216_v39, %v444_v53  ;;  %v448_v53 = vld [vmem:[%s10637_s11 + $0x640] sm:$0xff] }
 0x195   : > { %1336 = vadd.xlane.f32.xlu1 %v1335_v58  ;;  %1333 = vadd.xlane.f32.xlu0 %v1332_v30 }
 0x196   : > { %v11652_v12 = vpop.xlane.xlu1 %1132  ;;  %v11654_v56 = vpop.xlane.xlu0 %1129 }
 0x197   : > { %17540 = vst [vmem:[#allocation99_spill] sm:$0xff] %v11652_v12  ;;  %17541 = vst [vmem:[#allocation100_spill] sm:$0xff] %v11654_v56  ;;  %v1347_v56 = vsel %vm17433_vm0, %v704_v50, 0.0  ;;  %v445_v12 = vld [vmem:[%s10637_s11 + $0x628] sm:$0xff]  ;;  %v1350_v50 = vsel %vm17433_vm0, %v705_v42, 0.0 }
 0x198   : > { %v708_v18 = vmul.f32 %v11216_v39, %v445_v12  ;;  %v709_v12 = vmul.f32 %v11216_v39, %v446_v51  ;;  %v450_v51 = vld [vmem:[%s10637_s11 + $0x650] sm:$0xff] }
 0x199   : > { %1342 = vadd.xlane.f32.xlu1 %v1341_v2  ;;  %1339 = vadd.xlane.f32.xlu0 %v1338_v4 }
 0x19a   : > { %v11662_v58 = vpop.xlane.xlu1 %1138  ;;  %v11664_v30 = vpop.xlane.xlu0 %1135 }
 0x19b   : > { %17542 = vst [vmem:[#allocation101_spill] sm:$0xff] %v11662_v58  ;;  %17543 = vst [vmem:[#allocation102_spill] sm:$0xff] %v11664_v30  ;;  %v1353_v30 = vsel %vm17433_vm0, %v706_v27, 0.0  ;;  %v447_v58 = vld [vmem:[%s10637_s11 + $0x638] sm:$0xff]  ;;  %v1356_v27 = vsel %vm17433_vm0, %v707_v55, 0.0 }
 0x19c   : > { %v710_v42 = vmul.f32 %v11216_v39, %v447_v58  ;;  %v711_v58 = vmul.f32 %v11216_v39, %v448_v53  ;;  %v452_v53 = vld [vmem:[%s10637_s11 + $0x660] sm:$0xff] }
 0x19d   : > { %1348 = vadd.xlane.f32.xlu1 %v1347_v56  ;;  %1345 = vadd.xlane.f32.xlu0 %v1344_v54 }
 0x19e   : > { %v11672_v2 = vpop.xlane.xlu1 %1144  ;;  %v11674_v4 = vpop.xlane.xlu0 %1141 }
 0x19f   : > { %17544 = vst [vmem:[#allocation103_spill] sm:$0xff] %v11672_v2  ;;  %17545 = vst [vmem:[#allocation104_spill] sm:$0xff] %v11674_v4  ;;  %v1359_v4 = vsel %vm17433_vm0, %v708_v18, 0.0  ;;  %v449_v2 = vld [vmem:[%s10637_s11 + $0x648] sm:$0xff]  ;;  %v1362_v18 = vsel %vm17433_vm0, %v709_v12, 0.0 }
 0x1a0   : > { %v712_v55 = vmul.f32 %v11216_v39, %v449_v2  ;;  %v713_v2 = vmul.f32 %v11216_v39, %v450_v51  ;;  %v454_v51 = vld [vmem:[%s10637_s11 + $0x670] sm:$0xff] }
 0x1a1   : > { %1354 = vadd.xlane.f32.xlu1 %v1353_v30  ;;  %1351 = vadd.xlane.f32.xlu0 %v1350_v50 }
 0x1a2   : > { %v11682_v56 = vpop.xlane.xlu1 %1150  ;;  %v11684_v54 = vpop.xlane.xlu0 %1147 }
 0x1a3   : > { %17546 = vst [vmem:[#allocation105_spill] sm:$0xff] %v11682_v56  ;;  %17547 = vst [vmem:[#allocation106_spill] sm:$0xff] %v11684_v54  ;;  %v1365_v54 = vsel %vm17433_vm0, %v710_v42, 0.0  ;;  %v451_v56 = vld [vmem:[%s10637_s11 + $0x658] sm:$0xff]  ;;  %v1368_v42 = vsel %vm17433_vm0, %v711_v58, 0.0 }
 0x1a4   : > { %v714_v12 = vmul.f32 %v11216_v39, %v451_v56  ;;  %v715_v56 = vmul.f32 %v11216_v39, %v452_v53  ;;  %v456_v53 = vld [vmem:[%s10637_s11 + $0x680] sm:$0xff] }
 0x1a5   : > { %1360 = vadd.xlane.f32.xlu1 %v1359_v4  ;;  %1357 = vadd.xlane.f32.xlu0 %v1356_v27 }
 0x1a6   : > { %v11692_v30 = vpop.xlane.xlu1 %1156  ;;  %v11694_v50 = vpop.xlane.xlu0 %1153 }
 0x1a7   : > { %17548 = vst [vmem:[#allocation107_spill] sm:$0xff] %v11692_v30  ;;  %17549 = vst [vmem:[#allocation108_spill] sm:$0xff] %v11694_v50  ;;  %v1371_v50 = vsel %vm17433_vm0, %v712_v55, 0.0  ;;  %v453_v30 = vld [vmem:[%s10637_s11 + $0x668] sm:$0xff]  ;;  %v1374_v55 = vsel %vm17433_vm0, %v713_v2, 0.0 }
 0x1a8   : > { %v716_v58 = vmul.f32 %v11216_v39, %v453_v30  ;;  %v717_v30 = vmul.f32 %v11216_v39, %v454_v51  ;;  %v458_v51 = vld [vmem:[%s10637_s11 + $0x690] sm:$0xff] }
 0x1a9   : > { %1366 = vadd.xlane.f32.xlu1 %v1365_v54  ;;  %1363 = vadd.xlane.f32.xlu0 %v1362_v18 }
 0x1aa   : > { %v11702_v4 = vpop.xlane.xlu1 %1162  ;;  %v11704_v27 = vpop.xlane.xlu0 %1159 }
 0x1ab   : > { %17550 = vst [vmem:[#allocation109_spill] sm:$0xff] %v11702_v4  ;;  %17551 = vst [vmem:[#allocation110_spill] sm:$0xff] %v11704_v27  ;;  %v1377_v27 = vsel %vm17433_vm0, %v714_v12, 0.0  ;;  %v455_v4 = vld [vmem:[%s10637_s11 + $0x678] sm:$0xff]  ;;  %v1380_v12 = vsel %vm17433_vm0, %v715_v56, 0.0 }
 0x1ac   : > { %v718_v2 = vmul.f32 %v11216_v39, %v455_v4  ;;  %v11741_v4 = vld [vmem:[%s17156_s2] ss:$0 sm:$0xff]  ;;  %v459_v56 = vld [vmem:[%s10637_s11 + $0x698] sm:$0xff] }
 0x1ad   : > { %1372 = vadd.xlane.f32.xlu1 %v1371_v50  ;;  %1369 = vadd.xlane.f32.xlu0 %v1368_v42 }
 0x1ae   : > { %v11712_v54 = vpop.xlane.xlu1 %1168  ;;  %v11714_v18 = vpop.xlane.xlu0 %1165 }
 0x1af   : > { %17552 = vst [vmem:[#allocation111_spill] sm:$0xff] %v11712_v54  ;;  %17553 = vst [vmem:[#allocation112_spill] sm:$0xff] %v11714_v18  ;;  %v1383_v18 = vsel %vm17433_vm0, %v716_v58, 0.0  ;;  %v457_v54 = vld [vmem:[%s10637_s11 + $0x688] sm:$0xff]  ;;  %v1386_v58 = vsel %vm17433_vm0, %v717_v30, 0.0 }
 0x1b0   : > { %v720_v39 = vmul.f32 %v11741_v4, %v457_v54  ;;  %v721_v54 = vmul.f32 %v11741_v4, %v458_v51  ;;  %v462_v51 = vld [vmem:[%s10637_s11 + $0x6b0] sm:$0xff] }
 0x1b1   : > { %1378 = vadd.xlane.f32.xlu1 %v1377_v27  ;;  %1375 = vadd.xlane.f32.xlu0 %v1374_v55 }
 0x1b2   : > { %v11722_v50 = vpop.xlane.xlu1 %1174  ;;  %v11724_v42 = vpop.xlane.xlu0 %1171  ;;  %v1395_v30 = vsel %vm17433_vm0, %v720_v39, 0.0  ;;  %v1398_v39 = vsel %vm17433_vm0, %v721_v54, 0.0 }
 0x1b3   : > { %17554 = vst [vmem:[#allocation113_spill] sm:$0xff] %v11722_v50  ;;  %17555 = vst [vmem:[#allocation114_spill] sm:$0xff] %v11724_v42  ;;  %v1389_v42 = vsel %vm17433_vm0, %v718_v2, 0.0  ;;  %v461_v50 = vld [vmem:[%s10637_s11 + $0x6a8] sm:$0xff] }
 0x1b5   : > { %1384 = vadd.xlane.f32.xlu1 %v1383_v18  ;;  %1381 = vadd.xlane.f32.xlu0 %v1380_v12  ;;  %v719_v18 = vmul.f32 %v11741_v4, %v456_v53  ;;  %v460_v53 = vld [vmem:[%s10637_s11 + $0x6a0] sm:$0xff] }
 0x1b6   : > { %v11732_v27 = vpop.xlane.xlu1 %1180  ;;  %v11734_v55 = vpop.xlane.xlu0 %1177 }
 0x1b7   : > { %17556 = vst [vmem:[#allocation115_spill] sm:$0xff] %v11732_v27  ;;  %17557 = vst [vmem:[#allocation116_spill] sm:$0xff] %v11734_v55  ;;  %v1392_v55 = vsel %vm17433_vm0, %v719_v18, 0.0  ;;  %v722_v27 = vmul.f32 %v11741_v4, %v459_v56  ;;  %v724_v18 = vmul.f32 %v11741_v4, %v461_v50  ;;  %v723_v56 = vmul.f32 %v11741_v4, %v460_v53  ;;  %v464_v53 = vld [vmem:[%s10637_s11 + $0x6c0] sm:$0xff] }
 0x1b8   : > { %v725_v50 = vmul.f32 %v11741_v4, %v462_v51  ;;  %v466_v51 = vld [vmem:[%s10637_s11 + $0x6d0] sm:$0xff] }
 0x1b9   : > { %1390 = vadd.xlane.f32.xlu1 %v1389_v42  ;;  %1387 = vadd.xlane.f32.xlu0 %v1386_v58 }
 0x1ba   : > { %v11747_v12 = vpop.xlane.xlu1 %1186  ;;  %v11749_v2 = vpop.xlane.xlu0 %1183 }
 0x1bb   : > { %17558 = vst [vmem:[#allocation117_spill] sm:$0xff] %v11747_v12  ;;  %17559 = vst [vmem:[#allocation118_spill] sm:$0xff] %v11749_v2  ;;  %v1401_v2 = vsel %vm17433_vm0, %v722_v27, 0.0  ;;  %v463_v12 = vld [vmem:[%s10637_s11 + $0x6b8] sm:$0xff]  ;;  %v1404_v27 = vsel %vm17433_vm0, %v723_v56, 0.0 }
 0x1bc   : > { %v726_v54 = vmul.f32 %v11741_v4, %v463_v12  ;;  %v727_v12 = vmul.f32 %v11741_v4, %v464_v53  ;;  %v468_v53 = vld [vmem:[%s10637_s11 + $0x6e0] sm:$0xff] }
 0x1bd   : > { %1396 = vadd.xlane.f32.xlu1 %v1395_v30  ;;  %1393 = vadd.xlane.f32.xlu0 %v1392_v55 }
 0x1be   : > { %v11757_v42 = vpop.xlane.xlu1 %1192  ;;  %v11759_v58 = vpop.xlane.xlu0 %1189 }
 0x1bf   : > { %17560 = vst [vmem:[#allocation119_spill] sm:$0xff] %v11757_v42  ;;  %17561 = vst [vmem:[#allocation120_spill] sm:$0xff] %v11759_v58  ;;  %v1407_v58 = vsel %vm17433_vm0, %v724_v18, 0.0  ;;  %v465_v42 = vld [vmem:[%s10637_s11 + $0x6c8] sm:$0xff]  ;;  %v1410_v18 = vsel %vm17433_vm0, %v725_v50, 0.0 }
 0x1c0   : > { %v728_v56 = vmul.f32 %v11741_v4, %v465_v42  ;;  %v729_v42 = vmul.f32 %v11741_v4, %v466_v51  ;;  %v470_v51 = vld [vmem:[%s10637_s11 + $0x6f0] sm:$0xff] }
 0x1c1   : > { %1402 = vadd.xlane.f32.xlu1 %v1401_v2  ;;  %1399 = vadd.xlane.f32.xlu0 %v1398_v39 }
 0x1c2   : > { %v11767_v30 = vpop.xlane.xlu1 %1198  ;;  %v11769_v55 = vpop.xlane.xlu0 %1195 }
 0x1c3   : > { %17562 = vst [vmem:[#allocation121_spill] sm:$0xff] %v11767_v30  ;;  %17563 = vst [vmem:[#allocation122_spill] sm:$0xff] %v11769_v55  ;;  %v1413_v55 = vsel %vm17433_vm0, %v726_v54, 0.0  ;;  %v467_v30 = vld [vmem:[%s10637_s11 + $0x6d8] sm:$0xff]  ;;  %v1416_v54 = vsel %vm17433_vm0, %v727_v12, 0.0 }
 0x1c4   : > { %v730_v50 = vmul.f32 %v11741_v4, %v467_v30  ;;  %v731_v30 = vmul.f32 %v11741_v4, %v468_v53  ;;  %v472_v53 = vld [vmem:[%s10637_s11 + $0x700] sm:$0xff] }
 0x1c5   : > { %1408 = vadd.xlane.f32.xlu1 %v1407_v58  ;;  %1405 = vadd.xlane.f32.xlu0 %v1404_v27 }
 0x1c6   : > { %v11777_v2 = vpop.xlane.xlu1 %1204  ;;  %v11779_v39 = vpop.xlane.xlu0 %1201 }
 0x1c7   : > { %17564 = vst [vmem:[#allocation123_spill] sm:$0xff] %v11777_v2  ;;  %17565 = vst [vmem:[#allocation124_spill] sm:$0xff] %v11779_v39  ;;  %v1419_v39 = vsel %vm17433_vm0, %v728_v56, 0.0  ;;  %v469_v2 = vld [vmem:[%s10637_s11 + $0x6e8] sm:$0xff]  ;;  %v1422_v56 = vsel %vm17433_vm0, %v729_v42, 0.0 }
 0x1c8   : > { %v732_v12 = vmul.f32 %v11741_v4, %v469_v2  ;;  %v733_v2 = vmul.f32 %v11741_v4, %v470_v51  ;;  %v474_v51 = vld [vmem:[%s10637_s11 + $0x710] sm:$0xff] }
 0x1c9   : > { %1414 = vadd.xlane.f32.xlu1 %v1413_v55  ;;  %1411 = vadd.xlane.f32.xlu0 %v1410_v18 }
 0x1ca   : > { %v11787_v58 = vpop.xlane.xlu1 %1210  ;;  %v11789_v27 = vpop.xlane.xlu0 %1207 }
 0x1cb   : > { %17566 = vst [vmem:[#allocation125_spill] sm:$0xff] %v11787_v58  ;;  %17567 = vst [vmem:[#allocation126_spill] sm:$0xff] %v11789_v27  ;;  %v1425_v27 = vsel %vm17433_vm0, %v730_v50, 0.0  ;;  %v471_v58 = vld [vmem:[%s10637_s11 + $0x6f8] sm:$0xff]  ;;  %v1428_v50 = vsel %vm17433_vm0, %v731_v30, 0.0 }
 0x1cc   : > { %v734_v42 = vmul.f32 %v11741_v4, %v471_v58  ;;  %v735_v58 = vmul.f32 %v11741_v4, %v472_v53  ;;  %v476_v53 = vld [vmem:[%s10637_s11 + $0x720] sm:$0xff] }
 0x1cd   : > { %1420 = vadd.xlane.f32.xlu1 %v1419_v39  ;;  %1417 = vadd.xlane.f32.xlu0 %v1416_v54 }
 0x1ce   : > { %v11797_v55 = vpop.xlane.xlu1 %1216  ;;  %v11799_v18 = vpop.xlane.xlu0 %1213 }
 0x1cf   : > { %17568 = vst [vmem:[#allocation127_spill] sm:$0xff] %v11797_v55  ;;  %17569 = vst [vmem:[#allocation128_spill] sm:$0xff] %v11799_v18  ;;  %v1431_v18 = vsel %vm17433_vm0, %v732_v12, 0.0  ;;  %v473_v55 = vld [vmem:[%s10637_s11 + $0x708] sm:$0xff]  ;;  %v1434_v12 = vsel %vm17433_vm0, %v733_v2, 0.0 }
 0x1d0   : > { %v736_v30 = vmul.f32 %v11741_v4, %v473_v55  ;;  %v737_v55 = vmul.f32 %v11741_v4, %v474_v51  ;;  %v478_v51 = vld [vmem:[%s10637_s11 + $0x730] sm:$0xff] }
 0x1d1   : > { %1426 = vadd.xlane.f32.xlu1 %v1425_v27  ;;  %1423 = vadd.xlane.f32.xlu0 %v1422_v56 }
 0x1d2   : > { %v11807_v39 = vpop.xlane.xlu1 %1222  ;;  %v11809_v54 = vpop.xlane.xlu0 %1219 }
 0x1d3   : > { %17570 = vst [vmem:[#allocation129_spill] sm:$0xff] %v11807_v39  ;;  %17571 = vst [vmem:[#allocation130_spill] sm:$0xff] %v11809_v54  ;;  %v1437_v54 = vsel %vm17433_vm0, %v734_v42, 0.0  ;;  %v475_v39 = vld [vmem:[%s10637_s11 + $0x718] sm:$0xff]  ;;  %v1440_v42 = vsel %vm17433_vm0, %v735_v58, 0.0 }
 0x1d4   : > { %v738_v2 = vmul.f32 %v11741_v4, %v475_v39  ;;  %v739_v39 = vmul.f32 %v11741_v4, %v476_v53  ;;  %v480_v53 = vld [vmem:[%s10637_s11 + $0x740] sm:$0xff] }
 0x1d5   : > { %1432 = vadd.xlane.f32.xlu1 %v1431_v18  ;;  %1429 = vadd.xlane.f32.xlu0 %v1428_v50 }
 0x1d6   : > { %v11817_v27 = vpop.xlane.xlu1 %1228  ;;  %v11819_v56 = vpop.xlane.xlu0 %1225 }
 0x1d7   : > { %17572 = vst [vmem:[#allocation131_spill] sm:$0xff] %v11817_v27  ;;  %17573 = vst [vmem:[#allocation132_spill] sm:$0xff] %v11819_v56  ;;  %v1443_v56 = vsel %vm17433_vm0, %v736_v30, 0.0  ;;  %v477_v27 = vld [vmem:[%s10637_s11 + $0x728] sm:$0xff]  ;;  %v1446_v30 = vsel %vm17433_vm0, %v737_v55, 0.0 }
 0x1d8   : > { %v740_v58 = vmul.f32 %v11741_v4, %v477_v27  ;;  %v741_v27 = vmul.f32 %v11741_v4, %v478_v51  ;;  %v482_v51 = vld [vmem:[%s10637_s11 + $0x750] sm:$0xff] }
 0x1d9   : > { %1438 = vadd.xlane.f32.xlu1 %v1437_v54  ;;  %1435 = vadd.xlane.f32.xlu0 %v1434_v12 }
 0x1da   : > { %v11827_v18 = vpop.xlane.xlu1 %1234  ;;  %v11829_v50 = vpop.xlane.xlu0 %1231 }
 0x1db   : > { %17574 = vst [vmem:[#allocation133_spill] sm:$0xff] %v11827_v18  ;;  %17575 = vst [vmem:[#allocation134_spill] sm:$0xff] %v11829_v50  ;;  %v1449_v50 = vsel %vm17433_vm0, %v738_v2, 0.0  ;;  %v479_v18 = vld [vmem:[%s10637_s11 + $0x738] sm:$0xff]  ;;  %v1452_v2 = vsel %vm17433_vm0, %v739_v39, 0.0 }
 0x1dc   : > { %v742_v55 = vmul.f32 %v11741_v4, %v479_v18  ;;  %v743_v18 = vmul.f32 %v11741_v4, %v480_v53  ;;  %v484_v53 = vld [vmem:[%s10637_s11 + $0x760] sm:$0xff] }
 0x1dd   : > { %1444 = vadd.xlane.f32.xlu1 %v1443_v56  ;;  %1441 = vadd.xlane.f32.xlu0 %v1440_v42 }
 0x1de   : > { %v11837_v54 = vpop.xlane.xlu1 %1240  ;;  %v11839_v12 = vpop.xlane.xlu0 %1237 }
 0x1df   : > { %17576 = vst [vmem:[#allocation135_spill] sm:$0xff] %v11837_v54  ;;  %17577 = vst [vmem:[#allocation136_spill] sm:$0xff] %v11839_v12  ;;  %v1455_v12 = vsel %vm17433_vm0, %v740_v58, 0.0  ;;  %v481_v54 = vld [vmem:[%s10637_s11 + $0x748] sm:$0xff]  ;;  %v1458_v58 = vsel %vm17433_vm0, %v741_v27, 0.0 }
 0x1e0   : > { %v744_v39 = vmul.f32 %v11741_v4, %v481_v54  ;;  %v745_v54 = vmul.f32 %v11741_v4, %v482_v51  ;;  %v486_v51 = vld [vmem:[%s10637_s11 + $0x770] sm:$0xff] }
 0x1e1   : > { %1450 = vadd.xlane.f32.xlu1 %v1449_v50  ;;  %1447 = vadd.xlane.f32.xlu0 %v1446_v30 }
 0x1e2   : > { %v11847_v56 = vpop.xlane.xlu1 %1246  ;;  %v11849_v42 = vpop.xlane.xlu0 %1243 }
 0x1e3   : > { %17578 = vst [vmem:[#allocation137_spill] sm:$0xff] %v11847_v56  ;;  %17579 = vst [vmem:[#allocation138_spill] sm:$0xff] %v11849_v42  ;;  %v1461_v42 = vsel %vm17433_vm0, %v742_v55, 0.0  ;;  %v483_v56 = vld [vmem:[%s10637_s11 + $0x758] sm:$0xff]  ;;  %v1464_v55 = vsel %vm17433_vm0, %v743_v18, 0.0 }
 0x1e4   : > { %v746_v27 = vmul.f32 %v11741_v4, %v483_v56  ;;  %v747_v56 = vmul.f32 %v11741_v4, %v484_v53  ;;  %v488_v53 = vld [vmem:[%s10637_s11 + $0x780] sm:$0xff] }
 0x1e5   : > { %1456 = vadd.xlane.f32.xlu1 %v1455_v12  ;;  %1453 = vadd.xlane.f32.xlu0 %v1452_v2 }
 0x1e6   : > { %v11857_v50 = vpop.xlane.xlu1 %1252  ;;  %v11859_v30 = vpop.xlane.xlu0 %1249 }
 0x1e7   : > { %17580 = vst [vmem:[#allocation139_spill] sm:$0xff] %v11857_v50  ;;  %17581 = vst [vmem:[#allocation140_spill] sm:$0xff] %v11859_v30  ;;  %v1467_v30 = vsel %vm17433_vm0, %v744_v39, 0.0  ;;  %v485_v50 = vld [vmem:[%s10637_s11 + $0x768] sm:$0xff]  ;;  %v1470_v39 = vsel %vm17433_vm0, %v745_v54, 0.0 }
 0x1e8   : > { %v748_v18 = vmul.f32 %v11741_v4, %v485_v50  ;;  %v749_v50 = vmul.f32 %v11741_v4, %v486_v51  ;;  %v490_v51 = vld [vmem:[%s10637_s11 + $0x790] sm:$0xff] }
 0x1e9   : > { %1462 = vadd.xlane.f32.xlu1 %v1461_v42  ;;  %1459 = vadd.xlane.f32.xlu0 %v1458_v58 }
 0x1ea   : > { %v11867_v12 = vpop.xlane.xlu1 %1258  ;;  %v11869_v2 = vpop.xlane.xlu0 %1255 }
 0x1eb   : > { %17582 = vst [vmem:[#allocation141_spill] sm:$0xff] %v11867_v12  ;;  %17583 = vst [vmem:[#allocation142_spill] sm:$0xff] %v11869_v2  ;;  %v1473_v2 = vsel %vm17433_vm0, %v746_v27, 0.0  ;;  %v487_v12 = vld [vmem:[%s10637_s11 + $0x778] sm:$0xff]  ;;  %v1476_v27 = vsel %vm17433_vm0, %v747_v56, 0.0 }
 0x1ec   : > { %v750_v54 = vmul.f32 %v11741_v4, %v487_v12  ;;  %v751_v12 = vmul.f32 %v11741_v4, %v488_v53  ;;  %v492_v53 = vld [vmem:[%s10637_s11 + $0x7a0] sm:$0xff] }
 0x1ed   : > { %1468 = vadd.xlane.f32.xlu1 %v1467_v30  ;;  %1465 = vadd.xlane.f32.xlu0 %v1464_v55 }
 0x1ee   : > { %v11877_v42 = vpop.xlane.xlu1 %1264  ;;  %v11879_v58 = vpop.xlane.xlu0 %1261 }
 0x1ef   : > { %17584 = vst [vmem:[#allocation143_spill] sm:$0xff] %v11877_v42  ;;  %17585 = vst [vmem:[#allocation144_spill] sm:$0xff] %v11879_v58  ;;  %v1479_v58 = vsel %vm17433_vm0, %v748_v18, 0.0  ;;  %v489_v42 = vld [vmem:[%s10637_s11 + $0x788] sm:$0xff]  ;;  %v1482_v18 = vsel %vm17433_vm0, %v749_v50, 0.0 }
 0x1f0   : > { %v752_v56 = vmul.f32 %v11741_v4, %v489_v42  ;;  %v753_v42 = vmul.f32 %v11741_v4, %v490_v51  ;;  %v494_v51 = vld [vmem:[%s10637_s11 + $0x7b0] sm:$0xff] }
 0x1f1   : > { %1474 = vadd.xlane.f32.xlu1 %v1473_v2  ;;  %1471 = vadd.xlane.f32.xlu0 %v1470_v39 }
 0x1f2   : > { %v11887_v30 = vpop.xlane.xlu1 %1270  ;;  %v11889_v55 = vpop.xlane.xlu0 %1267 }
 0x1f3   : > { %17586 = vst [vmem:[#allocation145_spill] sm:$0xff] %v11887_v30  ;;  %17587 = vst [vmem:[#allocation146_spill] sm:$0xff] %v11889_v55  ;;  %v1485_v55 = vsel %vm17433_vm0, %v750_v54, 0.0  ;;  %v491_v30 = vld [vmem:[%s10637_s11 + $0x798] sm:$0xff]  ;;  %v1488_v54 = vsel %vm17433_vm0, %v751_v12, 0.0 }
 0x1f4   : > { %v754_v50 = vmul.f32 %v11741_v4, %v491_v30  ;;  %v755_v30 = vmul.f32 %v11741_v4, %v492_v53  ;;  %v496_v53 = vld [vmem:[%s10637_s11 + $0x7c0] sm:$0xff] }
 0x1f5   : > { %1480 = vadd.xlane.f32.xlu1 %v1479_v58  ;;  %1477 = vadd.xlane.f32.xlu0 %v1476_v27 }
 0x1f6   : > { %v11897_v2 = vpop.xlane.xlu1 %1276  ;;  %v11899_v39 = vpop.xlane.xlu0 %1273 }
 0x1f7   : > { %17588 = vst [vmem:[#allocation147_spill] sm:$0xff] %v11897_v2  ;;  %17589 = vst [vmem:[#allocation148_spill] sm:$0xff] %v11899_v39  ;;  %v1491_v39 = vsel %vm17433_vm0, %v752_v56, 0.0  ;;  %v493_v2 = vld [vmem:[%s10637_s11 + $0x7a8] sm:$0xff]  ;;  %v1494_v56 = vsel %vm17433_vm0, %v753_v42, 0.0 }
 0x1f8   : > { %v756_v12 = vmul.f32 %v11741_v4, %v493_v2  ;;  %v757_v2 = vmul.f32 %v11741_v4, %v494_v51  ;;  %v499_v51 = vld [vmem:[%s10637_s11 + $0x7d8] sm:$0xff] }
 0x1f9   : > { %1486 = vadd.xlane.f32.xlu1 %v1485_v55  ;;  %1483 = vadd.xlane.f32.xlu0 %v1482_v18 }
 0x1fa   : > { %v11907_v58 = vpop.xlane.xlu1 %1282  ;;  %v11909_v27 = vpop.xlane.xlu0 %1279 }
 0x1fb   : > { %17590 = vst [vmem:[#allocation149_spill] sm:$0xff] %v11907_v58  ;;  %17591 = vst [vmem:[#allocation150_spill] sm:$0xff] %v11909_v27  ;;  %v1497_v27 = vsel %vm17433_vm0, %v754_v50, 0.0  ;;  %v495_v58 = vld [vmem:[%s10637_s11 + $0x7b8] sm:$0xff]  ;;  %v1500_v50 = vsel %vm17433_vm0, %v755_v30, 0.0 }
 0x1fc   : > { %v758_v42 = vmul.f32 %v11741_v4, %v495_v58  ;;  %v759_v58 = vmul.f32 %v11741_v4, %v496_v53  ;;  %v501_v53 = vld [vmem:[%s10637_s11 + $0x7e8] sm:$0xff] }
 0x1fd   : > { %1492 = vadd.xlane.f32.xlu1 %v1491_v39  ;;  %1489 = vadd.xlane.f32.xlu0 %v1488_v54 }
 0x1fe   : > { %v11917_v55 = vpop.xlane.xlu1 %1288  ;;  %v11919_v18 = vpop.xlane.xlu0 %1285 }
 0x1ff   : > { %17592 = vst [vmem:[#allocation151_spill] sm:$0xff] %v11917_v55  ;;  %17593 = vst [vmem:[#allocation152_spill] sm:$0xff] %v11919_v18  ;;  %v1503_v18 = vsel %vm17433_vm0, %v756_v12, 0.0  ;;  %v497_v55 = vld [vmem:[%s10637_s11 + $0x7c8] sm:$0xff]  ;;  %v1506_v12 = vsel %vm17433_vm0, %v757_v2, 0.0  ;;  %v762_v2 = vmul.f32 %v11741_v4, %v499_v51 }
 0x200   : > { %v760_v30 = vmul.f32 %v11741_v4, %v497_v55 }
 0x201   : > { %1498 = vadd.xlane.f32.xlu1 %v1497_v27  ;;  %1495 = vadd.xlane.f32.xlu0 %v1494_v56 }
 0x202   : > { %v11927_v39 = vpop.xlane.xlu1 %1294  ;;  %v11929_v54 = vpop.xlane.xlu0 %1291 }
 0x203   : > { %17594 = vst [vmem:[#allocation153_spill] sm:$0xff] %v11927_v39  ;;  %17595 = vst [vmem:[#allocation154_spill] sm:$0xff] %v11929_v54  ;;  %v1509_v54 = vsel %vm17433_vm0, %v758_v42, 0.0  ;;  %v498_v39 = vld [vmem:[%s10637_s11 + $0x7d0] sm:$0xff]  ;;  %v1512_v42 = vsel %vm17433_vm0, %v759_v58, 0.0  ;;  %v764_v58 = vmul.f32 %v11741_v4, %v501_v53 }
 0x204   : > { %v761_v55 = vmul.f32 %v11741_v4, %v498_v39  ;;  %v502_v39 = vld [vmem:[%s10637_s11 + $0x7f0] sm:$0xff] }
 0x205   : > { %1504 = vadd.xlane.f32.xlu1 %v1503_v18  ;;  %1501 = vadd.xlane.f32.xlu0 %v1500_v50 }
 0x206   : > { %v11937_v27 = vpop.xlane.xlu1 %1300  ;;  %v11939_v56 = vpop.xlane.xlu0 %1297 }
 0x207   : > { %17596 = vst [vmem:[#allocation155_spill] sm:$0xff] %v11937_v27  ;;  %17597 = vst [vmem:[#allocation156_spill] sm:$0xff] %v11939_v56  ;;  %v1515_v56 = vsel %vm17433_vm0, %v760_v30, 0.0  ;;  %v500_v27 = vld [vmem:[%s10637_s11 + $0x7e0] sm:$0xff]  ;;  %v1518_v30 = vsel %vm17433_vm0, %v761_v55, 0.0  ;;  %v765_v55 = vmul.f32 %v11741_v4, %v502_v39 }
 0x208   : > { %v763_v51 = vmul.f32 %v11741_v4, %v500_v27 }
 0x209   : > { %1510 = vadd.xlane.f32.xlu1 %v1509_v54  ;;  %1507 = vadd.xlane.f32.xlu0 %v1506_v12 }
 0x20a   : > { %v11947_v18 = vpop.xlane.xlu1 %1306  ;;  %v11949_v50 = vpop.xlane.xlu0 %1303 }
 0x20b   : > { %17598 = vst [vmem:[#allocation157_spill] sm:$0xff] %v11947_v18  ;;  %17599 = vst [vmem:[#allocation158_spill] sm:$0xff] %v11949_v50  ;;  %v1521_v50 = vsel %vm17433_vm0, %v762_v2, 0.0  ;;  %v503_v18 = vld [vmem:[%s10637_s11 + $0x7f8] sm:$0xff] }
 0x20c   : > { %v766_v2 = vmul.f32 %v11741_v4, %v503_v18 }
 0x20d   : > { %1516 = vadd.xlane.f32.xlu1 %v1515_v56  ;;  %1513 = vadd.xlane.f32.xlu0 %v1512_v42 }
 0x20e   : > { %v11958_v54 = vpop.xlane.xlu1 %1312  ;;  %v11960_v12 = vpop.xlane.xlu0 %1309  ;;  %v1533_v53 = vsel %vm17433_vm0, %v766_v2, 0.0 }
 0x20f   : > { %17600 = vst [vmem:[#allocation159_spill] sm:$0xff] %v11958_v54  ;;  %17601 = vst [vmem:[#allocation160_spill] sm:$0xff] %v11960_v12  ;;  %v1527_v54 = vsel %vm17433_vm0, %v764_v58, 0.0  ;;  %v1524_v12 = vsel %vm17433_vm0, %v763_v51, 0.0 }
 0x211   : > { %1522 = vadd.xlane.f32.xlu1 %v1521_v50  ;;  %1519 = vadd.xlane.f32.xlu0 %v1518_v30  ;;  %v1530_v30 = vsel %vm17433_vm0, %v765_v55, 0.0  ;;  %vm17434_vm0 = vcmask 1041409  }
 0x212   : > { %v11969_v56 = vpop.xlane.xlu1 %1318  ;;  %v11971_v42 = vpop.xlane.xlu0 %1315 }
 0x213   : > { %17602 = vst [vmem:[#allocation161_spill] sm:$0xff] %v11969_v56  ;;  %17603 = vst [vmem:[#allocation162_spill] sm:$0xff] %v11971_v42 }
 0x215   : > { %1528 = vadd.xlane.f32.xlu1 %v1527_v54  ;;  %1525 = vadd.xlane.f32.xlu0 %v1524_v12  ;;  %v17160_v54 = vlaneseq  ;;  %v1536_v12 = vld [vmem:[%s11986_s26] sm:$0xff] }
 0x216   : > { %v11977_v27 = vpop.xlane.xlu1 %1324  ;;  %v11979_v50 = vpop.xlane.xlu0 %1321  ;;  %v1538_v39 = vcvt.s32.f32 %v1536_v12 }
 0x217   : > { %17604 = vst [vmem:[#allocation163_spill] sm:$0xff] %v11977_v27  ;;  %17605 = vst [vmem:[#allocation164_spill] sm:$0xff] %v11979_v50  ;;  %v11998_v2 = vshrl.u32 %v17160_v54, 7 }
 0x219   : > { %1534 = vadd.xlane.f32.xlu1 %v1533_v53  ;;  %1531 = vadd.xlane.f32.xlu0 %v1530_v30  ;;  %17610 = vst [vmem:[#allocation169_spill] sm:$0xff] %v11998_v2  ;;  %v12004_v53 = vmul.f32 -1e+30, %v1538_v39  ;;  %v12007_v30 = vsub.s32 0, %v11998_v2 }
 0x21a   : > { %v11988_v4 = vpop.xlane.xlu1 %1330  ;;  %v11990_v18 = vpop.xlane.xlu0 %1327 }
 0x21b   : > { %17606 = vst [vmem:[#allocation165_spill] sm:$0xff] %v11988_v4  ;;  %17607 = vst [vmem:[#allocation166_spill] sm:$0xff] %v11990_v18 }
 0x21c   : > { %17613 = vst [vmem:[#allocation172_spill] sm:$0xff] %v12007_v30 }
 0x21e   : > { %v11993_v58 = vpop.xlane.xlu1 %1336  ;;  %v11995_v51 = vpop.xlane.xlu0 %1333 }
 0x21f   : > { %17608 = vst [vmem:[#allocation167_spill] sm:$0xff] %v11993_v58  ;;  %17609 = vst [vmem:[#allocation168_spill] sm:$0xff] %v11995_v51  ;;  %v1547_v51 = vrot.slane %v12004_v53, %v12007_v30 }
 0x222   : > { %v12000_v55 = vpop.xlane.xlu1 %1342  ;;  %v12002_v50 = vpop.xlane.xlu0 %1339 }
 0x223   : > { %17611 = vst [vmem:[#allocation170_spill] sm:$0xff] %v12000_v55  ;;  %17612 = vst [vmem:[#allocation171_spill] sm:$0xff] %v12002_v50 }
 0x226   : > { %v12009_v18 = vpop.xlane.xlu1 %1348  ;;  %v12011_v4 = vpop.xlane.xlu0 %1345 }
 0x227   : > { %17614 = vst [vmem:[#allocation173_spill] sm:$0xff] %v12009_v18  ;;  %17615 = vst [vmem:[#allocation174_spill] sm:$0xff] %v12011_v4 }
 0x22a   : > { %1553 = vbcast.lane.b32.xlu1 %v1547_v51, 264  ;;  %v12015_v12 = vpop.xlane.xlu1 %1354  ;;  %v12017_v54 = vpop.xlane.xlu0 %1351 }
 0x22b   : > { %17616 = vst [vmem:[#allocation175_spill] sm:$0xff] %v12015_v12  ;;  %17617 = vst [vmem:[#allocation176_spill] sm:$0xff] %v12017_v54 }
 0x22e   : > { %1557 = vbcast.lane.b32.xlu1 %v1547_v51, 272  ;;  %v12019_v50 = vpop.xlane.xlu1 %1360  ;;  %v12021_v39 = vpop.xlane.xlu0 %1357 }
 0x22f   : > { %17618 = vst [vmem:[#allocation177_spill] sm:$0xff] %v12019_v50  ;;  %17619 = vst [vmem:[#allocation178_spill] sm:$0xff] %v12021_v39  ;;  %1549 = vbcast.lane.b32.xlu0 %v1547_v51, 256  ;;  %v1537_v39 = vld [vmem:[%s11986_s26 + $0x8] sm:$0xff] }
 0x232   : > { %1561 = vbcast.lane.b32.xlu1 %v1547_v51, 280  ;;  %v12023_v55 = vpop.xlane.xlu1 %1366  ;;  %v12025_v18 = vpop.xlane.xlu0 %1363 }
 0x233   : > { %17620 = vst [vmem:[#allocation179_spill] sm:$0xff] %v12023_v55  ;;  %17621 = vst [vmem:[#allocation180_spill] sm:$0xff] %v12025_v18  ;;  %1565 = vbcast.lane.b32.xlu0 %v1547_v51, 288  ;;  %v1539_v18 = vcvt.s32.f32 %v1537_v39 }
 0x236   : > { %1569 = vbcast.lane.b32.xlu1 %v1547_v51, 296  ;;  %v12027_v4 = vpop.xlane.xlu1 %1372  ;;  %v12029_v58 = vpop.xlane.xlu0 %1369 }
 0x237   : > { %17622 = vst [vmem:[#allocation181_spill] sm:$0xff] %v12027_v4  ;;  %17623 = vst [vmem:[#allocation182_spill] sm:$0xff] %v12029_v58  ;;  %1573 = vbcast.lane.b32.xlu0 %v1547_v51, 304  ;;  %v12044_v58 = vmul.f32 -1e+30, %v1539_v18 }
 0x23a   : > { %1577 = vbcast.lane.b32.xlu1 %v1547_v51, 312  ;;  %v12031_v54 = vpop.xlane.xlu1 %1378  ;;  %v12033_v12 = vpop.xlane.xlu0 %1375 }
 0x23b   : > { %17624 = vst [vmem:[#allocation183_spill] sm:$0xff] %v12031_v54  ;;  %17625 = vst [vmem:[#allocation184_spill] sm:$0xff] %v12033_v12  ;;  %1581 = vbcast.lane.b32.xlu0 %v1547_v51, 320 }
 0x23e   : > { %1585 = vbcast.lane.b32.xlu1 %v1547_v51, 328  ;;  %v12036_v50 = vpop.xlane.xlu1 %1384  ;;  %v12038_v55 = vpop.xlane.xlu0 %1381 }
 0x23f   : > { %17626 = vst [vmem:[#allocation185_spill] sm:$0xff] %v12036_v50  ;;  %17627 = vst [vmem:[#allocation186_spill] sm:$0xff] %v12038_v55  ;;  %1589 = vbcast.lane.b32.xlu0 %v1547_v51, 336  ;;  %v1614_v50 = vrot.slane %v12044_v58, %v12007_v30 }
 0x242   : > { %1593 = vbcast.lane.b32.xlu1 %v1547_v51, 344  ;;  %v12040_v27 = vpop.xlane.xlu1 %1390  ;;  %v12042_v4 = vpop.xlane.xlu0 %1387 }
 0x243   : > { %17628 = vst [vmem:[#allocation187_spill] sm:$0xff] %v12040_v27  ;;  %17629 = vst [vmem:[#allocation188_spill] sm:$0xff] %v12042_v4  ;;  %1597 = vbcast.lane.b32.xlu0 %v1547_v51, 352 }
 0x246   : > { %1601 = vbcast.lane.b32.xlu1 %v1547_v51, 360  ;;  %v12046_v54 = vpop.xlane.xlu1 %1396  ;;  %v12048_v12 = vpop.xlane.xlu0 %1393 }
 0x247   : > { %17630 = vst [vmem:[#allocation189_spill] sm:$0xff] %v12046_v54  ;;  %17631 = vst [vmem:[#allocation190_spill] sm:$0xff] %v12048_v12  ;;  %1605 = vbcast.lane.b32.xlu0 %v1547_v51, 368 }
 0x24a   : > { %1609 = vbcast.lane.b32.xlu1 %v1547_v51, 376  ;;  %v12052_v55 = vpop.xlane.xlu1 %1402  ;;  %v12054_v39 = vpop.xlane.xlu0 %1399 }
 0x24b   : > { %17632 = vst [vmem:[#allocation191_spill] sm:$0xff] %v12052_v55  ;;  %17633 = vst [vmem:[#allocation192_spill] sm:$0xff] %v12054_v39  ;;  %1616 = vbcast.lane.b32.xlu0 %v1614_v50, 256 }
 0x24e   : > { %1620 = vbcast.lane.b32.xlu1 %v1614_v50, 264  ;;  %v12056_v4 = vpop.xlane.xlu1 %1408  ;;  %v12058_v18 = vpop.xlane.xlu0 %1405 }
 0x24f   : > { %17634 = vst [vmem:[#allocation193_spill] sm:$0xff] %v12056_v4  ;;  %17635 = vst [vmem:[#allocation194_spill] sm:$0xff] %v12058_v18  ;;  %1624 = vbcast.lane.b32.xlu0 %v1614_v50, 272 }
 0x252   : > { %1628 = vbcast.lane.b32.xlu1 %v1614_v50, 280  ;;  %v12060_v54 = vpop.xlane.xlu1 %1414  ;;  %v12062_v12 = vpop.xlane.xlu0 %1411 }
 0x253   : > { %17636 = vst [vmem:[#allocation195_spill] sm:$0xff] %v12060_v54  ;;  %17637 = vst [vmem:[#allocation196_spill] sm:$0xff] %v12062_v12  ;;  %1632 = vbcast.lane.b32.xlu0 %v1614_v50, 288 }
 0x256   : > { %1636 = vbcast.lane.b32.xlu1 %v1614_v50, 296  ;;  %v12064_v30 = vpop.xlane.xlu1 %1420  ;;  %v12066_v51 = vpop.xlane.xlu0 %1417 }
 0x257   : > { %17638 = vst [vmem:[#allocation197_spill] sm:$0xff] %v12064_v30  ;;  %17639 = vst [vmem:[#allocation198_spill] sm:$0xff] %v12066_v51  ;;  %1640 = vbcast.lane.b32.xlu0 %v1614_v50, 304  ;;  %v12081_v51 = vsub.s32 1, %v11998_v2 }
 0x259   : > { %17646 = vst [vmem:[#allocation205_spill] sm:$0xff] %v12081_v51 }
 0x25a   : > { %1644 = vbcast.lane.b32.xlu1 %v1614_v50, 312  ;;  %v12068_v39 = vpop.xlane.xlu1 %1426  ;;  %v12070_v55 = vpop.xlane.xlu0 %1423 }
 0x25b   : > { %17640 = vst [vmem:[#allocation199_spill] sm:$0xff] %v12068_v39  ;;  %17641 = vst [vmem:[#allocation200_spill] sm:$0xff] %v12070_v55  ;;  %1648 = vbcast.lane.b32.xlu0 %v1614_v50, 320 }
 0x25e   : > { %1652 = vbcast.lane.b32.xlu1 %v1614_v50, 328  ;;  %v12072_v18 = vpop.xlane.xlu1 %1432  ;;  %v12074_v4 = vpop.xlane.xlu0 %1429 }
 0x25f   : > { %17642 = vst [vmem:[#allocation201_spill] sm:$0xff] %v12072_v18  ;;  %17643 = vst [vmem:[#allocation202_spill] sm:$0xff] %v12074_v4  ;;  %1656 = vbcast.lane.b32.xlu0 %v1614_v50, 336  ;;  %v1681_v18 = vrot.slane %v12004_v53, %v12081_v51 }
 0x262   : > { %1660 = vbcast.lane.b32.xlu1 %v1614_v50, 344  ;;  %v12076_v12 = vpop.xlane.xlu1 %1438  ;;  %v12078_v54 = vpop.xlane.xlu0 %1435 }
 0x263   : > { %17644 = vst [vmem:[#allocation203_spill] sm:$0xff] %v12076_v12  ;;  %17645 = vst [vmem:[#allocation204_spill] sm:$0xff] %v12078_v54  ;;  %1664 = vbcast.lane.b32.xlu0 %v1614_v50, 352 }
 0x266   : > { %1668 = vbcast.lane.b32.xlu1 %v1614_v50, 360  ;;  %v12083_v39 = vpop.xlane.xlu1 %1444  ;;  %v12085_v55 = vpop.xlane.xlu0 %1441 }
 0x267   : > { %17647 = vst [vmem:[#allocation206_spill] sm:$0xff] %v12083_v39  ;;  %17648 = vst [vmem:[#allocation207_spill] sm:$0xff] %v12085_v55  ;;  %1672 = vbcast.lane.b32.xlu0 %v1614_v50, 368 }
 0x26a   : > { %1676 = vbcast.lane.b32.xlu1 %v1614_v50, 376  ;;  %v12089_v4 = vpop.xlane.xlu1 %1450  ;;  %v12091_v30 = vpop.xlane.xlu0 %1447 }
 0x26b   : > { %17649 = vst [vmem:[#allocation208_spill] sm:$0xff] %v12089_v4  ;;  %17650 = vst [vmem:[#allocation209_spill] sm:$0xff] %v12091_v30  ;;  %1683 = vbcast.lane.b32.xlu0 %v1681_v18, 256 }
 0x26e   : > { %1687 = vbcast.lane.b32.xlu1 %v1681_v18, 264  ;;  %v12093_v54 = vpop.xlane.xlu1 %1456  ;;  %v12095_v12 = vpop.xlane.xlu0 %1453 }
 0x26f   : > { %17651 = vst [vmem:[#allocation210_spill] sm:$0xff] %v12093_v54  ;;  %17652 = vst [vmem:[#allocation211_spill] sm:$0xff] %v12095_v12  ;;  %1691 = vbcast.lane.b32.xlu0 %v1681_v18, 272 }
 0x272   : > { %1695 = vbcast.lane.b32.xlu1 %v1681_v18, 280  ;;  %v12097_v39 = vpop.xlane.xlu1 %1462  ;;  %v12099_v55 = vpop.xlane.xlu0 %1459 }
 0x273   : > { %17653 = vst [vmem:[#allocation212_spill] sm:$0xff] %v12097_v39  ;;  %17654 = vst [vmem:[#allocation213_spill] sm:$0xff] %v12099_v55  ;;  %1699 = vbcast.lane.b32.xlu0 %v1681_v18, 288 }
 0x276   : > { %1703 = vbcast.lane.b32.xlu1 %v1681_v18, 296  ;;  %v12101_v27 = vpop.xlane.xlu1 %1468  ;;  %v12103_v50 = vpop.xlane.xlu0 %1465 }
 0x277   : > { %17655 = vst [vmem:[#allocation214_spill] sm:$0xff] %v12101_v27  ;;  %17656 = vst [vmem:[#allocation215_spill] sm:$0xff] %v12103_v50  ;;  %1707 = vbcast.lane.b32.xlu0 %v1681_v18, 304 }
 0x27a   : > { %1711 = vbcast.lane.b32.xlu1 %v1681_v18, 312  ;;  %v12105_v30 = vpop.xlane.xlu1 %1474  ;;  %v12107_v4 = vpop.xlane.xlu0 %1471 }
 0x27b   : > { %17657 = vst [vmem:[#allocation216_spill] sm:$0xff] %v12105_v30  ;;  %17658 = vst [vmem:[#allocation217_spill] sm:$0xff] %v12107_v4  ;;  %1715 = vbcast.lane.b32.xlu0 %v1681_v18, 320  ;;  %v1748_v4 = vrot.slane %v12044_v58, %v12081_v51 }
 0x27e   : > { %1719 = vbcast.lane.b32.xlu1 %v1681_v18, 328  ;;  %v12109_v12 = vpop.xlane.xlu1 %1480  ;;  %v12111_v54 = vpop.xlane.xlu0 %1477 }
 0x27f   : > { %17659 = vst [vmem:[#allocation218_spill] sm:$0xff] %v12109_v12  ;;  %17660 = vst [vmem:[#allocation219_spill] sm:$0xff] %v12111_v54  ;;  %1723 = vbcast.lane.b32.xlu0 %v1681_v18, 336 }
 0x282   : > { %1727 = vbcast.lane.b32.xlu1 %v1681_v18, 344  ;;  %v12113_v55 = vpop.xlane.xlu1 %1486  ;;  %v12115_v39 = vpop.xlane.xlu0 %1483 }
 0x283   : > { %17661 = vst [vmem:[#allocation220_spill] sm:$0xff] %v12113_v55  ;;  %17662 = vst [vmem:[#allocation221_spill] sm:$0xff] %v12115_v39  ;;  %1731 = vbcast.lane.b32.xlu0 %v1681_v18, 352 }
 0x286   : > { %1735 = vbcast.lane.b32.xlu1 %v1681_v18, 360  ;;  %v12117_v50 = vpop.xlane.xlu1 %1492  ;;  %v12119_v27 = vpop.xlane.xlu0 %1489 }
 0x287   : > { %17663 = vst [vmem:[#allocation222_spill] sm:$0xff] %v12117_v50  ;;  %17664 = vst [vmem:[#allocation223_spill] sm:$0xff] %v12119_v27  ;;  %1739 = vbcast.lane.b32.xlu0 %v1681_v18, 368 }
 0x28a   : > { %1743 = vbcast.lane.b32.xlu1 %v1681_v18, 376  ;;  %v12123_v12 = vpop.xlane.xlu1 %1498  ;;  %v12125_v54 = vpop.xlane.xlu0 %1495 }
 0x28b   : > { %17665 = vst [vmem:[#allocation224_spill] sm:$0xff] %v12123_v12  ;;  %17666 = vst [vmem:[#allocation225_spill] sm:$0xff] %v12125_v54  ;;  %1750 = vbcast.lane.b32.xlu0 %v1748_v4, 256 }
 0x28e   : > { %1754 = vbcast.lane.b32.xlu1 %v1748_v4, 264  ;;  %v12127_v55 = vpop.xlane.xlu1 %1504  ;;  %v12129_v39 = vpop.xlane.xlu0 %1501 }
 0x28f   : > { %17667 = vst [vmem:[#allocation226_spill] sm:$0xff] %v12127_v55  ;;  %17668 = vst [vmem:[#allocation227_spill] sm:$0xff] %v12129_v39  ;;  %1758 = vbcast.lane.b32.xlu0 %v1748_v4, 272 }
 0x292   : > { %1762 = vbcast.lane.b32.xlu1 %v1748_v4, 280  ;;  %v12131_v50 = vpop.xlane.xlu1 %1510  ;;  %v12133_v27 = vpop.xlane.xlu0 %1507 }
 0x293   : > { %17669 = vst [vmem:[#allocation228_spill] sm:$0xff] %v12131_v50  ;;  %17670 = vst [vmem:[#allocation229_spill] sm:$0xff] %v12133_v27  ;;  %1766 = vbcast.lane.b32.xlu0 %v1748_v4, 288 }
 0x296   : > { %1770 = vbcast.lane.b32.xlu1 %v1748_v4, 296  ;;  %v12135_v51 = vpop.xlane.xlu1 %1516  ;;  %v12137_v18 = vpop.xlane.xlu0 %1513 }
 0x297   : > { %17671 = vst [vmem:[#allocation230_spill] sm:$0xff] %v12135_v51  ;;  %17672 = vst [vmem:[#allocation231_spill] sm:$0xff] %v12137_v18  ;;  %1774 = vbcast.lane.b32.xlu0 %v1748_v4, 304  ;;  %v12152_v18 = vsub.s32 2, %v11998_v2 }
 0x299   : > { %17679 = vst [vmem:[#allocation238_spill] sm:$0xff] %v12152_v18  ;;  %v1882_v0 = vrot.slane %v12044_v58, %v12152_v18 }
 0x29a   : > { %1778 = vbcast.lane.b32.xlu1 %v1748_v4, 312  ;;  %v12139_v54 = vpop.xlane.xlu1 %1522  ;;  %v12141_v12 = vpop.xlane.xlu0 %1519 }
 0x29b   : > { %17673 = vst [vmem:[#allocation232_spill] sm:$0xff] %v12139_v54  ;;  %17674 = vst [vmem:[#allocation233_spill] sm:$0xff] %v12141_v12  ;;  %1782 = vbcast.lane.b32.xlu0 %v1748_v4, 320 }
 0x29e   : > { %1786 = vbcast.lane.b32.xlu1 %v1748_v4, 328  ;;  %v12143_v39 = vpop.xlane.xlu1 %1528  ;;  %v12145_v55 = vpop.xlane.xlu0 %1525 }
 0x29f   : > { %17675 = vst [vmem:[#allocation234_spill] sm:$0xff] %v12143_v39  ;;  %17676 = vst [vmem:[#allocation235_spill] sm:$0xff] %v12145_v55  ;;  %1790 = vbcast.lane.b32.xlu0 %v1748_v4, 336  ;;  %v1815_v39 = vrot.slane %v12004_v53, %v12152_v18 }
 0x2a2   : > { %1794 = vbcast.lane.b32.xlu1 %v1748_v4, 344  ;;  %v12147_v27 = vpop.xlane.xlu1 %1534  ;;  %v12149_v50 = vpop.xlane.xlu0 %1531 }
 0x2a3   : > { %17677 = vst [vmem:[#allocation236_spill] sm:$0xff] %v12147_v27  ;;  %17678 = vst [vmem:[#allocation237_spill] sm:$0xff] %v12149_v50  ;;  %1798 = vbcast.lane.b32.xlu0 %v1748_v4, 352 }
 0x2a6   : > { %1802 = vbcast.lane.b32.xlu1 %v1748_v4, 360  ;;  %v12154_v54 = vpop.permute.xlu1 %1553  ;;  %v12156_v12 = vpop.permute.xlu0 %1549 }
 0x2a7   : > { %1806 = vbcast.lane.b32.xlu0 %v1748_v4, 368 }
 0x2aa   : > { %1810 = vbcast.lane.b32.xlu1 %v1748_v4, 376  ;;  %v12160_v55 = vpop.permute.xlu1 %1557  ;;  %v12162_v51 = vpop.permute.xlu0 %1565 }
 0x2ab   : > { %1817 = vbcast.lane.b32.xlu0 %v1815_v39, 256 }
 0x2ae   : > { %1821 = vbcast.lane.b32.xlu1 %v1815_v39, 264  ;;  %v12164_v50 = vpop.permute.xlu1 %1561  ;;  %v12166_v27 = vpop.permute.xlu0 %1573 }
 0x2af   : > { %1825 = vbcast.lane.b32.xlu0 %v1815_v39, 272 }
 0x2b2   : > { %1829 = vbcast.lane.b32.xlu1 %v1815_v39, 280  ;;  %v12168_v30 = vpop.permute.xlu1 %1569  ;;  %v12170_v42 = vpop.permute.xlu0 %1581 }
 0x2b3   : > { %1833 = vbcast.lane.b32.xlu0 %v1815_v39, 288 }
 0x2b6   : > { %1837 = vbcast.lane.b32.xlu1 %v1815_v39, 296  ;;  %v12172_v56 = vpop.permute.xlu1 %1577  ;;  %v12174_v4 = vpop.permute.xlu0 %1589 }
 0x2b7   : > { %1841 = vbcast.lane.b32.xlu0 %v1815_v39, 304 }
 0x2ba   : > { %1845 = vbcast.lane.b32.xlu1 %v1815_v39, 312  ;;  %v12176_v19 = vpop.permute.xlu1 %1585  ;;  %v12178_v1 = vpop.permute.xlu0 %1597 }
 0x2bb   : > { %1849 = vbcast.lane.b32.xlu0 %v1815_v39, 320 }
 0x2be   : > { %1853 = vbcast.lane.b32.xlu1 %v1815_v39, 328  ;;  %v12180_v9 = vpop.permute.xlu1 %1593  ;;  %v12182_v14 = vpop.permute.xlu0 %1605 }
 0x2bf   : > { %1857 = vbcast.lane.b32.xlu0 %v1815_v39, 336 }
 0x2c2   : > { %1861 = vbcast.lane.b32.xlu1 %v1815_v39, 344  ;;  %v12184_v31 = vpop.permute.xlu1 %1601  ;;  %v12186_v57 = vpop.permute.xlu0 %1616 }
 0x2c3   : > { %1865 = vbcast.lane.b32.xlu0 %v1815_v39, 352 }
 0x2c6   : > { %1869 = vbcast.lane.b32.xlu1 %v1815_v39, 360  ;;  %v12188_v5 = vpop.permute.xlu1 %1609  ;;  %v12190_v40 = vpop.permute.xlu0 %1624 }
 0x2c7   : > { %1873 = vbcast.lane.b32.xlu0 %v1815_v39, 368 }
 0x2ca   : > { %1877 = vbcast.lane.b32.xlu1 %v1815_v39, 376  ;;  %v12194_v23 = vpop.permute.xlu1 %1620  ;;  %v12196_v25 = vpop.permute.xlu0 %1632 }
 0x2cb   : > { %1884 = vbcast.lane.b32.xlu0 %v1882_v0, 256 }
 0x2ce   : > { %1888 = vbcast.lane.b32.xlu1 %v1882_v0, 264  ;;  %v12198_v6 = vpop.permute.xlu1 %1628  ;;  %v12200_v61 = vpop.permute.xlu0 %1640 }
 0x2cf   : > { %1892 = vbcast.lane.b32.xlu0 %v1882_v0, 272 }
 0x2d2   : > { %1896 = vbcast.lane.b32.xlu1 %v1882_v0, 280  ;;  %v12202_v21 = vpop.permute.xlu1 %1636  ;;  %v12204_v3 = vpop.permute.xlu0 %1648 }
 0x2d3   : > { %17680 = vst [vmem:[#allocation239_spill] sm:$0xff] %v12204_v3  ;;  %1900 = vbcast.lane.b32.xlu0 %v1882_v0, 288 }
 0x2d6   : > { %1904 = vbcast.lane.b32.xlu1 %v1882_v0, 296  ;;  %v12206_v18 = vpop.permute.xlu1 %1644  ;;  %v12208_v39 = vpop.permute.xlu0 %1656 }
 0x2d7   : > { %17681 = vst [vmem:[#allocation240_spill] sm:$0xff] %v12208_v39  ;;  %1908 = vbcast.lane.b32.xlu0 %v1882_v0, 304  ;;  %v12223_v39 = vsub.s32 3, %v11998_v2 }
 0x2d9   : > { %17687 = vst [vmem:[#allocation246_spill] sm:$0xff] %v12223_v39 }
 0x2da   : > { %1912 = vbcast.lane.b32.xlu1 %v1882_v0, 312  ;;  %v12210_v34 = vpop.permute.xlu1 %1652  ;;  %v12212_v33 = vpop.permute.xlu0 %1664 }
 0x2db   : > { %17682 = vst [vmem:[#allocation241_spill] sm:$0xff] %v12212_v33  ;;  %1916 = vbcast.lane.b32.xlu0 %v1882_v0, 320 }
 0x2de   : > { %1920 = vbcast.lane.b32.xlu1 %v1882_v0, 328  ;;  %v12214_v22 = vpop.permute.xlu1 %1660  ;;  %v12216_v20 = vpop.permute.xlu0 %1672 }
 0x2df   : > { %17683 = vst [vmem:[#allocation242_spill] sm:$0xff] %v12214_v22  ;;  %17684 = vst [vmem:[#allocation243_spill] sm:$0xff] %v12216_v20  ;;  %1924 = vbcast.lane.b32.xlu0 %v1882_v0, 336  ;;  %v1949_v22 = vrot.slane %v12004_v53, %v12223_v39 }
 0x2e2   : > { %1928 = vbcast.lane.b32.xlu1 %v1882_v0, 344  ;;  %v12218_v8 = vpop.permute.xlu1 %1668  ;;  %v12220_v35 = vpop.permute.xlu0 %1683 }
 0x2e3   : > { %17685 = vst [vmem:[#allocation244_spill] sm:$0xff] %v12218_v8  ;;  %17686 = vst [vmem:[#allocation245_spill] sm:$0xff] %v12220_v35  ;;  %1932 = vbcast.lane.b32.xlu0 %v1882_v0, 352 }
 0x2e6   : > { %1936 = vbcast.lane.b32.xlu1 %v1882_v0, 360  ;;  %v12225_v37 = vpop.permute.xlu1 %1676  ;;  %v12227_v33 = vpop.permute.xlu0 %1691 }
 0x2e7   : > { %17688 = vst [vmem:[#allocation247_spill] sm:$0xff] %v12225_v37  ;;  %17689 = vst [vmem:[#allocation248_spill] sm:$0xff] %v12227_v33  ;;  %1940 = vbcast.lane.b32.xlu0 %v1882_v0, 368 }
 0x2ea   : > { %1944 = vbcast.lane.b32.xlu1 %v1882_v0, 376  ;;  %v12231_v20 = vpop.permute.xlu1 %1687  ;;  %v12233_v60 = vpop.permute.xlu0 %1699 }
 0x2eb   : > { %17690 = vst [vmem:[#allocation249_spill] sm:$0xff] %v12231_v20  ;;  %17691 = vst [vmem:[#allocation250_spill] sm:$0xff] %v12233_v60  ;;  %1951 = vbcast.lane.b32.xlu0 %v1949_v22, 256 }
 0x2ee   : > { %1955 = vbcast.lane.b32.xlu1 %v1949_v22, 264  ;;  %v12235_v35 = vpop.permute.xlu1 %1695  ;;  %v12237_v8 = vpop.permute.xlu0 %1707 }
 0x2ef   : > { %17692 = vst [vmem:[#allocation251_spill] sm:$0xff] %v12235_v35  ;;  %17693 = vst [vmem:[#allocation252_spill] sm:$0xff] %v12237_v8  ;;  %1959 = vbcast.lane.b32.xlu0 %v1949_v22, 272 }
 0x2f2   : > { %1963 = vbcast.lane.b32.xlu1 %v1949_v22, 280  ;;  %v12239_v37 = vpop.permute.xlu1 %1703  ;;  %v12241_v33 = vpop.permute.xlu0 %1715 }
 0x2f3   : > { %17694 = vst [vmem:[#allocation253_spill] sm:$0xff] %v12239_v37  ;;  %17695 = vst [vmem:[#allocation254_spill] sm:$0xff] %v12241_v33  ;;  %1967 = vbcast.lane.b32.xlu0 %v1949_v22, 288 }
 0x2f6   : > { %1971 = vbcast.lane.b32.xlu1 %v1949_v22, 296  ;;  %v12243_v3 = vpop.permute.xlu1 %1711  ;;  %v12245_v0 = vpop.permute.xlu0 %1723 }
 0x2f7   : > { %17696 = vst [vmem:[#allocation255_spill] sm:$0xff] %v12243_v3  ;;  %17697 = vst [vmem:[#allocation256_spill] sm:$0xff] %v12245_v0  ;;  %1975 = vbcast.lane.b32.xlu0 %v1949_v22, 304 }
 0x2fa   : > { %1979 = vbcast.lane.b32.xlu1 %v1949_v22, 312  ;;  %v12247_v60 = vpop.permute.xlu1 %1719  ;;  %v12249_v20 = vpop.permute.xlu0 %1731 }
 0x2fb   : > { %17698 = vst [vmem:[#allocation257_spill] sm:$0xff] %v12247_v60  ;;  %17699 = vst [vmem:[#allocation258_spill] sm:$0xff] %v12249_v20  ;;  %1983 = vbcast.lane.b32.xlu0 %v1949_v22, 320  ;;  %v2016_v20 = vrot.slane %v12044_v58, %v12223_v39 }
 0x2fe   : > { %1987 = vbcast.lane.b32.xlu1 %v1949_v22, 328  ;;  %v12251_v8 = vpop.permute.xlu1 %1727  ;;  %v12253_v35 = vpop.permute.xlu0 %1739 }
 0x2ff   : > { %17700 = vst [vmem:[#allocation259_spill] sm:$0xff] %v12251_v8  ;;  %17701 = vst [vmem:[#allocation260_spill] sm:$0xff] %v12253_v35  ;;  %1991 = vbcast.lane.b32.xlu0 %v1949_v22, 336 }
 0x302   : > { %1995 = vbcast.lane.b32.xlu1 %v1949_v22, 344  ;;  %v12255_v33 = vpop.permute.xlu1 %1735  ;;  %v12257_v37 = vpop.permute.xlu0 %1750 }
 0x303   : > { %17702 = vst [vmem:[#allocation261_spill] sm:$0xff] %v12255_v33  ;;  %17703 = vst [vmem:[#allocation262_spill] sm:$0xff] %v12257_v37  ;;  %1999 = vbcast.lane.b32.xlu0 %v1949_v22, 352 }
 0x306   : > { %2003 = vbcast.lane.b32.xlu1 %v1949_v22, 360  ;;  %v12259_v0 = vpop.permute.xlu1 %1743  ;;  %v12261_v3 = vpop.permute.xlu0 %1758 }
 0x307   : > { %17704 = vst [vmem:[#allocation263_spill] sm:$0xff] %v12259_v0  ;;  %17705 = vst [vmem:[#allocation264_spill] sm:$0xff] %v12261_v3  ;;  %2007 = vbcast.lane.b32.xlu0 %v1949_v22, 368 }
 0x30a   : > { %2011 = vbcast.lane.b32.xlu1 %v1949_v22, 376  ;;  %v12265_v8 = vpop.permute.xlu1 %1754  ;;  %v12267_v35 = vpop.permute.xlu0 %1766 }
 0x30b   : > { %17706 = vst [vmem:[#allocation265_spill] sm:$0xff] %v12265_v8  ;;  %17707 = vst [vmem:[#allocation266_spill] sm:$0xff] %v12267_v35  ;;  %2018 = vbcast.lane.b32.xlu0 %v2016_v20, 256 }
 0x30e   : > { %2022 = vbcast.lane.b32.xlu1 %v2016_v20, 264  ;;  %v12269_v33 = vpop.permute.xlu1 %1762  ;;  %v12271_v37 = vpop.permute.xlu0 %1774 }
 0x30f   : > { %17708 = vst [vmem:[#allocation267_spill] sm:$0xff] %v12269_v33  ;;  %17709 = vst [vmem:[#allocation268_spill] sm:$0xff] %v12271_v37  ;;  %2026 = vbcast.lane.b32.xlu0 %v2016_v20, 272 }
 0x312   : > { %2030 = vbcast.lane.b32.xlu1 %v2016_v20, 280  ;;  %v12273_v0 = vpop.permute.xlu1 %1770  ;;  %v12275_v3 = vpop.permute.xlu0 %1782 }
 0x313   : > { %17710 = vst [vmem:[#allocation269_spill] sm:$0xff] %v12273_v0  ;;  %17711 = vst [vmem:[#allocation270_spill] sm:$0xff] %v12275_v3  ;;  %2034 = vbcast.lane.b32.xlu0 %v2016_v20, 288 }
 0x316   : > { %2038 = vbcast.lane.b32.xlu1 %v2016_v20, 296  ;;  %v12277_v39 = vpop.permute.xlu1 %1778  ;;  %v12279_v22 = vpop.permute.xlu0 %1790 }
 0x317   : > { %17712 = vst [vmem:[#allocation271_spill] sm:$0xff] %v12277_v39  ;;  %17713 = vst [vmem:[#allocation272_spill] sm:$0xff] %v12279_v22  ;;  %2042 = vbcast.lane.b32.xlu0 %v2016_v20, 304  ;;  %v12294_v22 = vsub.s32 4, %v11998_v2 }
 0x319   : > { %17720 = vst [vmem:[#allocation279_spill] sm:$0xff] %v12294_v22 }
 0x31a   : > { %2046 = vbcast.lane.b32.xlu1 %v2016_v20, 312  ;;  %v12281_v35 = vpop.permute.xlu1 %1786  ;;  %v12283_v8 = vpop.permute.xlu0 %1798 }
 0x31b   : > { %17714 = vst [vmem:[#allocation273_spill] sm:$0xff] %v12281_v35  ;;  %17715 = vst [vmem:[#allocation274_spill] sm:$0xff] %v12283_v8  ;;  %2050 = vbcast.lane.b32.xlu0 %v2016_v20, 320 }
 0x31e   : > { %2054 = vbcast.lane.b32.xlu1 %v2016_v20, 328  ;;  %v12285_v37 = vpop.permute.xlu1 %1794  ;;  %v12287_v33 = vpop.permute.xlu0 %1806 }
 0x31f   : > { %17716 = vst [vmem:[#allocation275_spill] sm:$0xff] %v12285_v37  ;;  %17717 = vst [vmem:[#allocation276_spill] sm:$0xff] %v12287_v33  ;;  %2058 = vbcast.lane.b32.xlu0 %v2016_v20, 336  ;;  %v2083_v37 = vrot.slane %v12004_v53, %v12294_v22 }
 0x322   : > { %2062 = vbcast.lane.b32.xlu1 %v2016_v20, 344  ;;  %v12289_v3 = vpop.permute.xlu1 %1802  ;;  %v12291_v0 = vpop.permute.xlu0 %1817 }
 0x323   : > { %17718 = vst [vmem:[#allocation277_spill] sm:$0xff] %v12289_v3  ;;  %17719 = vst [vmem:[#allocation278_spill] sm:$0xff] %v12291_v0  ;;  %2066 = vbcast.lane.b32.xlu0 %v2016_v20, 352 }
 0x326   : > { %2070 = vbcast.lane.b32.xlu1 %v2016_v20, 360  ;;  %v12296_v35 = vpop.permute.xlu1 %1810  ;;  %v12298_v8 = vpop.permute.xlu0 %1825 }
 0x327   : > { %17721 = vst [vmem:[#allocation280_spill] sm:$0xff] %v12296_v35  ;;  %17722 = vst [vmem:[#allocation281_spill] sm:$0xff] %v12298_v8  ;;  %2074 = vbcast.lane.b32.xlu0 %v2016_v20, 368 }
 0x32a   : > { %2078 = vbcast.lane.b32.xlu1 %v2016_v20, 376  ;;  %v12302_v33 = vpop.permute.xlu1 %1821  ;;  %v12304_v39 = vpop.permute.xlu0 %1833 }
 0x32b   : > { %17723 = vst [vmem:[#allocation282_spill] sm:$0xff] %v12302_v33  ;;  %17724 = vst [vmem:[#allocation283_spill] sm:$0xff] %v12304_v39  ;;  %2085 = vbcast.lane.b32.xlu0 %v2083_v37, 256 }
 0x32e   : > { %2089 = vbcast.lane.b32.xlu1 %v2083_v37, 264  ;;  %v12306_v0 = vpop.permute.xlu1 %1829  ;;  %v12308_v3 = vpop.permute.xlu0 %1841 }
 0x32f   : > { %17725 = vst [vmem:[#allocation284_spill] sm:$0xff] %v12306_v0  ;;  %17726 = vst [vmem:[#allocation285_spill] sm:$0xff] %v12308_v3  ;;  %2093 = vbcast.lane.b32.xlu0 %v2083_v37, 272 }
 0x332   : > { %2097 = vbcast.lane.b32.xlu1 %v2083_v37, 280  ;;  %v12310_v35 = vpop.permute.xlu1 %1837  ;;  %v12312_v8 = vpop.permute.xlu0 %1849 }
 0x333   : > { %17727 = vst [vmem:[#allocation286_spill] sm:$0xff] %v12310_v35  ;;  %17728 = vst [vmem:[#allocation287_spill] sm:$0xff] %v12312_v8  ;;  %2101 = vbcast.lane.b32.xlu0 %v2083_v37, 288 }
 0x336   : > { %2105 = vbcast.lane.b32.xlu1 %v2083_v37, 296  ;;  %v12314_v60 = vpop.permute.xlu1 %1845  ;;  %v12316_v20 = vpop.permute.xlu0 %1857 }
 0x337   : > { %17729 = vst [vmem:[#allocation288_spill] sm:$0xff] %v12314_v60  ;;  %17730 = vst [vmem:[#allocation289_spill] sm:$0xff] %v12316_v20  ;;  %2109 = vbcast.lane.b32.xlu0 %v2083_v37, 304 }
 0x33a   : > { %2113 = vbcast.lane.b32.xlu1 %v2083_v37, 312  ;;  %v12318_v39 = vpop.permute.xlu1 %1853  ;;  %v12320_v33 = vpop.permute.xlu0 %1865 }
 0x33b   : > { %17731 = vst [vmem:[#allocation290_spill] sm:$0xff] %v12318_v39  ;;  %17732 = vst [vmem:[#allocation291_spill] sm:$0xff] %v12320_v33  ;;  %2117 = vbcast.lane.b32.xlu0 %v2083_v37, 320  ;;  %v2150_v33 = vrot.slane %v12044_v58, %v12294_v22 }
 0x33e   : > { %2121 = vbcast.lane.b32.xlu1 %v2083_v37, 328  ;;  %v12322_v3 = vpop.permute.xlu1 %1861  ;;  %v12324_v0 = vpop.permute.xlu0 %1873 }
 0x33f   : > { %17733 = vst [vmem:[#allocation292_spill] sm:$0xff] %v12322_v3  ;;  %17734 = vst [vmem:[#allocation293_spill] sm:$0xff] %v12324_v0  ;;  %2125 = vbcast.lane.b32.xlu0 %v2083_v37, 336 }
 0x342   : > { %2129 = vbcast.lane.b32.xlu1 %v2083_v37, 344  ;;  %v12326_v8 = vpop.permute.xlu1 %1869  ;;  %v12328_v35 = vpop.permute.xlu0 %1884 }
 0x343   : > { %17735 = vst [vmem:[#allocation294_spill] sm:$0xff] %v12326_v8  ;;  %17736 = vst [vmem:[#allocation295_spill] sm:$0xff] %v12328_v35  ;;  %2133 = vbcast.lane.b32.xlu0 %v2083_v37, 352 }
 0x346   : > { %2137 = vbcast.lane.b32.xlu1 %v2083_v37, 360  ;;  %v12330_v20 = vpop.permute.xlu1 %1877  ;;  %v12332_v60 = vpop.permute.xlu0 %1892 }
 0x347   : > { %17737 = vst [vmem:[#allocation296_spill] sm:$0xff] %v12330_v20  ;;  %17738 = vst [vmem:[#allocation297_spill] sm:$0xff] %v12332_v60  ;;  %2141 = vbcast.lane.b32.xlu0 %v2083_v37, 368 }
 0x34a   : > { %2145 = vbcast.lane.b32.xlu1 %v2083_v37, 376  ;;  %v12336_v3 = vpop.permute.xlu1 %1888  ;;  %v12338_v0 = vpop.permute.xlu0 %1900 }
 0x34b   : > { %17739 = vst [vmem:[#allocation298_spill] sm:$0xff] %v12336_v3  ;;  %17740 = vst [vmem:[#allocation299_spill] sm:$0xff] %v12338_v0  ;;  %2152 = vbcast.lane.b32.xlu0 %v2150_v33, 256 }
 0x34e   : > { %2156 = vbcast.lane.b32.xlu1 %v2150_v33, 264  ;;  %v12340_v8 = vpop.permute.xlu1 %1896  ;;  %v12342_v35 = vpop.permute.xlu0 %1908 }
 0x34f   : > { %17741 = vst [vmem:[#allocation300_spill] sm:$0xff] %v12340_v8  ;;  %17742 = vst [vmem:[#allocation301_spill] sm:$0xff] %v12342_v35  ;;  %2160 = vbcast.lane.b32.xlu0 %v2150_v33, 272 }
 0x352   : > { %2164 = vbcast.lane.b32.xlu1 %v2150_v33, 280  ;;  %v12344_v20 = vpop.permute.xlu1 %1904  ;;  %v12346_v60 = vpop.permute.xlu0 %1916 }
 0x353   : > { %17743 = vst [vmem:[#allocation302_spill] sm:$0xff] %v12344_v20  ;;  %17744 = vst [vmem:[#allocation303_spill] sm:$0xff] %v12346_v60  ;;  %2168 = vbcast.lane.b32.xlu0 %v2150_v33, 288 }
 0x356   : > { %2172 = vbcast.lane.b32.xlu1 %v2150_v33, 296  ;;  %v12348_v22 = vpop.permute.xlu1 %1912  ;;  %v12350_v37 = vpop.permute.xlu0 %1924 }
 0x357   : > { %17745 = vst [vmem:[#allocation304_spill] sm:$0xff] %v12348_v22  ;;  %17746 = vst [vmem:[#allocation305_spill] sm:$0xff] %v12350_v37  ;;  %2176 = vbcast.lane.b32.xlu0 %v2150_v33, 304  ;;  %v12365_v37 = vsub.s32 5, %v11998_v2 }
 0x359   : > { %17753 = vst [vmem:[#allocation312_spill] sm:$0xff] %v12365_v37 }
 0x35a   : > { %2180 = vbcast.lane.b32.xlu1 %v2150_v33, 312  ;;  %v12352_v0 = vpop.permute.xlu1 %1920  ;;  %v12354_v3 = vpop.permute.xlu0 %1932 }
 0x35b   : > { %17747 = vst [vmem:[#allocation306_spill] sm:$0xff] %v12352_v0  ;;  %17748 = vst [vmem:[#allocation307_spill] sm:$0xff] %v12354_v3  ;;  %2184 = vbcast.lane.b32.xlu0 %v2150_v33, 320 }
 0x35e   : > { %2188 = vbcast.lane.b32.xlu1 %v2150_v33, 328  ;;  %v12356_v35 = vpop.permute.xlu1 %1928  ;;  %v12358_v8 = vpop.permute.xlu0 %1940 }
 0x35f   : > { %17749 = vst [vmem:[#allocation308_spill] sm:$0xff] %v12356_v35  ;;  %17750 = vst [vmem:[#allocation309_spill] sm:$0xff] %v12358_v8  ;;  %2192 = vbcast.lane.b32.xlu0 %v2150_v33, 336  ;;  %v2217_v35 = vrot.slane %v12004_v53, %v12365_v37 }
 0x362   : > { %2196 = vbcast.lane.b32.xlu1 %v2150_v33, 344  ;;  %v12360_v60 = vpop.permute.xlu1 %1936  ;;  %v12362_v20 = vpop.permute.xlu0 %1951 }
 0x363   : > { %17751 = vst [vmem:[#allocation310_spill] sm:$0xff] %v12360_v60  ;;  %17752 = vst [vmem:[#allocation311_spill] sm:$0xff] %v12362_v20  ;;  %2200 = vbcast.lane.b32.xlu0 %v2150_v33, 352 }
 0x366   : > { %2204 = vbcast.lane.b32.xlu1 %v2150_v33, 360  ;;  %v12367_v0 = vpop.permute.xlu1 %1944  ;;  %v12369_v3 = vpop.permute.xlu0 %1959 }
 0x367   : > { %17754 = vst [vmem:[#allocation313_spill] sm:$0xff] %v12367_v0  ;;  %17755 = vst [vmem:[#allocation314_spill] sm:$0xff] %v12369_v3  ;;  %2208 = vbcast.lane.b32.xlu0 %v2150_v33, 368 }
 0x36a   : > { %2212 = vbcast.lane.b32.xlu1 %v2150_v33, 376  ;;  %v12373_v8 = vpop.permute.xlu1 %1955  ;;  %v12375_v22 = vpop.permute.xlu0 %1967 }
 0x36b   : > { %17756 = vst [vmem:[#allocation315_spill] sm:$0xff] %v12373_v8  ;;  %17757 = vst [vmem:[#allocation316_spill] sm:$0xff] %v12375_v22  ;;  %2219 = vbcast.lane.b32.xlu0 %v2217_v35, 256 }
 0x36e   : > { %2223 = vbcast.lane.b32.xlu1 %v2217_v35, 264  ;;  %v12377_v20 = vpop.permute.xlu1 %1963  ;;  %v12379_v60 = vpop.permute.xlu0 %1975 }
 0x36f   : > { %17758 = vst [vmem:[#allocation317_spill] sm:$0xff] %v12377_v20  ;;  %17759 = vst [vmem:[#allocation318_spill] sm:$0xff] %v12379_v60  ;;  %2227 = vbcast.lane.b32.xlu0 %v2217_v35, 272 }
 0x372   : > { %2231 = vbcast.lane.b32.xlu1 %v2217_v35, 280  ;;  %v12381_v0 = vpop.permute.xlu1 %1971  ;;  %v12383_v3 = vpop.permute.xlu0 %1983 }
 0x373   : > { %17760 = vst [vmem:[#allocation319_spill] sm:$0xff] %v12381_v0  ;;  %17761 = vst [vmem:[#allocation320_spill] sm:$0xff] %v12383_v3  ;;  %2235 = vbcast.lane.b32.xlu0 %v2217_v35, 288 }
 0x376   : > { %2239 = vbcast.lane.b32.xlu1 %v2217_v35, 296  ;;  %v12385_v39 = vpop.permute.xlu1 %1979  ;;  %v12387_v33 = vpop.permute.xlu0 %1991 }
 0x377   : > { %17762 = vst [vmem:[#allocation321_spill] sm:$0xff] %v12385_v39  ;;  %17763 = vst [vmem:[#allocation322_spill] sm:$0xff] %v12387_v33  ;;  %2243 = vbcast.lane.b32.xlu0 %v2217_v35, 304 }
 0x37a   : > { %2247 = vbcast.lane.b32.xlu1 %v2217_v35, 312  ;;  %v12389_v22 = vpop.permute.xlu1 %1987  ;;  %v12391_v8 = vpop.permute.xlu0 %1999 }
 0x37b   : > { %17764 = vst [vmem:[#allocation323_spill] sm:$0xff] %v12389_v22  ;;  %17765 = vst [vmem:[#allocation324_spill] sm:$0xff] %v12391_v8  ;;  %2251 = vbcast.lane.b32.xlu0 %v2217_v35, 320  ;;  %v2284_v8 = vrot.slane %v12044_v58, %v12365_v37 }
 0x37e   : > { %2255 = vbcast.lane.b32.xlu1 %v2217_v35, 328  ;;  %v12393_v60 = vpop.permute.xlu1 %1995  ;;  %v12395_v20 = vpop.permute.xlu0 %2007 }
 0x37f   : > { %17766 = vst [vmem:[#allocation325_spill] sm:$0xff] %v12393_v60  ;;  %17767 = vst [vmem:[#allocation326_spill] sm:$0xff] %v12395_v20  ;;  %2259 = vbcast.lane.b32.xlu0 %v2217_v35, 336 }
 0x382   : > { %2263 = vbcast.lane.b32.xlu1 %v2217_v35, 344  ;;  %v12397_v3 = vpop.permute.xlu1 %2003  ;;  %v12399_v0 = vpop.permute.xlu0 %2018 }
 0x383   : > { %17768 = vst [vmem:[#allocation327_spill] sm:$0xff] %v12397_v3  ;;  %17769 = vst [vmem:[#allocation328_spill] sm:$0xff] %v12399_v0  ;;  %2267 = vbcast.lane.b32.xlu0 %v2217_v35, 352 }
 0x386   : > { %2271 = vbcast.lane.b32.xlu1 %v2217_v35, 360  ;;  %v12401_v33 = vpop.permute.xlu1 %2011  ;;  %v12403_v39 = vpop.permute.xlu0 %2026 }
 0x387   : > { %17770 = vst [vmem:[#allocation329_spill] sm:$0xff] %v12401_v33  ;;  %17771 = vst [vmem:[#allocation330_spill] sm:$0xff] %v12403_v39  ;;  %2275 = vbcast.lane.b32.xlu0 %v2217_v35, 368 }
 0x38a   : > { %2279 = vbcast.lane.b32.xlu1 %v2217_v35, 376  ;;  %v12407_v60 = vpop.permute.xlu1 %2022  ;;  %v12409_v20 = vpop.permute.xlu0 %2034 }
 0x38b   : > { %17772 = vst [vmem:[#allocation331_spill] sm:$0xff] %v12407_v60  ;;  %17773 = vst [vmem:[#allocation332_spill] sm:$0xff] %v12409_v20  ;;  %2286 = vbcast.lane.b32.xlu0 %v2284_v8, 256 }
 0x38e   : > { %2290 = vbcast.lane.b32.xlu1 %v2284_v8, 264  ;;  %v12411_v3 = vpop.permute.xlu1 %2030  ;;  %v12413_v0 = vpop.permute.xlu0 %2042 }
 0x38f   : > { %17774 = vst [vmem:[#allocation333_spill] sm:$0xff] %v12411_v3  ;;  %17775 = vst [vmem:[#allocation334_spill] sm:$0xff] %v12413_v0  ;;  %2294 = vbcast.lane.b32.xlu0 %v2284_v8, 272 }
 0x392   : > { %2298 = vbcast.lane.b32.xlu1 %v2284_v8, 280  ;;  %v12415_v33 = vpop.permute.xlu1 %2038  ;;  %v12417_v39 = vpop.permute.xlu0 %2050 }
 0x393   : > { %17776 = vst [vmem:[#allocation335_spill] sm:$0xff] %v12415_v33  ;;  %17777 = vst [vmem:[#allocation336_spill] sm:$0xff] %v12417_v39  ;;  %2302 = vbcast.lane.b32.xlu0 %v2284_v8, 288 }
 0x396   : > { %2306 = vbcast.lane.b32.xlu1 %v2284_v8, 296  ;;  %v12419_v37 = vpop.permute.xlu1 %2046  ;;  %v12421_v35 = vpop.permute.xlu0 %2058 }
 0x397   : > { %17778 = vst [vmem:[#allocation337_spill] sm:$0xff] %v12419_v37  ;;  %17779 = vst [vmem:[#allocation338_spill] sm:$0xff] %v12421_v35  ;;  %2310 = vbcast.lane.b32.xlu0 %v2284_v8, 304  ;;  %v12436_v35 = vsub.s32 6, %v11998_v2 }
 0x399   : > { %17786 = vst [vmem:[#allocation345_spill] sm:$0xff] %v12436_v35 }
 0x39a   : > { %2314 = vbcast.lane.b32.xlu1 %v2284_v8, 312  ;;  %v12423_v20 = vpop.permute.xlu1 %2054  ;;  %v12425_v60 = vpop.permute.xlu0 %2066 }
 0x39b   : > { %17780 = vst [vmem:[#allocation339_spill] sm:$0xff] %v12423_v20  ;;  %17781 = vst [vmem:[#allocation340_spill] sm:$0xff] %v12425_v60  ;;  %2318 = vbcast.lane.b32.xlu0 %v2284_v8, 320 }
 0x39e   : > { %2322 = vbcast.lane.b32.xlu1 %v2284_v8, 328  ;;  %v12427_v0 = vpop.permute.xlu1 %2062  ;;  %v12429_v3 = vpop.permute.xlu0 %2074 }
 0x39f   : > { %17782 = vst [vmem:[#allocation341_spill] sm:$0xff] %v12427_v0  ;;  %17783 = vst [vmem:[#allocation342_spill] sm:$0xff] %v12429_v3  ;;  %2326 = vbcast.lane.b32.xlu0 %v2284_v8, 336  ;;  %v2351_v0 = vrot.slane %v12004_v53, %v12436_v35  ;;  %v10546_v3 = vmov 0  }
 0x3a0   : > { %9762 = vset.pattern.permute.xlu0 %v10546_v3  ;;  %9763 = vset.pattern.permute.xlu1 %v10546_v3 }
 0x3a2   : > { %2330 = vbcast.lane.b32.xlu1 %v2284_v8, 344  ;;  %v12431_v39 = vpop.permute.xlu1 %2070  ;;  %v12433_v33 = vpop.permute.xlu0 %2085 }
 0x3a3   : > { %17784 = vst [vmem:[#allocation343_spill] sm:$0xff] %v12431_v39  ;;  %17785 = vst [vmem:[#allocation344_spill] sm:$0xff] %v12433_v33  ;;  %2334 = vbcast.lane.b32.xlu0 %v2284_v8, 352 }
 0x3a6   : > { %2338 = vbcast.lane.b32.xlu1 %v2284_v8, 360  ;;  %v12438_v20 = vpop.permute.xlu1 %2078  ;;  %v12440_v60 = vpop.permute.xlu0 %2093 }
 0x3a7   : > { %17787 = vst [vmem:[#allocation346_spill] sm:$0xff] %v12438_v20  ;;  %17788 = vst [vmem:[#allocation347_spill] sm:$0xff] %v12440_v60  ;;  %2342 = vbcast.lane.b32.xlu0 %v2284_v8, 368 }
 0x3aa   : > { %2346 = vbcast.lane.b32.xlu1 %v2284_v8, 376  ;;  %v12444_v39 = vpop.permute.xlu1 %2089  ;;  %v12446_v33 = vpop.permute.xlu0 %2101 }
 0x3ab   : > { %17789 = vst [vmem:[#allocation348_spill] sm:$0xff] %v12444_v39  ;;  %17790 = vst [vmem:[#allocation349_spill] sm:$0xff] %v12446_v33  ;;  %2353 = vbcast.lane.b32.xlu0 %v2351_v0, 256 }
 0x3ae   : > { %2357 = vbcast.lane.b32.xlu1 %v2351_v0, 264  ;;  %v12448_v37 = vpop.permute.xlu1 %2097  ;;  %v12450_v22 = vpop.permute.xlu0 %2109 }
 0x3af   : > { %17791 = vst [vmem:[#allocation350_spill] sm:$0xff] %v12448_v37  ;;  %17792 = vst [vmem:[#allocation351_spill] sm:$0xff] %v12450_v22  ;;  %2361 = vbcast.lane.b32.xlu0 %v2351_v0, 272 }
 0x3b2   : > { %2365 = vbcast.lane.b32.xlu1 %v2351_v0, 280  ;;  %v12452_v60 = vpop.permute.xlu1 %2105  ;;  %v12454_v20 = vpop.permute.xlu0 %2117 }
 0x3b3   : > { %17793 = vst [vmem:[#allocation352_spill] sm:$0xff] %v12452_v60  ;;  %17794 = vst [vmem:[#allocation353_spill] sm:$0xff] %v12454_v20  ;;  %2369 = vbcast.lane.b32.xlu0 %v2351_v0, 288 }
 0x3b6   : > { %2373 = vbcast.lane.b32.xlu1 %v2351_v0, 296  ;;  %v12456_v3 = vpop.permute.xlu1 %2113  ;;  %v12458_v8 = vpop.permute.xlu0 %2125 }
 0x3b7   : > { %17795 = vst [vmem:[#allocation354_spill] sm:$0xff] %v12456_v3  ;;  %17796 = vst [vmem:[#allocation355_spill] sm:$0xff] %v12458_v8  ;;  %2377 = vbcast.lane.b32.xlu0 %v2351_v0, 304 }
 0x3ba   : > { %2381 = vbcast.lane.b32.xlu1 %v2351_v0, 312  ;;  %v12460_v33 = vpop.permute.xlu1 %2121  ;;  %v12462_v39 = vpop.permute.xlu0 %2133 }
 0x3bb   : > { %17797 = vst [vmem:[#allocation356_spill] sm:$0xff] %v12462_v39  ;;  %2385 = vbcast.lane.b32.xlu0 %v2351_v0, 320  ;;  %v2418_v39 = vrot.slane %v12044_v58, %v12436_v35 }
 0x3be   : > { %2389 = vbcast.lane.b32.xlu1 %v2351_v0, 328  ;;  %v12464_v22 = vpop.permute.xlu1 %2129  ;;  %v12466_v37 = vpop.permute.xlu0 %2141 }
 0x3bf   : > { %17798 = vst [vmem:[#allocation357_spill] sm:$0xff] %v12464_v22  ;;  %17799 = vst [vmem:[#allocation358_spill] sm:$0xff] %v12466_v37  ;;  %2393 = vbcast.lane.b32.xlu0 %v2351_v0, 336 }
 0x3c2   : > { %2397 = vbcast.lane.b32.xlu1 %v2351_v0, 344  ;;  %v12468_v20 = vpop.permute.xlu1 %2137  ;;  %v12470_v60 = vpop.permute.xlu0 %2152 }
 0x3c3   : > { %17800 = vst [vmem:[#allocation359_spill] sm:$0xff] %v12468_v20  ;;  %17801 = vst [vmem:[#allocation360_spill] sm:$0xff] %v12470_v60  ;;  %2401 = vbcast.lane.b32.xlu0 %v2351_v0, 352 }
 0x3c6   : > { %2405 = vbcast.lane.b32.xlu1 %v2351_v0, 360  ;;  %v12472_v8 = vpop.permute.xlu1 %2145  ;;  %v12474_v3 = vpop.permute.xlu0 %2160 }
 0x3c7   : > { %17802 = vst [vmem:[#allocation361_spill] sm:$0xff] %v12472_v8  ;;  %17803 = vst [vmem:[#allocation362_spill] sm:$0xff] %v12474_v3  ;;  %2409 = vbcast.lane.b32.xlu0 %v2351_v0, 368 }
 0x3ca   : > { %2413 = vbcast.lane.b32.xlu1 %v2351_v0, 376  ;;  %v12478_v22 = vpop.permute.xlu1 %2156  ;;  %v12480_v37 = vpop.permute.xlu0 %2168 }
 0x3cb   : > { %17804 = vst [vmem:[#allocation363_spill] sm:$0xff] %v12478_v22  ;;  %17805 = vst [vmem:[#allocation364_spill] sm:$0xff] %v12480_v37  ;;  %2420 = vbcast.lane.b32.xlu0 %v2418_v39, 256 }
 0x3ce   : > { %2424 = vbcast.lane.b32.xlu1 %v2418_v39, 264  ;;  %v12482_v20 = vpop.permute.xlu1 %2164  ;;  %v12484_v60 = vpop.permute.xlu0 %2176 }
 0x3cf   : > { %17806 = vst [vmem:[#allocation365_spill] sm:$0xff] %v12482_v20  ;;  %17807 = vst [vmem:[#allocation366_spill] sm:$0xff] %v12484_v60  ;;  %2428 = vbcast.lane.b32.xlu0 %v2418_v39, 272 }
 0x3d2   : > { %2432 = vbcast.lane.b32.xlu1 %v2418_v39, 280  ;;  %v12486_v8 = vpop.permute.xlu1 %2172  ;;  %v12488_v3 = vpop.permute.xlu0 %2184 }
 0x3d3   : > { %17808 = vst [vmem:[#allocation367_spill] sm:$0xff] %v12486_v8  ;;  %17809 = vst [vmem:[#allocation368_spill] sm:$0xff] %v12488_v3  ;;  %2436 = vbcast.lane.b32.xlu0 %v2418_v39, 288 }
 0x3d6   : > { %2440 = vbcast.lane.b32.xlu1 %v2418_v39, 296  ;;  %v12490_v35 = vpop.permute.xlu1 %2180  ;;  %v12492_v0 = vpop.permute.xlu0 %2192 }
 0x3d7   : > { %17810 = vst [vmem:[#allocation369_spill] sm:$0xff] %v12490_v35  ;;  %17811 = vst [vmem:[#allocation370_spill] sm:$0xff] %v12492_v0  ;;  %2444 = vbcast.lane.b32.xlu0 %v2418_v39, 304  ;;  %v12507_v0 = vsub.s32 7, %v11998_v2 }
 0x3d9   : > { %17817 = vst [vmem:[#allocation376_spill] sm:$0xff] %v12507_v0 }
 0x3da   : > { %2448 = vbcast.lane.b32.xlu1 %v2418_v39, 312  ;;  %v12494_v37 = vpop.permute.xlu1 %2188  ;;  %v12496_v22 = vpop.permute.xlu0 %2200 }
 0x3db   : > { %17812 = vst [vmem:[#allocation371_spill] sm:$0xff] %v12494_v37  ;;  %17813 = vst [vmem:[#allocation372_spill] sm:$0xff] %v12496_v22  ;;  %2452 = vbcast.lane.b32.xlu0 %v2418_v39, 320 }
 0x3de   : > { %2456 = vbcast.lane.b32.xlu1 %v2418_v39, 328  ;;  %v12498_v60 = vpop.permute.xlu1 %2196  ;;  %v12500_v20 = vpop.permute.xlu0 %2208 }
 0x3df   : > { %17814 = vst [vmem:[#allocation373_spill] sm:$0xff] %v12498_v60  ;;  %17815 = vst [vmem:[#allocation374_spill] sm:$0xff] %v12500_v20  ;;  %2460 = vbcast.lane.b32.xlu0 %v2418_v39, 336  ;;  %v2485_v60 = vrot.slane %v12004_v53, %v12507_v0 }
 0x3e2   : > { %2464 = vbcast.lane.b32.xlu1 %v2418_v39, 344  ;;  %v12502_v3 = vpop.permute.xlu1 %2204  ;;  %v12504_v8 = vpop.permute.xlu0 %2219 }
 0x3e3   : > { %17816 = vst [vmem:[#allocation375_spill] sm:$0xff] %v12504_v8  ;;  %2468 = vbcast.lane.b32.xlu0 %v2418_v39, 352 }
 0x3e6   : > { %2472 = vbcast.lane.b32.xlu1 %v2418_v39, 360  ;;  %v12509_v37 = vpop.permute.xlu1 %2212  ;;  %v12511_v22 = vpop.permute.xlu0 %2227 }
 0x3e7   : > { %17818 = vst [vmem:[#allocation377_spill] sm:$0xff] %v12509_v37  ;;  %17819 = vst [vmem:[#allocation378_spill] sm:$0xff] %v12511_v22  ;;  %2476 = vbcast.lane.b32.xlu0 %v2418_v39, 368 }
 0x3ea   : > { %2480 = vbcast.lane.b32.xlu1 %v2418_v39, 376  ;;  %v12515_v20 = vpop.permute.xlu1 %2223  ;;  %v12517_v35 = vpop.permute.xlu0 %2235 }
 0x3eb   : > { %17820 = vst [vmem:[#allocation379_spill] sm:$0xff] %v12515_v20  ;;  %17821 = vst [vmem:[#allocation380_spill] sm:$0xff] %v12517_v35  ;;  %2487 = vbcast.lane.b32.xlu0 %v2485_v60, 256 }
 0x3ee   : > { %2491 = vbcast.lane.b32.xlu1 %v2485_v60, 264  ;;  %v12519_v8 = vpop.permute.xlu1 %2231  ;;  %v12521_v2 = vpop.permute.xlu0 %2243 }
 0x3ef   : > { %17822 = vst [vmem:[#allocation381_spill] sm:$0xff] %v12519_v8  ;;  %17823 = vst [vmem:[#allocation382_spill] sm:$0xff] %v12521_v2  ;;  %2495 = vbcast.lane.b32.xlu0 %v2485_v60, 272 }
 0x3f2   : > { %2499 = vbcast.lane.b32.xlu1 %v2485_v60, 280  ;;  %v12523_v37 = vpop.permute.xlu1 %2239  ;;  %v12525_v22 = vpop.permute.xlu0 %2251 }
 0x3f3   : > { %17824 = vst [vmem:[#allocation383_spill] sm:$0xff] %v12523_v37  ;;  %17825 = vst [vmem:[#allocation384_spill] sm:$0xff] %v12525_v22  ;;  %2503 = vbcast.lane.b32.xlu0 %v2485_v60, 288 }
 0x3f6   : > { %2507 = vbcast.lane.b32.xlu1 %v2485_v60, 296  ;;  %v12527_v53 = vpop.permute.xlu1 %2247  ;;  %v12529_v39 = vpop.permute.xlu0 %2259 }
 0x3f7   : > { %17826 = vst [vmem:[#allocation385_spill] sm:$0xff] %v12527_v53  ;;  %17827 = vst [vmem:[#allocation386_spill] sm:$0xff] %v12529_v39  ;;  %2511 = vbcast.lane.b32.xlu0 %v2485_v60, 304 }
 0x3fa   : > { %2515 = vbcast.lane.b32.xlu1 %v2485_v60, 312  ;;  %v12531_v35 = vpop.permute.xlu1 %2255  ;;  %v12533_v20 = vpop.permute.xlu0 %2267 }
 0x3fb   : > { %17828 = vst [vmem:[#allocation387_spill] sm:$0xff] %v12533_v20  ;;  %2519 = vbcast.lane.b32.xlu0 %v2485_v60, 320  ;;  %v2552_v20 = vrot.slane %v12044_v58, %v12507_v0 }
 0x3fe   : > { %2523 = vbcast.lane.b32.xlu1 %v2485_v60, 328  ;;  %v12535_v2 = vpop.permute.xlu1 %2263  ;;  %v12537_v8 = vpop.permute.xlu0 %2275 }
 0x3ff   : > { %17829 = vst [vmem:[#allocation388_spill] sm:$0xff] %v12535_v2  ;;  %17830 = vst [vmem:[#allocation389_spill] sm:$0xff] %v12537_v8  ;;  %2527 = vbcast.lane.b32.xlu0 %v2485_v60, 336 }
 0x402   : > { %2531 = vbcast.lane.b32.xlu1 %v2485_v60, 344  ;;  %v12539_v22 = vpop.permute.xlu1 %2271  ;;  %v12541_v37 = vpop.permute.xlu0 %2286 }
 0x403   : > { %17831 = vst [vmem:[#allocation390_spill] sm:$0xff] %v12539_v22  ;;  %17832 = vst [vmem:[#allocation391_spill] sm:$0xff] %v12541_v37  ;;  %2535 = vbcast.lane.b32.xlu0 %v2485_v60, 352 }
 0x406   : > { %2539 = vbcast.lane.b32.xlu1 %v2485_v60, 360  ;;  %v12543_v39 = vpop.permute.xlu1 %2279  ;;  %v12545_v53 = vpop.permute.xlu0 %2294 }
 0x407   : > { %17833 = vst [vmem:[#allocation392_spill] sm:$0xff] %v12543_v39  ;;  %17834 = vst [vmem:[#allocation393_spill] sm:$0xff] %v12545_v53  ;;  %2543 = vbcast.lane.b32.xlu0 %v2485_v60, 368 }
 0x40a   : > { %2547 = vbcast.lane.b32.xlu1 %v2485_v60, 376  ;;  %v12549_v2 = vpop.permute.xlu1 %2290  ;;  %v12551_v8 = vpop.permute.xlu0 %2302 }
 0x40b   : > { %17835 = vst [vmem:[#allocation394_spill] sm:$0xff] %v12551_v8  ;;  %2554 = vbcast.lane.b32.xlu0 %v2552_v20, 256 }
 0x40e   : > { %2558 = vbcast.lane.b32.xlu1 %v2552_v20, 264  ;;  %v12553_v22 = vpop.permute.xlu1 %2298  ;;  %v12555_v37 = vpop.permute.xlu0 %2310 }
 0x40f   : > { %17836 = vst [vmem:[#allocation395_spill] sm:$0xff] %v12553_v22  ;;  %17837 = vst [vmem:[#allocation396_spill] sm:$0xff] %v12555_v37  ;;  %2562 = vbcast.lane.b32.xlu0 %v2552_v20, 272 }
 0x412   : > { %2566 = vbcast.lane.b32.xlu1 %v2552_v20, 280  ;;  %v12557_v39 = vpop.permute.xlu1 %2306  ;;  %v12559_v53 = vpop.permute.xlu0 %2318 }
 0x413   : > { %17838 = vst [vmem:[#allocation397_spill] sm:$0xff] %v12557_v39  ;;  %17839 = vst [vmem:[#allocation398_spill] sm:$0xff] %v12559_v53  ;;  %2570 = vbcast.lane.b32.xlu0 %v2552_v20, 288 }
 0x416   : > { %2574 = vbcast.lane.b32.xlu1 %v2552_v20, 296  ;;  %v12561_v58 = vpop.permute.xlu1 %2314  ;;  %v12563_v60 = vpop.permute.xlu0 %2326 }
 0x417   : > { %17840 = vst [vmem:[#allocation399_spill] sm:$0xff] %v12561_v58  ;;  %17841 = vst [vmem:[#allocation400_spill] sm:$0xff] %v12563_v60  ;;  %2578 = vbcast.lane.b32.xlu0 %v2552_v20, 304 }
 0x41a   : > { %2582 = vbcast.lane.b32.xlu1 %v2552_v20, 312  ;;  %v12565_v0 = vpop.permute.xlu1 %2322  ;;  %v12567_v8 = vpop.permute.xlu0 %2334 }
 0x41b   : > { %17842 = vst [vmem:[#allocation401_spill] sm:$0xff] %v12567_v8  ;;  %2586 = vbcast.lane.b32.xlu0 %v2552_v20, 320  ;;  %v12583_v8 = vadd.f32 %v12156_v12, %v11049_v28  ;;  %v12606_v12 = vadd.f32 %v12160_v55, %v11047_v16  ;;  %v12624_v16 = vadd.f32 %v12172_v56, %v11077_v41 }
 0x41c   : > { %v12648_v56 = vadd.f32 %v12170_v42, %v11089_v26  ;;  %v12666_v26 = vadd.f32 %v12184_v31, %v11107_v47  ;;  %v12690_v31 = vadd.f32 %v12182_v14, %v11119_v17  ;;  %v12708_v17 = vadd.f32 %v12198_v6, %v11137_v13 }
 0x41d   : > { %17848 = vst [vmem:[#allocation407_spill] sm:$0xff] %v12583_v8  ;;  %17851 = vst [vmem:[#allocation410_spill] sm:$0xff] %v12606_v12  ;;  %v12732_v6 = vadd.f32 %v12196_v25, %v11149_v36  ;;  %v12750_v36 = vadd.f32 %v12210_v34, %v11167_v45  ;;  %v17878_v34 = vld [vmem:[#allocation6_spill] sm:$0xff] }
 0x41e   : > { %2590 = vbcast.lane.b32.xlu1 %v2552_v20, 328  ;;  %v12569_v37 = vpop.permute.xlu1 %2330  ;;  %v12571_v22 = vpop.permute.xlu0 %2342  ;;  %17854 = vst [vmem:[#allocation413_spill] sm:$0xff] %v12624_v16  ;;  %17857 = vst [vmem:[#allocation416_spill] sm:$0xff] %v12648_v56 }
 0x41f   : > { %17843 = vst [vmem:[#allocation402_spill] sm:$0xff] %v12569_v37  ;;  %17844 = vst [vmem:[#allocation403_spill] sm:$0xff] %v12571_v22  ;;  %2594 = vbcast.lane.b32.xlu0 %v2552_v20, 336 }
 0x420   : > { %17860 = vst [vmem:[#allocation419_spill] sm:$0xff] %v12666_v26  ;;  %17863 = vst [vmem:[#allocation422_spill] sm:$0xff] %v12690_v31 }
 0x421   : > { %17866 = vst [vmem:[#allocation425_spill] sm:$0xff] %v12708_v17  ;;  %17869 = vst [vmem:[#allocation428_spill] sm:$0xff] %v12732_v6 }
 0x422   : > { %2598 = vbcast.lane.b32.xlu1 %v2552_v20, 344  ;;  %v12573_v53 = vpop.permute.xlu1 %2338  ;;  %v12575_v39 = vpop.permute.xlu0 %2353  ;;  %17872 = vst [vmem:[#allocation431_spill] sm:$0xff] %v12750_v36 }
 0x423   : > { %17845 = vst [vmem:[#allocation404_spill] sm:$0xff] %v12575_v39  ;;  %2602 = vbcast.lane.b32.xlu0 %v2552_v20, 352  ;;  %v12592_v39 = vadd.f32 %v12154_v54, %v11059_v52  ;;  %v12610_v52 = vadd.f32 %v12168_v30, %v11067_v48  ;;  %v12634_v30 = vadd.f32 %v12166_v27, %v11079_v44 }
 0x424   : > { %v12652_v44 = vadd.f32 %v12180_v9, %v11097_v38  ;;  %v12676_v9 = vadd.f32 %v12178_v1, %v11109_v10  ;;  %v12694_v10 = vadd.f32 %v12194_v23, %v11127_v11  ;;  %v12718_v23 = vadd.f32 %v12190_v40, %v11139_v15 }
 0x425   : > { %17849 = vst [vmem:[#allocation408_spill] sm:$0xff] %v12592_v39  ;;  %17852 = vst [vmem:[#allocation411_spill] sm:$0xff] %v12610_v52  ;;  %v12736_v15 = vadd.f32 %v12206_v18, %v11156_v32  ;;  %v17873_v18 = vld [vmem:[#allocation239_spill] sm:$0xff] }
 0x426   : > { %2606 = vbcast.lane.b32.xlu1 %v2552_v20, 360  ;;  %v12577_v60 = vpop.permute.xlu1 %2346  ;;  %v12579_v58 = vpop.permute.xlu0 %2361  ;;  %17855 = vst [vmem:[#allocation414_spill] sm:$0xff] %v12634_v30  ;;  %17858 = vst [vmem:[#allocation417_spill] sm:$0xff] %v12652_v44 }
 0x427   : > { %17846 = vst [vmem:[#allocation405_spill] sm:$0xff] %v12577_v60  ;;  %17847 = vst [vmem:[#allocation406_spill] sm:$0xff] %v12579_v58  ;;  %2610 = vbcast.lane.b32.xlu0 %v2552_v20, 368  ;;  %v12596_v60 = vadd.f32 %v12164_v50, %v11057_v49  ;;  %v12620_v50 = vadd.f32 %v12162_v51, %v11069_v59  ;;  %v12638_v59 = vadd.f32 %v12176_v19, %v11087_v24 }
 0x428   : > { %v12662_v19 = vadd.f32 %v12174_v4, %v11099_v43  ;;  %17861 = vst [vmem:[#allocation420_spill] sm:$0xff] %v12676_v9  ;;  %v12680_v43 = vadd.f32 %v12188_v5, %v11117_v63  ;;  %17864 = vst [vmem:[#allocation423_spill] sm:$0xff] %v12694_v10  ;;  %v12704_v5 = vadd.f32 %v12186_v57, %v11129_v7 }
 0x429   : > { %17850 = vst [vmem:[#allocation409_spill] sm:$0xff] %v12596_v60  ;;  %17853 = vst [vmem:[#allocation412_spill] sm:$0xff] %v12620_v50  ;;  %v12722_v7 = vadd.f32 %v12202_v21, %v11147_v29  ;;  %v12746_v21 = vadd.f32 %v12200_v61, %v11158_v62 }
 0x42a   : > { %2614 = vbcast.lane.b32.xlu1 %v2552_v20, 376  ;;  %v12585_v37 = vpop.permute.xlu1 %2357  ;;  %v12587_v22 = vpop.permute.xlu0 %2369  ;;  %17856 = vst [vmem:[#allocation415_spill] sm:$0xff] %v12638_v59  ;;  %17859 = vst [vmem:[#allocation418_spill] sm:$0xff] %v12662_v19  ;;  %v12760_v20 = vadd.f32 %v17873_v18, %v11169_v46 }
 0x42b   : > { %3385 = vperm.xlu0 %9762, %v12583_v8   ;;  %17862 = vst [vmem:[#allocation421_spill] sm:$0xff] %v12680_v43  ;;  %17865 = vst [vmem:[#allocation424_spill] sm:$0xff] %v12704_v5 }
 0x42c   : > { %17867 = vst [vmem:[#allocation426_spill] sm:$0xff] %v12718_v23  ;;  %17868 = vst [vmem:[#allocation427_spill] sm:$0xff] %v12722_v7 }
 0x42d   : > { %17870 = vst [vmem:[#allocation429_spill] sm:$0xff] %v12736_v15  ;;  %17871 = vst [vmem:[#allocation430_spill] sm:$0xff] %v12746_v21 }
 0x42e   : > { %v12598_v58 = vpop.permute.xlu1 %2365  ;;  %3388 = vperm.xlu1 %9763, %v12592_v39   ;;  %v12601_v28 = vpop.permute.xlu0 %2377  ;;  %17874 = vst [vmem:[#allocation239_spill] sm:$0xff] %v12760_v20 }
 0x42f   : > { %3394 = vperm.xlu0 %9762, %v12596_v60  }
 0x432   : > { %v12612_v54 = vpop.permute.xlu1 %2373  ;;  %3391 = vperm.xlu1 %9763, %v12606_v12   ;;  %v12615_v49 = vpop.permute.xlu0 %2385  ;;  %v17931_v12 = vld [vmem:[#allocation261_spill] sm:$0xff] }
 0x433   : > { %3400 = vperm.xlu0 %9762, %v12610_v52  }
 0x436   : > { %v12626_v55 = vpop.permute.xlu1 %2381  ;;  %3397 = vperm.xlu1 %9763, %v12620_v50   ;;  %v12629_v48 = vpop.permute.xlu0 %2393 }
 0x437   : > { %3406 = vperm.xlu0 %9762, %v12624_v16  }
 0x43a   : > { %v12640_v51 = vpop.permute.xlu1 %2389  ;;  %3403 = vperm.xlu1 %9763, %v12634_v30   ;;  %v12643_v41 = vpop.permute.xlu0 %2401 }
 0x43b   : > { %3412 = vperm.xlu0 %9762, %v12638_v59   ;;  %v17938_v59 = vld [vmem:[#allocation263_spill] sm:$0xff] }
 0x43e   : > { %v12654_v27 = vpop.permute.xlu1 %2397  ;;  %3409 = vperm.xlu1 %9763, %v12648_v56   ;;  %v12657_v24 = vpop.permute.xlu0 %2409 }
 0x43f   : > { %3418 = vperm.xlu0 %9762, %v12652_v44   ;;  %v17887_v44 = vld [vmem:[#allocation9_spill] sm:$0xff] }
 0x442   : > { %v12668_v42 = vpop.permute.xlu1 %2405  ;;  %3415 = vperm.xlu1 %9763, %v12662_v19   ;;  %v12671_v38 = vpop.permute.xlu0 %2420 }
 0x443   : > { %3424 = vperm.xlu0 %9762, %v12666_v26   ;;  %v17882_v26 = vld [vmem:[#allocation244_spill] sm:$0xff] }
 0x446   : > { %v12682_v4 = vpop.permute.xlu1 %2413  ;;  %3421 = vperm.xlu1 %9763, %v12676_v9   ;;  %v12685_v47 = vpop.permute.xlu0 %2428 }
 0x447   : > { %3430 = vperm.xlu0 %9762, %v12680_v43   ;;  %v17924_v43 = vld [vmem:[#allocation259_spill] sm:$0xff] }
 0x44a   : > { %v12696_v1 = vpop.permute.xlu1 %2424  ;;  %3427 = vperm.xlu1 %9763, %v12690_v31   ;;  %v12699_v63 = vpop.permute.xlu0 %2436  ;;  %v17881_v31 = vld [vmem:[#allocation7_spill] sm:$0xff] }
 0x44b   : > { %3436 = vperm.xlu0 %9762, %v12694_v10   ;;  %v12778_v46 = vadd.f32 %v17882_v26, %v17881_v31  ;;  %v17890_v31 = vld [vmem:[#allocation10_spill] sm:$0xff]  ;;  %v17918_v10 = vld [vmem:[#allocation257_spill] sm:$0xff] }
 0x44d   : > { %17883 = vst [vmem:[#allocation6_spill] sm:$0xff] %v12778_v46 }
 0x44e   : > { %v12710_v14 = vpop.permute.xlu1 %2432  ;;  %3433 = vperm.xlu1 %9763, %v12704_v5   ;;  %v12713_v11 = vpop.permute.xlu0 %2444 }
 0x44f   : > { %3442 = vperm.xlu0 %9762, %v12708_v17   ;;  %v17912_v17 = vld [vmem:[#allocation255_spill] sm:$0xff] }
 0x452   : > { %v12724_v57 = vpop.permute.xlu1 %2440  ;;  %3439 = vperm.xlu1 %9763, %v12718_v23   ;;  %v12727_v13 = vpop.permute.xlu0 %2452  ;;  %v17876_v23 = vld [vmem:[#allocation242_spill] sm:$0xff] }
 0x453   : > { %3448 = vperm.xlu0 %9762, %v12722_v7   ;;  %v17906_v7 = vld [vmem:[#allocation253_spill] sm:$0xff] }
 0x456   : > { %v12738_v40 = vpop.permute.xlu1 %2448  ;;  %3445 = vperm.xlu1 %9763, %v12732_v6   ;;  %v12741_v29 = vpop.permute.xlu0 %2460  ;;  %v17875_v6 = vld [vmem:[#allocation5_spill] sm:$0xff] }
 0x457   : > { %3454 = vperm.xlu0 %9762, %v12736_v15   ;;  %v12764_v62 = vadd.f32 %v17876_v23, %v17875_v6  ;;  %v17884_v6 = vld [vmem:[#allocation8_spill] sm:$0xff]  ;;  %v17900_v15 = vld [vmem:[#allocation251_spill] sm:$0xff] }
 0x459   : > { %17877 = vst [vmem:[#allocation5_spill] sm:$0xff] %v12764_v62 }
 0x45a   : > { %v12752_v25 = vpop.permute.xlu1 %2456  ;;  %3451 = vperm.xlu1 %9763, %v12746_v21   ;;  %v12755_v32 = vpop.permute.xlu0 %2468  ;;  %v17879_v21 = vld [vmem:[#allocation240_spill] sm:$0xff] }
 0x45b   : > { %3460 = vperm.xlu0 %9762, %v12750_v36   ;;  %v12774_v5 = vadd.f32 %v17879_v21, %v17878_v34  ;;  %v17894_v36 = vld [vmem:[#allocation249_spill] sm:$0xff] }
 0x45d   : > { %17880 = vst [vmem:[#allocation242_spill] sm:$0xff] %v12774_v5 }
 0x45e   : > { %v12766_v61 = vpop.permute.xlu1 %2464  ;;  %3457 = vperm.xlu1 %9763, %v12760_v20   ;;  %v12769_v45 = vpop.permute.xlu0 %2476  ;;  %v17885_v20 = vld [vmem:[#allocation241_spill] sm:$0xff] }
 0x45f   : > { %3466 = vperm.xlu0 %9762, %v12764_v62   ;;  %v12788_v9 = vadd.f32 %v17885_v20, %v17884_v6  ;;  %v17888_v62 = vld [vmem:[#allocation247_spill] sm:$0xff] }
 0x460   : > { %v12792_v21 = vadd.f32 %v17888_v62, %v17887_v44  ;;  %v17896_v62 = vld [vmem:[#allocation12_spill] sm:$0xff] }
 0x461   : > { %17886 = vst [vmem:[#allocation240_spill] sm:$0xff] %v12788_v9 }
 0x462   : > { %v12780_v18 = vpop.permute.xlu1 %2472  ;;  %3463 = vperm.xlu1 %9763, %v12774_v5   ;;  %v12783_v23 = vpop.permute.xlu0 %2487  ;;  %17889 = vst [vmem:[#allocation7_spill] sm:$0xff] %v12792_v21  ;;  %v17891_v5 = vld [vmem:[#allocation243_spill] sm:$0xff] }
 0x463   : > { %3472 = vperm.xlu0 %9762, %v12778_v46   ;;  %v12802_v19 = vadd.f32 %v17891_v5, %v17890_v31  ;;  %v17893_v46 = vld [vmem:[#allocation11_spill] sm:$0xff] }
 0x464   : > { %v12806_v20 = vadd.f32 %v17894_v36, %v17893_v46  ;;  %v17902_v46 = vld [vmem:[#allocation14_spill] sm:$0xff] }
 0x465   : > { %17892 = vst [vmem:[#allocation244_spill] sm:$0xff] %v12802_v19 }
 0x466   : > { %v12794_v34 = vpop.permute.xlu1 %2480  ;;  %3469 = vperm.xlu1 %9763, %v12788_v9   ;;  %v12797_v26 = vpop.permute.xlu0 %2495  ;;  %17895 = vst [vmem:[#allocation8_spill] sm:$0xff] %v12806_v20  ;;  %v17897_v9 = vld [vmem:[#allocation245_spill] sm:$0xff] }
 0x467   : > { %3478 = vperm.xlu0 %9762, %v12792_v21   ;;  %v12816_v56 = vadd.f32 %v17897_v9, %v17896_v62  ;;  %v17899_v21 = vld [vmem:[#allocation13_spill] sm:$0xff] }
 0x468   : > { %v12820_v5 = vadd.f32 %v17900_v15, %v17899_v21  ;;  %v17908_v21 = vld [vmem:[#allocation16_spill] sm:$0xff] }
 0x469   : > { %17898 = vst [vmem:[#allocation241_spill] sm:$0xff] %v12816_v56 }
 0x46a   : > { %v12808_v6 = vpop.permute.xlu1 %2491  ;;  %3475 = vperm.xlu1 %9763, %v12802_v19   ;;  %v12811_v44 = vpop.permute.xlu0 %2503  ;;  %17901 = vst [vmem:[#allocation9_spill] sm:$0xff] %v12820_v5  ;;  %v17903_v19 = vld [vmem:[#allocation248_spill] sm:$0xff] }
 0x46b   : > { %3484 = vperm.xlu0 %9762, %v12806_v20   ;;  %v12830_v16 = vadd.f32 %v17903_v19, %v17902_v46  ;;  %v17905_v20 = vld [vmem:[#allocation15_spill] sm:$0xff] }
 0x46c   : > { %v12834_v9 = vadd.f32 %v17906_v7, %v17905_v20  ;;  %v17914_v20 = vld [vmem:[#allocation18_spill] sm:$0xff] }
 0x46d   : > { %17904 = vst [vmem:[#allocation247_spill] sm:$0xff] %v12830_v16 }
 0x46e   : > { %v12822_v31 = vpop.permute.xlu1 %2499  ;;  %3481 = vperm.xlu1 %9763, %v12816_v56   ;;  %v12825_v36 = vpop.permute.xlu0 %2511  ;;  %17907 = vst [vmem:[#allocation10_spill] sm:$0xff] %v12834_v9  ;;  %v17909_v56 = vld [vmem:[#allocation250_spill] sm:$0xff] }
 0x46f   : > { %3490 = vperm.xlu0 %9762, %v12820_v5   ;;  %v12844_v30 = vadd.f32 %v17909_v56, %v17908_v21  ;;  %v17911_v5 = vld [vmem:[#allocation17_spill] sm:$0xff] }
 0x470   : > { %v12848_v19 = vadd.f32 %v17912_v17, %v17911_v5  ;;  %v17920_v5 = vld [vmem:[#allocation20_spill] sm:$0xff] }
 0x471   : > { %17910 = vst [vmem:[#allocation243_spill] sm:$0xff] %v12844_v30 }
 0x472   : > { %v12836_v62 = vpop.permute.xlu1 %2507  ;;  %3487 = vperm.xlu1 %9763, %v12830_v16   ;;  %v12839_v15 = vpop.permute.xlu0 %2519  ;;  %17913 = vst [vmem:[#allocation11_spill] sm:$0xff] %v12848_v19  ;;  %v17915_v16 = vld [vmem:[#allocation252_spill] sm:$0xff] }
 0x473   : > { %3496 = vperm.xlu0 %9762, %v12834_v9   ;;  %v12858_v52 = vadd.f32 %v17915_v16, %v17914_v20  ;;  %v17917_v9 = vld [vmem:[#allocation19_spill] sm:$0xff] }
 0x474   : > { %v12862_v56 = vadd.f32 %v17918_v10, %v17917_v9  ;;  %v17927_v9 = vld [vmem:[#allocation22_spill] sm:$0xff] }
 0x475   : > { %17916 = vst [vmem:[#allocation249_spill] sm:$0xff] %v12858_v52 }
 0x476   : > { %v12850_v46 = vpop.permute.xlu1 %2515  ;;  %3493 = vperm.xlu1 %9763, %v12844_v30   ;;  %v12853_v7 = vpop.permute.xlu0 %2527  ;;  %17919 = vst [vmem:[#allocation12_spill] sm:$0xff] %v12862_v56  ;;  %v17921_v30 = vld [vmem:[#allocation254_spill] sm:$0xff] }
 0x477   : > { %3502 = vperm.xlu0 %9762, %v12848_v19   ;;  %v12872_v50 = vadd.f32 %v17921_v30, %v17920_v5  ;;  %v17923_v19 = vld [vmem:[#allocation21_spill] sm:$0xff] }
 0x478   : > { %v12876_v16 = vadd.f32 %v17924_v43, %v17923_v19  ;;  %v17934_v19 = vld [vmem:[#allocation24_spill] sm:$0xff] }
 0x479   : > { %17922 = vst [vmem:[#allocation245_spill] sm:$0xff] %v12872_v50 }
 0x47a   : > { %v12864_v21 = vpop.permute.xlu1 %2523  ;;  %3499 = vperm.xlu1 %9763, %v12858_v52   ;;  %v12867_v17 = vpop.permute.xlu0 %2535  ;;  %17925 = vst [vmem:[#allocation13_spill] sm:$0xff] %v12876_v16  ;;  %v17928_v52 = vld [vmem:[#allocation256_spill] sm:$0xff] }
 0x47b   : > { %3508 = vperm.xlu0 %9762, %v12862_v56   ;;  %v12886_v60 = vadd.f32 %v17928_v52, %v17927_v9  ;;  %v17930_v56 = vld [vmem:[#allocation23_spill] sm:$0xff] }
 0x47c   : > { %v12890_v30 = vadd.f32 %v17931_v12, %v17930_v56  ;;  %v17941_v56 = vld [vmem:[#allocation26_spill] sm:$0xff] }
 0x47d   : > { %17929 = vst [vmem:[#allocation14_spill] sm:$0xff] %v12886_v60 }
 0x47e   : > { %v12878_v20 = vpop.permute.xlu1 %2531  ;;  %3505 = vperm.xlu1 %9763, %v12872_v50   ;;  %v12881_v10 = vpop.permute.xlu0 %2543  ;;  %17932 = vst [vmem:[#allocation248_spill] sm:$0xff] %v12890_v30  ;;  %v17935_v50 = vld [vmem:[#allocation258_spill] sm:$0xff] }
 0x47f   : > { %17926 = vst [vmem:[#allocation251_spill] sm:$0xff] %v12881_v10  ;;  %3514 = vperm.xlu0 %9762, %v12876_v16   ;;  %v12900_v39 = vadd.f32 %v17935_v50, %v17934_v19  ;;  %v17937_v16 = vld [vmem:[#allocation25_spill] sm:$0xff]  ;;  %v17953_v10 = vld [vmem:[#allocation267_spill] sm:$0xff] }
 0x480   : > { %v12904_v52 = vadd.f32 %v17938_v59, %v17937_v16  ;;  %v17949_v16 = vld [vmem:[#allocation28_spill] sm:$0xff] }
 0x481   : > { %17936 = vst [vmem:[#allocation253_spill] sm:$0xff] %v12900_v39 }
 0x482   : > { %v12892_v5 = vpop.permute.xlu1 %2539  ;;  %3511 = vperm.xlu1 %9763, %v12886_v60   ;;  %v12895_v43 = vpop.permute.xlu0 %2554  ;;  %17939 = vst [vmem:[#allocation16_spill] sm:$0xff] %v12904_v52  ;;  %v17942_v60 = vld [vmem:[#allocation260_spill] sm:$0xff] }
 0x483   : > { %17933 = vst [vmem:[#allocation15_spill] sm:$0xff] %v12895_v43  ;;  %3520 = vperm.xlu0 %9762, %v12890_v30   ;;  %v12914_v8 = vadd.f32 %v17942_v60, %v17941_v56  ;;  %v17944_v30 = vld [vmem:[#allocation27_spill] sm:$0xff]  ;;  %v17945_v43 = vld [vmem:[#allocation265_spill] sm:$0xff] }
 0x484   : > { %v12918_v50 = vadd.f32 %v17945_v43, %v17944_v30  ;;  %v17957_v43 = vld [vmem:[#allocation30_spill] sm:$0xff] }
 0x485   : > { %17943 = vst [vmem:[#allocation17_spill] sm:$0xff] %v12914_v8 }
 0x486   : > { %v12906_v9 = vpop.permute.xlu1 %2547  ;;  %3517 = vperm.xlu1 %9763, %v12900_v39   ;;  %v12909_v12 = vpop.permute.xlu0 %2562  ;;  %17946 = vst [vmem:[#allocation255_spill] sm:$0xff] %v12918_v50  ;;  %v17950_v39 = vld [vmem:[#allocation262_spill] sm:$0xff] }
 0x487   : > { %17940 = vst [vmem:[#allocation250_spill] sm:$0xff] %v12909_v12  ;;  %3526 = vperm.xlu0 %9762, %v12904_v52   ;;  %v12928_v12 = vadd.f32 %v17950_v39, %v17949_v16  ;;  %v17952_v52 = vld [vmem:[#allocation29_spill] sm:$0xff] }
 0x488   : > { %v12932_v60 = vadd.f32 %v17953_v10, %v17952_v52  ;;  %v17965_v52 = vld [vmem:[#allocation32_spill] sm:$0xff] }
 0x489   : > { %17951 = vst [vmem:[#allocation19_spill] sm:$0xff] %v12928_v12 }
 0x48a   : > { %v12920_v19 = vpop.permute.xlu1 %2558  ;;  %3523 = vperm.xlu1 %9763, %v12914_v8   ;;  %v12923_v59 = vpop.permute.xlu0 %2570  ;;  %17954 = vst [vmem:[#allocation257_spill] sm:$0xff] %v12932_v60  ;;  %v17958_v8 = vld [vmem:[#allocation264_spill] sm:$0xff] }
 0x48b   : > { %17947 = vst [vmem:[#allocation18_spill] sm:$0xff] %v12920_v19  ;;  %17948 = vst [vmem:[#allocation252_spill] sm:$0xff] %v12923_v59  ;;  %3532 = vperm.xlu0 %9762, %v12918_v50   ;;  %v12942_v59 = vadd.f32 %v17958_v8, %v17957_v43  ;;  %v17960_v50 = vld [vmem:[#allocation31_spill] sm:$0xff]  ;;  %v17961_v19 = vld [vmem:[#allocation269_spill] sm:$0xff] }
 0x48c   : > { %v12946_v39 = vadd.f32 %v17961_v19, %v17960_v50  ;;  %v17973_v19 = vld [vmem:[#allocation34_spill] sm:$0xff] }
 0x48d   : > { %17959 = vst [vmem:[#allocation21_spill] sm:$0xff] %v12942_v59 }
 0x48e   : > { %v12934_v56 = vpop.permute.xlu1 %2566  ;;  %3529 = vperm.xlu1 %9763, %v12928_v12   ;;  %v12937_v30 = vpop.permute.xlu0 %2578  ;;  %17962 = vst [vmem:[#allocation259_spill] sm:$0xff] %v12946_v39  ;;  %v17966_v12 = vld [vmem:[#allocation266_spill] sm:$0xff] }
 0x48f   : > { %17955 = vst [vmem:[#allocation20_spill] sm:$0xff] %v12934_v56  ;;  %17956 = vst [vmem:[#allocation254_spill] sm:$0xff] %v12937_v30  ;;  %3538 = vperm.xlu0 %9762, %v12932_v60   ;;  %v12956_v30 = vadd.f32 %v17966_v12, %v17965_v52  ;;  %v17968_v60 = vld [vmem:[#allocation33_spill] sm:$0xff]  ;;  %v17969_v56 = vld [vmem:[#allocation271_spill] sm:$0xff] }
 0x490   : > { %v12960_v8 = vadd.f32 %v17969_v56, %v17968_v60  ;;  %v17980_v60 = vld [vmem:[#allocation36_spill] sm:$0xff]  ;;  %v17981_v56 = vld [vmem:[#allocation270_spill] sm:$0xff] }
 0x491   : > { %17967 = vst [vmem:[#allocation23_spill] sm:$0xff] %v12956_v30 }
 0x492   : > { %v12948_v16 = vpop.permute.xlu1 %2574  ;;  %3535 = vperm.xlu1 %9763, %v12942_v59   ;;  %v12951_v10 = vpop.permute.xlu0 %2586  ;;  %17970 = vst [vmem:[#allocation261_spill] sm:$0xff] %v12960_v8  ;;  %v17974_v59 = vld [vmem:[#allocation268_spill] sm:$0xff] }
 0x493   : > { %17963 = vst [vmem:[#allocation22_spill] sm:$0xff] %v12948_v16  ;;  %17964 = vst [vmem:[#allocation256_spill] sm:$0xff] %v12951_v10  ;;  %3544 = vperm.xlu0 %9762, %v12946_v39   ;;  %v12970_v10 = vadd.f32 %v17974_v59, %v17973_v19  ;;  %v17976_v39 = vld [vmem:[#allocation35_spill] sm:$0xff]  ;;  %v17977_v16 = vld [vmem:[#allocation273_spill] sm:$0xff] }
 0x494   : > { %v12974_v12 = vadd.f32 %v17977_v16, %v17976_v39  ;;  %v17988_v39 = vld [vmem:[#allocation38_spill] sm:$0xff]  ;;  %v17989_v16 = vld [vmem:[#allocation272_spill] sm:$0xff] }
 0x495   : > { %17975 = vst [vmem:[#allocation25_spill] sm:$0xff] %v12970_v10 }
 0x496   : > { %v12962_v43 = vpop.permute.xlu1 %2582  ;;  %3541 = vperm.xlu1 %9763, %v12956_v30   ;;  %v12965_v50 = vpop.permute.xlu0 %2594  ;;  %17978 = vst [vmem:[#allocation263_spill] sm:$0xff] %v12974_v12  ;;  %v12982_v30 = vadd.f32 %v17981_v56, %v17980_v60 }
 0x497   : > { %17971 = vst [vmem:[#allocation24_spill] sm:$0xff] %v12962_v43  ;;  %17972 = vst [vmem:[#allocation258_spill] sm:$0xff] %v12965_v50  ;;  %3550 = vperm.xlu0 %9762, %v12960_v8   ;;  %v17984_v8 = vld [vmem:[#allocation37_spill] sm:$0xff]  ;;  %v17985_v43 = vld [vmem:[#allocation275_spill] sm:$0xff] }
 0x498   : > { %17982 = vst [vmem:[#allocation260_spill] sm:$0xff] %v12982_v30  ;;  %v12988_v59 = vadd.f32 %v17985_v43, %v17984_v8  ;;  %v17996_v8 = vld [vmem:[#allocation40_spill] sm:$0xff]  ;;  %v17997_v43 = vld [vmem:[#allocation274_spill] sm:$0xff] }
 0x49a   : > { %v12976_v52 = vpop.permute.xlu1 %2590  ;;  %3547 = vperm.xlu1 %9763, %v12970_v10   ;;  %v12984_v50 = vpop.permute.xlu0 %2602  ;;  %17986 = vst [vmem:[#allocation265_spill] sm:$0xff] %v12988_v59  ;;  %v12996_v10 = vadd.f32 %v17989_v16, %v17988_v39 }
 0x49b   : > { %17979 = vst [vmem:[#allocation26_spill] sm:$0xff] %v12976_v52  ;;  %3556 = vperm.xlu0 %9762, %v12974_v12   ;;  %17983 = vst [vmem:[#allocation27_spill] sm:$0xff] %v12984_v50  ;;  %v17991_v12 = vld [vmem:[#allocation39_spill] sm:$0xff]  ;;  %v17992_v52 = vld [vmem:[#allocation277_spill] sm:$0xff] }
 0x49c   : > { %17990 = vst [vmem:[#allocation262_spill] sm:$0xff] %v12996_v10  ;;  %v13000_v60 = vadd.f32 %v17992_v52, %v17991_v12  ;;  %v18004_v52 = vld [vmem:[#allocation42_spill] sm:$0xff] }
 0x49e   : > { %v12990_v19 = vpop.permute.xlu1 %2598  ;;  %3553 = vperm.xlu1 %9763, %v12982_v30   ;;  %17993 = vst [vmem:[#allocation29_spill] sm:$0xff] %v13000_v60  ;;  %v13002_v56 = vpop.permute.xlu0 %2610  ;;  %v13010_v30 = vadd.f32 %v17997_v43, %v17996_v8 }
 0x49f   : > { %17987 = vst [vmem:[#allocation28_spill] sm:$0xff] %v12990_v19  ;;  %3562 = vperm.xlu0 %9762, %v12988_v59   ;;  %17994 = vst [vmem:[#allocation267_spill] sm:$0xff] %v13002_v56  ;;  %v17999_v59 = vld [vmem:[#allocation41_spill] sm:$0xff]  ;;  %v18000_v19 = vld [vmem:[#allocation280_spill] sm:$0xff] }
 0x4a0   : > { %17998 = vst [vmem:[#allocation264_spill] sm:$0xff] %v13010_v30  ;;  %v13014_v39 = vadd.f32 %v18000_v19, %v17999_v59  ;;  %v18012_v19 = vld [vmem:[#allocation44_spill] sm:$0xff] }
 0x4a2   : > { %v13004_v50 = vpop.permute.xlu1 %2606  ;;  %3559 = vperm.xlu1 %9763, %v12996_v10   ;;  %18001 = vst [vmem:[#allocation31_spill] sm:$0xff] %v13014_v39  ;;  %v18005_v10 = vld [vmem:[#allocation276_spill] sm:$0xff] }
 0x4a3   : > { %17995 = vst [vmem:[#allocation30_spill] sm:$0xff] %v13004_v50  ;;  %3568 = vperm.xlu0 %9762, %v13000_v60   ;;  %v13024_v56 = vadd.f32 %v18005_v10, %v18004_v52  ;;  %v18007_v60 = vld [vmem:[#allocation43_spill] sm:$0xff]  ;;  %v18008_v50 = vld [vmem:[#allocation282_spill] sm:$0xff] }
 0x4a4   : > { %v13028_v8 = vadd.f32 %v18008_v50, %v18007_v60  ;;  %v18020_v60 = vld [vmem:[#allocation46_spill] sm:$0xff] }
 0x4a5   : > { %18006 = vst [vmem:[#allocation266_spill] sm:$0xff] %v13024_v56 }
 0x4a6   : > { %v13016_v16 = vpop.permute.xlu1 %2614  ;;  %3565 = vperm.xlu1 %9763, %v13010_v30   ;;  %v13019_v12 = vpop.permute.xlu0 %3385  ;;  %18009 = vst [vmem:[#allocation33_spill] sm:$0xff] %v13028_v8  ;;  %v18013_v30 = vld [vmem:[#allocation278_spill] sm:$0xff] }
 0x4a7   : > { %18002 = vst [vmem:[#allocation269_spill] sm:$0xff] %v13016_v16  ;;  %18003 = vst [vmem:[#allocation32_spill] sm:$0xff] %v13019_v12  ;;  %3574 = vperm.xlu0 %9762, %v13014_v39   ;;  %v13038_v16 = vadd.f32 %v18013_v30, %v18012_v19  ;;  %v18015_v39 = vld [vmem:[#allocation45_spill] sm:$0xff]  ;;  %v18016_v12 = vld [vmem:[#allocation284_spill] sm:$0xff] }
 0x4a8   : > { %v13042_v10 = vadd.f32 %v18016_v12, %v18015_v39  ;;  %v18028_v12 = vld [vmem:[#allocation48_spill] sm:$0xff] }
 0x4a9   : > { %18014 = vst [vmem:[#allocation268_spill] sm:$0xff] %v13038_v16 }
 0x4aa   : > { %v13030_v43 = vpop.permute.xlu1 %3388  ;;  %3571 = vperm.xlu1 %9763, %v13024_v56   ;;  %v13033_v59 = vpop.permute.xlu0 %3394  ;;  %18017 = vst [vmem:[#allocation35_spill] sm:$0xff] %v13042_v10  ;;  %v18021_v56 = vld [vmem:[#allocation281_spill] sm:$0xff] }
 0x4ab   : > { %18010 = vst [vmem:[#allocation271_spill] sm:$0xff] %v13030_v43  ;;  %18011 = vst [vmem:[#allocation34_spill] sm:$0xff] %v13033_v59  ;;  %3580 = vperm.xlu0 %9762, %v13028_v8   ;;  %v13052_v59 = vadd.f32 %v18021_v56, %v18020_v60  ;;  %v18023_v8 = vld [vmem:[#allocation47_spill] sm:$0xff]  ;;  %v18024_v43 = vld [vmem:[#allocation286_spill] sm:$0xff] }
 0x4ac   : > { %v13056_v30 = vadd.f32 %v18024_v43, %v18023_v8  ;;  %v18036_v43 = vld [vmem:[#allocation50_spill] sm:$0xff] }
 0x4ad   : > { %18022 = vst [vmem:[#allocation270_spill] sm:$0xff] %v13052_v59 }
 0x4ae   : > { %v13044_v52 = vpop.permute.xlu1 %3391  ;;  %3577 = vperm.xlu1 %9763, %v13038_v16   ;;  %v13047_v50 = vpop.permute.xlu0 %3400  ;;  %18025 = vst [vmem:[#allocation37_spill] sm:$0xff] %v13056_v30  ;;  %v18029_v16 = vld [vmem:[#allocation283_spill] sm:$0xff] }
 0x4af   : > { %18018 = vst [vmem:[#allocation273_spill] sm:$0xff] %v13044_v52  ;;  %18019 = vst [vmem:[#allocation36_spill] sm:$0xff] %v13047_v50  ;;  %3586 = vperm.xlu0 %9762, %v13042_v10   ;;  %v13066_v50 = vadd.f32 %v18029_v16, %v18028_v12  ;;  %v18031_v10 = vld [vmem:[#allocation49_spill] sm:$0xff]  ;;  %v18032_v52 = vld [vmem:[#allocation288_spill] sm:$0xff] }
 0x4b0   : > { %v13070_v56 = vadd.f32 %v18032_v52, %v18031_v10  ;;  %v18044_v52 = vld [vmem:[#allocation52_spill] sm:$0xff] }
 0x4b1   : > { %18030 = vst [vmem:[#allocation272_spill] sm:$0xff] %v13066_v50 }
 0x4b2   : > { %v13058_v19 = vpop.permute.xlu1 %3397  ;;  %3583 = vperm.xlu1 %9763, %v13052_v59   ;;  %v13061_v39 = vpop.permute.xlu0 %3406  ;;  %18033 = vst [vmem:[#allocation39_spill] sm:$0xff] %v13070_v56  ;;  %v18037_v59 = vld [vmem:[#allocation285_spill] sm:$0xff] }
 0x4b3   : > { %18026 = vst [vmem:[#allocation275_spill] sm:$0xff] %v13058_v19  ;;  %18027 = vst [vmem:[#allocation38_spill] sm:$0xff] %v13061_v39  ;;  %3592 = vperm.xlu0 %9762, %v13056_v30   ;;  %v13080_v39 = vadd.f32 %v18037_v59, %v18036_v43  ;;  %v18039_v30 = vld [vmem:[#allocation51_spill] sm:$0xff]  ;;  %v18040_v19 = vld [vmem:[#allocation290_spill] sm:$0xff] }
 0x4b4   : > { %v13084_v16 = vadd.f32 %v18040_v19, %v18039_v30  ;;  %v18052_v19 = vld [vmem:[#allocation54_spill] sm:$0xff] }
 0x4b5   : > { %18038 = vst [vmem:[#allocation274_spill] sm:$0xff] %v13080_v39 }
 0x4b6   : > { %v13072_v60 = vpop.permute.xlu1 %3403  ;;  %3589 = vperm.xlu1 %9763, %v13066_v50   ;;  %v13075_v8 = vpop.permute.xlu0 %3412  ;;  %18041 = vst [vmem:[#allocation41_spill] sm:$0xff] %v13084_v16  ;;  %v18045_v50 = vld [vmem:[#allocation287_spill] sm:$0xff] }
 0x4b7   : > { %18034 = vst [vmem:[#allocation277_spill] sm:$0xff] %v13072_v60  ;;  %18035 = vst [vmem:[#allocation40_spill] sm:$0xff] %v13075_v8  ;;  %3598 = vperm.xlu0 %9762, %v13070_v56   ;;  %v13094_v8 = vadd.f32 %v18045_v50, %v18044_v52  ;;  %v18047_v56 = vld [vmem:[#allocation53_spill] sm:$0xff]  ;;  %v18048_v60 = vld [vmem:[#allocation292_spill] sm:$0xff] }
 0x4b8   : > { %v13098_v59 = vadd.f32 %v18048_v60, %v18047_v56  ;;  %v18060_v60 = vld [vmem:[#allocation56_spill] sm:$0xff] }
 0x4b9   : > { %18046 = vst [vmem:[#allocation276_spill] sm:$0xff] %v13094_v8 }
 0x4ba   : > { %v13086_v12 = vpop.permute.xlu1 %3409  ;;  %3595 = vperm.xlu1 %9763, %v13080_v39   ;;  %v13089_v10 = vpop.permute.xlu0 %3418  ;;  %18049 = vst [vmem:[#allocation43_spill] sm:$0xff] %v13098_v59  ;;  %v18053_v39 = vld [vmem:[#allocation289_spill] sm:$0xff] }
 0x4bb   : > { %18042 = vst [vmem:[#allocation280_spill] sm:$0xff] %v13086_v12  ;;  %18043 = vst [vmem:[#allocation42_spill] sm:$0xff] %v13089_v10  ;;  %3604 = vperm.xlu0 %9762, %v13084_v16   ;;  %v13108_v10 = vadd.f32 %v18053_v39, %v18052_v19  ;;  %v18055_v16 = vld [vmem:[#allocation55_spill] sm:$0xff]  ;;  %v18056_v12 = vld [vmem:[#allocation294_spill] sm:$0xff] }
 0x4bc   : > { %v13112_v50 = vadd.f32 %v18056_v12, %v18055_v16  ;;  %v18068_v12 = vld [vmem:[#allocation58_spill] sm:$0xff] }
 0x4bd   : > { %18054 = vst [vmem:[#allocation278_spill] sm:$0xff] %v13108_v10 }
 0x4be   : > { %v13100_v43 = vpop.permute.xlu1 %3415  ;;  %3601 = vperm.xlu1 %9763, %v13094_v8   ;;  %v13103_v30 = vpop.permute.xlu0 %3424  ;;  %18057 = vst [vmem:[#allocation45_spill] sm:$0xff] %v13112_v50  ;;  %v18061_v8 = vld [vmem:[#allocation291_spill] sm:$0xff] }
 0x4bf   : > { %18050 = vst [vmem:[#allocation282_spill] sm:$0xff] %v13100_v43  ;;  %18051 = vst [vmem:[#allocation44_spill] sm:$0xff] %v13103_v30  ;;  %3610 = vperm.xlu0 %9762, %v13098_v59   ;;  %v13122_v30 = vadd.f32 %v18061_v8, %v18060_v60  ;;  %v18063_v59 = vld [vmem:[#allocation57_spill] sm:$0xff]  ;;  %v18064_v43 = vld [vmem:[#allocation296_spill] sm:$0xff] }
 0x4c0   : > { %v13126_v39 = vadd.f32 %v18064_v43, %v18063_v59  ;;  %v18076_v43 = vld [vmem:[#allocation60_spill] sm:$0xff] }
 0x4c1   : > { %18062 = vst [vmem:[#allocation281_spill] sm:$0xff] %v13122_v30 }
 0x4c2   : > { %v13114_v52 = vpop.permute.xlu1 %3421  ;;  %3607 = vperm.xlu1 %9763, %v13108_v10   ;;  %v13117_v56 = vpop.permute.xlu0 %3430  ;;  %18065 = vst [vmem:[#allocation47_spill] sm:$0xff] %v13126_v39  ;;  %v18069_v10 = vld [vmem:[#allocation293_spill] sm:$0xff] }
 0x4c3   : > { %18058 = vst [vmem:[#allocation284_spill] sm:$0xff] %v13114_v52  ;;  %18059 = vst [vmem:[#allocation46_spill] sm:$0xff] %v13117_v56  ;;  %3616 = vperm.xlu0 %9762, %v13112_v50   ;;  %v13136_v56 = vadd.f32 %v18069_v10, %v18068_v12  ;;  %v18071_v50 = vld [vmem:[#allocation59_spill] sm:$0xff]  ;;  %v18072_v52 = vld [vmem:[#allocation298_spill] sm:$0xff] }
 0x4c4   : > { %v13140_v8 = vadd.f32 %v18072_v52, %v18071_v50  ;;  %v18084_v52 = vld [vmem:[#allocation62_spill] sm:$0xff] }
 0x4c5   : > { %18070 = vst [vmem:[#allocation283_spill] sm:$0xff] %v13136_v56 }
 0x4c6   : > { %v13128_v19 = vpop.permute.xlu1 %3427  ;;  %3613 = vperm.xlu1 %9763, %v13122_v30   ;;  %v13131_v16 = vpop.permute.xlu0 %3436  ;;  %18073 = vst [vmem:[#allocation49_spill] sm:$0xff] %v13140_v8  ;;  %v18077_v30 = vld [vmem:[#allocation295_spill] sm:$0xff] }
 0x4c7   : > { %18066 = vst [vmem:[#allocation286_spill] sm:$0xff] %v13128_v19  ;;  %18067 = vst [vmem:[#allocation48_spill] sm:$0xff] %v13131_v16  ;;  %3622 = vperm.xlu0 %9762, %v13126_v39   ;;  %v13150_v19 = vadd.f32 %v18077_v30, %v18076_v43  ;;  %v18079_v39 = vld [vmem:[#allocation61_spill] sm:$0xff]  ;;  %v18080_v16 = vld [vmem:[#allocation300_spill] sm:$0xff] }
 0x4c8   : > { %v13154_v10 = vadd.f32 %v18080_v16, %v18079_v39  ;;  %v18092_v16 = vld [vmem:[#allocation64_spill] sm:$0xff] }
 0x4c9   : > { %18078 = vst [vmem:[#allocation285_spill] sm:$0xff] %v13150_v19 }
 0x4ca   : > { %v13142_v60 = vpop.permute.xlu1 %3433  ;;  %3619 = vperm.xlu1 %9763, %v13136_v56   ;;  %v13145_v59 = vpop.permute.xlu0 %3442  ;;  %18081 = vst [vmem:[#allocation51_spill] sm:$0xff] %v13154_v10  ;;  %v18085_v56 = vld [vmem:[#allocation297_spill] sm:$0xff] }
 0x4cb   : > { %18074 = vst [vmem:[#allocation288_spill] sm:$0xff] %v13142_v60  ;;  %18075 = vst [vmem:[#allocation50_spill] sm:$0xff] %v13145_v59  ;;  %3628 = vperm.xlu0 %9762, %v13140_v8   ;;  %v13164_v59 = vadd.f32 %v18085_v56, %v18084_v52  ;;  %v18087_v8 = vld [vmem:[#allocation63_spill] sm:$0xff]  ;;  %v18088_v60 = vld [vmem:[#allocation302_spill] sm:$0xff] }
 0x4cc   : > { %v13168_v30 = vadd.f32 %v18088_v60, %v18087_v8  ;;  %v18100_v60 = vld [vmem:[#allocation66_spill] sm:$0xff] }
 0x4cd   : > { %18086 = vst [vmem:[#allocation287_spill] sm:$0xff] %v13164_v59 }
 0x4ce   : > { %v13156_v12 = vpop.permute.xlu1 %3439  ;;  %3625 = vperm.xlu1 %9763, %v13150_v19   ;;  %v13159_v50 = vpop.permute.xlu0 %3448  ;;  %18089 = vst [vmem:[#allocation53_spill] sm:$0xff] %v13168_v30  ;;  %v18093_v19 = vld [vmem:[#allocation299_spill] sm:$0xff] }
 0x4cf   : > { %18082 = vst [vmem:[#allocation290_spill] sm:$0xff] %v13156_v12  ;;  %18083 = vst [vmem:[#allocation52_spill] sm:$0xff] %v13159_v50  ;;  %3634 = vperm.xlu0 %9762, %v13154_v10   ;;  %v13178_v50 = vadd.f32 %v18093_v19, %v18092_v16  ;;  %v18095_v10 = vld [vmem:[#allocation65_spill] sm:$0xff]  ;;  %v18096_v12 = vld [vmem:[#allocation304_spill] sm:$0xff] }
 0x4d0   : > { %v13182_v56 = vadd.f32 %v18096_v12, %v18095_v10  ;;  %v18108_v12 = vld [vmem:[#allocation68_spill] sm:$0xff] }
 0x4d1   : > { %18094 = vst [vmem:[#allocation289_spill] sm:$0xff] %v13178_v50 }
 0x4d2   : > { %v13170_v43 = vpop.permute.xlu1 %3445  ;;  %3631 = vperm.xlu1 %9763, %v13164_v59   ;;  %v13173_v39 = vpop.permute.xlu0 %3454  ;;  %18097 = vst [vmem:[#allocation55_spill] sm:$0xff] %v13182_v56  ;;  %v18101_v59 = vld [vmem:[#allocation301_spill] sm:$0xff] }
 0x4d3   : > { %18090 = vst [vmem:[#allocation292_spill] sm:$0xff] %v13170_v43  ;;  %18091 = vst [vmem:[#allocation54_spill] sm:$0xff] %v13173_v39  ;;  %3640 = vperm.xlu0 %9762, %v13168_v30   ;;  %v13192_v39 = vadd.f32 %v18101_v59, %v18100_v60  ;;  %v18103_v30 = vld [vmem:[#allocation67_spill] sm:$0xff]  ;;  %v18104_v43 = vld [vmem:[#allocation306_spill] sm:$0xff] }
 0x4d4   : > { %v13196_v19 = vadd.f32 %v18104_v43, %v18103_v30  ;;  %v18116_v43 = vld [vmem:[#allocation70_spill] sm:$0xff] }
 0x4d5   : > { %18102 = vst [vmem:[#allocation291_spill] sm:$0xff] %v13192_v39 }
 0x4d6   : > { %v13184_v52 = vpop.permute.xlu1 %3451  ;;  %3637 = vperm.xlu1 %9763, %v13178_v50   ;;  %v13187_v8 = vpop.permute.xlu0 %3460  ;;  %18105 = vst [vmem:[#allocation57_spill] sm:$0xff] %v13196_v19  ;;  %v18109_v50 = vld [vmem:[#allocation303_spill] sm:$0xff] }
 0x4d7   : > { %18098 = vst [vmem:[#allocation294_spill] sm:$0xff] %v13184_v52  ;;  %18099 = vst [vmem:[#allocation56_spill] sm:$0xff] %v13187_v8  ;;  %3646 = vperm.xlu0 %9762, %v13182_v56   ;;  %v13206_v8 = vadd.f32 %v18109_v50, %v18108_v12  ;;  %v18111_v56 = vld [vmem:[#allocation69_spill] sm:$0xff]  ;;  %v18112_v52 = vld [vmem:[#allocation308_spill] sm:$0xff] }
 0x4d8   : > { %v13210_v59 = vadd.f32 %v18112_v52, %v18111_v56  ;;  %v18124_v52 = vld [vmem:[#allocation72_spill] sm:$0xff] }
 0x4d9   : > { %18110 = vst [vmem:[#allocation293_spill] sm:$0xff] %v13206_v8 }
 0x4da   : > { %v13198_v16 = vpop.permute.xlu1 %3457  ;;  %3643 = vperm.xlu1 %9763, %v13192_v39   ;;  %v13201_v10 = vpop.permute.xlu0 %3466  ;;  %18113 = vst [vmem:[#allocation59_spill] sm:$0xff] %v13210_v59  ;;  %v18117_v39 = vld [vmem:[#allocation305_spill] sm:$0xff] }
 0x4db   : > { %18106 = vst [vmem:[#allocation296_spill] sm:$0xff] %v13198_v16  ;;  %18107 = vst [vmem:[#allocation58_spill] sm:$0xff] %v13201_v10  ;;  %3652 = vperm.xlu0 %9762, %v13196_v19   ;;  %v13220_v10 = vadd.f32 %v18117_v39, %v18116_v43  ;;  %v18119_v19 = vld [vmem:[#allocation71_spill] sm:$0xff]  ;;  %v18120_v16 = vld [vmem:[#allocation310_spill] sm:$0xff] }
 0x4dc   : > { %v13224_v50 = vadd.f32 %v18120_v16, %v18119_v19  ;;  %v18132_v16 = vld [vmem:[#allocation74_spill] sm:$0xff] }
 0x4dd   : > { %18118 = vst [vmem:[#allocation295_spill] sm:$0xff] %v13220_v10 }
 0x4de   : > { %v13212_v60 = vpop.permute.xlu1 %3463  ;;  %3649 = vperm.xlu1 %9763, %v13206_v8   ;;  %v13215_v30 = vpop.permute.xlu0 %3472  ;;  %18121 = vst [vmem:[#allocation61_spill] sm:$0xff] %v13224_v50  ;;  %v18125_v8 = vld [vmem:[#allocation307_spill] sm:$0xff] }
 0x4df   : > { %18114 = vst [vmem:[#allocation298_spill] sm:$0xff] %v13212_v60  ;;  %18115 = vst [vmem:[#allocation60_spill] sm:$0xff] %v13215_v30  ;;  %3658 = vperm.xlu0 %9762, %v13210_v59   ;;  %v13234_v30 = vadd.f32 %v18125_v8, %v18124_v52  ;;  %v18127_v59 = vld [vmem:[#allocation73_spill] sm:$0xff] }
 0x4e0   : > { %v18128_v60 = vld [vmem:[#allocation313_spill] sm:$0xff] }
 0x4e1   : > { %18126 = vst [vmem:[#allocation297_spill] sm:$0xff] %v13234_v30  ;;  %v13238_v39 = vadd.f32 %v18128_v60, %v18127_v59  ;;  %v18140_v60 = vld [vmem:[#allocation76_spill] sm:$0xff] }
 0x4e2   : > { %v13226_v12 = vpop.permute.xlu1 %3469  ;;  %3655 = vperm.xlu1 %9763, %v13220_v10   ;;  %v13229_v56 = vpop.permute.xlu0 %3478  ;;  %v18133_v10 = vld [vmem:[#allocation309_spill] sm:$0xff] }
 0x4e3   : > { %18122 = vst [vmem:[#allocation300_spill] sm:$0xff] %v13226_v12  ;;  %18123 = vst [vmem:[#allocation62_spill] sm:$0xff] %v13229_v56  ;;  %3664 = vperm.xlu0 %9762, %v13224_v50   ;;  %v13248_v56 = vadd.f32 %v18133_v10, %v18132_v16  ;;  %v18135_v50 = vld [vmem:[#allocation75_spill] sm:$0xff] }
 0x4e4   : > { %18129 = vst [vmem:[#allocation63_spill] sm:$0xff] %v13238_v39  ;;  %v18136_v12 = vld [vmem:[#allocation315_spill] sm:$0xff] }
 0x4e5   : > { %18134 = vst [vmem:[#allocation299_spill] sm:$0xff] %v13248_v56  ;;  %v13252_v8 = vadd.f32 %v18136_v12, %v18135_v50  ;;  %v18148_v12 = vld [vmem:[#allocation78_spill] sm:$0xff] }
 0x4e6   : > { %v13240_v43 = vpop.permute.xlu1 %3475  ;;  %3661 = vperm.xlu1 %9763, %v13234_v30   ;;  %v13243_v19 = vpop.permute.xlu0 %3484  ;;  %v18141_v30 = vld [vmem:[#allocation311_spill] sm:$0xff] }
 0x4e7   : > { %18130 = vst [vmem:[#allocation302_spill] sm:$0xff] %v13240_v43  ;;  %18131 = vst [vmem:[#allocation64_spill] sm:$0xff] %v13243_v19  ;;  %3670 = vperm.xlu0 %9762, %v13238_v39   ;;  %v13262_v43 = vadd.f32 %v18141_v30, %v18140_v60  ;;  %v18143_v39 = vld [vmem:[#allocation77_spill] sm:$0xff] }
 0x4e8   : > { %18137 = vst [vmem:[#allocation65_spill] sm:$0xff] %v13252_v8  ;;  %v18144_v19 = vld [vmem:[#allocation317_spill] sm:$0xff] }
 0x4e9   : > { %18142 = vst [vmem:[#allocation301_spill] sm:$0xff] %v13262_v43  ;;  %v13266_v10 = vadd.f32 %v18144_v19, %v18143_v39  ;;  %v18156_v19 = vld [vmem:[#allocation80_spill] sm:$0xff] }
 0x4ea   : > { %v13254_v52 = vpop.permute.xlu1 %3481  ;;  %3667 = vperm.xlu1 %9763, %v13248_v56   ;;  %v13257_v59 = vpop.permute.xlu0 %3490  ;;  %v18149_v56 = vld [vmem:[#allocation314_spill] sm:$0xff] }
 0x4eb   : > { %18138 = vst [vmem:[#allocation304_spill] sm:$0xff] %v13254_v52  ;;  %18139 = vst [vmem:[#allocation66_spill] sm:$0xff] %v13257_v59  ;;  %3676 = vperm.xlu0 %9762, %v13252_v8   ;;  %v13276_v59 = vadd.f32 %v18149_v56, %v18148_v12  ;;  %v18151_v8 = vld [vmem:[#allocation79_spill] sm:$0xff] }
 0x4ec   : > { %18145 = vst [vmem:[#allocation67_spill] sm:$0xff] %v13266_v10  ;;  %v18152_v52 = vld [vmem:[#allocation319_spill] sm:$0xff] }
 0x4ed   : > { %18150 = vst [vmem:[#allocation303_spill] sm:$0xff] %v13276_v59  ;;  %v13280_v30 = vadd.f32 %v18152_v52, %v18151_v8  ;;  %v18164_v52 = vld [vmem:[#allocation82_spill] sm:$0xff] }
 0x4ee   : > { %v13268_v16 = vpop.permute.xlu1 %3487  ;;  %3673 = vperm.xlu1 %9763, %v13262_v43   ;;  %v13271_v50 = vpop.permute.xlu0 %3496  ;;  %v18157_v43 = vld [vmem:[#allocation316_spill] sm:$0xff] }
 0x4ef   : > { %18146 = vst [vmem:[#allocation306_spill] sm:$0xff] %v13268_v16  ;;  %18147 = vst [vmem:[#allocation68_spill] sm:$0xff] %v13271_v50  ;;  %3682 = vperm.xlu0 %9762, %v13266_v10   ;;  %v13290_v50 = vadd.f32 %v18157_v43, %v18156_v19  ;;  %v18159_v10 = vld [vmem:[#allocation81_spill] sm:$0xff] }
 0x4f0   : > { %18153 = vst [vmem:[#allocation69_spill] sm:$0xff] %v13280_v30  ;;  %v18160_v16 = vld [vmem:[#allocation321_spill] sm:$0xff] }
 0x4f1   : > { %18158 = vst [vmem:[#allocation305_spill] sm:$0xff] %v13290_v50  ;;  %v13294_v56 = vadd.f32 %v18160_v16, %v18159_v10  ;;  %v18172_v16 = vld [vmem:[#allocation84_spill] sm:$0xff] }
 0x4f2   : > { %v13282_v60 = vpop.permute.xlu1 %3493  ;;  %3679 = vperm.xlu1 %9763, %v13276_v59   ;;  %v13285_v39 = vpop.permute.xlu0 %3502  ;;  %v18165_v59 = vld [vmem:[#allocation318_spill] sm:$0xff] }
 0x4f3   : > { %18154 = vst [vmem:[#allocation308_spill] sm:$0xff] %v13282_v60  ;;  %18155 = vst [vmem:[#allocation70_spill] sm:$0xff] %v13285_v39  ;;  %3688 = vperm.xlu0 %9762, %v13280_v30   ;;  %v13304_v39 = vadd.f32 %v18165_v59, %v18164_v52  ;;  %v18167_v30 = vld [vmem:[#allocation83_spill] sm:$0xff] }
 0x4f4   : > { %18161 = vst [vmem:[#allocation71_spill] sm:$0xff] %v13294_v56  ;;  %v18168_v60 = vld [vmem:[#allocation323_spill] sm:$0xff] }
 0x4f5   : > { %18166 = vst [vmem:[#allocation307_spill] sm:$0xff] %v13304_v39  ;;  %v13308_v43 = vadd.f32 %v18168_v60, %v18167_v30  ;;  %v18180_v60 = vld [vmem:[#allocation86_spill] sm:$0xff] }
 0x4f6   : > { %v13296_v12 = vpop.permute.xlu1 %3499  ;;  %3685 = vperm.xlu1 %9763, %v13290_v50   ;;  %v13299_v8 = vpop.permute.xlu0 %3508  ;;  %v18173_v50 = vld [vmem:[#allocation320_spill] sm:$0xff] }
 0x4f7   : > { %18162 = vst [vmem:[#allocation310_spill] sm:$0xff] %v13296_v12  ;;  %18163 = vst [vmem:[#allocation72_spill] sm:$0xff] %v13299_v8  ;;  %3694 = vperm.xlu0 %9762, %v13294_v56   ;;  %v13318_v8 = vadd.f32 %v18173_v50, %v18172_v16  ;;  %v18175_v56 = vld [vmem:[#allocation85_spill] sm:$0xff] }
 0x4f8   : > { %18169 = vst [vmem:[#allocation73_spill] sm:$0xff] %v13308_v43  ;;  %v18176_v12 = vld [vmem:[#allocation325_spill] sm:$0xff] }
 0x4f9   : > { %18174 = vst [vmem:[#allocation309_spill] sm:$0xff] %v13318_v8  ;;  %v13322_v59 = vadd.f32 %v18176_v12, %v18175_v56  ;;  %v18188_v12 = vld [vmem:[#allocation88_spill] sm:$0xff] }
 0x4fa   : > { %v13310_v19 = vpop.permute.xlu1 %3505  ;;  %3691 = vperm.xlu1 %9763, %v13304_v39   ;;  %v13313_v10 = vpop.permute.xlu0 %3514  ;;  %v18181_v39 = vld [vmem:[#allocation322_spill] sm:$0xff] }
 0x4fb   : > { %18170 = vst [vmem:[#allocation313_spill] sm:$0xff] %v13310_v19  ;;  %18171 = vst [vmem:[#allocation74_spill] sm:$0xff] %v13313_v10  ;;  %3700 = vperm.xlu0 %9762, %v13308_v43   ;;  %v13332_v10 = vadd.f32 %v18181_v39, %v18180_v60  ;;  %v18183_v43 = vld [vmem:[#allocation87_spill] sm:$0xff] }
 0x4fc   : > { %18177 = vst [vmem:[#allocation75_spill] sm:$0xff] %v13322_v59  ;;  %v18184_v19 = vld [vmem:[#allocation327_spill] sm:$0xff] }
 0x4fd   : > { %18182 = vst [vmem:[#allocation311_spill] sm:$0xff] %v13332_v10  ;;  %v13336_v50 = vadd.f32 %v18184_v19, %v18183_v43  ;;  %v18196_v19 = vld [vmem:[#allocation90_spill] sm:$0xff] }
 0x4fe   : > { %v13324_v52 = vpop.permute.xlu1 %3511  ;;  %3697 = vperm.xlu1 %9763, %v13318_v8   ;;  %v13327_v30 = vpop.permute.xlu0 %3520  ;;  %v18189_v8 = vld [vmem:[#allocation324_spill] sm:$0xff] }
 0x4ff   : > { %18178 = vst [vmem:[#allocation315_spill] sm:$0xff] %v13324_v52  ;;  %18179 = vst [vmem:[#allocation76_spill] sm:$0xff] %v13327_v30  ;;  %3706 = vperm.xlu0 %9762, %v13322_v59   ;;  %v13346_v30 = vadd.f32 %v18189_v8, %v18188_v12  ;;  %v18191_v59 = vld [vmem:[#allocation89_spill] sm:$0xff] }
 0x500   : > { %18185 = vst [vmem:[#allocation77_spill] sm:$0xff] %v13336_v50  ;;  %v18192_v52 = vld [vmem:[#allocation329_spill] sm:$0xff] }
 0x501   : > { %18190 = vst [vmem:[#allocation314_spill] sm:$0xff] %v13346_v30  ;;  %v13350_v39 = vadd.f32 %v18192_v52, %v18191_v59  ;;  %v18204_v52 = vld [vmem:[#allocation92_spill] sm:$0xff] }
 0x502   : > { %v13338_v16 = vpop.permute.xlu1 %3517  ;;  %3703 = vperm.xlu1 %9763, %v13332_v10   ;;  %v13341_v56 = vpop.permute.xlu0 %3526  ;;  %v18197_v10 = vld [vmem:[#allocation326_spill] sm:$0xff] }
 0x503   : > { %18186 = vst [vmem:[#allocation317_spill] sm:$0xff] %v13338_v16  ;;  %18187 = vst [vmem:[#allocation78_spill] sm:$0xff] %v13341_v56  ;;  %3712 = vperm.xlu0 %9762, %v13336_v50   ;;  %v13360_v56 = vadd.f32 %v18197_v10, %v18196_v19  ;;  %v18199_v50 = vld [vmem:[#allocation91_spill] sm:$0xff] }
 0x504   : > { %18193 = vst [vmem:[#allocation79_spill] sm:$0xff] %v13350_v39  ;;  %v18200_v16 = vld [vmem:[#allocation331_spill] sm:$0xff] }
 0x505   : > { %18198 = vst [vmem:[#allocation316_spill] sm:$0xff] %v13360_v56  ;;  %v13364_v8 = vadd.f32 %v18200_v16, %v18199_v50  ;;  %v18212_v16 = vld [vmem:[#allocation94_spill] sm:$0xff] }
 0x506   : > { %v13352_v60 = vpop.permute.xlu1 %3523  ;;  %3709 = vperm.xlu1 %9763, %v13346_v30   ;;  %v13355_v43 = vpop.permute.xlu0 %3532  ;;  %v18205_v30 = vld [vmem:[#allocation328_spill] sm:$0xff] }
 0x507   : > { %18194 = vst [vmem:[#allocation319_spill] sm:$0xff] %v13352_v60  ;;  %18195 = vst [vmem:[#allocation80_spill] sm:$0xff] %v13355_v43  ;;  %3718 = vperm.xlu0 %9762, %v13350_v39   ;;  %v13374_v60 = vadd.f32 %v18205_v30, %v18204_v52  ;;  %v18207_v39 = vld [vmem:[#allocation93_spill] sm:$0xff] }
 0x508   : > { %18201 = vst [vmem:[#allocation81_spill] sm:$0xff] %v13364_v8  ;;  %v18208_v43 = vld [vmem:[#allocation333_spill] sm:$0xff] }
 0x509   : > { %18206 = vst [vmem:[#allocation318_spill] sm:$0xff] %v13374_v60  ;;  %v13378_v10 = vadd.f32 %v18208_v43, %v18207_v39  ;;  %v18220_v43 = vld [vmem:[#allocation96_spill] sm:$0xff] }
 0x50a   : > { %v13366_v12 = vpop.permute.xlu1 %3529  ;;  %3715 = vperm.xlu1 %9763, %v13360_v56   ;;  %v13369_v59 = vpop.permute.xlu0 %3538  ;;  %v18213_v56 = vld [vmem:[#allocation330_spill] sm:$0xff] }
 0x50b   : > { %18202 = vst [vmem:[#allocation321_spill] sm:$0xff] %v13366_v12  ;;  %18203 = vst [vmem:[#allocation82_spill] sm:$0xff] %v13369_v59  ;;  %3724 = vperm.xlu0 %9762, %v13364_v8   ;;  %v13388_v59 = vadd.f32 %v18213_v56, %v18212_v16  ;;  %v18215_v8 = vld [vmem:[#allocation95_spill] sm:$0xff] }
 0x50c   : > { %18209 = vst [vmem:[#allocation83_spill] sm:$0xff] %v13378_v10  ;;  %v18216_v12 = vld [vmem:[#allocation335_spill] sm:$0xff] }
 0x50d   : > { %18214 = vst [vmem:[#allocation320_spill] sm:$0xff] %v13388_v59  ;;  %v13392_v30 = vadd.f32 %v18216_v12, %v18215_v8  ;;  %v18228_v12 = vld [vmem:[#allocation98_spill] sm:$0xff] }
 0x50e   : > { %v13380_v19 = vpop.permute.xlu1 %3535  ;;  %3721 = vperm.xlu1 %9763, %v13374_v60   ;;  %v13383_v50 = vpop.permute.xlu0 %3544  ;;  %v18221_v60 = vld [vmem:[#allocation332_spill] sm:$0xff] }
 0x50f   : > { %18210 = vst [vmem:[#allocation323_spill] sm:$0xff] %v13380_v19  ;;  %18211 = vst [vmem:[#allocation84_spill] sm:$0xff] %v13383_v50  ;;  %3730 = vperm.xlu0 %9762, %v13378_v10   ;;  %v13402_v50 = vadd.f32 %v18221_v60, %v18220_v43  ;;  %v18223_v10 = vld [vmem:[#allocation97_spill] sm:$0xff] }
 0x510   : > { %18217 = vst [vmem:[#allocation85_spill] sm:$0xff] %v13392_v30  ;;  %v18224_v19 = vld [vmem:[#allocation337_spill] sm:$0xff] }
 0x511   : > { %18222 = vst [vmem:[#allocation322_spill] sm:$0xff] %v13402_v50  ;;  %v13406_v56 = vadd.f32 %v18224_v19, %v18223_v10  ;;  %v18236_v19 = vld [vmem:[#allocation100_spill] sm:$0xff] }
 0x512   : > { %v13394_v52 = vpop.permute.xlu1 %3541  ;;  %3727 = vperm.xlu1 %9763, %v13388_v59   ;;  %v13397_v39 = vpop.permute.xlu0 %3550  ;;  %v18229_v59 = vld [vmem:[#allocation334_spill] sm:$0xff] }
 0x513   : > { %18218 = vst [vmem:[#allocation325_spill] sm:$0xff] %v13394_v52  ;;  %18219 = vst [vmem:[#allocation86_spill] sm:$0xff] %v13397_v39  ;;  %3736 = vperm.xlu0 %9762, %v13392_v30   ;;  %v13416_v39 = vadd.f32 %v18229_v59, %v18228_v12  ;;  %v18231_v30 = vld [vmem:[#allocation99_spill] sm:$0xff] }
 0x514   : > { %18225 = vst [vmem:[#allocation87_spill] sm:$0xff] %v13406_v56  ;;  %v18232_v52 = vld [vmem:[#allocation339_spill] sm:$0xff] }
 0x515   : > { %18230 = vst [vmem:[#allocation324_spill] sm:$0xff] %v13416_v39  ;;  %v13420_v60 = vadd.f32 %v18232_v52, %v18231_v30  ;;  %v18244_v52 = vld [vmem:[#allocation102_spill] sm:$0xff] }
 0x516   : > { %v13408_v16 = vpop.permute.xlu1 %3547  ;;  %3733 = vperm.xlu1 %9763, %v13402_v50   ;;  %v13411_v8 = vpop.permute.xlu0 %3556  ;;  %v18237_v50 = vld [vmem:[#allocation336_spill] sm:$0xff] }
 0x517   : > { %18226 = vst [vmem:[#allocation327_spill] sm:$0xff] %v13408_v16  ;;  %18227 = vst [vmem:[#allocation88_spill] sm:$0xff] %v13411_v8  ;;  %3742 = vperm.xlu0 %9762, %v13406_v56   ;;  %v13430_v8 = vadd.f32 %v18237_v50, %v18236_v19  ;;  %v18239_v56 = vld [vmem:[#allocation101_spill] sm:$0xff] }
 0x518   : > { %18233 = vst [vmem:[#allocation89_spill] sm:$0xff] %v13420_v60  ;;  %v18240_v16 = vld [vmem:[#allocation341_spill] sm:$0xff] }
 0x519   : > { %18238 = vst [vmem:[#allocation326_spill] sm:$0xff] %v13430_v8  ;;  %v13434_v59 = vadd.f32 %v18240_v16, %v18239_v56  ;;  %v18252_v16 = vld [vmem:[#allocation104_spill] sm:$0xff] }
 0x51a   : > { %v13422_v43 = vpop.permute.xlu1 %3553  ;;  %3739 = vperm.xlu1 %9763, %v13416_v39   ;;  %v13425_v10 = vpop.permute.xlu0 %3562  ;;  %v18245_v39 = vld [vmem:[#allocation338_spill] sm:$0xff] }
 0x51b   : > { %18234 = vst [vmem:[#allocation329_spill] sm:$0xff] %v13422_v43  ;;  %18235 = vst [vmem:[#allocation90_spill] sm:$0xff] %v13425_v10  ;;  %3748 = vperm.xlu0 %9762, %v13420_v60   ;;  %v13444_v10 = vadd.f32 %v18245_v39, %v18244_v52  ;;  %v18247_v60 = vld [vmem:[#allocation103_spill] sm:$0xff] }
 0x51c   : > { %18241 = vst [vmem:[#allocation91_spill] sm:$0xff] %v13434_v59  ;;  %v18248_v43 = vld [vmem:[#allocation343_spill] sm:$0xff] }
 0x51d   : > { %18246 = vst [vmem:[#allocation328_spill] sm:$0xff] %v13444_v10  ;;  %v13448_v50 = vadd.f32 %v18248_v43, %v18247_v60  ;;  %v18260_v43 = vld [vmem:[#allocation106_spill] sm:$0xff] }
 0x51e   : > { %v13436_v12 = vpop.permute.xlu1 %3559  ;;  %3745 = vperm.xlu1 %9763, %v13430_v8   ;;  %v13439_v30 = vpop.permute.xlu0 %3568  ;;  %v18253_v8 = vld [vmem:[#allocation340_spill] sm:$0xff] }
 0x51f   : > { %18242 = vst [vmem:[#allocation331_spill] sm:$0xff] %v13436_v12  ;;  %18243 = vst [vmem:[#allocation92_spill] sm:$0xff] %v13439_v30  ;;  %3754 = vperm.xlu0 %9762, %v13434_v59   ;;  %v13458_v30 = vadd.f32 %v18253_v8, %v18252_v16  ;;  %v18255_v59 = vld [vmem:[#allocation105_spill] sm:$0xff]  ;;  %v18256_v12 = vld [vmem:[#allocation346_spill] sm:$0xff] }
 0x520   : > { %18249 = vst [vmem:[#allocation93_spill] sm:$0xff] %v13448_v50  ;;  %v13462_v39 = vadd.f32 %v18256_v12, %v18255_v59  ;;  %v18268_v12 = vld [vmem:[#allocation108_spill] sm:$0xff] }
 0x521   : > { %18254 = vst [vmem:[#allocation330_spill] sm:$0xff] %v13458_v30 }
 0x522   : > { %v13450_v19 = vpop.permute.xlu1 %3565  ;;  %3751 = vperm.xlu1 %9763, %v13444_v10   ;;  %v13453_v56 = vpop.permute.xlu0 %3574  ;;  %18257 = vst [vmem:[#allocation95_spill] sm:$0xff] %v13462_v39  ;;  %v18261_v10 = vld [vmem:[#allocation342_spill] sm:$0xff] }
 0x523   : > { %18250 = vst [vmem:[#allocation333_spill] sm:$0xff] %v13450_v19  ;;  %18251 = vst [vmem:[#allocation94_spill] sm:$0xff] %v13453_v56  ;;  %3760 = vperm.xlu0 %9762, %v13448_v50   ;;  %v13472_v56 = vadd.f32 %v18261_v10, %v18260_v43  ;;  %v18263_v50 = vld [vmem:[#allocation107_spill] sm:$0xff]  ;;  %v18264_v19 = vld [vmem:[#allocation348_spill] sm:$0xff] }
 0x524   : > { %v13476_v8 = vadd.f32 %v18264_v19, %v18263_v50  ;;  %v18276_v19 = vld [vmem:[#allocation110_spill] sm:$0xff] }
 0x525   : > { %18262 = vst [vmem:[#allocation332_spill] sm:$0xff] %v13472_v56 }
 0x526   : > { %v13464_v52 = vpop.permute.xlu1 %3571  ;;  %3757 = vperm.xlu1 %9763, %v13458_v30   ;;  %v13467_v60 = vpop.permute.xlu0 %3580  ;;  %18265 = vst [vmem:[#allocation97_spill] sm:$0xff] %v13476_v8  ;;  %v18269_v30 = vld [vmem:[#allocation344_spill] sm:$0xff] }
 0x527   : > { %18258 = vst [vmem:[#allocation335_spill] sm:$0xff] %v13464_v52  ;;  %18259 = vst [vmem:[#allocation96_spill] sm:$0xff] %v13467_v60  ;;  %3766 = vperm.xlu0 %9762, %v13462_v39   ;;  %v13486_v52 = vadd.f32 %v18269_v30, %v18268_v12  ;;  %v18271_v39 = vld [vmem:[#allocation109_spill] sm:$0xff]  ;;  %v18272_v60 = vld [vmem:[#allocation350_spill] sm:$0xff] }
 0x528   : > { %v13490_v10 = vadd.f32 %v18272_v60, %v18271_v39  ;;  %v18283_v60 = vld [vmem:[#allocation112_spill] sm:$0xff] }
 0x529   : > { %18270 = vst [vmem:[#allocation334_spill] sm:$0xff] %v13486_v52 }
 0x52a   : > { %v13478_v16 = vpop.permute.xlu1 %3577  ;;  %3763 = vperm.xlu1 %9763, %v13472_v56   ;;  %v13481_v59 = vpop.permute.xlu0 %3586  ;;  %18273 = vst [vmem:[#allocation99_spill] sm:$0xff] %v13490_v10  ;;  %v18277_v56 = vld [vmem:[#allocation347_spill] sm:$0xff] }
 0x52b   : > { %18266 = vst [vmem:[#allocation337_spill] sm:$0xff] %v13478_v16  ;;  %18267 = vst [vmem:[#allocation98_spill] sm:$0xff] %v13481_v59  ;;  %3772 = vperm.xlu0 %9762, %v13476_v8   ;;  %v13500_v59 = vadd.f32 %v18277_v56, %v18276_v19  ;;  %v18279_v8 = vld [vmem:[#allocation111_spill] sm:$0xff]  ;;  %v18280_v16 = vld [vmem:[#allocation352_spill] sm:$0xff] }
 0x52c   : > { %v13504_v30 = vadd.f32 %v18280_v16, %v18279_v8  ;;  %v18291_v16 = vld [vmem:[#allocation114_spill] sm:$0xff] }
 0x52d   : > { %18278 = vst [vmem:[#allocation336_spill] sm:$0xff] %v13500_v59 }
 0x52e   : > { %v13492_v43 = vpop.permute.xlu1 %3583  ;;  %3769 = vperm.xlu1 %9763, %v13486_v52   ;;  %v13495_v50 = vpop.permute.xlu0 %3592  ;;  %18281 = vst [vmem:[#allocation101_spill] sm:$0xff] %v13504_v30  ;;  %v18284_v52 = vld [vmem:[#allocation349_spill] sm:$0xff] }
 0x52f   : > { %18274 = vst [vmem:[#allocation339_spill] sm:$0xff] %v13492_v43  ;;  %18275 = vst [vmem:[#allocation100_spill] sm:$0xff] %v13495_v50  ;;  %3778 = vperm.xlu0 %9762, %v13490_v10   ;;  %v13514_v50 = vadd.f32 %v18284_v52, %v18283_v60  ;;  %v18286_v10 = vld [vmem:[#allocation113_spill] sm:$0xff]  ;;  %v18287_v43 = vld [vmem:[#allocation354_spill] sm:$0xff] }
 0x530   : > { %v13518_v56 = vadd.f32 %v18287_v43, %v18286_v10  ;;  %v18298_v43 = vld [vmem:[#allocation116_spill] sm:$0xff] }
 0x531   : > { %18285 = vst [vmem:[#allocation102_spill] sm:$0xff] %v13514_v50 }
 0x532   : > { %v13506_v12 = vpop.permute.xlu1 %3589  ;;  %3775 = vperm.xlu1 %9763, %v13500_v59   ;;  %v13509_v39 = vpop.permute.xlu0 %3598  ;;  %18288 = vst [vmem:[#allocation338_spill] sm:$0xff] %v13518_v56  ;;  %v18292_v59 = vld [vmem:[#allocation351_spill] sm:$0xff] }
 0x533   : > { %18282 = vst [vmem:[#allocation341_spill] sm:$0xff] %v13509_v39  ;;  %3784 = vperm.xlu0 %9762, %v13504_v30   ;;  %v13528_v39 = vadd.f32 %v18292_v59, %v18291_v16  ;;  %v18294_v30 = vld [vmem:[#allocation115_spill] sm:$0xff] }
 0x534   : > { %v13532_v52 = vadd.f32 %v12460_v33, %v18294_v30  ;;  %v18306_v30 = vld [vmem:[#allocation118_spill] sm:$0xff] }
 0x535   : > { %18293 = vst [vmem:[#allocation104_spill] sm:$0xff] %v13528_v39 }
 0x536   : > { %v13520_v19 = vpop.permute.xlu1 %3595  ;;  %3781 = vperm.xlu1 %9763, %v13514_v50   ;;  %v13523_v8 = vpop.permute.xlu0 %3604  ;;  %18295 = vst [vmem:[#allocation340_spill] sm:$0xff] %v13532_v52  ;;  %v18299_v50 = vld [vmem:[#allocation353_spill] sm:$0xff] }
 0x537   : > { %18289 = vst [vmem:[#allocation103_spill] sm:$0xff] %v13520_v19  ;;  %18290 = vst [vmem:[#allocation343_spill] sm:$0xff] %v13523_v8  ;;  %3790 = vperm.xlu0 %9762, %v13518_v56   ;;  %v13542_v8 = vadd.f32 %v18299_v50, %v18298_v43  ;;  %v18301_v56 = vld [vmem:[#allocation117_spill] sm:$0xff] }
 0x538   : > { %v18302_v19 = vld [vmem:[#allocation357_spill] sm:$0xff] }
 0x539   : > { %18300 = vst [vmem:[#allocation106_spill] sm:$0xff] %v13542_v8  ;;  %v13546_v59 = vadd.f32 %v18302_v19, %v18301_v56  ;;  %v18314_v19 = vld [vmem:[#allocation120_spill] sm:$0xff] }
 0x53a   : > { %v13534_v60 = vpop.permute.xlu1 %3601  ;;  %3787 = vperm.xlu1 %9763, %v13528_v39   ;;  %v13537_v10 = vpop.permute.xlu0 %3610  ;;  %v18307_v39 = vld [vmem:[#allocation355_spill] sm:$0xff] }
 0x53b   : > { %18296 = vst [vmem:[#allocation105_spill] sm:$0xff] %v13534_v60  ;;  %18297 = vst [vmem:[#allocation346_spill] sm:$0xff] %v13537_v10  ;;  %3796 = vperm.xlu0 %9762, %v13532_v52   ;;  %v13556_v10 = vadd.f32 %v18307_v39, %v18306_v30  ;;  %v18309_v52 = vld [vmem:[#allocation119_spill] sm:$0xff] }
 0x53c   : > { %18303 = vst [vmem:[#allocation342_spill] sm:$0xff] %v13546_v59  ;;  %v18310_v60 = vld [vmem:[#allocation359_spill] sm:$0xff] }
 0x53d   : > { %18308 = vst [vmem:[#allocation108_spill] sm:$0xff] %v13556_v10  ;;  %v13560_v50 = vadd.f32 %v18310_v60, %v18309_v52  ;;  %v18322_v60 = vld [vmem:[#allocation122_spill] sm:$0xff] }
 0x53e   : > { %v13548_v16 = vpop.permute.xlu1 %3607  ;;  %3793 = vperm.xlu1 %9763, %v13542_v8   ;;  %v13551_v33 = vpop.permute.xlu0 %3616  ;;  %v18315_v8 = vld [vmem:[#allocation356_spill] sm:$0xff] }
 0x53f   : > { %18304 = vst [vmem:[#allocation107_spill] sm:$0xff] %v13548_v16  ;;  %18305 = vst [vmem:[#allocation348_spill] sm:$0xff] %v13551_v33  ;;  %3802 = vperm.xlu0 %9762, %v13546_v59   ;;  %v13570_v33 = vadd.f32 %v18315_v8, %v18314_v19  ;;  %v18317_v59 = vld [vmem:[#allocation121_spill] sm:$0xff] }
 0x540   : > { %18311 = vst [vmem:[#allocation344_spill] sm:$0xff] %v13560_v50  ;;  %v18318_v16 = vld [vmem:[#allocation361_spill] sm:$0xff] }
 0x541   : > { %18316 = vst [vmem:[#allocation110_spill] sm:$0xff] %v13570_v33  ;;  %v13574_v39 = vadd.f32 %v18318_v16, %v18317_v59  ;;  %v18330_v16 = vld [vmem:[#allocation124_spill] sm:$0xff] }
 0x542   : > { %v13562_v43 = vpop.permute.xlu1 %3613  ;;  %3799 = vperm.xlu1 %9763, %v13556_v10   ;;  %v13565_v56 = vpop.permute.xlu0 %3622  ;;  %v18323_v10 = vld [vmem:[#allocation358_spill] sm:$0xff] }
 0x543   : > { %18312 = vst [vmem:[#allocation109_spill] sm:$0xff] %v13562_v43  ;;  %18313 = vst [vmem:[#allocation350_spill] sm:$0xff] %v13565_v56  ;;  %3808 = vperm.xlu0 %9762, %v13560_v50   ;;  %v13584_v56 = vadd.f32 %v18323_v10, %v18322_v60  ;;  %v18325_v50 = vld [vmem:[#allocation123_spill] sm:$0xff] }
 0x544   : > { %18319 = vst [vmem:[#allocation347_spill] sm:$0xff] %v13574_v39  ;;  %v18326_v43 = vld [vmem:[#allocation363_spill] sm:$0xff] }
 0x545   : > { %18324 = vst [vmem:[#allocation112_spill] sm:$0xff] %v13584_v56  ;;  %v13588_v8 = vadd.f32 %v18326_v43, %v18325_v50  ;;  %v18338_v43 = vld [vmem:[#allocation126_spill] sm:$0xff] }
 0x546   : > { %v13576_v30 = vpop.permute.xlu1 %3619  ;;  %3805 = vperm.xlu1 %9763, %v13570_v33   ;;  %v13579_v52 = vpop.permute.xlu0 %3628  ;;  %v18331_v33 = vld [vmem:[#allocation360_spill] sm:$0xff] }
 0x547   : > { %18320 = vst [vmem:[#allocation111_spill] sm:$0xff] %v13576_v30  ;;  %18321 = vst [vmem:[#allocation352_spill] sm:$0xff] %v13579_v52  ;;  %3814 = vperm.xlu0 %9762, %v13574_v39   ;;  %v13598_v30 = vadd.f32 %v18331_v33, %v18330_v16  ;;  %v18333_v39 = vld [vmem:[#allocation125_spill] sm:$0xff] }
 0x548   : > { %18327 = vst [vmem:[#allocation349_spill] sm:$0xff] %v13588_v8  ;;  %v18334_v52 = vld [vmem:[#allocation365_spill] sm:$0xff] }
 0x549   : > { %18332 = vst [vmem:[#allocation114_spill] sm:$0xff] %v13598_v30  ;;  %v13602_v10 = vadd.f32 %v18334_v52, %v18333_v39  ;;  %v18346_v52 = vld [vmem:[#allocation128_spill] sm:$0xff] }
 0x54a   : > { %v13590_v19 = vpop.permute.xlu1 %3625  ;;  %3811 = vperm.xlu1 %9763, %v13584_v56   ;;  %v13593_v59 = vpop.permute.xlu0 %3634  ;;  %v18339_v56 = vld [vmem:[#allocation362_spill] sm:$0xff] }
 0x54b   : > { %18328 = vst [vmem:[#allocation113_spill] sm:$0xff] %v13590_v19  ;;  %18329 = vst [vmem:[#allocation354_spill] sm:$0xff] %v13593_v59  ;;  %3820 = vperm.xlu0 %9762, %v13588_v8   ;;  %v13612_v59 = vadd.f32 %v18339_v56, %v18338_v43  ;;  %v18341_v8 = vld [vmem:[#allocation127_spill] sm:$0xff] }
 0x54c   : > { %18335 = vst [vmem:[#allocation351_spill] sm:$0xff] %v13602_v10  ;;  %v18342_v19 = vld [vmem:[#allocation367_spill] sm:$0xff] }
 0x54d   : > { %18340 = vst [vmem:[#allocation353_spill] sm:$0xff] %v13612_v59  ;;  %v13616_v33 = vadd.f32 %v18342_v19, %v18341_v8  ;;  %v18354_v19 = vld [vmem:[#allocation130_spill] sm:$0xff] }
 0x54e   : > { %v13604_v60 = vpop.permute.xlu1 %3631  ;;  %3817 = vperm.xlu1 %9763, %v13598_v30   ;;  %v13607_v50 = vpop.permute.xlu0 %3640  ;;  %v18347_v30 = vld [vmem:[#allocation364_spill] sm:$0xff] }
 0x54f   : > { %18336 = vst [vmem:[#allocation115_spill] sm:$0xff] %v13604_v60  ;;  %18337 = vst [vmem:[#allocation116_spill] sm:$0xff] %v13607_v50  ;;  %3826 = vperm.xlu0 %9762, %v13602_v10   ;;  %v13626_v50 = vadd.f32 %v18347_v30, %v18346_v52  ;;  %v18349_v10 = vld [vmem:[#allocation129_spill] sm:$0xff] }
 0x550   : > { %18343 = vst [vmem:[#allocation117_spill] sm:$0xff] %v13616_v33  ;;  %v18350_v60 = vld [vmem:[#allocation369_spill] sm:$0xff] }
 0x551   : > { %18348 = vst [vmem:[#allocation355_spill] sm:$0xff] %v13626_v50  ;;  %v13630_v56 = vadd.f32 %v18350_v60, %v18349_v10  ;;  %v18362_v60 = vld [vmem:[#allocation132_spill] sm:$0xff] }
 0x552   : > { %v13618_v16 = vpop.permute.xlu1 %3637  ;;  %3823 = vperm.xlu1 %9763, %v13612_v59   ;;  %v13621_v39 = vpop.permute.xlu0 %3646  ;;  %v18355_v59 = vld [vmem:[#allocation366_spill] sm:$0xff] }
 0x553   : > { %18344 = vst [vmem:[#allocation357_spill] sm:$0xff] %v13618_v16  ;;  %18345 = vst [vmem:[#allocation118_spill] sm:$0xff] %v13621_v39  ;;  %3832 = vperm.xlu0 %9762, %v13616_v33   ;;  %v13640_v39 = vadd.f32 %v18355_v59, %v18354_v19  ;;  %v18357_v33 = vld [vmem:[#allocation131_spill] sm:$0xff] }
 0x554   : > { %18351 = vst [vmem:[#allocation119_spill] sm:$0xff] %v13630_v56  ;;  %v18358_v16 = vld [vmem:[#allocation371_spill] sm:$0xff] }
 0x555   : > { %18356 = vst [vmem:[#allocation356_spill] sm:$0xff] %v13640_v39  ;;  %v13644_v30 = vadd.f32 %v18358_v16, %v18357_v33  ;;  %v18370_v16 = vld [vmem:[#allocation134_spill] sm:$0xff] }
 0x556   : > { %v13632_v43 = vpop.permute.xlu1 %3643  ;;  %3829 = vperm.xlu1 %9763, %v13626_v50   ;;  %v13635_v8 = vpop.permute.xlu0 %3652  ;;  %v18363_v50 = vld [vmem:[#allocation368_spill] sm:$0xff] }
 0x557   : > { %18352 = vst [vmem:[#allocation359_spill] sm:$0xff] %v13632_v43  ;;  %18353 = vst [vmem:[#allocation120_spill] sm:$0xff] %v13635_v8  ;;  %3838 = vperm.xlu0 %9762, %v13630_v56   ;;  %v13654_v8 = vadd.f32 %v18363_v50, %v18362_v60  ;;  %v18365_v56 = vld [vmem:[#allocation133_spill] sm:$0xff] }
 0x558   : > { %18359 = vst [vmem:[#allocation121_spill] sm:$0xff] %v13644_v30  ;;  %v18366_v43 = vld [vmem:[#allocation373_spill] sm:$0xff] }
 0x559   : > { %18364 = vst [vmem:[#allocation358_spill] sm:$0xff] %v13654_v8  ;;  %v13658_v59 = vadd.f32 %v18366_v43, %v18365_v56  ;;  %v18377_v43 = vld [vmem:[#allocation136_spill] sm:$0xff] }
 0x55a   : > { %v13646_v52 = vpop.permute.xlu1 %3649  ;;  %3835 = vperm.xlu1 %9763, %v13640_v39   ;;  %v13649_v10 = vpop.permute.xlu0 %3658  ;;  %v18371_v39 = vld [vmem:[#allocation370_spill] sm:$0xff] }
 0x55b   : > { %18360 = vst [vmem:[#allocation361_spill] sm:$0xff] %v13646_v52  ;;  %18361 = vst [vmem:[#allocation122_spill] sm:$0xff] %v13649_v10  ;;  %3844 = vperm.xlu0 %9762, %v13644_v30   ;;  %v13668_v10 = vadd.f32 %v18371_v39, %v18370_v16  ;;  %v18373_v30 = vld [vmem:[#allocation135_spill] sm:$0xff]  ;;  %v18396_v52 = vld [vmem:[#allocation381_spill] sm:$0xff] }
 0x55c   : > { %18367 = vst [vmem:[#allocation123_spill] sm:$0xff] %v13658_v59  ;;  %v13672_v50 = vadd.f32 %v12502_v3, %v18373_v30  ;;  %v18385_v30 = vld [vmem:[#allocation138_spill] sm:$0xff] }
 0x55d   : > { %18372 = vst [vmem:[#allocation360_spill] sm:$0xff] %v13668_v10 }
 0x55e   : > { %v13660_v19 = vpop.permute.xlu1 %3655  ;;  %3841 = vperm.xlu1 %9763, %v13654_v8   ;;  %v13663_v33 = vpop.permute.xlu0 %3664  ;;  %18374 = vst [vmem:[#allocation125_spill] sm:$0xff] %v13672_v50  ;;  %v18378_v8 = vld [vmem:[#allocation372_spill] sm:$0xff] }
 0x55f   : > { %18368 = vst [vmem:[#allocation363_spill] sm:$0xff] %v13660_v19  ;;  %18369 = vst [vmem:[#allocation124_spill] sm:$0xff] %v13663_v33  ;;  %3850 = vperm.xlu0 %9762, %v13658_v59   ;;  %v13682_v33 = vadd.f32 %v18378_v8, %v18377_v43  ;;  %v18380_v59 = vld [vmem:[#allocation137_spill] sm:$0xff] }
 0x560   : > { %v18381_v19 = vld [vmem:[#allocation377_spill] sm:$0xff] }
 0x561   : > { %18379 = vst [vmem:[#allocation362_spill] sm:$0xff] %v13682_v33  ;;  %v13686_v39 = vadd.f32 %v18381_v19, %v18380_v59  ;;  %v18392_v19 = vld [vmem:[#allocation140_spill] sm:$0xff] }
 0x562   : > { %v13674_v60 = vpop.permute.xlu1 %3661  ;;  %3847 = vperm.xlu1 %9763, %v13668_v10   ;;  %v13677_v56 = vpop.permute.xlu0 %3670  ;;  %v18386_v10 = vld [vmem:[#allocation374_spill] sm:$0xff] }
 0x563   : > { %18375 = vst [vmem:[#allocation365_spill] sm:$0xff] %v13674_v60  ;;  %18376 = vst [vmem:[#allocation126_spill] sm:$0xff] %v13677_v56  ;;  %3856 = vperm.xlu0 %9762, %v13672_v50   ;;  %v13696_v56 = vadd.f32 %v18386_v10, %v18385_v30  ;;  %v18388_v50 = vld [vmem:[#allocation139_spill] sm:$0xff] }
 0x564   : > { %18382 = vst [vmem:[#allocation127_spill] sm:$0xff] %v13686_v39  ;;  %v18389_v60 = vld [vmem:[#allocation379_spill] sm:$0xff] }
 0x565   : > { %18387 = vst [vmem:[#allocation364_spill] sm:$0xff] %v13696_v56  ;;  %v13700_v8 = vadd.f32 %v18389_v60, %v18388_v50  ;;  %v18400_v60 = vld [vmem:[#allocation142_spill] sm:$0xff] }
 0x566   : > { %v13688_v16 = vpop.permute.xlu1 %3667  ;;  %3853 = vperm.xlu1 %9763, %v13682_v33   ;;  %v13691_v3 = vpop.permute.xlu0 %3676  ;;  %v18393_v33 = vld [vmem:[#allocation375_spill] sm:$0xff] }
 0x567   : > { %18383 = vst [vmem:[#allocation367_spill] sm:$0xff] %v13688_v16  ;;  %18384 = vst [vmem:[#allocation128_spill] sm:$0xff] %v13691_v3  ;;  %3862 = vperm.xlu0 %9762, %v13686_v39   ;;  %v13710_v16 = vadd.f32 %v18393_v33, %v18392_v19  ;;  %v18395_v39 = vld [vmem:[#allocation141_spill] sm:$0xff]  ;;  %v18404_v3 = vld [vmem:[#allocation383_spill] sm:$0xff] }
 0x568   : > { %18390 = vst [vmem:[#allocation129_spill] sm:$0xff] %v13700_v8  ;;  %v13714_v10 = vadd.f32 %v18396_v52, %v18395_v39  ;;  %v18407_v39 = vld [vmem:[#allocation144_spill] sm:$0xff] }
 0x569   : > { %18394 = vst [vmem:[#allocation130_spill] sm:$0xff] %v13710_v16 }
 0x56a   : > { %v13702_v43 = vpop.permute.xlu1 %3673  ;;  %3859 = vperm.xlu1 %9763, %v13696_v56   ;;  %v13705_v59 = vpop.permute.xlu0 %3682  ;;  %18397 = vst [vmem:[#allocation366_spill] sm:$0xff] %v13714_v10  ;;  %v18401_v56 = vld [vmem:[#allocation378_spill] sm:$0xff] }
 0x56b   : > { %18391 = vst [vmem:[#allocation369_spill] sm:$0xff] %v13705_v59  ;;  %3868 = vperm.xlu0 %9762, %v13700_v8   ;;  %v13724_v59 = vadd.f32 %v18401_v56, %v18400_v60  ;;  %v18403_v8 = vld [vmem:[#allocation143_spill] sm:$0xff] }
 0x56c   : > { %v13728_v33 = vadd.f32 %v18404_v3, %v18403_v8  ;;  %v18415_v8 = vld [vmem:[#allocation146_spill] sm:$0xff] }
 0x56d   : > { %18402 = vst [vmem:[#allocation132_spill] sm:$0xff] %v13724_v59 }
 0x56e   : > { %v13716_v30 = vpop.permute.xlu1 %3679  ;;  %3865 = vperm.xlu1 %9763, %v13710_v16   ;;  %v13719_v50 = vpop.permute.xlu0 %3688  ;;  %18405 = vst [vmem:[#allocation368_spill] sm:$0xff] %v13728_v33  ;;  %v18408_v16 = vld [vmem:[#allocation380_spill] sm:$0xff] }
 0x56f   : > { %18398 = vst [vmem:[#allocation131_spill] sm:$0xff] %v13716_v30  ;;  %18399 = vst [vmem:[#allocation371_spill] sm:$0xff] %v13719_v50  ;;  %3874 = vperm.xlu0 %9762, %v13714_v10   ;;  %v13738_v50 = vadd.f32 %v18408_v16, %v18407_v39  ;;  %v18410_v10 = vld [vmem:[#allocation145_spill] sm:$0xff] }
 0x570   : > { %v18411_v30 = vld [vmem:[#allocation385_spill] sm:$0xff] }
 0x571   : > { %18409 = vst [vmem:[#allocation373_spill] sm:$0xff] %v13738_v50  ;;  %v13742_v56 = vadd.f32 %v18411_v30, %v18410_v10  ;;  %v18422_v30 = vld [vmem:[#allocation148_spill] sm:$0xff] }
 0x572   : > { %v13730_v19 = vpop.permute.xlu1 %3685  ;;  %3871 = vperm.xlu1 %9763, %v13724_v59   ;;  %v13733_v52 = vpop.permute.xlu0 %3694  ;;  %v18416_v59 = vld [vmem:[#allocation382_spill] sm:$0xff] }
 0x573   : > { %18406 = vst [vmem:[#allocation133_spill] sm:$0xff] %v13733_v52  ;;  %3880 = vperm.xlu0 %9762, %v13728_v33   ;;  %18412 = vst [vmem:[#allocation134_spill] sm:$0xff] %v13742_v56  ;;  %v13752_v52 = vadd.f32 %v18416_v59, %v18415_v8  ;;  %v18418_v33 = vld [vmem:[#allocation147_spill] sm:$0xff] }
 0x574   : > { %v13756_v16 = vadd.f32 %v12531_v35, %v18418_v33  ;;  %v18430_v33 = vld [vmem:[#allocation150_spill] sm:$0xff] }
 0x575   : > { %18417 = vst [vmem:[#allocation136_spill] sm:$0xff] %v13752_v52 }
 0x576   : > { %v13744_v60 = vpop.permute.xlu1 %3691  ;;  %3877 = vperm.xlu1 %9763, %v13738_v50   ;;  %v13747_v3 = vpop.permute.xlu0 %3700  ;;  %18419 = vst [vmem:[#allocation372_spill] sm:$0xff] %v13756_v16  ;;  %v18423_v50 = vld [vmem:[#allocation384_spill] sm:$0xff] }
 0x577   : > { %18413 = vst [vmem:[#allocation370_spill] sm:$0xff] %v13744_v60  ;;  %18414 = vst [vmem:[#allocation135_spill] sm:$0xff] %v13747_v3  ;;  %3886 = vperm.xlu0 %9762, %v13742_v56   ;;  %v13766_v3 = vadd.f32 %v18423_v50, %v18422_v30  ;;  %v18425_v56 = vld [vmem:[#allocation149_spill] sm:$0xff]  ;;  %v18426_v60 = vld [vmem:[#allocation388_spill] sm:$0xff] }
 0x578   : > { %v13770_v59 = vadd.f32 %v18426_v60, %v18425_v56  ;;  %v18438_v60 = vld [vmem:[#allocation152_spill] sm:$0xff] }
 0x579   : > { %18424 = vst [vmem:[#allocation138_spill] sm:$0xff] %v13766_v3 }
 0x57a   : > { %v13758_v39 = vpop.permute.xlu1 %3697  ;;  %3883 = vperm.xlu1 %9763, %v13752_v52   ;;  %v13761_v10 = vpop.permute.xlu0 %3706  ;;  %18427 = vst [vmem:[#allocation374_spill] sm:$0xff] %v13770_v59  ;;  %v18431_v52 = vld [vmem:[#allocation386_spill] sm:$0xff] }
 0x57b   : > { %18420 = vst [vmem:[#allocation137_spill] sm:$0xff] %v13758_v39  ;;  %18421 = vst [vmem:[#allocation377_spill] sm:$0xff] %v13761_v10  ;;  %3892 = vperm.xlu0 %9762, %v13756_v16   ;;  %v13780_v10 = vadd.f32 %v18431_v52, %v18430_v33  ;;  %v18433_v16 = vld [vmem:[#allocation151_spill] sm:$0xff]  ;;  %v18434_v39 = vld [vmem:[#allocation390_spill] sm:$0xff] }
 0x57c   : > { %v13784_v50 = vadd.f32 %v18434_v39, %v18433_v16  ;;  %v18446_v39 = vld [vmem:[#allocation154_spill] sm:$0xff] }
 0x57d   : > { %18432 = vst [vmem:[#allocation140_spill] sm:$0xff] %v13780_v10 }
 0x57e   : > { %v13772_v8 = vpop.permute.xlu1 %3703  ;;  %3889 = vperm.xlu1 %9763, %v13766_v3   ;;  %v13775_v35 = vpop.permute.xlu0 %3712  ;;  %18435 = vst [vmem:[#allocation375_spill] sm:$0xff] %v13784_v50  ;;  %v18439_v3 = vld [vmem:[#allocation387_spill] sm:$0xff] }
 0x57f   : > { %18428 = vst [vmem:[#allocation139_spill] sm:$0xff] %v13772_v8  ;;  %18429 = vst [vmem:[#allocation379_spill] sm:$0xff] %v13775_v35  ;;  %3898 = vperm.xlu0 %9762, %v13770_v59   ;;  %v13794_v35 = vadd.f32 %v18439_v3, %v18438_v60  ;;  %v18441_v59 = vld [vmem:[#allocation153_spill] sm:$0xff]  ;;  %v18442_v8 = vld [vmem:[#allocation392_spill] sm:$0xff] }
 0x580   : > { %v13798_v52 = vadd.f32 %v18442_v8, %v18441_v59  ;;  %v18452_v8 = vld [vmem:[#allocation156_spill] sm:$0xff] }
 0x581   : > { %18440 = vst [vmem:[#allocation142_spill] sm:$0xff] %v13794_v35 }
 0x582   : > { %v13786_v30 = vpop.permute.xlu1 %3709  ;;  %3895 = vperm.xlu1 %9763, %v13780_v10   ;;  %v13789_v56 = vpop.permute.xlu0 %3718  ;;  %18443 = vst [vmem:[#allocation378_spill] sm:$0xff] %v13798_v52  ;;  %v18447_v10 = vld [vmem:[#allocation389_spill] sm:$0xff] }
 0x583   : > { %18436 = vst [vmem:[#allocation141_spill] sm:$0xff] %v13786_v30  ;;  %18437 = vst [vmem:[#allocation381_spill] sm:$0xff] %v13789_v56  ;;  %3904 = vperm.xlu0 %9762, %v13784_v50   ;;  %v13808_v56 = vadd.f32 %v18447_v10, %v18446_v39  ;;  %v18449_v50 = vld [vmem:[#allocation155_spill] sm:$0xff] }
 0x584   : > { %v13812_v3 = vadd.f32 %v12549_v2, %v18449_v50  ;;  %v18456_v30 = vld [vmem:[#allocation395_spill] sm:$0xff]  ;;  %v18460_v50 = vld [vmem:[#allocation158_spill] sm:$0xff] }
 0x585   : > { %18448 = vst [vmem:[#allocation144_spill] sm:$0xff] %v13808_v56 }
 0x586   : > { %v13800_v33 = vpop.permute.xlu1 %3715  ;;  %3901 = vperm.xlu1 %9763, %v13794_v35   ;;  %v13803_v16 = vpop.permute.xlu0 %3724  ;;  %18450 = vst [vmem:[#allocation380_spill] sm:$0xff] %v13812_v3  ;;  %v18453_v35 = vld [vmem:[#allocation391_spill] sm:$0xff] }
 0x587   : > { %18444 = vst [vmem:[#allocation143_spill] sm:$0xff] %v13800_v33  ;;  %18445 = vst [vmem:[#allocation383_spill] sm:$0xff] %v13803_v16  ;;  %3910 = vperm.xlu0 %9762, %v13798_v52   ;;  %v13822_v33 = vadd.f32 %v18453_v35, %v18452_v8  ;;  %v18455_v52 = vld [vmem:[#allocation157_spill] sm:$0xff] }
 0x588   : > { %v13826_v10 = vadd.f32 %v18456_v30, %v18455_v52  ;;  %v18464_v16 = vld [vmem:[#allocation397_spill] sm:$0xff]  ;;  %v18467_v52 = vld [vmem:[#allocation160_spill] sm:$0xff] }
 0x589   : > { %18454 = vst [vmem:[#allocation385_spill] sm:$0xff] %v13822_v33 }
 0x58a   : > { %v13814_v60 = vpop.permute.xlu1 %3721  ;;  %3907 = vperm.xlu1 %9763, %v13808_v56   ;;  %v13817_v59 = vpop.permute.xlu0 %3730  ;;  %18457 = vst [vmem:[#allocation146_spill] sm:$0xff] %v13826_v10  ;;  %v18461_v56 = vld [vmem:[#allocation393_spill] sm:$0xff] }
 0x58b   : > { %18451 = vst [vmem:[#allocation145_spill] sm:$0xff] %v13817_v59  ;;  %3916 = vperm.xlu0 %9762, %v13812_v3   ;;  %v13836_v59 = vadd.f32 %v18461_v56, %v18460_v50  ;;  %v18463_v3 = vld [vmem:[#allocation159_spill] sm:$0xff] }
 0x58c   : > { %v13840_v35 = vadd.f32 %v18464_v16, %v18463_v3  ;;  %v18475_v3 = vld [vmem:[#allocation162_spill] sm:$0xff] }
 0x58d   : > { %18462 = vst [vmem:[#allocation148_spill] sm:$0xff] %v13836_v59 }
 0x58e   : > { %v13828_v39 = vpop.permute.xlu1 %3727  ;;  %3913 = vperm.xlu1 %9763, %v13822_v33   ;;  %v13831_v2 = vpop.permute.xlu0 %3736  ;;  %18465 = vst [vmem:[#allocation384_spill] sm:$0xff] %v13840_v35  ;;  %v18468_v33 = vld [vmem:[#allocation394_spill] sm:$0xff] }
 0x58f   : > { %18458 = vst [vmem:[#allocation382_spill] sm:$0xff] %v13828_v39  ;;  %18459 = vst [vmem:[#allocation147_spill] sm:$0xff] %v13831_v2  ;;  %3922 = vperm.xlu0 %9762, %v13826_v10   ;;  %v13850_v2 = vadd.f32 %v18468_v33, %v18467_v52  ;;  %v18470_v10 = vld [vmem:[#allocation161_spill] sm:$0xff]  ;;  %v18471_v39 = vld [vmem:[#allocation399_spill] sm:$0xff] }
 0x590   : > { %v13854_v56 = vadd.f32 %v18471_v39, %v18470_v10  ;;  %v18481_v39 = vld [vmem:[#allocation164_spill] sm:$0xff] }
 0x591   : > { %18469 = vst [vmem:[#allocation388_spill] sm:$0xff] %v13850_v2 }
 0x592   : > { %v13842_v8 = vpop.permute.xlu1 %3733  ;;  %3919 = vperm.xlu1 %9763, %v13836_v59   ;;  %v13845_v30 = vpop.permute.xlu0 %3742  ;;  %18472 = vst [vmem:[#allocation150_spill] sm:$0xff] %v13854_v56  ;;  %v18476_v59 = vld [vmem:[#allocation396_spill] sm:$0xff] }
 0x593   : > { %18466 = vst [vmem:[#allocation149_spill] sm:$0xff] %v13845_v30  ;;  %3928 = vperm.xlu0 %9762, %v13840_v35   ;;  %v13864_v30 = vadd.f32 %v18476_v59, %v18475_v3  ;;  %v18478_v35 = vld [vmem:[#allocation163_spill] sm:$0xff] }
 0x594   : > { %v13868_v33 = vadd.f32 %v12565_v0, %v18478_v35  ;;  %v18489_v35 = vld [vmem:[#allocation166_spill] sm:$0xff] }
 0x595   : > { %18477 = vst [vmem:[#allocation390_spill] sm:$0xff] %v13864_v30 }
 0x596   : > { %v13856_v50 = vpop.permute.xlu1 %3739  ;;  %3925 = vperm.xlu1 %9763, %v13850_v2   ;;  %v13859_v16 = vpop.permute.xlu0 %3748  ;;  %18479 = vst [vmem:[#allocation152_spill] sm:$0xff] %v13868_v33  ;;  %v18482_v2 = vld [vmem:[#allocation398_spill] sm:$0xff] }
 0x597   : > { %18473 = vst [vmem:[#allocation386_spill] sm:$0xff] %v13856_v50  ;;  %18474 = vst [vmem:[#allocation151_spill] sm:$0xff] %v13859_v16  ;;  %3934 = vperm.xlu0 %9762, %v13854_v56   ;;  %v13878_v16 = vadd.f32 %v18482_v2, %v18481_v39  ;;  %v18484_v56 = vld [vmem:[#allocation165_spill] sm:$0xff]  ;;  %v18485_v50 = vld [vmem:[#allocation402_spill] sm:$0xff] }
 0x598   : > { %v13882_v59 = vadd.f32 %v18485_v50, %v18484_v56  ;;  %v18496_v50 = vld [vmem:[#allocation168_spill] sm:$0xff] }
 0x599   : > { %18483 = vst [vmem:[#allocation153_spill] sm:$0xff] %v13878_v16 }
 0x59a   : > { %v13870_v52 = vpop.permute.xlu1 %3745  ;;  %3931 = vperm.xlu1 %9763, %v13864_v30   ;;  %v13873_v10 = vpop.permute.xlu0 %3754  ;;  %18486 = vst [vmem:[#allocation392_spill] sm:$0xff] %v13882_v59  ;;  %v18490_v30 = vld [vmem:[#allocation400_spill] sm:$0xff] }
 0x59b   : > { %18480 = vst [vmem:[#allocation387_spill] sm:$0xff] %v13873_v10  ;;  %3940 = vperm.xlu0 %9762, %v13868_v33   ;;  %v13892_v10 = vadd.f32 %v18490_v30, %v18489_v35  ;;  %v18492_v33 = vld [vmem:[#allocation167_spill] sm:$0xff] }
 0x59c   : > { %v13896_v2 = vadd.f32 %v12573_v53, %v18492_v33  ;;  %v18503_v33 = vld [vmem:[#allocation171_spill] sm:$0xff] }
 0x59d   : > { %18491 = vst [vmem:[#allocation155_spill] sm:$0xff] %v13892_v10 }
 0x59e   : > { %v13884_v3 = vpop.permute.xlu1 %3751  ;;  %3937 = vperm.xlu1 %9763, %v13878_v16   ;;  %v13887_v0 = vpop.permute.xlu0 %3760  ;;  %18493 = vst [vmem:[#allocation156_spill] sm:$0xff] %v13896_v2  ;;  %v18497_v16 = vld [vmem:[#allocation401_spill] sm:$0xff] }
 0x59f   : > { %18487 = vst [vmem:[#allocation154_spill] sm:$0xff] %v13884_v3  ;;  %18488 = vst [vmem:[#allocation389_spill] sm:$0xff] %v13887_v0  ;;  %3946 = vperm.xlu0 %9762, %v13882_v59   ;;  %v13906_v0 = vadd.f32 %v18497_v16, %v18496_v50  ;;  %v18499_v59 = vld [vmem:[#allocation170_spill] sm:$0xff]  ;;  %v18500_v3 = vld [vmem:[#allocation405_spill] sm:$0xff] }
 0x5a0   : > { %v13910_v30 = vadd.f32 %v18500_v3, %v18499_v59  ;;  %v18508_v3 = vld [vmem:[#allocation174_spill] sm:$0xff] }
 0x5a1   : > { %18498 = vst [vmem:[#allocation395_spill] sm:$0xff] %v13906_v0 }
 0x5a2   : > { %v13898_v39 = vpop.permute.xlu1 %3757  ;;  %3943 = vperm.xlu1 %9763, %v13892_v10   ;;  %v13901_v56 = vpop.permute.xlu0 %3766  ;;  %18501 = vst [vmem:[#allocation158_spill] sm:$0xff] %v13910_v30  ;;  %v18504_v10 = vld [vmem:[#allocation403_spill] sm:$0xff] }
 0x5a3   : > { %18494 = vst [vmem:[#allocation391_spill] sm:$0xff] %v13898_v39  ;;  %18495 = vst [vmem:[#allocation157_spill] sm:$0xff] %v13901_v56  ;;  %3952 = vperm.xlu0 %9762, %v13896_v2   ;;  %v13920_v56 = vadd.f32 %v18504_v10, %v18503_v33  ;;  %v18506_v2 = vld [vmem:[#allocation173_spill] sm:$0xff] }
 0x5a4   : > { %v13924_v16 = vadd.f32 %v12585_v37, %v18506_v2  ;;  %v18513_v2 = vld [vmem:[#allocation176_spill] sm:$0xff] }
 0x5a5   : > { %18505 = vst [vmem:[#allocation159_spill] sm:$0xff] %v13920_v56 }
 0x5a6   : > { %v13912_v35 = vpop.permute.xlu1 %3763  ;;  %3949 = vperm.xlu1 %9763, %v13906_v0   ;;  %v13915_v53 = vpop.permute.xlu0 %3772  ;;  %18507 = vst [vmem:[#allocation397_spill] sm:$0xff] %v13924_v16  ;;  %v18509_v0 = vld [vmem:[#allocation404_spill] sm:$0xff] }
 0x5a7   : > { %18502 = vst [vmem:[#allocation393_spill] sm:$0xff] %v13912_v35  ;;  %3958 = vperm.xlu0 %9762, %v13910_v30   ;;  %v13934_v35 = vadd.f32 %v18509_v0, %v18508_v3  ;;  %v18511_v30 = vld [vmem:[#allocation175_spill] sm:$0xff] }
 0x5a8   : > { %v13938_v10 = vadd.f32 %v12598_v58, %v18511_v30  ;;  %v18518_v30 = vld [vmem:[#allocation178_spill] sm:$0xff] }
 0x5a9   : > { %18510 = vst [vmem:[#allocation160_spill] sm:$0xff] %v13934_v35 }
 0x5aa   : > { %v13926_v50 = vpop.permute.xlu1 %3769  ;;  %3955 = vperm.xlu1 %9763, %v13920_v56   ;;  %v13929_v59 = vpop.permute.xlu0 %3778  ;;  %18512 = vst [vmem:[#allocation394_spill] sm:$0xff] %v13938_v10  ;;  %v18514_v56 = vld [vmem:[#allocation406_spill] sm:$0xff] }
 0x5ab   : > { %3964 = vperm.xlu0 %9762, %v13924_v16   ;;  %v13948_v39 = vadd.f32 %v18514_v56, %v18513_v2  ;;  %v18516_v16 = vld [vmem:[#allocation177_spill] sm:$0xff] }
 0x5ac   : > { %v13952_v0 = vadd.f32 %v12612_v54, %v18516_v16  ;;  %v18523_v16 = vld [vmem:[#allocation180_spill] sm:$0xff] }
 0x5ad   : > { %18515 = vst [vmem:[#allocation161_spill] sm:$0xff] %v13948_v39 }
 0x5ae   : > { %v13940_v33 = vpop.permute.xlu1 %3775  ;;  %3961 = vperm.xlu1 %9763, %v13934_v35   ;;  %v13943_v37 = vpop.permute.xlu0 %3784  ;;  %18517 = vst [vmem:[#allocation399_spill] sm:$0xff] %v13952_v0  ;;  %v13962_v35 = vadd.f32 %v12587_v22, %v18518_v30 }
 0x5af   : > { %3970 = vperm.xlu0 %9762, %v13938_v10   ;;  %v18520_v10 = vld [vmem:[#allocation179_spill] sm:$0xff] }
 0x5b0   : > { %18519 = vst [vmem:[#allocation162_spill] sm:$0xff] %v13962_v35  ;;  %v13966_v56 = vadd.f32 %v12626_v55, %v18520_v10  ;;  %v18528_v10 = vld [vmem:[#allocation182_spill] sm:$0xff] }
 0x5b2   : > { %v13954_v3 = vpop.permute.xlu1 %3781  ;;  %3967 = vperm.xlu1 %9763, %v13948_v39   ;;  %v13957_v58 = vpop.permute.xlu0 %3790  ;;  %18521 = vst [vmem:[#allocation396_spill] sm:$0xff] %v13966_v56  ;;  %v13976_v39 = vadd.f32 %v12601_v28, %v18523_v16 }
 0x5b3   : > { %3976 = vperm.xlu0 %9762, %v13952_v0   ;;  %v18525_v0 = vld [vmem:[#allocation181_spill] sm:$0xff] }
 0x5b4   : > { %18524 = vst [vmem:[#allocation164_spill] sm:$0xff] %v13976_v39  ;;  %v13980_v22 = vadd.f32 %v12640_v51, %v18525_v0  ;;  %v18534_v0 = vld [vmem:[#allocation184_spill] sm:$0xff] }
 0x5b6   : > { %v13968_v2 = vpop.permute.xlu1 %3787  ;;  %3973 = vperm.xlu1 %9763, %v13962_v35   ;;  %v13971_v54 = vpop.permute.xlu0 %3796  ;;  %18526 = vst [vmem:[#allocation398_spill] sm:$0xff] %v13980_v22  ;;  %v13990_v35 = vadd.f32 %v12615_v49, %v18528_v10 }
 0x5b7   : > { %18522 = vst [vmem:[#allocation163_spill] sm:$0xff] %v13971_v54  ;;  %3982 = vperm.xlu0 %9762, %v13966_v56   ;;  %v18530_v56 = vld [vmem:[#allocation183_spill] sm:$0xff] }
 0x5b8   : > { %18529 = vst [vmem:[#allocation402_spill] sm:$0xff] %v13990_v35  ;;  %v13994_v28 = vadd.f32 %v12654_v27, %v18530_v56  ;;  %v18540_v56 = vld [vmem:[#allocation186_spill] sm:$0xff] }
 0x5ba   : > { %v13982_v30 = vpop.permute.xlu1 %3793  ;;  %3979 = vperm.xlu1 %9763, %v13976_v39   ;;  %v13985_v55 = vpop.permute.xlu0 %3802  ;;  %18531 = vst [vmem:[#allocation166_spill] sm:$0xff] %v13994_v28  ;;  %v14004_v39 = vadd.f32 %v12629_v48, %v18534_v0 }
 0x5bb   : > { %18527 = vst [vmem:[#allocation165_spill] sm:$0xff] %v13985_v55  ;;  %3988 = vperm.xlu0 %9762, %v13980_v22   ;;  %v18536_v22 = vld [vmem:[#allocation185_spill] sm:$0xff] }
 0x5bc   : > { %18535 = vst [vmem:[#allocation168_spill] sm:$0xff] %v14004_v39  ;;  %v14008_v49 = vadd.f32 %v12668_v42, %v18536_v22  ;;  %v18545_v22 = vld [vmem:[#allocation188_spill] sm:$0xff] }
 0x5be   : > { %v13996_v16 = vpop.permute.xlu1 %3799  ;;  %3985 = vperm.xlu1 %9763, %v13990_v35   ;;  %v13999_v51 = vpop.permute.xlu0 %3808  ;;  %18537 = vst [vmem:[#allocation401_spill] sm:$0xff] %v14008_v49  ;;  %v14018_v35 = vadd.f32 %v12643_v41, %v18540_v56 }
 0x5bf   : > { %18532 = vst [vmem:[#allocation400_spill] sm:$0xff] %v13996_v16  ;;  %18533 = vst [vmem:[#allocation167_spill] sm:$0xff] %v13999_v51  ;;  %3994 = vperm.xlu0 %9762, %v13994_v28   ;;  %v18542_v28 = vld [vmem:[#allocation187_spill] sm:$0xff]  ;;  %v18699_v51 = vld [vmem:[#allocation236_spill] sm:$0xff] }
 0x5c0   : > { %18541 = vst [vmem:[#allocation171_spill] sm:$0xff] %v14018_v35  ;;  %v14022_v48 = vadd.f32 %v12682_v4, %v18542_v28  ;;  %v18549_v28 = vld [vmem:[#allocation190_spill] sm:$0xff] }
 0x5c2   : > { %v14010_v10 = vpop.permute.xlu1 %3805  ;;  %3991 = vperm.xlu1 %9763, %v14004_v39   ;;  %v14013_v27 = vpop.permute.xlu0 %3814  ;;  %18543 = vst [vmem:[#allocation403_spill] sm:$0xff] %v14022_v48  ;;  %v14032_v39 = vadd.f32 %v12657_v24, %v18545_v22 }
 0x5c3   : > { %18538 = vst [vmem:[#allocation170_spill] sm:$0xff] %v14010_v10  ;;  %18539 = vst [vmem:[#allocation405_spill] sm:$0xff] %v14013_v27  ;;  %4000 = vperm.xlu0 %9762, %v14008_v49   ;;  %v18547_v49 = vld [vmem:[#allocation189_spill] sm:$0xff]  ;;  %v18680_v27 = vld [vmem:[#allocation28_spill] sm:$0xff] }
 0x5c4   : > { %18546 = vst [vmem:[#allocation174_spill] sm:$0xff] %v14032_v39  ;;  %v14036_v41 = vadd.f32 %v12696_v1, %v18547_v49  ;;  %v18554_v49 = vld [vmem:[#allocation192_spill] sm:$0xff] }
 0x5c6   : > { %v14024_v0 = vpop.permute.xlu1 %3811  ;;  %3997 = vperm.xlu1 %9763, %v14018_v35   ;;  %v14027_v42 = vpop.permute.xlu0 %3820  ;;  %18548 = vst [vmem:[#allocation404_spill] sm:$0xff] %v14036_v41  ;;  %v14046_v35 = vadd.f32 %v12671_v38, %v18549_v28 }
 0x5c7   : > { %18544 = vst [vmem:[#allocation173_spill] sm:$0xff] %v14024_v0  ;;  %4006 = vperm.xlu0 %9762, %v14022_v48   ;;  %v18551_v48 = vld [vmem:[#allocation191_spill] sm:$0xff] }
 0x5c8   : > { %18550 = vst [vmem:[#allocation175_spill] sm:$0xff] %v14046_v35  ;;  %v14050_v24 = vadd.f32 %v12710_v14, %v18551_v48  ;;  %v18559_v48 = vld [vmem:[#allocation194_spill] sm:$0xff]  ;;  %v18696_v0 = vld [vmem:[#allocation27_spill] sm:$0xff] }
 0x5ca   : > { %v14038_v56 = vpop.permute.xlu1 %3817  ;;  %4003 = vperm.xlu1 %9763, %v14032_v39   ;;  %v14041_v4 = vpop.permute.xlu0 %3826  ;;  %18552 = vst [vmem:[#allocation176_spill] sm:$0xff] %v14050_v24  ;;  %v14060_v39 = vadd.f32 %v12685_v47, %v18554_v49 }
 0x5cb   : > { %4012 = vperm.xlu0 %9762, %v14036_v41   ;;  %v18556_v41 = vld [vmem:[#allocation193_spill] sm:$0xff] }
 0x5cc   : > { %18555 = vst [vmem:[#allocation177_spill] sm:$0xff] %v14060_v39  ;;  %v14064_v38 = vadd.f32 %v12724_v57, %v18556_v41  ;;  %v18564_v41 = vld [vmem:[#allocation196_spill] sm:$0xff] }
 0x5ce   : > { %v14052_v22 = vpop.permute.xlu1 %3823  ;;  %4009 = vperm.xlu1 %9763, %v14046_v35   ;;  %v14055_v1 = vpop.permute.xlu0 %3832  ;;  %18557 = vst [vmem:[#allocation178_spill] sm:$0xff] %v14064_v38  ;;  %v14074_v35 = vadd.f32 %v12699_v63, %v18559_v48 }
 0x5cf   : > { %18553 = vst [vmem:[#allocation406_spill] sm:$0xff] %v14055_v1  ;;  %4018 = vperm.xlu0 %9762, %v14050_v24   ;;  %v18561_v24 = vld [vmem:[#allocation195_spill] sm:$0xff] }
 0x5d0   : > { %18560 = vst [vmem:[#allocation180_spill] sm:$0xff] %v14074_v35  ;;  %v14078_v47 = vadd.f32 %v12738_v40, %v18561_v24  ;;  %v18570_v24 = vld [vmem:[#allocation198_spill] sm:$0xff]  ;;  %v18768_v1 = vld [vmem:[#allocation319_spill] sm:$0xff] }
 0x5d2   : > { %v14066_v28 = vpop.permute.xlu1 %3829  ;;  %4015 = vperm.xlu1 %9763, %v14060_v39   ;;  %v14069_v14 = vpop.permute.xlu0 %3838  ;;  %18562 = vst [vmem:[#allocation181_spill] sm:$0xff] %v14078_v47  ;;  %v14088_v39 = vadd.f32 %v12713_v11, %v18564_v41 }
 0x5d3   : > { %18558 = vst [vmem:[#allocation179_spill] sm:$0xff] %v14069_v14  ;;  %4024 = vperm.xlu0 %9762, %v14064_v38   ;;  %v18566_v38 = vld [vmem:[#allocation197_spill] sm:$0xff] }
 0x5d4   : > { %18565 = vst [vmem:[#allocation183_spill] sm:$0xff] %v14088_v39  ;;  %v14092_v63 = vadd.f32 %v12752_v25, %v18566_v38  ;;  %v18576_v38 = vld [vmem:[#allocation200_spill] sm:$0xff] }
 0x5d6   : > { %v14080_v49 = vpop.permute.xlu1 %3835  ;;  %4021 = vperm.xlu1 %9763, %v14074_v35   ;;  %v14083_v57 = vpop.permute.xlu0 %3844  ;;  %18567 = vst [vmem:[#allocation184_spill] sm:$0xff] %v14092_v63  ;;  %v14102_v35 = vadd.f32 %v12727_v13, %v18570_v24 }
 0x5d7   : > { %18563 = vst [vmem:[#allocation182_spill] sm:$0xff] %v14083_v57  ;;  %4030 = vperm.xlu0 %9762, %v14078_v47   ;;  %v18572_v47 = vld [vmem:[#allocation199_spill] sm:$0xff] }
 0x5d8   : > { %18571 = vst [vmem:[#allocation187_spill] sm:$0xff] %v14102_v35  ;;  %v14106_v11 = vadd.f32 %v12766_v61, %v18572_v47  ;;  %v18582_v47 = vld [vmem:[#allocation202_spill] sm:$0xff] }
 0x5da   : > { %v14094_v48 = vpop.permute.xlu1 %3841  ;;  %4027 = vperm.xlu1 %9763, %v14088_v39   ;;  %v14097_v40 = vpop.permute.xlu0 %3850  ;;  %18573 = vst [vmem:[#allocation188_spill] sm:$0xff] %v14106_v11  ;;  %v14116_v39 = vadd.f32 %v12741_v29, %v18576_v38 }
 0x5db   : > { %18568 = vst [vmem:[#allocation185_spill] sm:$0xff] %v14094_v48  ;;  %18569 = vst [vmem:[#allocation186_spill] sm:$0xff] %v14097_v40  ;;  %4036 = vperm.xlu0 %9762, %v14092_v63   ;;  %v18578_v63 = vld [vmem:[#allocation201_spill] sm:$0xff] }
 0x5dc   : > { %18577 = vst [vmem:[#allocation191_spill] sm:$0xff] %v14116_v39  ;;  %v14120_v13 = vadd.f32 %v12780_v18, %v18578_v63  ;;  %v18588_v63 = vld [vmem:[#allocation204_spill] sm:$0xff] }
 0x5de   : > { %v14108_v41 = vpop.permute.xlu1 %3847  ;;  %4033 = vperm.xlu1 %9763, %v14102_v35   ;;  %v14111_v25 = vpop.permute.xlu0 %3856  ;;  %18579 = vst [vmem:[#allocation192_spill] sm:$0xff] %v14120_v13  ;;  %v14130_v35 = vadd.f32 %v12755_v32, %v18582_v47 }
 0x5df   : > { %18574 = vst [vmem:[#allocation189_spill] sm:$0xff] %v14108_v41  ;;  %18575 = vst [vmem:[#allocation190_spill] sm:$0xff] %v14111_v25  ;;  %4042 = vperm.xlu0 %9762, %v14106_v11   ;;  %v18584_v11 = vld [vmem:[#allocation203_spill] sm:$0xff] }
 0x5e0   : > { %18583 = vst [vmem:[#allocation195_spill] sm:$0xff] %v14130_v35  ;;  %v14134_v29 = vadd.f32 %v12794_v34, %v18584_v11  ;;  %v18593_v11 = vld [vmem:[#allocation207_spill] sm:$0xff] }
 0x5e2   : > { %v14122_v24 = vpop.permute.xlu1 %3853  ;;  %4039 = vperm.xlu1 %9763, %v14116_v39   ;;  %v14125_v61 = vpop.permute.xlu0 %3862  ;;  %18585 = vst [vmem:[#allocation196_spill] sm:$0xff] %v14134_v29  ;;  %v14144_v39 = vadd.f32 %v12769_v45, %v18588_v63 }
 0x5e3   : > { %18580 = vst [vmem:[#allocation193_spill] sm:$0xff] %v14122_v24  ;;  %18581 = vst [vmem:[#allocation194_spill] sm:$0xff] %v14125_v61  ;;  %4048 = vperm.xlu0 %9762, %v14120_v13   ;;  %v18590_v13 = vld [vmem:[#allocation206_spill] sm:$0xff]  ;;  %v18647_v61 = vld [vmem:[#allocation20_spill] sm:$0xff] }
 0x5e4   : > { %18589 = vst [vmem:[#allocation199_spill] sm:$0xff] %v14144_v39  ;;  %v14148_v32 = vadd.f32 %v12808_v6, %v18590_v13  ;;  %v18599_v13 = vld [vmem:[#allocation209_spill] sm:$0xff] }
 0x5e6   : > { %v14136_v38 = vpop.permute.xlu1 %3859  ;;  %4045 = vperm.xlu1 %9763, %v14130_v35   ;;  %v14139_v18 = vpop.permute.xlu0 %3868  ;;  %18591 = vst [vmem:[#allocation200_spill] sm:$0xff] %v14148_v32  ;;  %v14158_v35 = vadd.f32 %v12783_v23, %v18593_v11 }
 0x5e7   : > { %18586 = vst [vmem:[#allocation197_spill] sm:$0xff] %v14136_v38  ;;  %18587 = vst [vmem:[#allocation198_spill] sm:$0xff] %v14139_v18  ;;  %4054 = vperm.xlu0 %9762, %v14134_v29   ;;  %v18595_v29 = vld [vmem:[#allocation208_spill] sm:$0xff] }
 0x5e8   : > { %18594 = vst [vmem:[#allocation202_spill] sm:$0xff] %v14158_v35  ;;  %v14162_v45 = vadd.f32 %v12822_v31, %v18595_v29  ;;  %v18605_v29 = vld [vmem:[#allocation211_spill] sm:$0xff] }
 0x5ea   : > { %v14150_v47 = vpop.permute.xlu1 %3865  ;;  %4051 = vperm.xlu1 %9763, %v14144_v39   ;;  %v14153_v34 = vpop.permute.xlu0 %3874  ;;  %18596 = vst [vmem:[#allocation203_spill] sm:$0xff] %v14162_v45  ;;  %v14172_v39 = vadd.f32 %v12797_v26, %v18599_v13 }
 0x5eb   : > { %18592 = vst [vmem:[#allocation201_spill] sm:$0xff] %v14153_v34  ;;  %4060 = vperm.xlu0 %9762, %v14148_v32   ;;  %v18601_v32 = vld [vmem:[#allocation210_spill] sm:$0xff] }
 0x5ec   : > { %18600 = vst [vmem:[#allocation207_spill] sm:$0xff] %v14172_v39  ;;  %v14176_v23 = vadd.f32 %v12836_v62, %v18601_v32  ;;  %v18611_v32 = vld [vmem:[#allocation213_spill] sm:$0xff] }
 0x5ee   : > { %v14164_v63 = vpop.permute.xlu1 %3871  ;;  %4057 = vperm.xlu1 %9763, %v14158_v35   ;;  %v14167_v6 = vpop.permute.xlu0 %3880  ;;  %18602 = vst [vmem:[#allocation208_spill] sm:$0xff] %v14176_v23  ;;  %v14186_v35 = vadd.f32 %v12811_v44, %v18605_v29 }
 0x5ef   : > { %18597 = vst [vmem:[#allocation204_spill] sm:$0xff] %v14164_v63  ;;  %18598 = vst [vmem:[#allocation206_spill] sm:$0xff] %v14167_v6  ;;  %4066 = vperm.xlu0 %9762, %v14162_v45   ;;  %v18607_v45 = vld [vmem:[#allocation212_spill] sm:$0xff] }
 0x5f0   : > { %18606 = vst [vmem:[#allocation211_spill] sm:$0xff] %v14186_v35  ;;  %v14190_v26 = vadd.f32 %v12850_v46, %v18607_v45  ;;  %v18617_v45 = vld [vmem:[#allocation215_spill] sm:$0xff] }
 0x5f2   : > { %v14178_v11 = vpop.permute.xlu1 %3877  ;;  %4063 = vperm.xlu1 %9763, %v14172_v39   ;;  %v14181_v31 = vpop.permute.xlu0 %3886  ;;  %18608 = vst [vmem:[#allocation212_spill] sm:$0xff] %v14190_v26  ;;  %v14200_v39 = vadd.f32 %v12825_v36, %v18611_v32 }
 0x5f3   : > { %18603 = vst [vmem:[#allocation209_spill] sm:$0xff] %v14178_v11  ;;  %18604 = vst [vmem:[#allocation210_spill] sm:$0xff] %v14181_v31  ;;  %4072 = vperm.xlu0 %9762, %v14176_v23   ;;  %v18613_v23 = vld [vmem:[#allocation214_spill] sm:$0xff]  ;;  %v18691_v31 = vld [vmem:[#allocation271_spill] sm:$0xff] }
 0x5f4   : > { %18612 = vst [vmem:[#allocation213_spill] sm:$0xff] %v14200_v39  ;;  %v14204_v44 = vadd.f32 %v12864_v21, %v18613_v23  ;;  %v18623_v23 = vld [vmem:[#allocation217_spill] sm:$0xff] }
 0x5f6   : > { %v14192_v13 = vpop.permute.xlu1 %3883  ;;  %4069 = vperm.xlu1 %9763, %v14186_v35   ;;  %v14195_v62 = vpop.permute.xlu0 %3892  ;;  %18614 = vst [vmem:[#allocation214_spill] sm:$0xff] %v14204_v44  ;;  %v14214_v35 = vadd.f32 %v12839_v15, %v18617_v45 }
 0x5f7   : > { %18609 = vst [vmem:[#allocation432_spill] sm:$0xff] %v14192_v13  ;;  %18610 = vst [vmem:[#allocation433_spill] sm:$0xff] %v14195_v62  ;;  %4078 = vperm.xlu0 %9762, %v14190_v26   ;;  %v18619_v26 = vld [vmem:[#allocation216_spill] sm:$0xff] }
 0x5f8   : > { %18618 = vst [vmem:[#allocation215_spill] sm:$0xff] %v14214_v35  ;;  %v14218_v36 = vadd.f32 %v12878_v20, %v18619_v26  ;;  %v18629_v26 = vld [vmem:[#allocation219_spill] sm:$0xff]  ;;  %v18663_v62 = vld [vmem:[#allocation24_spill] sm:$0xff] }
 0x5fa   : > { %v14206_v29 = vpop.permute.xlu1 %3889  ;;  %4075 = vperm.xlu1 %9763, %v14200_v39   ;;  %v14209_v46 = vpop.permute.xlu0 %3898  ;;  %18620 = vst [vmem:[#allocation216_spill] sm:$0xff] %v14218_v36  ;;  %v14228_v39 = vadd.f32 %v12853_v7, %v18623_v23 }
 0x5fb   : > { %18615 = vst [vmem:[#allocation434_spill] sm:$0xff] %v14206_v29  ;;  %18616 = vst [vmem:[#allocation435_spill] sm:$0xff] %v14209_v46  ;;  %4084 = vperm.xlu0 %9762, %v14204_v44   ;;  %v18625_v44 = vld [vmem:[#allocation218_spill] sm:$0xff] }
 0x5fc   : > { %18624 = vst [vmem:[#allocation217_spill] sm:$0xff] %v14228_v39  ;;  %v14232_v15 = vadd.f32 %v12892_v5, %v18625_v44  ;;  %v18635_v44 = vld [vmem:[#allocation221_spill] sm:$0xff] }
 0x5fe   : > { %v14220_v32 = vpop.permute.xlu1 %3895  ;;  %4081 = vperm.xlu1 %9763, %v14214_v35   ;;  %v14223_v21 = vpop.permute.xlu0 %3904  ;;  %18626 = vst [vmem:[#allocation218_spill] sm:$0xff] %v14232_v15  ;;  %v14242_v35 = vadd.f32 %v12867_v17, %v18629_v26 }
 0x5ff   : > { %18621 = vst [vmem:[#allocation436_spill] sm:$0xff] %v14220_v32  ;;  %18622 = vst [vmem:[#allocation437_spill] sm:$0xff] %v14223_v21  ;;  %4090 = vperm.xlu0 %9762, %v14218_v36   ;;  %v18631_v36 = vld [vmem:[#allocation220_spill] sm:$0xff]  ;;  %v18639_v21 = vld [vmem:[#allocation18_spill] sm:$0xff] }
 0x600   : > { %18630 = vst [vmem:[#allocation219_spill] sm:$0xff] %v14242_v35  ;;  %v14246_v7 = vadd.f32 %v12906_v9, %v18631_v36  ;;  %v18643_v36 = vld [vmem:[#allocation223_spill] sm:$0xff] }
 0x602   : > { %v14234_v45 = vpop.permute.xlu1 %3901  ;;  %4087 = vperm.xlu1 %9763, %v14228_v39   ;;  %v14237_v20 = vpop.permute.xlu0 %3910  ;;  %18632 = vst [vmem:[#allocation220_spill] sm:$0xff] %v14246_v7  ;;  %v18636_v39 = vld [vmem:[#allocation251_spill] sm:$0xff] }
 0x603   : > { %18627 = vst [vmem:[#allocation438_spill] sm:$0xff] %v14234_v45  ;;  %18628 = vst [vmem:[#allocation439_spill] sm:$0xff] %v14237_v20  ;;  %4096 = vperm.xlu0 %9762, %v14232_v15   ;;  %v14256_v20 = vadd.f32 %v18636_v39, %v18635_v44  ;;  %v18638_v15 = vld [vmem:[#allocation222_spill] sm:$0xff] }
 0x604   : > { %v14260_v17 = vadd.f32 %v18639_v21, %v18638_v15  ;;  %v18651_v15 = vld [vmem:[#allocation225_spill] sm:$0xff]  ;;  %v18655_v45 = vld [vmem:[#allocation22_spill] sm:$0xff] }
 0x605   : > { %18637 = vst [vmem:[#allocation221_spill] sm:$0xff] %v14256_v20 }
 0x606   : > { %v14248_v23 = vpop.permute.xlu1 %3907  ;;  %4093 = vperm.xlu1 %9763, %v14242_v35   ;;  %v14251_v5 = vpop.permute.xlu0 %3916  ;;  %18640 = vst [vmem:[#allocation251_spill] sm:$0xff] %v14260_v17  ;;  %v18644_v35 = vld [vmem:[#allocation15_spill] sm:$0xff] }
 0x607   : > { %18633 = vst [vmem:[#allocation440_spill] sm:$0xff] %v14248_v23  ;;  %18634 = vst [vmem:[#allocation441_spill] sm:$0xff] %v14251_v5  ;;  %4102 = vperm.xlu0 %9762, %v14246_v7   ;;  %v14270_v23 = vadd.f32 %v18644_v35, %v18643_v36  ;;  %v18646_v7 = vld [vmem:[#allocation224_spill] sm:$0xff] }
 0x608   : > { %v14274_v39 = vadd.f32 %v18647_v61, %v18646_v7  ;;  %v18659_v7 = vld [vmem:[#allocation227_spill] sm:$0xff] }
 0x609   : > { %18645 = vst [vmem:[#allocation223_spill] sm:$0xff] %v14270_v23 }
 0x60a   : > { %v14262_v26 = vpop.permute.xlu1 %3913  ;;  %4099 = vperm.xlu1 %9763, %v14256_v20   ;;  %v14265_v9 = vpop.permute.xlu0 %3922  ;;  %18648 = vst [vmem:[#allocation15_spill] sm:$0xff] %v14274_v39  ;;  %v18652_v20 = vld [vmem:[#allocation250_spill] sm:$0xff] }
 0x60b   : > { %18641 = vst [vmem:[#allocation222_spill] sm:$0xff] %v14262_v26  ;;  %18642 = vst [vmem:[#allocation18_spill] sm:$0xff] %v14265_v9  ;;  %4108 = vperm.xlu0 %9762, %v14260_v17   ;;  %v14284_v46 = vadd.f32 %v18652_v20, %v18651_v15  ;;  %v18654_v17 = vld [vmem:[#allocation226_spill] sm:$0xff] }
 0x60c   : > { %v14288_v35 = vadd.f32 %v18655_v45, %v18654_v17  ;;  %v18667_v17 = vlaneseq }
 0x60d   : > { %18653 = vst [vmem:[#allocation225_spill] sm:$0xff] %v14284_v46 }
 0x60e   : > { %v14276_v44 = vpop.permute.xlu1 %3919  ;;  %4105 = vperm.xlu1 %9763, %v14270_v23   ;;  %v14279_v21 = vpop.permute.xlu0 %3928  ;;  %18656 = vst [vmem:[#allocation250_spill] sm:$0xff] %v14288_v35  ;;  %v18660_v23 = vld [vmem:[#allocation252_spill] sm:$0xff] }
 0x60f   : > { %18649 = vst [vmem:[#allocation224_spill] sm:$0xff] %v14276_v44  ;;  %18650 = vst [vmem:[#allocation20_spill] sm:$0xff] %v14279_v21  ;;  %4114 = vperm.xlu0 %9762, %v14274_v39   ;;  %v14298_v25 = vadd.f32 %v18660_v23, %v18659_v7  ;;  %v18662_v39 = vld [vmem:[#allocation228_spill] sm:$0xff]  ;;  %v18671_v23 = vld [vmem:[#allocation230_spill] sm:$0xff] }
 0x610   : > { %v14302_v20 = vadd.f32 %v18663_v62, %v18662_v39  ;;  %v18672_v7 = vld [vmem:[#allocation26_spill] sm:$0xff]  ;;  %v18682_v21 = vld [vmem:[#allocation169_spill] sm:$0xff] }
 0x611   : > { %18661 = vst [vmem:[#allocation227_spill] sm:$0xff] %v14298_v25  ;;  %v14319_v32 = vadd.f32 %v18672_v7, %v18671_v23 }
 0x612   : > { %v14290_v36 = vpop.permute.xlu1 %3925  ;;  %4111 = vperm.xlu1 %9763, %v14284_v46   ;;  %v14293_v61 = vpop.permute.xlu0 %3934  ;;  %18664 = vst [vmem:[#allocation252_spill] sm:$0xff] %v14302_v20  ;;  %v14311_v46 = vand.u32 127, %v18667_v17  ;;  %v18676_v17 = vld [vmem:[#allocation231_spill] sm:$0xff] }
 0x613   : > { %18657 = vst [vmem:[#allocation226_spill] sm:$0xff] %v14290_v36  ;;  %18658 = vst [vmem:[#allocation22_spill] sm:$0xff] %v14293_v61  ;;  %4120 = vperm.xlu0 %9762, %v14288_v35   ;;  %v18668_v35 = vld [vmem:[#allocation229_spill] sm:$0xff]  ;;  %v18669_v61 = vld [vmem:[#allocation254_spill] sm:$0xff] }
 0x614   : > { %v14315_v38 = vadd.f32 %v18669_v61, %v18668_v35  ;;  %18673 = vst [vmem:[#allocation254_spill] sm:$0xff] %v14319_v32  ;;  %v4158_v62 = vadd.s32 4294967288, %v14311_v46  ;;  %v18679_v61 = vld [vmem:[#allocation232_spill] sm:$0xff]  ;;  %v4172_v7 = vadd.s32 4294967272, %v14311_v46 }
 0x615   : > { %v14335_v23 = vadd.f32 %v18680_v27, %v18679_v61  ;;  %v18685_v27 = vld [vmem:[#allocation233_spill] sm:$0xff] }
 0x616   : > { %v14304_v15 = vpop.permute.xlu1 %3931  ;;  %4117 = vperm.xlu1 %9763, %v14298_v25   ;;  %v14307_v45 = vpop.permute.xlu0 %3940  ;;  %18670 = vst [vmem:[#allocation229_spill] sm:$0xff] %v14315_v38  ;;  %v14368_v40 = vsub.s32 %v4172_v7, %v18682_v21  ;;  %v18695_v7 = vld [vmem:[#allocation235_spill] sm:$0xff] }
 0x617   : > { %18665 = vst [vmem:[#allocation228_spill] sm:$0xff] %v14304_v15  ;;  %18666 = vst [vmem:[#allocation24_spill] sm:$0xff] %v14307_v45  ;;  %4126 = vperm.xlu0 %9762, %v14302_v20   ;;  %v4165_v20 = vadd.s32 4294967280, %v14311_v46  ;;  %v18677_v45 = vld [vmem:[#allocation256_spill] sm:$0xff]  ;;  %v18689_v15 = vld [vmem:[#allocation30_spill] sm:$0xff]  ;;  %v14385_v9 = vadd.f32 %v18696_v0, %v18695_v7 }
 0x618   : > { %v14331_v35 = vadd.f32 %v18677_v45, %v18676_v17  ;;  %18681 = vst [vmem:[#allocation256_spill] sm:$0xff] %v14335_v23  ;;  %v4179_v45 = vadd.s32 4294967264, %v14311_v46  ;;  %v18686_v17 = vld [vmem:[#allocation258_spill] sm:$0xff] }
 0x619   : > { %v14353_v61 = vadd.f32 %v18686_v17, %v18685_v27  ;;  %v4193_v27 = vadd.s32 4294967248, %v14311_v46  ;;  %18697 = vst [vmem:[#allocation30_spill] sm:$0xff] %v14385_v9 }
 0x61a   : > { %v14322_v39 = vpop.permute.xlu1 %3937  ;;  %4123 = vperm.xlu1 %9763, %v14315_v38   ;;  %v14325_v25 = vpop.permute.xlu0 %3946  ;;  %18678 = vst [vmem:[#allocation231_spill] sm:$0xff] %v14331_v35  ;;  %v14379_v24 = vsub.s32 %v4179_v45, %v18682_v21 }
 0x61b   : > { %18674 = vst [vmem:[#allocation230_spill] sm:$0xff] %v14322_v39  ;;  %18675 = vst [vmem:[#allocation26_spill] sm:$0xff] %v14325_v25  ;;  %4132 = vperm.xlu0 %9762, %v14319_v32   ;;  %v14339_v39 = vsub.s32 %v4158_v62, %v18682_v21  ;;  %v14347_v32 = vsub.s32 %v4165_v20, %v18682_v21  ;;  %v14357_v62 = vsub.s32 %v14311_v46, %v18682_v21 }
 0x61c   : > { %18687 = vst [vmem:[#allocation169_spill] sm:$0xff] %v14353_v61  ;;  %v4200_v20 = vadd.s32 4294967240, %v14311_v46  ;;  %v14402_v7 = vsub.s32 %v4193_v27, %v18682_v21  ;;  %v18706_v27 = vld [vmem:[#allocation267_spill] sm:$0xff] }
 0x61e   : > { %v14341_v38 = vpop.permute.xlu1 %3943  ;;  %4129 = vperm.xlu1 %9763, %v14331_v35   ;;  %v14344_v25 = vpop.permute.xlu0 %3952  ;;  %v18688_v35 = vld [vmem:[#allocation234_spill] sm:$0xff]  ;;  %v14397_v45 = vsub.s32 %v4200_v20, %v18682_v21  ;;  %v18704_v20 = vld [vmem:[#allocation275_spill] sm:$0xff] }
 0x61f   : > { %18683 = vst [vmem:[#allocation232_spill] sm:$0xff] %v14341_v38  ;;  %18684 = vst [vmem:[#allocation28_spill] sm:$0xff] %v14344_v25  ;;  %4138 = vperm.xlu0 %9762, %v14335_v23   ;;  %v4186_v38 = vadd.s32 4294967256, %v14311_v46  ;;  %v14362_v25 = vadd.f32 %v18689_v15, %v18688_v35  ;;  %v4162_v23 = vrot.slane %v18691_v31, %v14339_v39  ;;  %v18694_v15 = vld [vmem:[#allocation273_spill] sm:$0xff]  ;;  %v4214_v31 = vadd.s32 4294967224, %v14311_v46 }
 0x620   : > { %v4169_v35 = vrot.slane %v18694_v15, %v14347_v32  ;;  %v18700_v15 = vld [vmem:[#allocation269_spill] sm:$0xff]  ;;  %v4183_v6 = vrot.slane %v18704_v20, %v14379_v24 }
 0x621   : > { %18690 = vst [vmem:[#allocation233_spill] sm:$0xff] %v14362_v25  ;;  %v14394_v36 = vadd.f32 %v18700_v15, %v18699_v51 }
 0x622   : > { %v14371_v17 = vpop.permute.xlu1 %3949  ;;  %4135 = vperm.xlu1 %9763, %v14353_v61   ;;  %v14374_v29 = vpop.permute.xlu0 %3958 }
 0x623   : > { %18692 = vst [vmem:[#allocation258_spill] sm:$0xff] %v14371_v17  ;;  %18693 = vst [vmem:[#allocation234_spill] sm:$0xff] %v14374_v29  ;;  %4144 = vperm.xlu0 %9762, %v14362_v25   ;;  %v18698_v17 = vld [vmem:[#allocation32_spill] sm:$0xff]  ;;  %v14390_v29 = vsub.s32 %v4186_v38, %v18682_v21  ;;  %v4207_v25 = vadd.s32 4294967232, %v14311_v46  ;;  %v4228_v38 = vadd.s32 4294967208, %v14311_v46 }
 0x624   : > { %v4157_v61 = vrot.slane %v18698_v17, %v14357_v62  ;;  %18701 = vst [vmem:[#allocation271_spill] sm:$0xff] %v14394_v36 }
 0x625   : > { %v14427_v20 = vsub.s32 %v4207_v25, %v18682_v21 }
 0x626   : > { %v4164_v0 = vsel %vm17435_vm1, %v4162_v23, %v4157_v61  ;;  %v14405_v17 = vpop.permute.xlu1 %3955  ;;  %4141 = vperm.xlu1 %9763, %v14385_v9   ;;  %v14408_v51 = vpop.permute.xlu0 %3964  ;;  %v14414_v23 = vsub.s32 %v4214_v31, %v18682_v21  ;;  %v18705_v61 = vld [vmem:[#allocation237_spill] sm:$0xff]  ;;  %v18710_v31 = vld [vmem:[#allocation306_spill] sm:$0xff] }
 0x627   : > { %18702 = vst [vmem:[#allocation273_spill] sm:$0xff] %v14405_v17  ;;  %18703 = vst [vmem:[#allocation235_spill] sm:$0xff] %v14408_v51  ;;  %v4171_v15 = vsel %vm17436_vm2, %v4169_v35, %v4164_v0  ;;  %4150 = vperm.xlu0 %9762, %v14394_v36   ;;  %v14419_v13 = vadd.f32 %v18706_v27, %v18705_v61  ;;  %v18708_v17 = vld [vmem:[#allocation34_spill] sm:$0xff]  ;;  %v4221_v51 = vadd.s32 4294967216, %v14311_v46  ;;  %v18709_v35 = vld [vmem:[#allocation304_spill] sm:$0xff] }
 0x628   : > { %v4176_v9 = vrot.slane %v18708_v17, %v14368_v40  ;;  %v4345_v0 = vrot.slane %v18709_v35, %v14357_v62  ;;  %v4354_v36 = vrot.slane %v18710_v31, %v14347_v32  ;;  %v14433_v61 = vsub.s32 %v4228_v38, %v18682_v21  ;;  %v18711_v27 = vld [vmem:[#allocation64_spill] sm:$0xff]  ;;  %v18714_v31 = vld [vmem:[#allocation277_spill] sm:$0xff] }
 0x629   : > { %18707 = vst [vmem:[#allocation27_spill] sm:$0xff] %v14419_v13  ;;  %v4242_v17 = vadd.s32 4294967192, %v14311_v46  ;;  %v4349_v41 = vrot.slane %v18711_v27, %v14339_v39  ;;  %v4197_v5 = vrot.slane %v18714_v31, %v14402_v7  ;;  %v14451_v27 = vsub.s32 %v4221_v51, %v18682_v21 }
 0x62a   : > { %v4178_v57 = vsel %vm4177_vm3, %v4176_v9, %v4171_v15  ;;  %v14438_v10 = vpop.permute.xlu1 %3961  ;;  %4147 = vperm.xlu1 %9763, %v14419_v13   ;;  %v14441_v25 = vpop.permute.xlu0 %3970  ;;  %v18715_v9 = vld [vmem:[#allocation288_spill] sm:$0xff] }
 0x62b   : > { %18712 = vst [vmem:[#allocation32_spill] sm:$0xff] %v14438_v10  ;;  %18713 = vst [vmem:[#allocation236_spill] sm:$0xff] %v14441_v25  ;;  %v4185_v35 = vsel %vm4184_vm4, %v4183_v6, %v4178_v57  ;;  %v4266_v38 = vrot.slane %v18715_v9, %v14357_v62  ;;  %v18716_v15 = vld [vmem:[#allocation36_spill] sm:$0xff]  ;;  %v18717_v10 = vld [vmem:[#allocation290_spill] sm:$0xff]  ;;  %v4350_v25 = vsel %vm17435_vm1, %v4349_v41, %v4345_v0  ;;  %v4235_v57 = vadd.s32 4294967200, %v14311_v46 }
 0x62c   : > { %v4190_v55 = vrot.slane %v18716_v15, %v14390_v29  ;;  %v4275_v13 = vrot.slane %v18717_v10, %v14347_v32  ;;  %v18718_v6 = vld [vmem:[#allocation48_spill] sm:$0xff]  ;;  %v4355_v44 = vsel %vm17436_vm2, %v4354_v36, %v4350_v25  ;;  %v14464_v51 = vsub.s32 %v4242_v17, %v18682_v21  ;;  %v18720_v10 = vld [vmem:[#allocation66_spill] sm:$0xff] }
 0x62d   : > { %v4270_v31 = vrot.slane %v18718_v6, %v14339_v39  ;;  %v18719_v9 = vld [vmem:[#allocation308_spill] sm:$0xff]  ;;  %v4359_v26 = vrot.slane %v18720_v10, %v14368_v40 }
 0x62e   : > { %v4364_v34 = vrot.slane %v18719_v9, %v14379_v24  ;;  %v4192_v15 = vsel %vm4191_vm5, %v4190_v55, %v4185_v35  ;;  %v14468_v41 = vpop.permute.xlu1 %3967  ;;  %v14470_v0 = vpop.permute.xlu0 %3976  ;;  %v18723_v36 = vld [vmem:[#allocation280_spill] sm:$0xff]  ;;  %v4256_v9 = vadd.s32 4294967176, %v14311_v46  ;;  %v18724_v35 = vld [vmem:[#allocation38_spill] sm:$0xff] }
 0x62f   : > { %18721 = vst [vmem:[#allocation269_spill] sm:$0xff] %v14468_v41  ;;  %18722 = vst [vmem:[#allocation275_spill] sm:$0xff] %v14470_v0  ;;  %v4199_v6 = vsel %vm4198_vm6, %v4197_v5, %v4192_v15  ;;  %v4211_v25 = vrot.slane %v18723_v36, %v14427_v20  ;;  %v4271_v55 = vsel %vm17435_vm1, %v4270_v31, %v4266_v38  ;;  %v18725_v10 = vld [vmem:[#allocation292_spill] sm:$0xff]  ;;  %v18726_v15 = vld [vmem:[#allocation50_spill] sm:$0xff] }
 0x630   : > { %v4204_v17 = vrot.slane %v18724_v35, %v14397_v45  ;;  %v4276_v11 = vsel %vm17436_vm2, %v4275_v13, %v4271_v55  ;;  %v4285_v41 = vrot.slane %v18725_v10, %v14379_v24  ;;  %v4360_v0 = vsel %vm4177_vm3, %v4359_v26, %v4355_v44  ;;  %v18727_v38 = vld [vmem:[#allocation310_spill] sm:$0xff]  ;;  %v18728_v55 = vld [vmem:[#allocation68_spill] sm:$0xff] }
 0x631   : > { %v14484_v5 = vsub.s32 %v4235_v57, %v18682_v21  ;;  %v4280_v36 = vrot.slane %v18726_v15, %v14368_v40  ;;  %v4365_v14 = vsel %vm4184_vm4, %v4364_v34, %v4360_v0  ;;  %v4374_v31 = vrot.slane %v18727_v38, %v14402_v7  ;;  %v18731_v15 = vld [vmem:[#allocation282_spill] sm:$0xff] }
 0x632   : > { %v4206_v35 = vsel %vm4205_vm7, %v4204_v17, %v4199_v6  ;;  %v4249_v13 = vadd.s32 4294967184, %v14311_v46  ;;  %v4369_v10 = vrot.slane %v18728_v55, %v14390_v29  ;;  %v14495_v26 = vpop.permute.xlu1 %3973  ;;  %v14497_v44 = vpop.permute.xlu0 %3982  ;;  %v4225_v34 = vrot.slane %v18731_v15, %v14451_v27  ;;  %v18732_v17 = vld [vmem:[#allocation40_spill] sm:$0xff]  ;;  %v18733_v55 = vld [vmem:[#allocation294_spill] sm:$0xff] }
 0x633   : > { %18729 = vst [vmem:[#allocation237_spill] sm:$0xff] %v14495_v26  ;;  %18730 = vst [vmem:[#allocation267_spill] sm:$0xff] %v14497_v44  ;;  %v4213_v57 = vsel %vm4212_vm8, %v4211_v25, %v4206_v35  ;;  %v14503_v0 = vsub.s32 %v4256_v9, %v18682_v21  ;;  %v4281_v6 = vsel %vm4177_vm3, %v4280_v36, %v4276_v11  ;;  %v18734_v25 = vld [vmem:[#allocation52_spill] sm:$0xff]  ;;  %v18735_v9 = vld [vmem:[#allocation313_spill] sm:$0xff] }
 0x634   : > { %v4218_v46 = vrot.slane %v18732_v17, %v14414_v23  ;;  %v4286_v38 = vsel %vm4184_vm4, %v4285_v41, %v4281_v6  ;;  %v4295_v26 = vrot.slane %v18733_v55, %v14402_v7  ;;  %v4370_v44 = vsel %vm4191_vm5, %v4369_v10, %v4365_v14  ;;  %v18736_v11 = vld [vmem:[#allocation321_spill] sm:$0xff]  ;;  %v18737_v6 = vld [vmem:[#allocation70_spill] sm:$0xff]  ;;  %v18738_v14 = vld [vmem:[#allocation323_spill] sm:$0xff] }
 0x635   : > { %v4290_v35 = vrot.slane %v18734_v25, %v14390_v29  ;;  %v4375_v15 = vsel %vm4198_vm6, %v4374_v31, %v4370_v44  ;;  %v4384_v48 = vrot.slane %v18735_v9, %v14427_v20  ;;  %v4424_v36 = vrot.slane %v18736_v11, %v14357_v62  ;;  %v18741_v44 = vld [vmem:[#allocation42_spill] sm:$0xff] }
 0x636   : > { %v4220_v17 = vsel %vm4219_vm9, %v4218_v46, %v4213_v57  ;;  %v14521_v41 = vsub.s32 %v4249_v13, %v18682_v21  ;;  %v4379_v55 = vrot.slane %v18737_v6, %v14397_v45  ;;  %v4433_v10 = vrot.slane %v18738_v14, %v14347_v32  ;;  %v14527_v25 = vpop.permute.xlu1 %3979  ;;  %v14529_v31 = vpop.permute.xlu0 %3988  ;;  %v18742_v21 = vld [vmem:[#allocation80_spill] sm:$0xff] }
 0x637   : > { %18739 = vst [vmem:[#allocation34_spill] sm:$0xff] %v14527_v25  ;;  %18740 = vst [vmem:[#allocation304_spill] sm:$0xff] %v14529_v31  ;;  %v4232_v9 = vrot.slane %v18741_v44, %v14433_v61  ;;  %v4227_v11 = vsel %vm17443_vm10, %v4225_v34, %v4220_v17  ;;  %v4291_v57 = vsel %vm4191_vm5, %v4290_v35, %v4286_v38  ;;  %v18743_v46 = vld [vmem:[#allocation284_spill] sm:$0xff]  ;;  %v18745_v44 = vld [vmem:[#allocation54_spill] sm:$0xff] }
 0x638   : > { %v4428_v13 = vrot.slane %v18742_v21, %v14339_v39  ;;  %v4239_v6 = vrot.slane %v18743_v46, %v14484_v5  ;;  %v4296_v54 = vsel %vm4198_vm6, %v4295_v26, %v4291_v57  ;;  %v18744_v14 = vld [vmem:[#allocation296_spill] sm:$0xff]  ;;  %v4380_v31 = vsel %vm4205_vm7, %v4379_v55, %v4375_v15  ;;  %v18746_v38 = vld [vmem:[#allocation315_spill] sm:$0xff]  ;;  %v18749_v15 = vld [vmem:[#allocation325_spill] sm:$0xff] }
 0x639   : > { %v4305_v25 = vrot.slane %v18744_v14, %v14427_v20  ;;  %v4300_v16 = vrot.slane %v18745_v44, %v14397_v45  ;;  %v4385_v34 = vsel %vm4212_vm8, %v4384_v48, %v4380_v31  ;;  %v4394_v35 = vrot.slane %v18746_v38, %v14451_v27  ;;  %v18747_v21 = vld [vmem:[#allocation44_spill] sm:$0xff]  ;;  %v18752_v31 = vld [vmem:[#allocation46_spill] sm:$0xff] }
 0x63a   : > { %v4429_v17 = vsel %vm17435_vm1, %v4428_v13, %v4424_v36  ;;  %v4246_v46 = vrot.slane %v18747_v21, %v14464_v51  ;;  %v18748_v26 = vld [vmem:[#allocation72_spill] sm:$0xff]  ;;  %v4443_v55 = vrot.slane %v18749_v15, %v14379_v24  ;;  %v14556_v18 = vpop.permute.xlu1 %3985  ;;  %v14558_v44 = vpop.permute.xlu0 %3994  ;;  %v4234_v48 = vsel %vm17441_vm11, %v4232_v9, %v4227_v11  ;;  %v18753_v38 = vld [vmem:[#allocation82_spill] sm:$0xff]  ;;  %v18756_v36 = vld [vmem:[#allocation317_spill] sm:$0xff] }
 0x63b   : > { %v4389_v57 = vrot.slane %v18748_v26, %v14414_v23  ;;  %v4434_v14 = vsel %vm17436_vm2, %v4433_v10, %v4429_v17  ;;  %18750 = vst [vmem:[#allocation306_spill] sm:$0xff] %v14556_v18  ;;  %18751 = vst [vmem:[#allocation64_spill] sm:$0xff] %v14558_v44  ;;  %v4301_v13 = vsel %vm4205_vm7, %v4300_v16, %v4296_v54  ;;  %v18754_v10 = vld [vmem:[#allocation56_spill] sm:$0xff]  ;;  %v18755_v44 = vld [vmem:[#allocation298_spill] sm:$0xff] }
 0x63c   : > { %v4438_v21 = vrot.slane %v18753_v38, %v14368_v40  ;;  %v4241_v26 = vsel %vm17442_vm12, %v4239_v6, %v4234_v48  ;;  %v4310_v17 = vrot.slane %v18754_v10, %v14414_v23  ;;  %v4306_v15 = vsel %vm4212_vm8, %v4305_v25, %v4301_v13  ;;  %v18757_v38 = vld [vmem:[#allocation74_spill] sm:$0xff]  ;;  %v18758_v10 = vld [vmem:[#allocation327_spill] sm:$0xff] }
 0x63d   : > { %v4390_v18 = vsel %vm4219_vm9, %v4389_v57, %v4385_v34  ;;  %v4315_v9 = vrot.slane %v18755_v44, %v14451_v27  ;;  %v4404_v54 = vrot.slane %v18756_v36, %v14484_v5  ;;  %v4399_v6 = vrot.slane %v18757_v38, %v14433_v61  ;;  %v18759_v34 = vld [vmem:[#allocation337_spill] sm:$0xff]  ;;  %v18763_v36 = vld [vmem:[#allocation84_spill] sm:$0xff]  ;;  %v18765_v38 = vld [vmem:[#allocation58_spill] sm:$0xff] }
 0x63e   : > { %v4395_v11 = vsel %vm17443_vm10, %v4394_v35, %v4390_v18  ;;  %v4439_v16 = vsel %vm4177_vm3, %v4438_v21, %v4434_v14  ;;  %v4453_v25 = vrot.slane %v18758_v10, %v14402_v7  ;;  %v4503_v57 = vrot.slane %v18759_v34, %v14357_v62  ;;  %v14584_v13 = vpop.permute.xlu1 %3991  ;;  %v14586_v44 = vpop.permute.xlu0 %4000  ;;  %v18762_v35 = vld [vmem:[#allocation286_spill] sm:$0xff] }
 0x63f   : > { %v4444_v48 = vsel %vm4184_vm4, %v4443_v55, %v4439_v16  ;;  %18760 = vst [vmem:[#allocation277_spill] sm:$0xff] %v14584_v13  ;;  %18761 = vst [vmem:[#allocation288_spill] sm:$0xff] %v14586_v44  ;;  %v4248_v18 = vsel %vm4247_vm13, %v4246_v46, %v4241_v26  ;;  %v4253_v14 = vrot.slane %v18762_v35, %v14521_v41  ;;  %v18764_v55 = vld [vmem:[#allocation339_spill] sm:$0xff]  ;;  %v18766_v44 = vld [vmem:[#allocation96_spill] sm:$0xff] }
 0x640   : > { %v4448_v21 = vrot.slane %v18763_v36, %v14390_v29  ;;  %v4512_v16 = vrot.slane %v18764_v55, %v14347_v32  ;;  %v4320_v10 = vrot.slane %v18765_v38, %v14433_v61  ;;  %v4311_v34 = vsel %vm4219_vm9, %v4310_v17, %v4306_v15  ;;  %v18767_v26 = vld [vmem:[#allocation300_spill] sm:$0xff]  ;;  %v18769_v15 = vld [vmem:[#allocation329_spill] sm:$0xff] }
 0x641   : > { %v4400_v13 = vsel %vm17441_vm11, %v4399_v6, %v4395_v11  ;;  %v4507_v63 = vrot.slane %v18766_v44, %v14339_v39  ;;  %v4316_v46 = vsel %vm17443_vm10, %v4315_v9, %v4311_v34  ;;  %v4325_v35 = vrot.slane %v18767_v26, %v14484_v5  ;;  %v18772_v34 = vld [vmem:[#allocation76_spill] sm:$0xff] }
 0x642   : > { %v4405_v36 = vsel %vm17442_vm12, %v4404_v54, %v4400_v13  ;;  %v4449_v55 = vsel %vm4191_vm5, %v4448_v21, %v4444_v48  ;;  %v4414_v38 = vrot.slane %v18768_v1, %v14521_v41  ;;  %v4463_v11 = vrot.slane %v18769_v15, %v14427_v20  ;;  %v14612_v44 = vpop.permute.xlu1 %3997  ;;  %v14614_v9 = vpop.permute.xlu0 %4006  ;;  %v18773_v54 = vld [vmem:[#allocation86_spill] sm:$0xff] }
 0x643   : > { %v4454_v17 = vsel %vm4198_vm6, %v4453_v25, %v4449_v55  ;;  %v4508_v6 = vsel %vm17435_vm1, %v4507_v63, %v4503_v57  ;;  %18770 = vst [vmem:[#allocation36_spill] sm:$0xff] %v14612_v44  ;;  %18771 = vst [vmem:[#allocation290_spill] sm:$0xff] %v14614_v9  ;;  %v4409_v26 = vrot.slane %v18772_v34, %v14464_v51  ;;  %v18774_v63 = vld [vmem:[#allocation60_spill] sm:$0xff]  ;;  %v18775_v55 = vld [vmem:[#allocation98_spill] sm:$0xff] }
 0x644   : > { %v4458_v48 = vrot.slane %v18773_v54, %v14397_v45  ;;  %v4513_v1 = vsel %vm17436_vm2, %v4512_v16, %v4508_v6  ;;  %v4522_v25 = vrot.slane %v13506_v12, %v14379_v24  ;;  %v4255_v13 = vsel %vm4254_vm14, %v4253_v14, %v4248_v18  ;;  %v18776_v9 = vld [vmem:[#allocation302_spill] sm:$0xff]  ;;  %v18777_v14 = vld [vmem:[#allocation331_spill] sm:$0xff] }
 0x645   : > { %v4330_v57 = vrot.slane %v18774_v63, %v14464_v51  ;;  %v4321_v21 = vsel %vm17441_vm11, %v4320_v10, %v4316_v46  ;;  %v4517_v15 = vrot.slane %v18775_v55, %v14368_v40  ;;  %v4335_v54 = vrot.slane %v18776_v9, %v14521_v41 }
 0x646   : > { %v4326_v34 = vsel %vm17442_vm12, %v4325_v35, %v4321_v21  ;;  %v4410_v16 = vsel %vm4247_vm13, %v4409_v26, %v4405_v36  ;;  %v4459_v6 = vsel %vm4205_vm7, %v4458_v48, %v4454_v17  ;;  %v4473_v63 = vrot.slane %v18777_v14, %v14451_v27  ;;  %v14639_v46 = vpop.permute.xlu1 %4003  ;;  %v14641_v55 = vpop.permute.xlu0 %4012  ;;  %v18780_v35 = vld [vmem:[#allocation88_spill] sm:$0xff]  ;;  %v18781_v17 = vld [vmem:[#allocation103_spill] sm:$0xff]  ;;  %v18783_v21 = vld [vmem:[#allocation78_spill] sm:$0xff] }
 0x647   : > { %v4415_v12 = vsel %vm4254_vm14, %v4414_v38, %v4410_v16  ;;  %v4464_v18 = vsel %vm4212_vm8, %v4463_v11, %v4459_v6  ;;  %v4518_v10 = vsel %vm4177_vm3, %v4517_v15, %v4513_v1  ;;  %18778 = vst [vmem:[#allocation48_spill] sm:$0xff] %v14639_v46  ;;  %18779 = vst [vmem:[#allocation308_spill] sm:$0xff] %v14641_v55  ;;  %v18782_v38 = vld [vmem:[#allocation113_spill] sm:$0xff]  ;;  %v18784_v15 = vld [vmem:[#allocation100_spill] sm:$0xff] }
 0x648   : > { %v4468_v9 = vrot.slane %v18780_v35, %v14414_v23  ;;  %v4523_v36 = vsel %vm4184_vm4, %v4522_v25, %v4518_v10  ;;  %v4532_v26 = vrot.slane %v18781_v17, %v14402_v7  ;;  %v4582_v11 = vrot.slane %v18782_v38, %v14357_v62  ;;  %v18785_v6 = vld [vmem:[#allocation115_spill] sm:$0xff]  ;;  %v18786_v35 = vld [vmem:[#allocation62_spill] sm:$0xff]  ;;  %v18787_v38 = vld [vmem:[#allocation352_spill] sm:$0xff] }
 0x649   : > { %v4331_v48 = vsel %vm4247_vm13, %v4330_v57, %v4326_v34  ;;  %v4419_v1 = vrot.slane %v18783_v21, %v14503_v0  ;;  %v4527_v16 = vrot.slane %v18784_v15, %v14390_v29  ;;  %v4591_v14 = vrot.slane %v18785_v6, %v14347_v32  ;;  %v18788_v34 = vld [vmem:[#allocation90_spill] sm:$0xff] }
 0x64a   : > { %v4340_v25 = vrot.slane %v18786_v35, %v14503_v0  ;;  %v4336_v10 = vsel %vm4254_vm14, %v4335_v54, %v4331_v48  ;;  %v4469_v17 = vsel %vm4219_vm9, %v4468_v9, %v4464_v18  ;;  %v4586_v46 = vrot.slane %v18787_v38, %v14339_v39  ;;  %v14668_v6 = vpop.permute.xlu1 %4009  ;;  %v14670_v55 = vpop.permute.xlu0 %4018  ;;  %v18790_v54 = vld [vmem:[#allocation333_spill] sm:$0xff] }
 0x64b   : > { %v4420_v57 = vsel %vm17440_vm15, %v4419_v1, %v4415_v12  ;;  %v4478_v21 = vrot.slane %v18788_v34, %v14433_v61  ;;  %v4474_v15 = vsel %vm17443_vm10, %v4473_v63, %v4469_v17  ;;  %v4528_v44 = vsel %vm4191_vm5, %v4527_v16, %v4523_v36  ;;  %18789 = vst [vmem:[#allocation66_spill] sm:$0xff] %v14670_v55  ;;  %v18791_v9 = vld [vmem:[#allocation105_spill] sm:$0xff] }
 0x64c   : > { %v4483_v48 = vrot.slane %v18790_v54, %v14484_v5  ;;  %v4533_v18 = vsel %vm4198_vm6, %v4532_v26, %v4528_v44  ;;  %v4542_v35 = vrot.slane %v18791_v9, %v14427_v20  ;;  %v4587_v12 = vsel %vm17435_vm1, %v4586_v46, %v4582_v11  ;;  %v18792_v1 = vld [vmem:[#allocation341_spill] sm:$0xff]  ;;  %v18795_v46 = vld [vmem:[#allocation354_spill] sm:$0xff]  ;;  %v18796_v54 = vld [vmem:[#allocation131_spill] sm:$0xff] }
 0x64d   : > { %v4537_v38 = vrot.slane %v18792_v1, %v14397_v45  ;;  %v4592_v63 = vsel %vm17436_vm2, %v4591_v14, %v4587_v12  ;;  %v18793_v36 = vld [vmem:[#allocation357_spill] sm:$0xff]  ;;  %v4661_v17 = vrot.slane %v13702_v43, %v14357_v62  ;;  %v18794_v34 = vrot.slane %v18752_v31, %v14503_v0  ;;  %v18797_v31 = vld [vmem:[#allocation128_spill] sm:$0xff] }
 0x64e   : > { %v4601_v16 = vrot.slane %v18793_v36, %v14379_v24  ;;  %v14690_v26 = vsel %vm17440_vm15, %v4340_v25, %v4336_v10  ;;  %v4596_v11 = vrot.slane %v18795_v46, %v14368_v40  ;;  %v4670_v14 = vrot.slane %v18796_v54, %v14347_v32  ;;  %v14705_v25 = vpop.permute.xlu0 %4024 }
 0x64f   : > { %v4262_v44 = vsel %vm17440_vm15, %v18794_v34, %v4255_v13  ;;  %v4479_v12 = vsel %vm17441_vm11, %v4478_v21, %v4474_v15  ;;  %v4538_v43 = vsel %vm4205_vm7, %v4537_v38, %v4533_v18  ;;  %v4665_v1 = vrot.slane %v18797_v31, %v14339_v39  ;;  %v14703_v13 = vpop.permute.xlu1 %4015  ;;  %18798 = vst [vmem:[#allocation280_spill] sm:$0xff] %v14705_v25  ;;  %v18799_v34 = vld [vmem:[#allocation107_spill] sm:$0xff]  ;;  %v18802_v31 = vld [vmem:[#allocation92_spill] sm:$0xff] }
 0x650   : > { %v14697_v9 = vsel %vm17434_vm0, %v4420_v57, %v4262_v44  ;;  %v4484_v10 = vsel %vm17442_vm12, %v4483_v48, %v4479_v12  ;;  %v4543_v36 = vsel %vm4212_vm8, %v4542_v35, %v4538_v43  ;;  %v4552_v46 = vrot.slane %v18799_v34, %v14451_v27  ;;  %v18800_v21 = vld [vmem:[#allocation343_spill] sm:$0xff]  ;;  %v18803_v35 = vld [vmem:[#allocation116_spill] sm:$0xff] }
 0x651   : > { %v4597_v57 = vsel %vm4177_vm3, %v4596_v11, %v4592_v63  ;;  %v4547_v15 = vrot.slane %v18800_v21, %v14414_v23  ;;  %v18801_v38 = vld [vmem:[#allocation359_spill] sm:$0xff]  ;;  %v4666_v54 = vsel %vm17435_vm1, %v4665_v1, %v4661_v17  ;;  %v4488_v48 = vrot.slane %v18802_v31, %v14464_v51  ;;  %v18804_v11 = vld [vmem:[#allocation94_spill] sm:$0xff]  ;;  %v18806_v17 = vld [vmem:[#allocation369_spill] sm:$0xff] }
 0x652   : > { %v4602_v18 = vsel %vm4184_vm4, %v4601_v16, %v4597_v57  ;;  %v4611_v44 = vrot.slane %v18801_v38, %v14402_v7  ;;  %v4606_v12 = vrot.slane %v18803_v35, %v14390_v29  ;;  %v4671_v43 = vsel %vm17436_vm2, %v4670_v14, %v4666_v54  ;;  %v18805_v16 = vld [vmem:[#allocation335_spill] sm:$0xff]  ;;  %v14734_v31 = vpop.permute.xlu0 %4030 }
 0x653   : > { %v4680_v63 = vrot.slane %v13730_v19, %v14379_v24  ;;  %v4498_v34 = vrot.slane %v18804_v11, %v14503_v0  ;;  %v4493_v57 = vrot.slane %v18805_v16, %v14521_v41  ;;  %v4548_v21 = vsel %vm4219_vm9, %v4547_v15, %v4543_v36  ;;  %v14732_v38 = vpop.permute.xlu1 %4021  ;;  %18807 = vst [vmem:[#allocation38_spill] sm:$0xff] %v14734_v31  ;;  %v18808_v19 = vld [vmem:[#allocation109_spill] sm:$0xff]  ;;  %v18809_v16 = vld [vmem:[#allocation346_spill] sm:$0xff] }
 0x654   : > { %v4675_v1 = vrot.slane %v18806_v17, %v14368_v40  ;;  %v4489_v14 = vsel %vm4247_vm13, %v4488_v48, %v4484_v10  ;;  %v4553_v54 = vsel %vm17443_vm10, %v4552_v46, %v4548_v21  ;;  %v4562_v35 = vrot.slane %v18808_v19, %v14484_v5  ;;  %v18810_v15 = vld [vmem:[#allocation361_spill] sm:$0xff]  ;;  %v18811_v31 = vld [vmem:[#allocation118_spill] sm:$0xff]  ;;  %v18813_v19 = vld [vmem:[#allocation371_spill] sm:$0xff] }
 0x655   : > { %v4607_v11 = vsel %vm4191_vm5, %v4606_v12, %v4602_v18  ;;  %v4557_v25 = vrot.slane %v18809_v16, %v14433_v61  ;;  %v4621_v17 = vrot.slane %v18810_v15, %v14427_v20  ;;  %v4616_v10 = vrot.slane %v18811_v31, %v14397_v45  ;;  %v18812_v48 = vld [vmem:[#allocation370_spill] sm:$0xff] }
 0x656   : > { %v4612_v36 = vsel %vm4198_vm6, %v4611_v44, %v4607_v11  ;;  %v4676_v55 = vsel %vm4177_vm3, %v4675_v1, %v4671_v43  ;;  %v4690_v21 = vrot.slane %v18812_v48, %v14402_v7  ;;  %v4740_v18 = vrot.slane %v13814_v60, %v14357_v62  ;;  %v18814_v43 = vld [vmem:[#allocation382_spill] sm:$0xff]  ;;  %v14762_v31 = vpop.permute.xlu0 %4036 }
 0x657   : > { %v4681_v46 = vsel %vm4184_vm4, %v4680_v63, %v4676_v55  ;;  %v4494_v12 = vsel %vm4254_vm14, %v4493_v57, %v4489_v14  ;;  %v4558_v44 = vsel %vm17441_vm11, %v4557_v25, %v4553_v54  ;;  %v4685_v11 = vrot.slane %v18813_v19, %v14390_v29  ;;  %v14760_v16 = vpop.permute.xlu1 %4027  ;;  %18816 = vst [vmem:[#allocation50_spill] sm:$0xff] %v14762_v31  ;;  %v18817_v55 = vld [vmem:[#allocation348_spill] sm:$0xff]  ;;  %v18818_v57 = vld [vmem:[#allocation383_spill] sm:$0xff] }
 0x658   : > { %v4749_v1 = vrot.slane %v18814_v43, %v14347_v32  ;;  %18815 = vst [vmem:[#allocation292_spill] sm:$0xff] %v14760_v16  ;;  %v4567_v63 = vrot.slane %v18817_v55, %v14464_v51  ;;  %v4563_v15 = vsel %vm17442_vm12, %v4562_v35, %v4558_v44  ;;  %v4617_v60 = vsel %vm4205_vm7, %v4616_v10, %v4612_v36  ;;  %v18819_v14 = vld [vmem:[#allocation111_spill] sm:$0xff]  ;;  %v18821_v16 = vld [vmem:[#allocation120_spill] sm:$0xff]  ;;  %v18822_v36 = vld [vmem:[#allocation137_spill] sm:$0xff] }
 0x659   : > { %v4744_v25 = vrot.slane %v18818_v57, %v14339_v39  ;;  %v4572_v54 = vrot.slane %v18819_v14, %v14521_v41  ;;  %v4622_v48 = vsel %vm4212_vm8, %v4621_v17, %v4617_v60  ;;  %v18820_v19 = vld [vmem:[#allocation363_spill] sm:$0xff]  ;;  %v4686_v31 = vsel %vm4191_vm5, %v4685_v11, %v4681_v46  ;;  %v18823_v14 = vld [vmem:[#allocation133_spill] sm:$0xff] }
 0x65a   : > { %v4631_v43 = vrot.slane %v18820_v19, %v14451_v27  ;;  %v4626_v55 = vrot.slane %v18821_v16, %v14414_v23  ;;  %v4691_v35 = vsel %vm4198_vm6, %v4690_v21, %v4686_v31  ;;  %v4700_v10 = vrot.slane %v18822_v36, %v14427_v20  ;;  %v14790_v16 = vpop.permute.xlu0 %4042  ;;  %v18825_v21 = vld [vmem:[#allocation350_spill] sm:$0xff] }
 0x65b   : > { %v4745_v44 = vsel %vm17435_vm1, %v4744_v25, %v4740_v18  ;;  %v4499_v57 = vsel %vm17440_vm15, %v4498_v34, %v4494_v12  ;;  %v4695_v17 = vrot.slane %v18823_v14, %v14397_v45  ;;  %v4759_v46 = vrot.slane %v13842_v8, %v14379_v24  ;;  %v14788_v11 = vpop.permute.xlu1 %4033  ;;  %18824 = vst [vmem:[#allocation310_spill] sm:$0xff] %v14790_v16  ;;  %v18826_v34 = vld [vmem:[#allocation145_spill] sm:$0xff] }
 0x65c   : > { %v4750_v60 = vsel %vm17436_vm2, %v4749_v1, %v4745_v44  ;;  %v4577_v31 = vrot.slane %v18825_v21, %v14503_v0  ;;  %v4568_v19 = vsel %vm4247_vm13, %v4567_v63, %v4563_v15  ;;  %v4627_v18 = vsel %vm4219_vm9, %v4626_v55, %v4622_v48  ;;  %v18827_v1 = vld [vmem:[#allocation122_spill] sm:$0xff]  ;;  %v18828_v14 = vld [vmem:[#allocation365_spill] sm:$0xff]  ;;  %v18829_v63 = vld [vmem:[#allocation139_spill] sm:$0xff] }
 0x65d   : > { %v4754_v12 = vrot.slane %v18826_v34, %v14368_v40  ;;  %v4573_v25 = vsel %vm4254_vm14, %v4572_v54, %v4568_v19  ;;  %v4636_v36 = vrot.slane %v18827_v1, %v14433_v61  ;;  %v4632_v8 = vsel %vm17443_vm10, %v4631_v43, %v4627_v18  ;;  %v18830_v55 = vld [vmem:[#allocation135_spill] sm:$0xff]  ;;  %v18831_v34 = vld [vmem:[#allocation386_spill] sm:$0xff] }
 0x65e   : > { %v4696_v44 = vsel %vm4205_vm7, %v4695_v17, %v4691_v35  ;;  %v4641_v16 = vrot.slane %v18828_v14, %v14484_v5  ;;  %v4710_v15 = vrot.slane %v18829_v63, %v14451_v27  ;;  %v4705_v54 = vrot.slane %v18830_v55, %v14414_v23  ;;  %v14818_v18 = vpop.permute.xlu0 %4048 }
 0x65f   : > { %v4701_v21 = vsel %vm4212_vm8, %v4700_v10, %v4696_v44  ;;  %v4755_v48 = vsel %vm4177_vm3, %v4754_v12, %v4750_v60  ;;  %v4769_v43 = vrot.slane %v18831_v34, %v14402_v7  ;;  %v4819_v35 = vrot.slane %v13926_v50, %v14357_v62  ;;  %v14816_v17 = vpop.permute.xlu1 %4039  ;;  %18832 = vst [vmem:[#allocation68_spill] sm:$0xff] %v14818_v18  ;;  %v18833_v12 = vld [vmem:[#allocation147_spill] sm:$0xff]  ;;  %v18834_v44 = vld [vmem:[#allocation124_spill] sm:$0xff] }
 0x660   : > { %v4760_v19 = vsel %vm4184_vm4, %v4759_v46, %v4755_v48  ;;  %v14822_v10 = vsel %vm17434_vm0, %v4499_v57, %v14690_v26  ;;  %v14825_v60 = vsel %vm17440_vm15, %v4577_v31, %v4573_v25  ;;  %v4764_v46 = vrot.slane %v18833_v12, %v14390_v29  ;;  %v18835_v31 = vld [vmem:[#allocation377_spill] sm:$0xff] }
 0x661   : > { %v4828_v1 = vrot.slane %v13940_v33, %v14347_v32  ;;  %v4646_v50 = vrot.slane %v18834_v44, %v14464_v51  ;;  %v4637_v14 = vsel %vm17441_vm11, %v4636_v36, %v4632_v8  ;;  %v4706_v63 = vsel %vm4219_vm9, %v4705_v54, %v4701_v21  ;;  %v18836_v33 = vld [vmem:[#allocation141_spill] sm:$0xff] }
 0x662   : > { %v4823_v26 = vrot.slane %v13915_v53, %v14339_v39  ;;  %v4642_v57 = vsel %vm17442_vm12, %v4641_v16, %v4637_v14  ;;  %v4715_v25 = vrot.slane %v18835_v31, %v14433_v61  ;;  %v4711_v48 = vsel %vm17443_vm10, %v4710_v15, %v4706_v63  ;;  %v14850_v16 = vpop.permute.xlu0 %4054  ;;  %v18839_v21 = vld [vmem:[#allocation149_spill] sm:$0xff]  ;;  %v18841_v63 = vld [vmem:[#allocation367_spill] sm:$0xff] }
 0x663   : > { %v4765_v55 = vsel %vm4191_vm5, %v4764_v46, %v4760_v19  ;;  %v4720_v34 = vrot.slane %v18836_v33, %v14484_v5  ;;  %v4779_v36 = vrot.slane %v13870_v52, %v14427_v20  ;;  %v14848_v53 = vpop.permute.xlu1 %4045  ;;  %18838 = vst [vmem:[#allocation40_spill] sm:$0xff] %v14850_v16  ;;  %v4774_v54 = vrot.slane %v18839_v21, %v14397_v45  ;;  %v18840_v46 = vld [vmem:[#allocation126_spill] sm:$0xff] }
 0x664   : > { %v4770_v12 = vsel %vm4198_vm6, %v4769_v43, %v4765_v55  ;;  %v4824_v8 = vsel %vm17435_vm1, %v4823_v26, %v4819_v35  ;;  %18837 = vst [vmem:[#allocation282_spill] sm:$0xff] %v14848_v53  ;;  %v4838_v19 = vrot.slane %v13954_v3, %v14379_v24  ;;  %v4898_v43 = vrot.slane %v14038_v56, %v14357_v62 }
 0x665   : > { %v4829_v15 = vsel %vm17436_vm2, %v4828_v1, %v4824_v8  ;;  %v4647_v35 = vsel %vm4247_vm13, %v4646_v50, %v4642_v57  ;;  %v4833_v44 = vrot.slane %v13929_v59, %v14368_v40  ;;  %v4907_v14 = vrot.slane %v14052_v22, %v14347_v32  ;;  %v18842_v57 = vld [vmem:[#allocation154_spill] sm:$0xff] }
 0x666   : > { %v4651_v1 = vrot.slane %v18841_v63, %v14521_v41  ;;  %v4716_v26 = vsel %vm17441_vm11, %v4715_v25, %v4711_v48  ;;  %v4775_v3 = vsel %vm4205_vm7, %v4774_v54, %v4770_v12  ;;  %v4902_v56 = vrot.slane %v14027_v42, %v14339_v39  ;;  %v14879_v33 = vpop.permute.xlu0 %4060  ;;  %v18844_v25 = vld [vmem:[#allocation151_spill] sm:$0xff] }
 0x667   : > { %v4721_v31 = vsel %vm17442_vm12, %v4720_v34, %v4716_v26  ;;  %v4780_v50 = vsel %vm4212_vm8, %v4779_v36, %v4775_v3  ;;  %v4789_v59 = vrot.slane %v18842_v57, %v14451_v27  ;;  %v4834_v55 = vsel %vm4177_vm3, %v4833_v44, %v4829_v15  ;;  %v14877_v22 = vpop.permute.xlu1 %4051  ;;  %v18845_v36 = vld [vmem:[#allocation379_spill] sm:$0xff] }
 0x668   : > { %18843 = vst [vmem:[#allocation294_spill] sm:$0xff] %v14877_v22  ;;  %v4784_v48 = vrot.slane %v18844_v25, %v14414_v23  ;;  %v4839_v12 = vsel %vm4184_vm4, %v4838_v19, %v4834_v55  ;;  %v4848_v42 = vrot.slane %v13968_v2, %v14402_v7  ;;  %v4903_v34 = vsel %vm17435_vm1, %v4902_v56, %v4898_v43  ;;  %v18846_v19 = vld [vmem:[#allocation143_spill] sm:$0xff] }
 0x669   : > { %v4725_v8 = vrot.slane %v18845_v36, %v14464_v51  ;;  %v4843_v21 = vrot.slane %v13943_v37, %v14390_v29  ;;  %v4908_v54 = vsel %vm17436_vm2, %v4907_v14, %v4903_v34  ;;  %v4917_v15 = vrot.slane %v14066_v28, %v14379_v24  ;;  %v18847_v37 = vld [vmem:[#allocation387_spill] sm:$0xff] }
 0x66a   : > { %v14895_v44 = vsel %vm4254_vm14, %v4651_v1, %v4647_v35  ;;  %v4730_v63 = vrot.slane %v18846_v19, %v14521_v41  ;;  %v4785_v2 = vsel %vm4219_vm9, %v4784_v48, %v4780_v50  ;;  %v4912_v43 = vrot.slane %v14041_v4, %v14368_v40  ;;  %v14909_v35 = vpop.permute.xlu0 %4066  ;;  %v18848_v1 = vld [vmem:[#allocation391_spill] sm:$0xff] }
 0x66b   : > { %v4726_v26 = vsel %vm4247_vm13, %v4725_v8, %v4721_v31  ;;  %v4794_v3 = vrot.slane %v18847_v37, %v14433_v61  ;;  %v4790_v14 = vsel %vm17443_vm10, %v4789_v59, %v4785_v2  ;;  %v4844_v28 = vsel %vm4191_vm5, %v4843_v21, %v4839_v12  ;;  %v14907_v56 = vpop.permute.xlu1 %4057  ;;  %v18849_v12 = vld [vmem:[#allocation381_spill] sm:$0xff]  ;;  %v18851_v8 = vld [vmem:[#allocation204_spill] sm:$0xff] }
 0x66c   : > { %v4799_v57 = vrot.slane %v18848_v1, %v14484_v5  ;;  %v4849_v50 = vsel %vm4198_vm6, %v4848_v42, %v4844_v28  ;;  %v4858_v4 = vrot.slane %v13982_v30, %v14427_v20  ;;  %v4913_v31 = vsel %vm4177_vm3, %v4912_v43, %v4908_v54  ;;  %v18850_v30 = vld [vmem:[#allocation406_spill] sm:$0xff]  ;;  %v18852_v21 = vld [vmem:[#allocation389_spill] sm:$0xff]  ;;  %v18854_v37 = vld [vmem:[#allocation400_spill] sm:$0xff] }
 0x66d   : > { %v4853_v55 = vrot.slane %v13957_v58, %v14397_v45  ;;  %v4918_v59 = vsel %vm4184_vm4, %v4917_v15, %v4913_v31  ;;  %v4927_v25 = vrot.slane %v14080_v49, %v14402_v7  ;;  %v4977_v48 = vrot.slane %v14150_v47, %v14357_v62  ;;  %v18853_v47 = vld [vmem:[#allocation198_spill] sm:$0xff]  ;;  %v18856_v31 = vld [vmem:[#allocation185_spill] sm:$0xff] }
 0x66e   : > { %v14927_v42 = vsel %vm4254_vm14, %v4730_v63, %v4726_v26  ;;  %v4922_v36 = vrot.slane %v18850_v30, %v14390_v29  ;;  %v4986_v58 = vrot.slane %v18851_v8, %v14347_v32  ;;  %v4804_v54 = vrot.slane %v18852_v21, %v14464_v51  ;;  %v14941_v63 = vpop.permute.xlu0 %4072  ;;  %v18857_v8 = vld [vmem:[#allocation179_spill] sm:$0xff]  ;;  %v18858_v21 = vld [vmem:[#allocation209_spill] sm:$0xff] }
 0x66f   : > { %v4795_v49 = vsel %vm17441_vm11, %v4794_v3, %v4790_v14  ;;  %v4854_v15 = vsel %vm4205_vm7, %v4853_v55, %v4849_v50  ;;  %v4981_v19 = vrot.slane %v18853_v47, %v14339_v39  ;;  %v14939_v2 = vpop.permute.xlu1 %4063  ;;  %v4868_v28 = vrot.slane %v18854_v37, %v14451_v27  ;;  %v18855_v3 = vld [vmem:[#allocation163_spill] sm:$0xff]  ;;  %v18860_v47 = vld [vmem:[#allocation201_spill] sm:$0xff] }
 0x670   : > { %v4800_v43 = vsel %vm17442_vm12, %v4799_v57, %v4795_v49  ;;  %v4859_v26 = vsel %vm4212_vm8, %v4858_v4, %v4854_v15  ;;  %v4923_v1 = vsel %vm4191_vm5, %v4922_v36, %v4918_v59  ;;  %v4863_v14 = vrot.slane %v18855_v3, %v14414_v23  ;;  %v18859_v59 = vld [vmem:[#allocation222_spill] sm:$0xff] }
 0x671   : > { %v4928_v50 = vsel %vm4198_vm6, %v4927_v25, %v4923_v1  ;;  %v4937_v55 = vrot.slane %v18856_v31, %v14427_v20  ;;  %v4982_v30 = vsel %vm17435_vm1, %v4981_v19, %v4977_v48  ;;  %v4932_v57 = vrot.slane %v18857_v8, %v14397_v45  ;;  %v18861_v48 = vld [vmem:[#allocation224_spill] sm:$0xff] }
 0x672   : > { %v4987_v4 = vsel %vm17436_vm2, %v4986_v58, %v4982_v30  ;;  %v4996_v49 = vrot.slane %v18858_v21, %v14379_v24  ;;  %v5056_v36 = vrot.slane %v18859_v59, %v14357_v62  ;;  %v4805_v15 = vsel %vm4247_vm13, %v4804_v54, %v4800_v43  ;;  %v14969_v3 = vpop.permute.xlu0 %4078  ;;  %v18862_v58 = vld [vmem:[#allocation165_spill] sm:$0xff] }
 0x673   : > { %v4864_v25 = vsel %vm4219_vm9, %v4863_v14, %v4859_v26  ;;  %v4991_v37 = vrot.slane %v18860_v47, %v14368_v40  ;;  %v5065_v19 = vrot.slane %v18861_v48, %v14347_v32  ;;  %v14967_v1 = vpop.permute.xlu1 %4069  ;;  %v4873_v31 = vrot.slane %v18862_v58, %v14433_v61  ;;  %v18863_v54 = vld [vmem:[#allocation441_spill] sm:$0xff]  ;;  %v18864_v26 = vld [vmem:[#allocation170_spill] sm:$0xff] }
 0x674   : > { %v4869_v30 = vsel %vm17443_vm10, %v4868_v28, %v4864_v25  ;;  %v4933_v8 = vsel %vm4205_vm7, %v4932_v57, %v4928_v50  ;;  %v5060_v43 = vrot.slane %v18863_v54, %v14339_v39  ;;  %vm17438_vm0 = vcmask 1042434   ;;  %v18865_v59 = vld [vmem:[#allocation189_spill] sm:$0xff]  ;;  %v18866_v58 = vld [vmem:[#allocation182_spill] sm:$0xff]  ;;  %v18867_v50 = vld [vmem:[#allocation432_spill] sm:$0xff] }
 0x675   : > { %v4878_v14 = vrot.slane %v18864_v26, %v14484_v5  ;;  %v4938_v21 = vsel %vm4212_vm8, %v4937_v55, %v4933_v8  ;;  %v4947_v47 = vrot.slane %v18865_v59, %v14451_v27  ;;  %v4992_v48 = vsel %vm4177_vm3, %v4991_v37, %v4987_v4  ;;  %v18868_v54 = vld [vmem:[#allocation393_spill] sm:$0xff]  ;;  %v18869_v55 = vld [vmem:[#allocation206_spill] sm:$0xff] }
 0x676   : > { %v4942_v34 = vrot.slane %v18866_v58, %v14414_v23  ;;  %v4997_v28 = vsel %vm4184_vm4, %v4996_v49, %v4992_v48  ;;  %v5006_v57 = vrot.slane %v18867_v50, %v14402_v7  ;;  %v5061_v25 = vsel %vm17435_vm1, %v5060_v43, %v5056_v36  ;;  %v18870_v4 = vld [vmem:[#allocation226_spill] sm:$0xff]  ;;  %v14998_v58 = vpop.permute.xlu0 %4084  ;;  %v18871_v49 = vld [vmem:[#allocation167_spill] sm:$0xff] }
 0x677   : > { %v4809_v26 = vrot.slane %v18868_v54, %v14521_v41  ;;  %v5001_v8 = vrot.slane %v18869_v55, %v14390_v29  ;;  %v5066_v59 = vsel %vm17436_vm2, %v5065_v19, %v5061_v25  ;;  %v5075_v37 = vrot.slane %v18870_v4, %v14379_v24  ;;  %v14996_v52 = vpop.permute.xlu1 %4075  ;;  %v18872_v50 = vld [vmem:[#allocation18_spill] sm:$0xff]  ;;  %v18873_v25 = vld [vmem:[#allocation173_spill] sm:$0xff] }
 0x678   : > { %v4883_v48 = vrot.slane %v18871_v49, %v14464_v51  ;;  %v4874_v36 = vsel %vm17441_vm11, %v4873_v31, %v4869_v30  ;;  %v4943_v43 = vsel %vm4219_vm9, %v4942_v34, %v4938_v21  ;;  %v5070_v54 = vrot.slane %v18872_v50, %v14368_v40  ;;  %v18874_v49 = vld [vmem:[#allocation193_spill] sm:$0xff]  ;;  %v18875_v34 = vld [vmem:[#allocation434_spill] sm:$0xff] }
 0x679   : > { %vm17437_vm1 = vcmask 1043459   ;;  %v4879_v19 = vsel %vm17442_vm12, %v4878_v14, %v4874_v36  ;;  %v4888_v55 = vrot.slane %v18873_v25, %v14521_v41  ;;  %v4948_v4 = vsel %vm17443_vm10, %v4947_v47, %v4943_v43  ;;  %v18876_v14 = vld [vmem:[#allocation186_spill] sm:$0xff] }
 0x67a   : > { %v5002_v16 = vsel %vm4191_vm5, %v5001_v8, %v4997_v28  ;;  %vm17439_vm2 = vcmask 1044484   ;;  %v4957_v18 = vrot.slane %v18874_v49, %v14484_v5  ;;  %v5016_v30 = vrot.slane %v18875_v34, %v14427_v20  ;;  %v18877_v50 = vld [vmem:[#allocation210_spill] sm:$0xff]  ;;  %v18878_v28 = vld [vmem:[#allocation228_spill] sm:$0xff]  ;;  %v15026_v49 = vpop.permute.xlu0 %4090 }
 0x67b   : > { %v5007_v31 = vsel %vm4198_vm6, %v5006_v57, %v5002_v16  ;;  %v5071_v21 = vsel %vm4177_vm3, %v5070_v54, %v5066_v59  ;;  %v4952_v36 = vrot.slane %v18876_v14, %v14433_v61  ;;  %v5011_v25 = vrot.slane %v18877_v50, %v14397_v45  ;;  %v15024_v43 = vpop.permute.xlu1 %4081  ;;  %18879 = vst [vmem:[#allocation52_spill] sm:$0xff] %v15026_v49  ;;  %v18880_v16 = vld [vmem:[#allocation157_spill] sm:$0xff]  ;;  %v18881_v34 = vld [vmem:[#allocation20_spill] sm:$0xff] }
 0x67c   : > { %v5076_v47 = vsel %vm4184_vm4, %v5075_v37, %v5071_v21  ;;  %v5085_v8 = vrot.slane %v18878_v28, %v14402_v7  ;;  %v4814_v57 = vrot.slane %v18880_v16, %v14503_v0  ;;  %v4810_v59 = vsel %vm4254_vm14, %v4809_v26, %v4805_v15  ;;  %v18882_v50 = vld [vmem:[#allocation405_spill] sm:$0xff]  ;;  %v18883_v15 = vld [vmem:[#allocation436_spill] sm:$0xff] }
 0x67d   : > { %v4884_v54 = vsel %vm4247_vm13, %v4883_v48, %v4879_v19  ;;  %v5080_v14 = vrot.slane %v18881_v34, %v14390_v29  ;;  %v4893_v37 = vrot.slane %v18882_v50, %v14503_v0  ;;  %v4953_v28 = vsel %vm17441_vm11, %v4952_v36, %v4948_v4  ;;  %v18884_v19 = vld [vmem:[#allocation197_spill] sm:$0xff]  ;;  %v18886_v4 = vld [vmem:[#allocation230_spill] sm:$0xff] }
 0x67e   : > { %v4889_v21 = vsel %vm4254_vm14, %v4888_v55, %v4884_v54  ;;  %v5012_v22 = vsel %vm4205_vm7, %v5011_v25, %v5007_v31  ;;  %v4958_v49 = vsel %vm17442_vm12, %v4957_v18, %v4953_v28  ;;  %v5026_v26 = vrot.slane %v18883_v15, %v14451_v27  ;;  %v18885_v50 = vld [vmem:[#allocation433_spill] sm:$0xff]  ;;  %v15053_v18 = vpop.permute.xlu0 %4096  ;;  %v18889_v54 = vld [vmem:[#allocation22_spill] sm:$0xff] }
 0x67f   : > { %v5017_v16 = vsel %vm4212_vm8, %v5016_v30, %v5012_v22  ;;  %v5081_v48 = vsel %vm4191_vm5, %v5080_v14, %v5076_v47  ;;  %v4967_v34 = vrot.slane %v18884_v19, %v14521_v41  ;;  %v5021_v53 = vrot.slane %v18885_v50, %v14414_v23  ;;  %v15051_v36 = vpop.permute.xlu1 %4087  ;;  %v18888_v47 = vld [vmem:[#allocation190_spill] sm:$0xff] }
 0x680   : > { %v5086_v55 = vsel %vm4198_vm6, %v5085_v8, %v5081_v48  ;;  %v5095_v31 = vrot.slane %v18886_v4, %v14427_v20  ;;  %v5451_v22 = vsel %vm17438_vm0, %v14825_v60, %v14697_v9  ;;  %v18887_v30 = vrot.slane %v18840_v46, %v14503_v0  ;;  %v18891_v19 = vld [vmem:[#allocation438_spill] sm:$0xff] }
 0x681   : > { %v4962_v8 = vrot.slane %v18888_v47, %v14464_v51  ;;  %v5090_v14 = vrot.slane %v18889_v54, %v14397_v45  ;;  %v18890_v28 = vrot.slane %v18849_v12, %v14503_v0  ;;  %v4815_v9 = vsel %vm17440_vm15, %v4814_v57, %v4810_v59  ;;  %v18892_v12 = vld [vmem:[#allocation435_spill] sm:$0xff]  ;;  %v18893_v59 = vld [vmem:[#allocation232_spill] sm:$0xff] }
 0x682   : > { %v4657_v25 = vsel %vm17440_vm15, %v18887_v30, %v14895_v44  ;;  %v4894_v60 = vsel %vm17440_vm15, %v4893_v37, %v4889_v21  ;;  %v5022_v46 = vsel %vm4219_vm9, %v5021_v53, %v5017_v16  ;;  %v5036_v50 = vrot.slane %v18891_v19, %v14484_v5 }
 0x683   : > { %v4736_v15 = vsel %vm17440_vm15, %v18890_v28, %v14927_v42  ;;  %v4963_v44 = vsel %vm4247_vm13, %v4962_v8, %v4958_v49  ;;  %v5027_v48 = vsel %vm17443_vm10, %v5026_v26, %v5022_v46  ;;  %v5091_v4 = vsel %vm4205_vm7, %v5090_v14, %v5086_v55  ;;  %v15086_v53 = vpop.permute.xlu1 %4093  ;;  %v15088_v49 = vpop.permute.xlu0 %4102  ;;  %v18894_v26 = vld [vmem:[#allocation194_spill] sm:$0xff]  ;;  %v18895_v55 = vld [vmem:[#allocation24_spill] sm:$0xff] }
 0x684   : > { %v4968_v30 = vsel %vm4254_vm14, %v4967_v34, %v4963_v44  ;;  %v5031_v42 = vrot.slane %v18892_v12, %v14433_v61  ;;  %v5096_v57 = vsel %vm4212_vm8, %v5095_v31, %v5091_v4  ;;  %v5105_v37 = vrot.slane %v18893_v59, %v14451_v27  ;;  %v18902_v59 = vld [vmem:[#allocation269_spill] sm:$0xff] }
 0x685   : > { %v5463_v21 = vsel %vm17438_vm0, %v4657_v25, %v14822_v10  ;;  %v5453_v16 = vsel %vm17437_vm1, %v4736_v15, %v5451_v22  ;;  %v4972_v34 = vrot.slane %v18894_v26, %v14503_v0  ;;  %v5100_v47 = vrot.slane %v18895_v55, %v14414_v23  ;;  %v18896_v22 = vld [vmem:[#allocation440_spill] sm:$0xff]  ;;  %v18897_v15 = vld [vmem:[#allocation437_spill] sm:$0xff]  ;;  %v18903_v26 = vld [vmem:[#allocation235_spill] sm:$0xff] }
 0x686   : > { %v15098_v31 = vsel %vm17437_vm1, %v4815_v9, %v5463_v21  ;;  %v15101_v8 = vsel %vm17439_vm2, %v4894_v60, %v5453_v16  ;;  %v5032_v54 = vsel %vm17441_vm11, %v5031_v42, %v5027_v48  ;;  %v5046_v25 = vrot.slane %v18896_v22, %v14521_v41  ;;  %v18898_v60 = vld [vmem:[#allocation258_spill] sm:$0xff]  ;;  %v18899_v48 = vld [vmem:[#allocation32_spill] sm:$0xff] }
 0x687   : > { %v15105_v14 = vsel %vm17440_vm15, %v4972_v34, %v4968_v30  ;;  %v5037_v10 = vsel %vm17442_vm12, %v5036_v50, %v5032_v54  ;;  %v5101_v28 = vsel %vm4219_vm9, %v5100_v47, %v5096_v57  ;;  %v5041_v46 = vrot.slane %v18897_v15, %v14464_v51  ;;  %v15118_v4 = vpop.permute.xlu1 %4099  ;;  %v4109_v30 = vpop.permute.xlu0 %4108  ;;  %v18900_v50 = vld [vmem:[#allocation439_spill] sm:$0xff]  ;;  %v18901_v42 = vld [vmem:[#allocation26_spill] sm:$0xff] }
 0x688   : > { %v5106_v9 = vsel %vm17443_vm10, %v5105_v37, %v5101_v28  ;;  %v5115_v44 = vrot.slane %v18898_v60, %v14484_v5  ;;  %v5135_v19 = vrot.slane %v18899_v48, %v14357_v62  ;;  %v5110_v57 = vrot.slane %v18901_v42, %v14433_v61  ;;  %v18904_v28 = vld [vmem:[#allocation308_spill] sm:$0xff] }
 0x689   : > { %v5144_v21 = vrot.slane %v18902_v59, %v14347_v32  ;;  %v5214_v37 = vrot.slane %v14668_v6, %v14357_v62  ;;  %v5042_v16 = vsel %vm4247_vm13, %v5041_v46, %v5037_v10  ;;  %v5139_v34 = vrot.slane %v18903_v26, %v14339_v39  ;;  %v18905_v10 = vld [vmem:[#allocation28_spill] sm:$0xff] }
 0x68a   : > { %v5223_v55 = vrot.slane %v14703_v13, %v14347_v32  ;;  %v5293_v47 = vrot.slane %v14907_v56, %v14357_v62  ;;  %v15136_v54 = vsel %vm4254_vm14, %v5046_v25, %v5042_v16  ;;  %v5111_v22 = vsel %vm17441_vm11, %v5110_v57, %v5106_v9  ;;  %v18907_v9 = vld [vmem:[#allocation236_spill] sm:$0xff] }
 0x68b   : > { %v5218_v15 = vrot.slane %v18904_v28, %v14339_v39  ;;  %v5302_v6 = vrot.slane %v14939_v2, %v14347_v32  ;;  %v5120_v46 = vrot.slane %v18905_v10, %v14464_v51  ;;  %v15146_v60 = vsel %vm17442_vm12, %v5115_v44, %v5111_v22  ;;  %v4106_v25 = vpop.permute.xlu1 %4105  ;;  %v4115_v48 = vpop.permute.xlu0 %4114  ;;  %v18909_v2 = vld [vmem:[#allocation237_spill] sm:$0xff]  ;;  %v18913_v28 = vld [vmem:[#allocation66_spill] sm:$0xff] }
 0x68c   : > { %vm18906_vm1 = vcmask 130112   ;;  %v5297_v56 = vrot.slane %v14879_v33, %v14339_v39  ;;  %v5149_v42 = vrot.slane %v18907_v9, %v14368_v40  ;;  %vm18908_vm0 = vcmask 195712  }
 0x68d   : > { %v5140_v13 = vsel %vm18906_vm1, %v5139_v34, %v5135_v19  ;;  %v5154_v59 = vrot.slane %v18909_v2, %v14379_v24  ;;  %vm18910_vm2 = vmmov %vm18906_vm1  ;;  %v5233_v19 = vrot.slane %v14732_v38, %v14379_v24  ;;  %v5372_v33 = vrot.slane %v4106_v25, %v14357_v62  ;;  %v18912_v34 = vld [vmem:[#allocation273_spill] sm:$0xff] }
 0x68e   : > { %v5145_v57 = vsel %vm18908_vm0, %v5144_v21, %v5140_v13  ;;  %v5219_v16 = vsel %vm18910_vm2, %v5218_v15, %v5214_v37  ;;  %vm18911_vm15 = vmmov %vm18908_vm0  ;;  %v5298_v26 = vsel %vm18906_vm1, %v5297_v56, %v5293_v47  ;;  %v5125_v22 = vrot.slane %v18912_v34, %v14521_v41  ;;  %v18937_v34 = vld [vmem:[#allocation40_spill] sm:$0xff] }
 0x68f   : > { %v5224_v44 = vsel %vm18911_vm15, %v5223_v55, %v5219_v16  ;;  %v5228_v21 = vrot.slane %v18913_v28, %v14368_v40  ;;  %v5303_v13 = vsel %vm18908_vm0, %v5302_v6, %v5298_v26  ;;  %v5312_v37 = vrot.slane %v14967_v1, %v14379_v24  ;;  %v18914_v55 = vld [vmem:[#allocation275_spill] sm:$0xff]  ;;  %v4112_v25 = vpop.permute.xlu1 %4111  ;;  %v4121_v9 = vpop.permute.xlu0 %4120  ;;  %v18915_v16 = vld [vmem:[#allocation34_spill] sm:$0xff]  ;;  %vm18917_vm2 = vmmov %vm18906_vm1 }
 0x690   : > { %v5159_v15 = vrot.slane %v18914_v55, %v14390_v29  ;;  %v5150_v38 = vsel %vm4177_vm3, %v5149_v42, %v5145_v57  ;;  %v5307_v47 = vrot.slane %v14909_v35, %v14368_v40  ;;  %v5376_v56 = vrot.slane %v4109_v30, %v14339_v39  ;;  %v18916_v42 = vld [vmem:[#allocation292_spill] sm:$0xff]  ;;  %vm18919_vm15 = vmmov %vm18908_vm0 }
 0x691   : > { %v5155_v2 = vsel %vm4184_vm4, %v5154_v59, %v5150_v38  ;;  %v5164_v6 = vrot.slane %v18915_v16, %v14402_v7  ;;  %v5229_v26 = vsel %vm4177_vm3, %v5228_v21, %v5224_v44  ;;  %v5381_v1 = vrot.slane %v4112_v25, %v14347_v32  ;;  %v18918_v55 = vld [vmem:[#allocation280_spill] sm:$0xff]  ;;  %v18920_v21 = vld [vmem:[#allocation267_spill] sm:$0xff] }
 0x692   : > { %v5234_v28 = vsel %vm4184_vm4, %v5233_v19, %v5229_v26  ;;  %v5243_v57 = vrot.slane %v18916_v42, %v14402_v7  ;;  %v5308_v35 = vsel %vm4177_vm3, %v5307_v47, %v5303_v13  ;;  %v5377_v30 = vsel %vm18917_vm2, %v5376_v56, %v5372_v33 }
 0x693   : > { %v5238_v12 = vrot.slane %v18918_v55, %v14390_v29  ;;  %v5313_v59 = vsel %vm4184_vm4, %v5312_v37, %v5308_v35  ;;  %v5322_v38 = vrot.slane %v14996_v52, %v14402_v7  ;;  %v5382_v44 = vsel %vm18919_vm15, %v5381_v1, %v5377_v30  ;;  %v4118_v47 = vpop.permute.xlu1 %4117  ;;  %v4127_v56 = vpop.permute.xlu0 %4126  ;;  %v18921_v37 = vld [vmem:[#allocation306_spill] sm:$0xff] }
 0x694   : > { %v5169_v19 = vrot.slane %v18920_v21, %v14397_v45  ;;  %v5160_v25 = vsel %vm4191_vm5, %v5159_v15, %v5155_v2  ;;  %v5317_v13 = vrot.slane %v14941_v63, %v14390_v29  ;;  %v5386_v33 = vrot.slane %v4115_v48, %v14368_v40  ;;  %v18922_v2 = vld [vmem:[#allocation38_spill] sm:$0xff] }
 0x695   : > { %v5165_v16 = vsel %vm4198_vm6, %v5164_v6, %v5160_v25  ;;  %v5174_v26 = vrot.slane %v18921_v37, %v14427_v20  ;;  %v5239_v52 = vsel %vm4191_vm5, %v5238_v12, %v5234_v28  ;;  %v5391_v1 = vrot.slane %v4118_v47, %v14379_v24  ;;  %v18923_v28 = vld [vmem:[#allocation304_spill] sm:$0xff] }
 0x696   : > { %v5244_v42 = vsel %vm4198_vm6, %v5243_v57, %v5239_v52  ;;  %v5253_v15 = vrot.slane %v14788_v11, %v14427_v20  ;;  %v5318_v63 = vsel %vm4191_vm5, %v5317_v13, %v5313_v59  ;;  %v5387_v48 = vsel %vm4177_vm3, %v5386_v33, %v5382_v44 }
 0x697   : > { %v5248_v35 = vrot.slane %v18922_v2, %v14397_v45  ;;  %v5323_v6 = vsel %vm4198_vm6, %v5322_v38, %v5318_v63  ;;  %v5332_v30 = vrot.slane %v15024_v43, %v14427_v20  ;;  %v5392_v12 = vsel %vm4184_vm4, %v5391_v1, %v5387_v48  ;;  %v4124_v44 = vpop.permute.xlu1 %4123  ;;  %v4133_v21 = vpop.permute.xlu0 %4132  ;;  %v18924_v38 = vld [vmem:[#allocation277_spill] sm:$0xff] }
 0x698   : > { %v5179_v57 = vrot.slane %v18923_v28, %v14414_v23  ;;  %v5170_v55 = vsel %vm4205_vm7, %v5169_v19, %v5165_v16  ;;  %v5327_v11 = vrot.slane %v14969_v3, %v14397_v45  ;;  %v5396_v59 = vrot.slane %v4121_v9, %v14390_v29  ;;  %v18925_v16 = vld [vmem:[#allocation50_spill] sm:$0xff] }
 0x699   : > { %v5175_v25 = vsel %vm4212_vm8, %v5174_v26, %v5170_v55  ;;  %v5184_v13 = vrot.slane %v18924_v38, %v14451_v27  ;;  %v5249_v43 = vsel %vm4205_vm7, %v5248_v35, %v5244_v42  ;;  %v5401_v33 = vrot.slane %v4124_v44, %v14402_v7  ;;  %v18926_v42 = vld [vmem:[#allocation64_spill] sm:$0xff] }
 0x69a   : > { %v5254_v47 = vsel %vm4212_vm8, %v5253_v15, %v5249_v43  ;;  %v5263_v19 = vrot.slane %v14816_v17, %v14451_v27  ;;  %v5328_v3 = vsel %vm4205_vm7, %v5327_v11, %v5323_v6  ;;  %v5397_v9 = vsel %vm4191_vm5, %v5396_v59, %v5392_v12  ;;  %v18929_v59 = vld [vmem:[#allocation310_spill] sm:$0xff]  ;;  %v18930_v43 = vld [vmem:[#allocation288_spill] sm:$0xff] }
 0x69b   : > { %v5258_v37 = vrot.slane %v18925_v16, %v14414_v23  ;;  %v5333_v26 = vsel %vm4212_vm8, %v5332_v30, %v5328_v3  ;;  %v5342_v52 = vrot.slane %v15051_v36, %v14451_v27  ;;  %v5402_v1 = vsel %vm4198_vm6, %v5401_v33, %v5397_v9  ;;  %v4130_v2 = vpop.permute.xlu1 %4129  ;;  %v4139_v35 = vpop.permute.xlu0 %4138  ;;  %v18927_v30 = vld [vmem:[#allocation36_spill] sm:$0xff] }
 0x69c   : > { %v5189_v15 = vrot.slane %v18926_v42, %v14433_v61  ;;  %v5180_v63 = vsel %vm4219_vm9, %v5179_v57, %v5175_v25  ;;  %v5337_v17 = vrot.slane %v14998_v58, %v14414_v23  ;;  %v5406_v48 = vrot.slane %v4127_v56, %v14397_v45  ;;  %v18928_v57 = vld [vmem:[#allocation282_spill] sm:$0xff] }
 0x69d   : > { %v5185_v6 = vsel %vm17443_vm10, %v5184_v13, %v5180_v63  ;;  %v5194_v12 = vrot.slane %v18927_v30, %v14484_v5  ;;  %v5259_v36 = vsel %vm4219_vm9, %v5258_v37, %v5254_v47  ;;  %v5411_v28 = vrot.slane %v4130_v2, %v14427_v20  ;;  %v18933_v63 = vld [vmem:[#allocation294_spill] sm:$0xff]  ;;  %v18934_v2 = vld [vmem:[#allocation68_spill] sm:$0xff] }
 0x69e   : > { %v5264_v55 = vsel %vm17443_vm10, %v5263_v19, %v5259_v36  ;;  %v5273_v11 = vrot.slane %v18928_v57, %v14484_v5  ;;  %v5338_v58 = vsel %vm4219_vm9, %v5337_v17, %v5333_v26  ;;  %v5407_v56 = vsel %vm4205_vm7, %v5406_v48, %v5402_v1  ;;  %v18931_v19 = vld [vmem:[#allocation52_spill] sm:$0xff] }
 0x69f   : > { %v5268_v44 = vrot.slane %v18929_v59, %v14433_v61  ;;  %v5343_v25 = vsel %vm17443_vm10, %v5342_v52, %v5338_v58  ;;  %v5352_v38 = vrot.slane %v15086_v53, %v14484_v5  ;;  %v5412_v13 = vsel %vm4212_vm8, %v5411_v28, %v5407_v56  ;;  %v4136_v16 = vpop.permute.xlu1 %4135  ;;  %v18932_v26 = vld [vmem:[#allocation48_spill] sm:$0xff]  ;;  %v4145_v42 = vpop.permute.xlu0 %4144  ;;  %v18935_v28 = vld [vmem:[#allocation234_spill] sm:$0xff] }
 0x6a0   : > { %v5199_v33 = vrot.slane %v18930_v43, %v14464_v51  ;;  %v5190_v47 = vsel %vm17441_vm11, %v5189_v15, %v5185_v6  ;;  %v5347_v3 = vrot.slane %v18931_v19, %v14433_v61  ;;  %v5416_v9 = vrot.slane %v4133_v21, %v14414_v23 }
 0x6a1   : > { %vm5456_vm1 = vcmask 1045509   ;;  %v5195_v37 = vsel %vm17442_vm12, %v5194_v12, %v5190_v47  ;;  %v5204_v52 = vrot.slane %v18932_v26, %v14521_v41  ;;  %v5269_v53 = vsel %vm17441_vm11, %v5268_v44, %v5264_v55 }
 0x6a2   : > { %v5421_v1 = vrot.slane %v4136_v16, %v14451_v27  ;;  %vm5458_vm0 = vcmask 1046534   ;;  %v5274_v15 = vsel %vm17442_vm12, %v5273_v11, %v5269_v53  ;;  %v5283_v17 = vrot.slane %v18933_v63, %v14521_v41 }
 0x6a3   : > { %v5348_v21 = vsel %vm17441_vm11, %v5347_v3, %v5343_v25  ;;  %v5417_v48 = vsel %vm4219_vm9, %v5416_v9, %v5412_v13  ;;  %v5278_v6 = vrot.slane %v18934_v2, %v14464_v51  ;;  %v5362_v12 = vrot.slane %v15118_v4, %v14521_v41  ;;  %v4142_v56 = vpop.permute.xlu1 %4141 }
 0x6a4   : > { %v5353_v30 = vsel %vm17442_vm12, %v5352_v38, %v5348_v21  ;;  %v5422_v36 = vsel %vm17443_vm10, %v5421_v1, %v5417_v48  ;;  %v5130_v55 = vrot.slane %v18935_v28, %v14503_v0  ;;  %v5121_v57 = vsel %vm4247_vm13, %v5120_v46, %v15146_v60  ;;  %v18947_v28 = vld [vmem:[#allocation415_spill] sm:$0xff] }
 0x6a5   : > { %v5357_v11 = vrot.slane %v15053_v18, %v14464_v51  ;;  %v5426_v58 = vrot.slane %v4139_v35, %v14433_v61  ;;  %v5126_v4 = vsel %vm4254_vm14, %v5125_v22, %v5121_v57  ;;  %v5200_v59 = vsel %vm4247_vm13, %v5199_v33, %v5195_v37  ;;  %v18936_v35 = vld [vmem:[#allocation290_spill] sm:$0xff]  ;;  %v4151_v33 = vpop.permute.xlu0 %4150  ;;  %v18948_v57 = vld [vmem:[#allocation408_spill] sm:$0xff] }
 0x6a6   : > { %v5279_v44 = vsel %vm4247_vm13, %v5278_v6, %v5274_v15  ;;  %v5431_v25 = vrot.slane %v4142_v56, %v14484_v5  ;;  %v5205_v10 = vsel %vm4254_vm14, %v5204_v52, %v5200_v59  ;;  %v5209_v38 = vrot.slane %v18936_v35, %v14503_v0  ;;  %v18952_v35 = vld [vmem:[#allocation412_spill] sm:$0xff] }
 0x6a7   : > { %v5284_v46 = vsel %vm4254_vm14, %v5283_v17, %v5279_v44  ;;  %v5358_v18 = vsel %vm4247_vm13, %v5357_v11, %v5353_v30  ;;  %v5427_v60 = vsel %vm17441_vm11, %v5426_v58, %v5422_v36  ;;  %v5288_v22 = vrot.slane %v18937_v34, %v14503_v0  ;;  %v4148_v37 = vpop.permute.xlu1 %4147  ;;  %v18945_v30 = vld [vmem:[#allocation172_spill] sm:$0xff] }
 0x6a8   : > { %v5363_v13 = vsel %vm4254_vm14, %v5362_v12, %v5358_v18  ;;  %v5432_v43 = vsel %vm17442_vm12, %v5431_v25, %v5427_v60  ;;  %v18938_v47 = vrot.slane %v18900_v50, %v14503_v0  ;;  %vm18939_vm2 = vcmask 1048512   ;;  %v18950_v25 = vld [vmem:[#allocation409_spill] sm:$0xff] }
 0x6a9   : > { %vm18940_vm15 = vmmov %vm18939_vm2  ;;  %v5367_v9 = vrot.slane %v15088_v49, %v14503_v0  ;;  %v5436_v16 = vrot.slane %v4145_v42, %v14464_v51  ;;  %vm18941_vm11 = vcmask 1044484   ;;  %v5441_v50 = vrot.slane %v4148_v37, %v14521_v41  ;;  %v18951_v18 = vld [vmem:[#allocation421_spill] sm:$0xff] }
 0x6aa   : > { %v5052_v19 = vsel %vm18939_vm2, %v18938_v47, %v15136_v54  ;;  %v5131_v3 = vsel %vm18940_vm15, %v5130_v55, %v5126_v4  ;;  %v5465_v26 = vsel %vm18941_vm11, %v15105_v14, %v15098_v31  ;;  %vm18942_vm12 = vmmov %vm18939_vm2  ;;  %v5446_v54 = vrot.slane %v4151_v33, %v14503_v0  ;;  %v18949_v4 = vld [vmem:[#allocation410_spill] sm:$0xff]  ;;  %v18954_v47 = vld [vmem:[#allocation411_spill] sm:$0xff] }
 0x6ab   : > { %v5210_v52 = vsel %vm18942_vm12, %v5209_v38, %v5205_v10  ;;  %vm18943_vm10 = vmmov %vm18939_vm2  ;;  %v5437_v1 = vsel %vm4247_vm13, %v5436_v16, %v5432_v43  ;;  %v5368_v15 = vsel %vm18939_vm2, %v5367_v9, %v5363_v13  ;;  %vm5460_vm15 = vcmask 1047559   ;;  %v18955_v16 = vld [vmem:[#allocation425_spill] sm:$0xff] }
 0x6ac   : > { %v5289_v53 = vsel %vm18943_vm10, %v5288_v22, %v5284_v46  ;;  %v5442_v49 = vsel %vm4254_vm14, %v5441_v50, %v5437_v1  ;;  %v5457_v42 = vsel %vm5456_vm1, %v5052_v19, %v15101_v8  ;;  %v5466_v31 = vsel %vm5456_vm1, %v5131_v3, %v5465_v26  ;;  %vm18944_vm11 = vmmov %vm18939_vm2  ;;  %v18946_v8 = vld [vmem:[#allocation407_spill] sm:$0xff] }
 0x6ad   : > { %v5447_v14 = vsel %vm18944_vm11, %v5446_v54, %v5442_v49  ;;  %v5459_v63 = vsel %vm5458_vm0, %v5210_v52, %v5457_v42  ;;  %v5467_v17 = vsel %vm5458_vm0, %v5289_v53, %v5466_v31  ;;  %v18953_v22 = vld [vmem:[#allocation423_spill] sm:$0xff]  ;;  %v18956_v52 = vld [vmem:[#allocation414_spill] sm:$0xff]  ;;  %v18958_v42 = vld [vmem:[#allocation413_spill] sm:$0xff]  ;;  %vm19052_vm10 = vcmask 130112  }
 0x6ae   : > { %v5461_v21 = vsel %vm5460_vm15, %v5368_v15, %v5459_v63  ;;  %v5468_v48 = vsel %vm5460_vm15, %v5447_v14, %v5467_v17  ;;  %v18957_v1 = vld [vmem:[#allocation427_spill] sm:$0xff]  ;;  %v18959_v17 = vld [vmem:[#allocation429_spill] sm:$0xff]  ;;  %vm19054_vm12 = vcmask 195712   ;;  %vm19060_vm2 = vmmov %vm19052_vm10 }
 0x6af   : > { %v5471_v2 = vmax.f32 %v5461_v21, %v5468_v48  ;;  %vm19061_vm11 = vmmov %vm19054_vm12 }
 0x6b1   : > { %5472 = vmax.xlane.f32.xlu1 %v5471_v2  ;;  %v18960_v2 = vld [vmem:[#allocation416_spill] sm:$0xff] }
 0x73a   : > { %v15333_v6 = vpop.xlane.xlu1 %5472 }
 0x73b   : > { %v15337_v12 = vrot.slane %v15333_v6, %v18945_v30 }
 0x73d   : > { %v5515_v36 = vsub.f32 %v18946_v8, %v15337_v12  ;;  %v5524_v55 = vsub.f32 %v18947_v28, %v15337_v12  ;;  %v5516_v11 = vsub.f32 %v18948_v57, %v15337_v12  ;;  %v5517_v59 = vsub.f32 %v18949_v4, %v15337_v12  ;;  %v18961_v28 = vld [vmem:[#allocation431_spill] sm:$0xff] }
 0x73e   : > { %v5518_v10 = vsub.f32 %v18950_v25, %v15337_v12  ;;  %v5530_v60 = vsub.f32 %v18951_v18, %v15337_v12  ;;  %v5519_v38 = vsub.f32 %v18952_v35, %v15337_v12  ;;  %v5532_v13 = vsub.f32 %v18953_v22, %v15337_v12  ;;  %v18964_v18 = vld [vmem:[#allocation417_spill] sm:$0xff] }
 0x73f   : > { %v5789_v58 = vmul.f32 1.442695, %v5524_v55  ;;  %v5771_v56 = vmul.f32 1.442695, %v5515_v36  ;;  %v5773_v44 = vmul.f32 1.442695, %v5516_v11  ;;  %v5520_v19 = vsub.f32 %v18954_v47, %v15337_v12 }
 0x740   : > { %v5775_v46 = vmul.f32 1.442695, %v5517_v59  ;;  %v5777_v34 = vmul.f32 1.442695, %v5518_v10  ;;  %v5801_v43 = vmul.f32 1.442695, %v5530_v60  ;;  %v5534_v37 = vsub.f32 %v18955_v16, %v15337_v12 }
 0x741   : > { %9764 = vpow2.f32 %v5789_v58  ;;  %v5779_v3 = vmul.f32 1.442695, %v5519_v38  ;;  %v5805_v26 = vmul.f32 1.442695, %v5532_v13  ;;  %v5521_v53 = vsub.f32 %v18956_v52, %v15337_v12  ;;  %v18962_v58 = vld [vmem:[#allocation418_spill] sm:$0xff] }
 0x742   : > { %9766 = vpow2.f32 %v5771_v56  ;;  %v5781_v50 = vmul.f32 1.442695, %v5520_v19  ;;  %v5536_v15 = vsub.f32 %v18957_v1, %v15337_v12  ;;  %v5809_v49 = vmul.f32 1.442695, %v5534_v37  ;;  %v18968_v37 = vld [vmem:[#allocation7_spill] sm:$0xff] }
 0x743   : > { %9768 = vpow2.f32 %v5773_v44  ;;  %v5522_v31 = vsub.f32 %v18958_v42, %v15337_v12  ;;  %v5783_v14 = vmul.f32 1.442695, %v5521_v53  ;;  %v5538_v21 = vsub.f32 %v18959_v17, %v15337_v12  ;;  %v18963_v44 = vld [vmem:[#allocation5_spill] sm:$0xff] }
 0x744   : > { %9770 = vpow2.f32 %v5775_v46  ;;  %v5813_v48 = vmul.f32 1.442695, %v5536_v15  ;;  %v5523_v30 = vsub.f32 %v18960_v2, %v15337_v12  ;;  %v5540_v55 = vsub.f32 %v18961_v28, %v15337_v12  ;;  %v18972_v2 = vld [vmem:[#allocation9_spill] sm:$0xff]  ;;  %v18973_v28 = vld [vmem:[#allocation424_spill] sm:$0xff] }
 0x745   : > { %9772 = vpow2.f32 %v5777_v34  ;;  %v5785_v8 = vmul.f32 1.442695, %v5522_v31  ;;  %v5817_v57 = vmul.f32 1.442695, %v5538_v21  ;;  %v5525_v56 = vsub.f32 %v18962_v58, %v15337_v12  ;;  %v18965_v34 = vld [vmem:[#allocation6_spill] sm:$0xff] }
 0x746   : > { %9774 = vpow2.f32 %v5801_v43  ;;  %v5787_v4 = vmul.f32 1.442695, %v5523_v30  ;;  %v5542_v25 = vsub.f32 %v18963_v44, %v15337_v12  ;;  %v5821_v10 = vmul.f32 1.442695, %v5540_v55  ;;  %v18974_v58 = vld [vmem:[#allocation10_spill] sm:$0xff] }
 0x747   : > { %9776 = vpow2.f32 %v5779_v3  ;;  %v5526_v60 = vsub.f32 %v18964_v18, %v15337_v12  ;;  %v5791_v35 = vmul.f32 1.442695, %v5525_v56  ;;  %v5544_v22 = vsub.f32 %v18965_v34, %v15337_v12  ;;  %v18975_v44 = vld [vmem:[#allocation426_spill] sm:$0xff]  ;;  %v18976_v18 = vld [vmem:[#allocation11_spill] sm:$0xff]  ;;  %v18977_v34 = vld [vmem:[#allocation428_spill] sm:$0xff] }
 0x748   : > { %9778 = vpow2.f32 %v5805_v26  ;;  %v5825_v13 = vmul.f32 1.442695, %v5542_v25  ;;  %v5546_v26 = vsub.f32 %v18968_v37, %v15337_v12  ;;  %v5531_v55 = vsub.f32 %v18973_v28, %v15337_v12 }
 0x749   : > { %9780 = vpow2.f32 %v5781_v50  ;;  %v5793_v19 = vmul.f32 1.442695, %v5526_v60  ;;  %v5829_v52 = vmul.f32 1.442695, %v5544_v22  ;;  %v18969_v50 = vld [vmem:[#allocation419_spill] sm:$0xff]  ;;  %v5533_v25 = vsub.f32 %v18975_v44, %v15337_v12 }
 0x74a   : > { %9782 = vpow2.f32 %v5809_v49  ;;  %v18970_v49 = vld [vmem:[#allocation8_spill] sm:$0xff]  ;;  %v5833_v31 = vmul.f32 1.442695, %v5546_v26  ;;  %v5535_v22 = vsub.f32 %v18977_v34, %v15337_v12 }
 0x74b   : > { %9784 = vpow2.f32 %v5783_v14 }
 0x74c   : > { %9786 = vpow2.f32 %v5813_v48  ;;  %v5811_v26 = vmul.f32 1.442695, %v5535_v22 }
 0x74d   : > { %9788 = vpow2.f32 %v5785_v8 }
 0x74e   : > { %v9765_v33 = vpop.eup %9764  ;;  %9790 = vpow2.f32 %v5817_v57 }
 0x74f   : > { %v9767_v9 = vpop.eup %9766  ;;  %6567 = vperm.xlu1 %9763, %v9765_v33   ;;  %9792 = vpow2.f32 %v5787_v4  ;;  %v18966_v33 = vld [vmem:[#allocation420_spill] sm:$0xff] }
 0x750   : > { %6540 = vperm.xlu0 %9762, %v9767_v9   ;;  %v9769_v54 = vpop.eup %9768  ;;  %9794 = vpow2.f32 %v5821_v10  ;;  %v5527_v47 = vsub.f32 %v18966_v33, %v15337_v12  ;;  %v18967_v9 = vld [vmem:[#allocation205_spill] sm:$0xff]  ;;  %v5803_v10 = vmul.f32 1.442695, %v5531_v55  ;;  %v18978_v33 = vld [vmem:[#allocation12_spill] sm:$0xff] }
 0x751   : > { %v9771_v63 = vpop.eup %9770  ;;  %9796 = vpow2.f32 %v5791_v35  ;;  %v15383_v16 = vrot.slane %v15333_v6, %v18967_v9  ;;  %v18979_v9 = vld [vmem:[#allocation430_spill] sm:$0xff] }
 0x752   : > { %v9773_v36 = vpop.eup %9772  ;;  %9798 = vpow2.f32 %v5825_v13  ;;  %v5795_v1 = vmul.f32 1.442695, %v5527_v47  ;;  %v5807_v13 = vmul.f32 1.442695, %v5533_v25  ;;  %v5537_v37 = vsub.f32 %v18979_v9, %v15337_v12 }
 0x753   : > { %v9775_v11 = vpop.eup %9774  ;;  %9800 = vpow2.f32 %v5793_v19  ;;  %v5548_v42 = vsub.f32 %v18970_v49, %v15383_v16  ;;  %v5550_v30 = vsub.f32 %v18972_v2, %v15383_v16  ;;  %v5552_v56 = vsub.f32 %v18974_v58, %v15383_v16 }
 0x754   : > { %6543 = vperm.xlu0 %9762, %v9769_v54   ;;  %6585 = vperm.xlu1 %9763, %v9775_v11   ;;  %v9777_v59 = vpop.eup %9776  ;;  %v5528_v54 = vsub.f32 %v18969_v50, %v15337_v12  ;;  %9802 = vpow2.f32 %v5829_v52  ;;  %v5554_v60 = vsub.f32 %v18976_v18, %v15383_v16  ;;  %v5556_v47 = vsub.f32 %v18978_v33, %v15383_v16 }
 0x755   : > { %v9779_v46 = vpop.eup %9778  ;;  %9804 = vpow2.f32 %v5795_v1  ;;  %v5837_v8 = vmul.f32 1.442695, %v5548_v42  ;;  %v5841_v4 = vmul.f32 1.442695, %v5550_v30  ;;  %v5845_v35 = vmul.f32 1.442695, %v5552_v56 }
 0x756   : > { %v9781_v38 = vpop.eup %9780  ;;  %v5797_v21 = vmul.f32 1.442695, %v5528_v54  ;;  %9806 = vpow2.f32 %v5833_v31  ;;  %v5849_v19 = vmul.f32 1.442695, %v5554_v60  ;;  %v5853_v54 = vmul.f32 1.442695, %v5556_v47 }
 0x757   : > { %v9783_v43 = vpop.eup %9782  ;;  %v5815_v42 = vmul.f32 1.442695, %v5537_v37 }
 0x758   : > { %6546 = vperm.xlu0 %9762, %v9771_v63   ;;  %6591 = vperm.xlu1 %9763, %v9779_v46   ;;  %v9785_v3 = vpop.eup %9784  ;;  %v18971_v63 = vld [vmem:[#allocation422_spill] sm:$0xff]  ;;  %9808 = vpow2.f32 %v5797_v21 }
 0x759   : > { %v9787_v53 = vpop.eup %9786  ;;  %v5529_v17 = vsub.f32 %v18971_v63, %v15337_v12  ;;  %9810 = vpow2.f32 %v5837_v8 }
 0x75a   : > { %v9789_v15 = vpop.eup %9788 }
 0x75b   : > { %v9791_v14 = vpop.eup %9790  ;;  %v5799_v57 = vmul.f32 1.442695, %v5529_v17 }
 0x75c   : > { %6549 = vperm.xlu0 %9762, %v9773_v36   ;;  %6597 = vperm.xlu1 %9763, %v9783_v43   ;;  %v9793_v48 = vpop.eup %9792 }
 0x75d   : > { %v9795_v36 = vpop.eup %9794  ;;  %9812 = vpow2.f32 %v5799_v57 }
 0x75e   : > { %v9797_v11 = vpop.eup %9796  ;;  %9814 = vpow2.f32 %v5841_v4 }
 0x75f   : > { %9816 = vpow2.f32 %v5803_v10 }
 0x760   : > { %6552 = vperm.xlu0 %9762, %v9777_v59   ;;  %6603 = vperm.xlu1 %9763, %v9787_v53   ;;  %v9799_v59 = vpop.eup %9798  ;;  %9818 = vpow2.f32 %v5845_v35  ;;  %v18980_v53 = vld [vmem:[#allocation13_spill] sm:$0xff] }
 0x761   : > { %v9801_v46 = vpop.eup %9800  ;;  %9820 = vpow2.f32 %v5807_v13  ;;  %v5558_v50 = vsub.f32 %v18980_v53, %v15383_v16 }
 0x762   : > { %9822 = vpow2.f32 %v5849_v19 }
 0x763   : > { %9824 = vpow2.f32 %v5811_v26  ;;  %v5857_v17 = vmul.f32 1.442695, %v5558_v50  ;;  %v18991_v26 = vld [vmem:[#allocation247_spill] sm:$0xff] }
 0x764   : > { %6555 = vperm.xlu0 %9762, %v9781_v38   ;;  %6609 = vperm.xlu1 %9763, %v9791_v14   ;;  %v9803_v38 = vpop.eup %9802  ;;  %v18982_v14 = vld [vmem:[#allocation248_spill] sm:$0xff]  ;;  %9826 = vpow2.f32 %v5853_v54  ;;  %v18992_v54 = vld [vmem:[#allocation261_spill] sm:$0xff] }
 0x765   : > { %v9805_v43 = vpop.eup %9804  ;;  %v5560_v63 = vsub.f32 %v18982_v14, %v15383_v16  ;;  %9828 = vpow2.f32 %v5815_v42  ;;  %v18993_v42 = vld [vmem:[#allocation243_spill] sm:$0xff] }
 0x766   : > { %9830 = vpow2.f32 %v5857_v17  ;;  %v18994_v17 = vld [vmem:[#allocation263_spill] sm:$0xff] }
 0x767   : > { %v5861_v55 = vmul.f32 1.442695, %v5560_v63 }
 0x768   : > { %6558 = vperm.xlu0 %9762, %v9785_v3   ;;  %6615 = vperm.xlu1 %9763, %v9795_v36   ;;  %v9807_v3 = vpop.eup %9806  ;;  %v18984_v36 = vld [vmem:[#allocation16_spill] sm:$0xff] }
 0x769   : > { %v9809_v52 = vpop.eup %9808  ;;  %v5562_v28 = vsub.f32 %v18984_v36, %v15383_v16 }
 0x76a   : > { %v9811_v1 = vpop.eup %9810 }
 0x76b   : > { %v9813_v31 = vpop.eup %9812  ;;  %v5865_v25 = vmul.f32 1.442695, %v5562_v28 }
 0x76c   : > { %6561 = vperm.xlu0 %9762, %v9789_v15   ;;  %6621 = vperm.xlu1 %9763, %v9799_v59   ;;  %v18981_v15 = vld [vmem:[#allocation239_spill] sm:$0xff]  ;;  %v9815_v21 = vpop.eup %9814 }
 0x76d   : > { %v5539_v49 = vsub.f32 %v18981_v15, %v15337_v12  ;;  %v9817_v8 = vpop.eup %9816  ;;  %v18986_v59 = vld [vmem:[#allocation255_spill] sm:$0xff] }
 0x76e   : > { %v9819_v57 = vpop.eup %9818  ;;  %v5564_v44 = vsub.f32 %v18986_v59, %v15383_v16 }
 0x76f   : > { %v5819_v30 = vmul.f32 1.442695, %v5539_v49  ;;  %v9821_v4 = vpop.eup %9820 }
 0x770   : > { %6564 = vperm.xlu0 %9762, %v9793_v48   ;;  %6627 = vperm.xlu1 %9763, %v9803_v38   ;;  %v18983_v48 = vld [vmem:[#allocation242_spill] sm:$0xff]  ;;  %v9823_v10 = vpop.eup %9822  ;;  %v18988_v38 = vld [vmem:[#allocation257_spill] sm:$0xff]  ;;  %v5869_v22 = vmul.f32 1.442695, %v5564_v44 }
 0x771   : > { %v5541_v2 = vsub.f32 %v18983_v48, %v15337_v12  ;;  %9832 = vpow2.f32 %v5819_v30  ;;  %v9825_v35 = vpop.eup %9824  ;;  %v5566_v34 = vsub.f32 %v18988_v38, %v15383_v16  ;;  %v18995_v30 = vld [vmem:[#allocation249_spill] sm:$0xff] }
 0x772   : > { %9834 = vpow2.f32 %v5861_v55  ;;  %v9827_v13 = vpop.eup %9826  ;;  %v18996_v55 = vld [vmem:[#allocation265_spill] sm:$0xff] }
 0x773   : > { %v5823_v56 = vmul.f32 1.442695, %v5541_v2  ;;  %v9829_v19 = vpop.eup %9828  ;;  %v5873_v9 = vmul.f32 1.442695, %v5566_v34 }
 0x774   : > { %6570 = vperm.xlu0 %9762, %v9797_v11   ;;  %6633 = vperm.xlu1 %9763, %v9807_v3   ;;  %v18985_v11 = vld [vmem:[#allocation240_spill] sm:$0xff]  ;;  %v9831_v37 = vpop.eup %9830 }
 0x775   : > { %v5543_v58 = vsub.f32 %v18985_v11, %v15337_v12  ;;  %9836 = vpow2.f32 %v5823_v56  ;;  %v18997_v56 = vld [vmem:[#allocation245_spill] sm:$0xff] }
 0x776   : > { %9838 = vpow2.f32 %v5865_v25  ;;  %v18998_v25 = vld [vmem:[#allocation29_spill] sm:$0xff] }
 0x777   : > { %v5827_v60 = vmul.f32 1.442695, %v5543_v58 }
 0x778   : > { %6573 = vperm.xlu0 %9762, %v9801_v46   ;;  %6639 = vperm.xlu1 %9763, %v9811_v1   ;;  %v18987_v46 = vld [vmem:[#allocation244_spill] sm:$0xff]  ;;  %v5570_v1 = vsub.f32 %v18992_v54, %v15383_v16  ;;  %v19004_v54 = vld [vmem:[#allocation17_spill] sm:$0xff] }
 0x779   : > { %v5545_v18 = vsub.f32 %v18987_v46, %v15337_v12  ;;  %9840 = vpow2.f32 %v5827_v60  ;;  %v18990_v12 = vld [vmem:[#allocation259_spill] sm:$0xff]  ;;  %v18999_v60 = vld [vmem:[#allocation14_spill] sm:$0xff] }
 0x77a   : > { %v5568_v3 = vsub.f32 %v18990_v12, %v15383_v16  ;;  %9842 = vpow2.f32 %v5869_v22  ;;  %v5881_v48 = vmul.f32 1.442695, %v5570_v1  ;;  %v19000_v22 = vld [vmem:[#allocation238_spill] sm:$0xff]  ;;  %v19002_v12 = vld [vmem:[#allocation253_spill] sm:$0xff]  ;;  %v5561_v1 = vsub.f32 %v19004_v54, %v15383_v16 }
 0x77b   : > { %v5831_v47 = vmul.f32 1.442695, %v5545_v18 }
 0x77c   : > { %6576 = vperm.xlu0 %9762, %v9805_v43   ;;  %6645 = vperm.xlu1 %9763, %v9815_v21   ;;  %v18989_v43 = vld [vmem:[#allocation241_spill] sm:$0xff]  ;;  %v5877_v15 = vmul.f32 1.442695, %v5568_v3  ;;  %v5572_v21 = vsub.f32 %v18994_v17, %v15383_v16  ;;  %v5559_v3 = vsub.f32 %v19002_v12, %v15383_v16  ;;  %v19006_v17 = vld [vmem:[#allocation19_spill] sm:$0xff] }
 0x77d   : > { %v5547_v33 = vsub.f32 %v18989_v43, %v15383_v16  ;;  %9844 = vpow2.f32 %v5831_v47  ;;  %v19001_v43 = vld [vmem:[#allocation31_spill] sm:$0xff] }
 0x77e   : > { %v9833_v50 = vpop.eup %9832  ;;  %9846 = vpow2.f32 %v5873_v9  ;;  %v5885_v11 = vmul.f32 1.442695, %v5572_v21  ;;  %v5563_v21 = vsub.f32 %v19006_v17, %v15383_v16 }
 0x77f   : > { %v5835_v53 = vmul.f32 1.442695, %v5547_v33  ;;  %v9835_v49 = vpop.eup %9834  ;;  %v5578_v33 = vsub.f32 %v19001_v43, %v15383_v16 }
 0x780   : > { %6579 = vperm.xlu0 %9762, %v9809_v52   ;;  %6651 = vperm.xlu1 %9763, %v9819_v57   ;;  %v5549_v52 = vsub.f32 %v18991_v26, %v15383_v16  ;;  %v5574_v57 = vsub.f32 %v18996_v55, %v15383_v16  ;;  %v19003_v26 = vld [vmem:[#allocation33_spill] sm:$0xff] }
 0x781   : > { %9848 = vpow2.f32 %v5835_v53  ;;  %v5897_v53 = vmul.f32 1.442695, %v5578_v33  ;;  %v19008_v55 = vld [vmem:[#allocation21_spill] sm:$0xff] }
 0x782   : > { %v5839_v14 = vmul.f32 1.442695, %v5549_v52  ;;  %v9837_v63 = vpop.eup %9836  ;;  %9850 = vpow2.f32 %v5877_v15  ;;  %v5889_v46 = vmul.f32 1.442695, %v5574_v57  ;;  %v5859_v15 = vmul.f32 1.442695, %v5559_v3 }
 0x783   : > { %v9839_v2 = vpop.eup %9838  ;;  %v5565_v57 = vsub.f32 %v19008_v55, %v15383_v16  ;;  %v19019_v55 = vld [vmem:[#allocation49_spill] sm:$0xff] }
 0x784   : > { %6582 = vperm.xlu0 %9762, %v9813_v31   ;;  %6657 = vperm.xlu1 %9763, %v9823_v10   ;;  %v5551_v31 = vsub.f32 %v18993_v42, %v15383_v16  ;;  %9852 = vpow2.f32 %v5839_v14  ;;  %v5576_v10 = vsub.f32 %v18998_v25, %v15383_v16  ;;  %v19005_v42 = vld [vmem:[#allocation35_spill] sm:$0xff] }
 0x785   : > { %9854 = vpow2.f32 %v5881_v48  ;;  %v5863_v48 = vmul.f32 1.442695, %v5561_v1  ;;  %v19010_v25 = vld [vmem:[#allocation23_spill] sm:$0xff] }
 0x786   : > { %v5843_v36 = vmul.f32 1.442695, %v5551_v31  ;;  %v9841_v28 = vpop.eup %9840  ;;  %v5893_v47 = vmul.f32 1.442695, %v5576_v10  ;;  %v5567_v10 = vsub.f32 %v19010_v25, %v15383_v16 }
 0x787   : > { %v9843_v58 = vpop.eup %9842 }
 0x788   : > { %6588 = vperm.xlu0 %9762, %v9817_v8   ;;  %6663 = vperm.xlu1 %9763, %v9827_v13   ;;  %v5553_v8 = vsub.f32 %v18995_v30, %v15383_v16  ;;  %9856 = vpow2.f32 %v5843_v36  ;;  %v15451_v13 = vrot.slane %v15333_v6, %v19000_v22  ;;  %v19007_v30 = vld [vmem:[#allocation37_spill] sm:$0xff]  ;;  %v5875_v33 = vmul.f32 1.442695, %v5567_v10  ;;  %v19021_v10 = vld [vmem:[#allocation51_spill] sm:$0xff] }
 0x789   : > { %9858 = vpow2.f32 %v5885_v11  ;;  %v5867_v11 = vmul.f32 1.442695, %v5563_v21  ;;  %v19012_v22 = vld [vmem:[#allocation25_spill] sm:$0xff] }
 0x78a   : > { %v5847_v59 = vmul.f32 1.442695, %v5553_v8  ;;  %v9845_v44 = vpop.eup %9844  ;;  %v5580_v52 = vsub.f32 %v19003_v26, %v15451_v13  ;;  %v5582_v31 = vsub.f32 %v19005_v42, %v15451_v13  ;;  %v5584_v8 = vsub.f32 %v19007_v30, %v15451_v13 }
 0x78b   : > { %v9847_v18 = vpop.eup %9846  ;;  %v5569_v43 = vsub.f32 %v19012_v22, %v15383_v16 }
 0x78c   : > { %6594 = vperm.xlu0 %9762, %v9821_v4   ;;  %6669 = vperm.xlu1 %9763, %v9831_v37   ;;  %v5555_v4 = vsub.f32 %v18997_v56, %v15383_v16  ;;  %9860 = vpow2.f32 %v5847_v59  ;;  %v5901_v14 = vmul.f32 1.442695, %v5580_v52  ;;  %v5905_v36 = vmul.f32 1.442695, %v5582_v31  ;;  %v19009_v56 = vld [vmem:[#allocation39_spill] sm:$0xff] }
 0x78d   : > { %9862 = vpow2.f32 %v5889_v46  ;;  %v5909_v59 = vmul.f32 1.442695, %v5584_v8  ;;  %v5871_v46 = vmul.f32 1.442695, %v5565_v57  ;;  %v5879_v52 = vmul.f32 1.442695, %v5569_v43 }
 0x78e   : > { %v5851_v38 = vmul.f32 1.442695, %v5555_v4  ;;  %v9849_v34 = vpop.eup %9848  ;;  %v5586_v4 = vsub.f32 %v19009_v56, %v15451_v13  ;;  %v5596_v57 = vsub.f32 %v19019_v55, %v15451_v13  ;;  %v19020_v56 = vld [vmem:[#allocation266_spill] sm:$0xff] }
 0x790   : > { %6600 = vperm.xlu0 %9762, %v9825_v35   ;;  %6675 = vperm.xlu1 %9763, %v9835_v49   ;;  %v5557_v35 = vsub.f32 %v18999_v60, %v15383_v16  ;;  %9864 = vpow2.f32 %v5851_v38  ;;  %v19011_v60 = vld [vmem:[#allocation41_spill] sm:$0xff]  ;;  %v5913_v38 = vmul.f32 1.442695, %v5586_v4  ;;  %v5577_v4 = vsub.f32 %v19020_v56, %v15383_v16 }
 0x791   : > { %9866 = vpow2.f32 %v5893_v47 }
 0x792   : > { %v5855_v9 = vmul.f32 1.442695, %v5557_v35  ;;  %v5588_v35 = vsub.f32 %v19011_v60, %v15451_v13 }
 0x794   : > { %6606 = vperm.xlu0 %9762, %v9829_v19   ;;  %6681 = vperm.xlu1 %9763, %v9839_v2   ;;  %v9851_v19 = vpop.eup %9850  ;;  %9868 = vpow2.f32 %v5855_v9  ;;  %v5917_v3 = vmul.f32 1.442695, %v5588_v35  ;;  %v19022_v35 = vld [vmem:[#allocation268_spill] sm:$0xff] }
 0x795   : > { %v9853_v37 = vpop.eup %9852  ;;  %9870 = vpow2.f32 %v5897_v53 }
 0x796   : > { %9872 = vpow2.f32 %v5859_v15 }
 0x797   : > { %9874 = vpow2.f32 %v5901_v14 }
 0x798   : > { %6612 = vperm.xlu0 %9762, %v9833_v50   ;;  %6687 = vperm.xlu1 %9763, %v9843_v58   ;;  %v9855_v50 = vpop.eup %9854  ;;  %9876 = vpow2.f32 %v5863_v48 }
 0x799   : > { %v9857_v49 = vpop.eup %9856  ;;  %9878 = vpow2.f32 %v5905_v36 }
 0x79a   : > { %9880 = vpow2.f32 %v5867_v11 }
 0x79b   : > { %9882 = vpow2.f32 %v5909_v59 }
 0x79c   : > { %6618 = vperm.xlu0 %9762, %v9837_v63   ;;  %6693 = vperm.xlu1 %9763, %v9847_v18   ;;  %v9859_v63 = vpop.eup %9858  ;;  %9884 = vpow2.f32 %v5871_v46  ;;  %v5598_v46 = vsub.f32 %v19021_v10, %v15451_v13  ;;  %v19030_v10 = vld [vmem:[#allocation276_spill] sm:$0xff] }
 0x79d   : > { %v9861_v2 = vpop.eup %9860  ;;  %9886 = vpow2.f32 %v5913_v38  ;;  %v5579_v38 = vsub.f32 %v19022_v35, %v15451_v13 }
 0x79e   : > { %9888 = vpow2.f32 %v5875_v33  ;;  %v19023_v33 = vld [vmem:[#allocation53_spill] sm:$0xff] }
 0x79f   : > { %9890 = vpow2.f32 %v5917_v3  ;;  %v19024_v3 = vld [vmem:[#allocation270_spill] sm:$0xff] }
 0x7a0   : > { %6624 = vperm.xlu0 %9762, %v9841_v28   ;;  %6699 = vperm.xlu1 %9763, %v9851_v19   ;;  %v9863_v28 = vpop.eup %9862  ;;  %v19013_v19 = vld [vmem:[#allocation43_spill] sm:$0xff]  ;;  %9892 = vpow2.f32 %v5879_v52 }
 0x7a1   : > { %v9865_v58 = vpop.eup %9864  ;;  %v5590_v12 = vsub.f32 %v19013_v19, %v15451_v13  ;;  %v5937_v19 = vmul.f32 1.442695, %v5598_v46  ;;  %v5587_v46 = vsub.f32 %v19030_v10, %v15451_v13 }
 0x7a3   : > { %v5921_v1 = vmul.f32 1.442695, %v5590_v12 }
 0x7a4   : > { %6630 = vperm.xlu0 %9762, %v9845_v44   ;;  %6705 = vperm.xlu1 %9763, %v9855_v50   ;;  %v9867_v44 = vpop.eup %9866  ;;  %v19015_v50 = vld [vmem:[#allocation45_spill] sm:$0xff] }
 0x7a5   : > { %v9869_v18 = vpop.eup %9868  ;;  %v5592_v54 = vsub.f32 %v19015_v50, %v15451_v13  ;;  %9894 = vpow2.f32 %v5921_v1 }
 0x7a7   : > { %v5925_v21 = vmul.f32 1.442695, %v5592_v54 }
 0x7a8   : > { %6636 = vperm.xlu0 %9762, %v9849_v34   ;;  %6711 = vperm.xlu1 %9763, %v9859_v63   ;;  %v9871_v34 = vpop.eup %9870  ;;  %v19017_v63 = vld [vmem:[#allocation47_spill] sm:$0xff] }
 0x7a9   : > { %v9873_v47 = vpop.eup %9872  ;;  %v5594_v17 = vsub.f32 %v19017_v63, %v15451_v13 }
 0x7aa   : > { %v9875_v9 = vpop.eup %9874 }
 0x7ab   : > { %v9877_v53 = vpop.eup %9876  ;;  %v5929_v11 = vmul.f32 1.442695, %v5594_v17  ;;  %v19027_v17 = vld [vmem:[#allocation57_spill] sm:$0xff] }
 0x7ac   : > { %6642 = vperm.xlu0 %9762, %v9853_v37   ;;  %6717 = vperm.xlu1 %9763, %v9863_v28   ;;  %v19014_v37 = vld [vmem:[#allocation260_spill] sm:$0xff]  ;;  %v9879_v15 = vpop.eup %9878 }
 0x7ad   : > { %v5571_v26 = vsub.f32 %v19014_v37, %v15383_v16  ;;  %v9881_v14 = vpop.eup %9880  ;;  %v5899_v37 = vmul.f32 1.442695, %v5579_v38  ;;  %v19031_v38 = vld [vmem:[#allocation61_spill] sm:$0xff] }
 0x7ae   : > { %v9883_v48 = vpop.eup %9882 }
 0x7af   : > { %v5883_v31 = vmul.f32 1.442695, %v5571_v26  ;;  %v9885_v36 = vpop.eup %9884 }
 0x7b0   : > { %6648 = vperm.xlu0 %9762, %v9857_v49   ;;  %6723 = vperm.xlu1 %9763, %v9867_v44   ;;  %v19016_v49 = vld [vmem:[#allocation262_spill] sm:$0xff] }
 0x7b1   : > { %v5573_v42 = vsub.f32 %v19016_v49, %v15383_v16  ;;  %9896 = vpow2.f32 %v5883_v31  ;;  %v19026_v49 = vld [vmem:[#allocation272_spill] sm:$0xff] }
 0x7b2   : > { %9898 = vpow2.f32 %v5925_v21  ;;  %v5604_v21 = vsub.f32 %v19027_v17, %v15451_v13 }
 0x7b3   : > { %v5887_v8 = vmul.f32 1.442695, %v5573_v42  ;;  %v5583_v42 = vsub.f32 %v19026_v49, %v15451_v13 }
 0x7b4   : > { %6654 = vperm.xlu0 %9762, %v9861_v2   ;;  %6729 = vperm.xlu1 %9763, %v9871_v34   ;;  %v19018_v2 = vld [vmem:[#allocation264_spill] sm:$0xff]  ;;  %v5895_v34 = vmul.f32 1.442695, %v5577_v4  ;;  %v5949_v4 = vmul.f32 1.442695, %v5604_v21 }
 0x7b5   : > { %v5575_v30 = vsub.f32 %v19018_v2, %v15383_v16  ;;  %9900 = vpow2.f32 %v5887_v8  ;;  %v19028_v8 = vld [vmem:[#allocation274_spill] sm:$0xff]  ;;  %v5907_v55 = vmul.f32 1.442695, %v5583_v42 }
 0x7b6   : > { %9902 = vpow2.f32 %v5929_v11 }
 0x7b7   : > { %v5891_v59 = vmul.f32 1.442695, %v5575_v30 }
 0x7b8   : > { %6660 = vperm.xlu0 %9762, %v9865_v58   ;;  %6735 = vperm.xlu1 %9763, %v9875_v9   ;;  %v9887_v58 = vpop.eup %9886  ;;  %v5581_v9 = vsub.f32 %v19024_v3, %v15451_v13  ;;  %v5915_v3 = vmul.f32 1.442695, %v5587_v46  ;;  %v19038_v46 = vld [vmem:[#allocation67_spill] sm:$0xff] }
 0x7b9   : > { %v9889_v44 = vpop.eup %9888  ;;  %9904 = vpow2.f32 %v5891_v59 }
 0x7ba   : > { %v9891_v60 = vpop.eup %9890  ;;  %v5903_v31 = vmul.f32 1.442695, %v5581_v9 }
 0x7bb   : > { %v9893_v16 = vpop.eup %9892 }
 0x7bc   : > { %6666 = vperm.xlu0 %9762, %v9869_v18   ;;  %6741 = vperm.xlu1 %9763, %v9879_v15   ;;  %v5933_v18 = vmul.f32 1.442695, %v5596_v57  ;;  %v9895_v12 = vpop.eup %9894 }
 0x7be   : > { %9906 = vpow2.f32 %v5933_v18  ;;  %v9897_v26 = vpop.eup %9896 }
 0x7bf   : > { %9908 = vpow2.f32 %v5895_v34  ;;  %v9899_v1 = vpop.eup %9898  ;;  %v5608_v34 = vsub.f32 %v19031_v38, %v15451_v13 }
 0x7c0   : > { %6672 = vperm.xlu0 %9762, %v9873_v47   ;;  %6747 = vperm.xlu1 %9763, %v9883_v48   ;;  %v5600_v47 = vsub.f32 %v19023_v33, %v15451_v13  ;;  %9910 = vpow2.f32 %v5937_v19  ;;  %v19032_v19 = vld [vmem:[#allocation278_spill] sm:$0xff] }
 0x7c1   : > { %9912 = vpow2.f32 %v5899_v37 }
 0x7c2   : > { %v5941_v54 = vmul.f32 1.442695, %v5600_v47 }
 0x7c4   : > { %6678 = vperm.xlu0 %9762, %v9877_v53   ;;  %6753 = vperm.xlu1 %9763, %v9887_v58   ;;  %v19025_v53 = vld [vmem:[#allocation55_spill] sm:$0xff]  ;;  %9914 = vpow2.f32 %v5941_v54 }
 0x7c5   : > { %v5602_v50 = vsub.f32 %v19025_v53, %v15451_v13  ;;  %9916 = vpow2.f32 %v5903_v31  ;;  %v19029_v58 = vld [vmem:[#allocation59_spill] sm:$0xff]  ;;  %v19035_v31 = vld [vmem:[#allocation281_spill] sm:$0xff] }
 0x7c6   : > { %v5606_v56 = vsub.f32 %v19029_v58, %v15451_v13  ;;  %v19037_v58 = vld [vmem:[#allocation283_spill] sm:$0xff] }
 0x7c7   : > { %v5945_v48 = vmul.f32 1.442695, %v5602_v50  ;;  %v19034_v50 = vld [vmem:[#allocation63_spill] sm:$0xff] }
 0x7c8   : > { %6684 = vperm.xlu0 %9762, %v9881_v14   ;;  %6759 = vperm.xlu1 %9763, %v9891_v60   ;;  %v9901_v14 = vpop.eup %9900  ;;  %v5610_v54 = vsub.f32 %v19034_v50, %v15451_v13 }
 0x7c9   : > { %v9903_v2 = vpop.eup %9902  ;;  %9918 = vpow2.f32 %v5945_v48 }
 0x7ca   : > { %v15501_v22 = vpop.permute.xlu1 %6567  ;;  %v9905_v57 = vpop.eup %9904  ;;  %9920 = vpow2.f32 %v5907_v55 }
 0x7cb   : > { %v15489_v28 = vpop.permute.xlu0 %6540  ;;  %v9907_v59 = vpop.eup %9906  ;;  %9922 = vpow2.f32 %v5949_v4 }
 0x7cc   : > { %6690 = vperm.xlu0 %9762, %v9885_v36   ;;  %6765 = vperm.xlu1 %9763, %v9895_v12   ;;  %v5585_v36 = vsub.f32 %v19028_v8, %v15451_v13  ;;  %v9909_v60 = vpop.eup %9908  ;;  %v5589_v12 = vsub.f32 %v19032_v19, %v15451_v13 }
 0x7cd   : > { %v9911_v33 = vpop.eup %9910 }
 0x7ce   : > { %v5911_v18 = vmul.f32 1.442695, %v5585_v36  ;;  %v9913_v9 = vpop.eup %9912  ;;  %v5919_v17 = vmul.f32 1.442695, %v5589_v12  ;;  %v5961_v36 = vmul.f32 1.442695, %v5610_v54 }
 0x7cf   : > { %v15495_v25 = vpop.permute.xlu0 %6543  ;;  %v15513_v15 = vpop.permute.xlu1 %6585 }
 0x7d0   : > { %6696 = vperm.xlu0 %9762, %v9889_v44   ;;  %6771 = vperm.xlu1 %9763, %v9899_v1   ;;  %9924 = vpow2.f32 %v5911_v18  ;;  %v5957_v1 = vmul.f32 1.442695, %v5608_v34 }
 0x7d1   : > { %v9915_v49 = vpop.eup %9914 }
 0x7d2   : > { %v9917_v21 = vpop.eup %9916 }
 0x7d3   : > { %v15503_v43 = vpop.permute.xlu0 %6546  ;;  %v15521_v30 = vpop.permute.xlu1 %6591 }
 0x7d4   : > { %6702 = vperm.xlu0 %9762, %v9893_v16   ;;  %6777 = vperm.xlu1 %9763, %v9903_v2   ;;  %v5953_v16 = vmul.f32 1.442695, %v5606_v56  ;;  %v19036_v2 = vld [vmem:[#allocation65_spill] sm:$0xff]  ;;  %v5593_v56 = vsub.f32 %v19037_v58, %v15451_v13 }
 0x7d6   : > { %9926 = vpow2.f32 %v5953_v16  ;;  %v9919_v55 = vpop.eup %9918  ;;  %v19039_v16 = vld [vmem:[#allocation285_spill] sm:$0xff]  ;;  %v5927_v19 = vmul.f32 1.442695, %v5593_v56 }
 0x7d7   : > { %v15509_v52 = vpop.permute.xlu0 %6549  ;;  %v15529_v44 = vpop.permute.xlu1 %6597  ;;  %9928 = vpow2.f32 %v5915_v3  ;;  %v19043_v56 = vld [vmem:[#allocation289_spill] sm:$0xff] }
 0x7d8   : > { %6708 = vperm.xlu0 %9762, %v9897_v26   ;;  %6783 = vperm.xlu1 %9763, %v9907_v59   ;;  %v19033_v26 = vld [vmem:[#allocation246_spill] sm:$0xff]  ;;  %9930 = vpow2.f32 %v5957_v1  ;;  %v9921_v59 = vpop.eup %9920 }
 0x7d9   : > { %v15545_v53 = vrot.slane %v15333_v6, %v19033_v26  ;;  %9932 = vpow2.f32 %v5919_v17  ;;  %v9923_v38 = vpop.eup %9922 }
 0x7da   : > { %9934 = vpow2.f32 %v5961_v36 }
 0x7db   : > { %v15517_v63 = vpop.permute.xlu0 %6552  ;;  %v15537_v47 = vpop.permute.xlu1 %6603  ;;  %v5612_v8 = vsub.f32 %v19036_v2, %v15545_v53  ;;  %v5614_v18 = vsub.f32 %v19038_v46, %v15545_v53  ;;  %v19042_v2 = vld [vmem:[#allocation71_spill] sm:$0xff] }
 0x7dc   : > { %6714 = vperm.xlu0 %9762, %v9901_v14   ;;  %6789 = vperm.xlu1 %9763, %v9911_v33   ;;  %v5591_v14 = vsub.f32 %v19035_v31, %v15451_v13  ;;  %v5595_v33 = vsub.f32 %v19039_v16, %v15451_v13 }
 0x7dd   : > { %v9925_v12 = vpop.eup %9924  ;;  %v5969_v50 = vmul.f32 1.442695, %v5614_v18 }
 0x7de   : > { %v5923_v4 = vmul.f32 1.442695, %v5591_v14  ;;  %v5931_v14 = vmul.f32 1.442695, %v5595_v33 }
 0x7df   : > { %v15525_v11 = vpop.permute.xlu0 %6555  ;;  %v15549_v42 = vpop.permute.xlu1 %6609 }
 0x7e0   : > { %6720 = vperm.xlu0 %9762, %v9905_v57   ;;  %6795 = vperm.xlu1 %9763, %v9915_v49   ;;  %9936 = vpow2.f32 %v5923_v4  ;;  %v19041_v49 = vld [vmem:[#allocation287_spill] sm:$0xff]  ;;  %v5599_v4 = vsub.f32 %v19043_v56, %v15451_v13 }
 0x7e1   : > { %v5597_v31 = vsub.f32 %v19041_v49, %v15451_v13  ;;  %v19046_v49 = vld [vmem:[#allocation75_spill] sm:$0xff] }
 0x7e3   : > { %v15533_v35 = vpop.permute.xlu0 %6558  ;;  %v15557_v57 = vpop.permute.xlu1 %6615 }
 0x7e4   : > { %6726 = vperm.xlu0 %9762, %v9909_v60   ;;  %6801 = vperm.xlu1 %9763, %v9919_v55   ;;  %v5965_v60 = vmul.f32 1.442695, %v5612_v8  ;;  %v9927_v54 = vpop.eup %9926  ;;  %v5618_v8 = vsub.f32 %v19042_v2, %v15545_v53 }
 0x7e5   : > { %v9929_v17 = vpop.eup %9928 }
 0x7e6   : > { %9938 = vpow2.f32 %v5965_v60  ;;  %v9931_v55 = vpop.eup %9930  ;;  %v19044_v60 = vld [vmem:[#allocation73_spill] sm:$0xff]  ;;  %v5977_v16 = vmul.f32 1.442695, %v5618_v8 }
 0x7e7   : > { %v15541_v37 = vpop.permute.xlu0 %6561  ;;  %v15565_v34 = vpop.permute.xlu1 %6621  ;;  %9940 = vpow2.f32 %v5927_v19  ;;  %v19047_v8 = vld [vmem:[#allocation293_spill] sm:$0xff] }
 0x7e8   : > { %6732 = vperm.xlu0 %9762, %v9913_v9   ;;  %6807 = vperm.xlu1 %9763, %v9923_v38   ;;  %v19040_v9 = vld [vmem:[#allocation69_spill] sm:$0xff]  ;;  %9942 = vpow2.f32 %v5969_v50  ;;  %v9933_v46 = vpop.eup %9932  ;;  %v5620_v38 = vsub.f32 %v19044_v60, %v15545_v53 }
 0x7e9   : > { %v5616_v26 = vsub.f32 %v19040_v9, %v15545_v53  ;;  %9944 = vpow2.f32 %v5931_v14  ;;  %v9935_v33 = vpop.eup %9934 }
 0x7ea   : > { %v5981_v14 = vmul.f32 1.442695, %v5620_v38 }
 0x7eb   : > { %v15553_v48 = vpop.permute.xlu0 %6564  ;;  %v15573_v1 = vpop.permute.xlu1 %6627  ;;  %v5973_v36 = vmul.f32 1.442695, %v5616_v26  ;;  %v5939_v26 = vmul.f32 1.442695, %v5599_v4 }
 0x7ec   : > { %6738 = vperm.xlu0 %9762, %v9917_v21   ;;  %6813 = vperm.xlu1 %9763, %v9927_v54  }
 0x7ed   : > { %9946 = vpow2.f32 %v5973_v36  ;;  %v9937_v50 = vpop.eup %9936  ;;  %v5603_v36 = vsub.f32 %v19047_v8, %v15451_v13 }
 0x7ef   : > { %v15561_v10 = vpop.permute.xlu0 %6570  ;;  %v15581_v58 = vpop.permute.xlu1 %6633 }
 0x7f0   : > { %6744 = vperm.xlu0 %9762, %v9921_v59   ;;  %v5935_v59 = vmul.f32 1.442695, %v5597_v31  ;;  %6819 = vperm.xlu1 %9763, %v9931_v55   ;;  %v5622_v31 = vsub.f32 %v19046_v49, %v15545_v53  ;;  %v5947_v49 = vmul.f32 1.442695, %v5603_v36 }
 0x7f2   : > { %9948 = vpow2.f32 %v5935_v59  ;;  %v19048_v59 = vld [vmem:[#allocation77_spill] sm:$0xff]  ;;  %v5985_v60 = vmul.f32 1.442695, %v5622_v31  ;;  %v19051_v31 = vld [vmem:[#allocation79_spill] sm:$0xff] }
 0x7f3   : > { %v15569_v3 = vpop.permute.xlu0 %6573  ;;  %v15589_v19 = vpop.permute.xlu1 %6639  ;;  %9950 = vpow2.f32 %v5977_v16 }
 0x7f4   : > { %6750 = vperm.xlu0 %9762, %v9925_v12   ;;  %v19045_v12 = vld [vmem:[#allocation291_spill] sm:$0xff]  ;;  %6825 = vperm.xlu1 %9763, %v9935_v33   ;;  %9952 = vpow2.f32 %v5939_v26  ;;  %v7393_v26 = vrot.slane %v15521_v30, %v14339_v39 }
 0x7f5   : > { %v5601_v9 = vsub.f32 %v19045_v12, %v15451_v13  ;;  %9954 = vpow2.f32 %v5981_v14  ;;  %v19050_v12 = vld [vmem:[#allocation295_spill] sm:$0xff]  ;;  %v5626_v14 = vsub.f32 %v19051_v31, %v15545_v53 }
 0x7f7   : > { %v15577_v21 = vpop.permute.xlu0 %6576  ;;  %v15597_v2 = vpop.permute.xlu1 %6645  ;;  %v5943_v55 = vmul.f32 1.442695, %v5601_v9  ;;  %v5993_v31 = vmul.f32 1.442695, %v5626_v14 }
 0x7f8   : > { %6756 = vperm.xlu0 %9762, %v9929_v17   ;;  %v9939_v17 = vpop.eup %9938 }
 0x7f9   : > { %6831 = vperm.xlu1 %9763, %v9939_v17   ;;  %v9941_v56 = vpop.eup %9940  ;;  %9956 = vpow2.f32 %v5943_v55  ;;  %v19053_v55 = vld [vmem:[#allocation297_spill] sm:$0xff] }
 0x7fa   : > { %v9943_v38 = vpop.eup %9942  ;;  %9958 = vpow2.f32 %v5985_v60 }
 0x7fb   : > { %v15585_v18 = vpop.permute.xlu0 %6579  ;;  %v15603_v16 = vpop.permute.xlu1 %6651  ;;  %9960 = vpow2.f32 %v5947_v49 }
 0x7fc   : > { %6762 = vperm.xlu0 %9762, %v9933_v46   ;;  %v5624_v46 = vsub.f32 %v19048_v59, %v15545_v53  ;;  %19049 = vst [vmem:[#allocation313_spill] sm:$0xff] %v15603_v16  ;;  %v9945_v9 = vpop.eup %9944 }
 0x7fd   : > { %6837 = vperm.xlu1 %9763, %v9943_v38   ;;  %v5607_v38 = vsub.f32 %v19053_v55, %v15451_v13 }
 0x7fe   : > { %v5989_v8 = vmul.f32 1.442695, %v5624_v46  ;;  %v19055_v46 = vld [vmem:[#allocation81_spill] sm:$0xff] }
 0x7ff   : > { %v15593_v54 = vpop.permute.xlu0 %6582  ;;  %v15613_v59 = vpop.permute.xlu1 %6657  ;;  %v5628_v60 = vsub.f32 %v19055_v46, %v15545_v53  ;;  %v5955_v46 = vmul.f32 1.442695, %v5607_v38  ;;  %v7310_v38 = vrot.slane %v15489_v28, %v14357_v62 }
 0x800   : > { %6768 = vperm.xlu0 %9762, %v9937_v50   ;;  %v5605_v50 = vsub.f32 %v19050_v12, %v15451_v13  ;;  %9962 = vpow2.f32 %v5989_v8  ;;  %v19058_v8 = vld [vmem:[#allocation83_spill] sm:$0xff] }
 0x802   : > { %v5951_v12 = vmul.f32 1.442695, %v5605_v50  ;;  %v19056_v50 = vld [vmem:[#allocation299_spill] sm:$0xff] }
 0x803   : > { %v6589_v4 = vpop.permute.xlu0 %6588  ;;  %v5609_v49 = vsub.f32 %v19056_v50, %v15451_v13  ;;  %v5997_v13 = vmul.f32 1.442695, %v5628_v60  ;;  %v7319_v50 = vrot.slane %v15503_v43, %v14347_v32  ;;  %v19059_v60 = vld [vmem:[#allocation85_spill] sm:$0xff]  ;;  %v7329_v43 = vrot.slane %v15517_v63, %v14379_v24 }
 0x804   : > { %6774 = vperm.xlu0 %9762, %v9941_v56   ;;  %v7389_v33 = vrot.slane %v6589_v4, %v14357_v62  ;;  %v9947_v4 = vpop.eup %9946  ;;  %9964 = vpow2.f32 %v5951_v12  ;;  %v7423_v63 = vrot.slane %v15549_v42, %v14397_v45  ;;  %v7349_v42 = vrot.slane %v15553_v48, %v14427_v20 }
 0x805   : > { %6843 = vperm.xlu1 %9763, %v9947_v4   ;;  %v9949_v16 = vpop.eup %9948  ;;  %v19057_v4 = vld [vmem:[#allocation301_spill] sm:$0xff]  ;;  %9966 = vpow2.f32 %v5993_v31  ;;  %v7433_v48 = vrot.slane %v15557_v57, %v14414_v23 }
 0x806   : > { %v7394_v36 = vsel %vm19052_vm10, %v7393_v26, %v7389_v33  ;;  %v9951_v26 = vpop.eup %9950  ;;  %9968 = vpow2.f32 %v5955_v46  ;;  %vm19065_vm10 = vcmask 720512  }
 0x807   : > { %v6595_v17 = vpop.permute.xlu0 %6594  ;;  %9970 = vpow2.f32 %v5997_v13 }
 0x808   : > { %v7398_v56 = vrot.slane %v6595_v17, %v14347_v32  ;;  %6780 = vperm.xlu0 %9762, %v9945_v9   ;;  %v7403_v9 = vrot.slane %v15529_v44, %v14368_v40  ;;  %v7314_v44 = vrot.slane %v15495_v25, %v14339_v39  ;;  %v7324_v25 = vrot.slane %v15509_v52, %v14368_v40 }
 0x809   : > { %6849 = vperm.xlu1 %9763, %v9951_v26   ;;  %v5959_v26 = vmul.f32 1.442695, %v5609_v49  ;;  %v7334_v52 = vrot.slane %v15525_v11, %v14390_v29  ;;  %v7344_v11 = vrot.slane %v15541_v37, %v14397_v45 }
 0x80a   : > { %v7399_v30 = vsel %vm19054_vm12, %v7398_v56, %v7394_v36  ;;  %v5611_v56 = vsub.f32 %v19057_v4, %v15545_v53  ;;  %v15628_v36 = vpop.permute.xlu1 %6663  ;;  %v7413_v4 = vrot.slane %v15537_v47, %v14390_v29  ;;  %v7315_v28 = vsel %vm19060_vm2, %v7314_v44, %v7310_v38  ;;  %vm19068_vm12 = vmmov %vm19065_vm10 }
 0x80b   : > { %v6601_v17 = vpop.permute.xlu0 %6600  ;;  %v7404_v55 = vsel %vm4177_vm3, %v7403_v9, %v7399_v30  ;;  %v7320_v49 = vsel %vm19061_vm11, %v7319_v50, %v7315_v28  ;;  %9972 = vpow2.f32 %v5959_v26  ;;  %vm19069_vm2 = vcmask 786112  }
 0x80c   : > { %v7408_v33 = vrot.slane %v6601_v17, %v14379_v24  ;;  %6786 = vperm.xlu0 %9762, %v9949_v16   ;;  %v9953_v16 = vpop.eup %9952  ;;  %v5630_v17 = vsub.f32 %v19058_v8, %v15545_v53  ;;  %v7325_v46 = vsel %vm4177_vm3, %v7324_v25, %v7320_v49  ;;  %v5963_v25 = vmul.f32 1.442695, %v5611_v56  ;;  %vm19070_vm11 = vmmov %vm19069_vm2 }
 0x80d   : > { %v9955_v9 = vpop.eup %9954  ;;  %v7330_v38 = vsel %vm4184_vm4, %v7329_v43, %v7325_v46  ;;  %v19064_v43 = vld [vmem:[#allocation87_spill] sm:$0xff]  ;;  %v7359_v46 = vrot.slane %v15561_v10, %v14451_v27  ;;  %v7443_v10 = vrot.slane %v15565_v34, %v14433_v61  ;;  %v7379_v34 = vrot.slane %v15593_v54, %v14521_v41 }
 0x80e   : > { %v7409_v14 = vsel %vm4184_vm4, %v7408_v33, %v7404_v55  ;;  %v5632_v33 = vsub.f32 %v19059_v60, %v15545_v53  ;;  %v15649_v47 = vpop.permute.xlu1 %6669  ;;  %6855 = vperm.xlu1 %9763, %v9955_v9   ;;  %v6001_v8 = vmul.f32 1.442695, %v5630_v17  ;;  %v19062_v17 = vld [vmem:[#allocation303_spill] sm:$0xff]  ;;  %v7335_v37 = vsel %vm4191_vm5, %v7334_v52, %v7330_v38  ;;  %v19063_v60 = vld [vmem:[#allocation305_spill] sm:$0xff] }
 0x80f   : > { %v6607_v30 = vpop.permute.xlu0 %6606  ;;  %v7414_v31 = vsel %vm4191_vm5, %v7413_v4, %v7409_v14  ;;  %v5613_v50 = vsub.f32 %v19062_v17, %v15545_v53  ;;  %v5634_v28 = vsub.f32 %v19064_v43, %v15545_v53  ;;  %v7369_v38 = vrot.slane %v15577_v21, %v14484_v5 }
 0x810   : > { %v7418_v12 = vrot.slane %v6607_v30, %v14402_v7  ;;  %6792 = vperm.xlu0 %9762, %v9953_v16   ;;  %v9957_v16 = vpop.eup %9956  ;;  %v7339_v30 = vrot.slane %v15533_v35, %v14402_v7  ;;  %v6005_v56 = vmul.f32 1.442695, %v5632_v33  ;;  %9974 = vpow2.f32 %v6001_v8 }
 0x811   : > { %v9959_v4 = vpop.eup %9958  ;;  %9976 = vpow2.f32 %v5963_v25  ;;  %v7354_v33 = vrot.slane %v15501_v22, %v14414_v23  ;;  %v7364_v8 = vrot.slane %v15569_v3, %v14433_v61  ;;  %v7374_v3 = vrot.slane %v15585_v18, %v14464_v51 }
 0x812   : > { %v7419_v55 = vsel %vm4198_vm6, %v7418_v12, %v7414_v31  ;;  %v15670_v35 = vpop.permute.xlu1 %6675  ;;  %6861 = vperm.xlu1 %9763, %v9959_v4   ;;  %v9961_v9 = vpop.eup %9960  ;;  %v5615_v31 = vsub.f32 %v19063_v60, %v15545_v53  ;;  %v19066_v4 = vld [vmem:[#allocation89_spill] sm:$0xff]  ;;  %9978 = vpow2.f32 %v6005_v56  ;;  %v7453_v56 = vrot.slane %v15573_v1, %v14464_v51 }
 0x813   : > { %v6613_v14 = vpop.permute.xlu0 %6612  ;;  %v7424_v13 = vsel %vm4205_vm7, %v7423_v63, %v7419_v55  ;;  %v9963_v49 = vpop.eup %9962  ;;  %v5967_v63 = vmul.f32 1.442695, %v5613_v50  ;;  %v5636_v17 = vsub.f32 %v19066_v4, %v15545_v53  ;;  %v6009_v50 = vmul.f32 1.442695, %v5634_v28 }
 0x814   : > { %v7428_v44 = vrot.slane %v6613_v14, %v14427_v20  ;;  %6798 = vperm.xlu0 %9762, %v9957_v16   ;;  %v7340_v16 = vsel %vm4198_vm6, %v7339_v30, %v7335_v37  ;;  %v19067_v37 = vld [vmem:[#allocation307_spill] sm:$0xff]  ;;  %v5971_v43 = vmul.f32 1.442695, %v5615_v31 }
 0x815   : > { %v7345_v26 = vsel %vm4205_vm7, %v7344_v11, %v7340_v16  ;;  %v9965_v11 = vpop.eup %9964  ;;  %9980 = vpow2.f32 %v5967_v63  ;;  %v19072_v16 = vld [vmem:[#allocation91_spill] sm:$0xff] }
 0x816   : > { %v7429_v12 = vsel %vm4212_vm8, %v7428_v44, %v7424_v13  ;;  %v7350_v14 = vsel %vm4212_vm8, %v7349_v42, %v7345_v26  ;;  %v15687_v44 = vpop.permute.xlu1 %6681  ;;  %6867 = vperm.xlu1 %9763, %v9963_v49   ;;  %v9967_v25 = vpop.eup %9966  ;;  %9982 = vpow2.f32 %v6009_v50 }
 0x817   : > { %v6619_v55 = vpop.permute.xlu0 %6618  ;;  %v7434_v57 = vsel %vm4219_vm9, %v7433_v48, %v7429_v12  ;;  %v7355_v22 = vsel %vm4219_vm9, %v7354_v33, %v7350_v14  ;;  %v5617_v12 = vsub.f32 %v19067_v37, %v15545_v53  ;;  %v9969_v48 = vpop.eup %9968  ;;  %v19074_v14 = vld [vmem:[#allocation309_spill] sm:$0xff]  ;;  %9984 = vpow2.f32 %v5971_v43 }
 0x818   : > { %v7438_v52 = vrot.slane %v6619_v55, %v14451_v27  ;;  %6804 = vperm.xlu0 %9762, %v9961_v9   ;;  %v7360_v9 = vsel %vm19068_vm12, %v7359_v46, %v7355_v22  ;;  %v5638_v55 = vsub.f32 %v19072_v16, %v15545_v53  ;;  %v9971_v63 = vpop.eup %9970  ;;  %v5619_v46 = vsub.f32 %v19074_v14, %v15545_v53  ;;  %v19080_v16 = vld [vmem:[#allocation95_spill] sm:$0xff] }
 0x819   : > { %v7365_v18 = vsel %vm19070_vm11, %v7364_v8, %v7360_v9  ;;  %v10294_v9 = vld [vmem:[%s10637_s11 + $0x278] sm:$0xff] }
 0x81a   : > { %v7439_v30 = vsel %vm19065_vm10, %v7438_v52, %v7434_v57  ;;  %v15710_v21 = vpop.permute.xlu1 %6687  ;;  %6873 = vperm.xlu1 %9763, %v9967_v25   ;;  %vm19071_vm10 = vcmask 851712   ;;  %v6013_v52 = vmul.f32 1.442695, %v5636_v17  ;;  %v7463_v57 = vrot.slane %v15581_v58, %v14503_v0  ;;  %v9973_v17 = vpop.eup %9972  ;;  %v19076_v58 = vld [vmem:[#allocation93_spill] sm:$0xff]  ;;  %v19078_v25 = vld [vmem:[#allocation311_spill] sm:$0xff] }
 0x81b   : > { %v6625_v42 = vpop.permute.xlu0 %6624  ;;  %v7444_v60 = vsel %vm19069_vm2, %v7443_v10, %v7439_v30  ;;  %vm19073_vm12 = vmmov %vm19071_vm10  ;;  %v5975_v30 = vmul.f32 1.442695, %v5617_v12  ;;  %vm19075_vm2 = vcmask 1048512   ;;  %v5621_v37 = vsub.f32 %v19078_v25, %v15545_v53  ;;  %v10301_v25 = vld [vmem:[%s10637_s11 + $0x2d8] sm:$0xff] }
 0x81c   : > { %v7448_v13 = vrot.slane %v6625_v42, %v14484_v5  ;;  %6810 = vperm.xlu0 %9762, %v9965_v11   ;;  %v7370_v54 = vsel %vm19073_vm12, %v7369_v38, %v7365_v18  ;;  %v7384_v11 = vrot.slane %v15513_v15, %v14503_v0  ;;  %v5640_v38 = vsub.f32 %v19076_v58, %v15545_v53  ;;  %vm19077_vm11 = vmmov %vm19075_vm2 }
 0x81d   : > { %v7375_v49 = vsel %vm4247_vm13, %v7374_v3, %v7370_v54  ;;  %v6017_v42 = vmul.f32 1.442695, %v5638_v55  ;;  %9986 = vpow2.f32 %v6013_v52  ;;  %v9975_v22 = vpop.eup %9974  ;;  %v5979_v12 = vmul.f32 1.442695, %v5619_v46 }
 0x81e   : > { %v7449_v28 = vsel %vm19071_vm10, %v7448_v13, %v7444_v60  ;;  %v15726_v33 = vpop.permute.xlu1 %6693  ;;  %v7380_v8 = vsel %vm4254_vm14, %v7379_v34, %v7375_v49  ;;  %6879 = vperm.xlu1 %9763, %v9971_v63   ;;  %9988 = vpow2.f32 %v5975_v30  ;;  %v9977_v34 = vpop.eup %9976  ;;  %v19079_v60 = vld [vmem:[#allocation279_spill] sm:$0xff]  ;;  %v7472_v18 = vrot.slane %v15589_v19, %v14339_v39  ;;  %v10297_v49 = vld [vmem:[%s10637_s11 + $0x2e8] sm:$0xff]  ;;  %v19082_v63 = vld [vmem:[#allocation314_spill] sm:$0xff] }
 0x81f   : > { %v6631_v26 = vpop.permute.xlu0 %6630  ;;  %v7454_v1 = vsel %vm4247_vm13, %v7453_v56, %v7449_v28  ;;  %v15740_v15 = vsel %vm19077_vm11, %v7384_v11, %v7380_v8  ;;  %v15751_v43 = vrot.slane %v15333_v6, %v19079_v60  ;;  %v5642_v55 = vsub.f32 %v19080_v16, %v15545_v53  ;;  %v9979_v52 = vpop.eup %9978  ;;  %v10302_v60 = vld [vmem:[%s10637_s11 + $0x258] sm:$0xff] }
 0x820   : > { %v7458_v31 = vrot.slane %v6631_v26, %v14521_v41  ;;  %6816 = vperm.xlu0 %9762, %v9969_v48   ;;  %v10295_v48 = vld [vmem:[%s10637_s11 + $0x2f0] sm:$0xff]  ;;  %v6021_v56 = vmul.f32 1.442695, %v5640_v38  ;;  %9990 = vpow2.f32 %v6017_v42  ;;  %vm19081_vm10 = vcmask 130112   ;;  %v10300_v42 = vld [vmem:[%s10637_s11 + $0x260] sm:$0xff] }
 0x821   : > { %v10296_v26 = vld [vmem:[%s10637_s11 + $0x270] sm:$0xff]  ;;  %v5623_v14 = vsub.f32 %v19082_v63, %v15545_v53  ;;  %v5983_v46 = vmul.f32 1.442695, %v5621_v37  ;;  %9992 = vpow2.f32 %v5979_v12  ;;  %vm19083_vm12 = vcmask 195712   ;;  %v19085_v37 = vld [vmem:[#allocation316_spill] sm:$0xff] }
 0x822   : > { %v7459_v4 = vsel %vm4254_vm14, %v7458_v31, %v7454_v1  ;;  %v15742_v3 = vpop.permute.xlu1 %6699  ;;  %6885 = vperm.xlu1 %9763, %v9975_v22   ;;  %v10298_v1 = vld [vmem:[%s10637_s11 + $0x268] sm:$0xff]  ;;  %v9981_v8 = vpop.eup %9980  ;;  %v7482_v30 = vrot.slane %v15597_v2, %v14368_v40  ;;  %v6025_v58 = vmul.f32 1.442695, %v5642_v55  ;;  %9994 = vpow2.f32 %v6021_v56  ;;  %v10303_v55 = vld [vmem:[%s10637_s11 + $0x2d0] sm:$0xff]  ;;  %v19087_v56 = vld [vmem:[#allocation99_spill] sm:$0xff] }
 0x823   : > { %v6637_v50 = vpop.permute.xlu0 %6636  ;;  %v15734_v10 = vsel %vm19075_vm2, %v7463_v57, %v7459_v4  ;;  %v10299_v4 = vld [vmem:[%s10637_s11 + $0x2e0] sm:$0xff]  ;;  %v9983_v22 = vpop.eup %9982  ;;  %v5625_v12 = vsub.f32 %v19085_v37, %v15545_v53  ;;  %9996 = vpow2.f32 %v5983_v46  ;;  %v10305_v46 = vld [vmem:[%s10637_s11 + $0x2c8] sm:$0xff]  ;;  %vm19094_vm2 = vcmask 720512  }
 0x824   : > { %6822 = vperm.xlu0 %9762, %v9973_v17   ;;  %8656 = vmatprep.mubr.f32.mxu0 %v15734_v10  ;;  %v7468_v13 = vrot.slane %v6637_v50, %v14357_v62  ;;  %v19084_v17 = vld [vmem:[#allocation97_spill] sm:$0xff]  ;;  %9998 = vpow2.f32 %v6025_v58  ;;  %v10307_v58 = vld [vmem:[%s10637_s11 + $0x2c0] sm:$0xff]  ;;  %vm19096_vm11 = vcmask 786112  }
 0x825   : > { %8657 = vmatmul.mubr.f32.vlgmr.msra.gmra.mxu0 %v15740_v15  ;;  %v5644_v50 = vsub.f32 %v19084_v17, %v15751_v43  ;;  %v7502_v17 = vrot.slane %v15613_v59, %v14397_v45 }
 0x826   : > { %9483 = vmatpush3.msra.mxu0 %v10294_v9  ;;  %v15760_v31 = vpop.permute.xlu1 %6705  ;;  %v7473_v19 = vsel %vm19081_vm10, %v7472_v18, %v7468_v13  ;;  %6891 = vperm.xlu1 %9763, %v9979_v52   ;;  %v5987_v9 = vmul.f32 1.442695, %v5623_v14  ;;  %v9985_v18 = vpop.eup %9984  ;;  %vm19098_vm10 = vcmask 851712  }
 0x827   : > { %v6643_v28 = vpop.permute.xlu0 %6642  ;;  %9484 = vmatprep.subr.mxu0 %v10295_v48 }
 0x828   : > { %v7477_v54 = vrot.slane %v6643_v28, %v14347_v32  ;;  %6828 = vperm.xlu0 %9762, %v9977_v34   ;;  %9485 = vmatpush3.msra.mxu0 %v10296_v26  ;;  %v19086_v28 = vld [vmem:[#allocation313_spill] sm:$0xff]  ;;  %v6029_v26 = vmul.f32 1.442695, %v5644_v50  ;;  %10000 = vpow2.f32 %v5987_v9  ;;  %v10309_v9 = vld [vmem:[%s10637_s11 + $0x2b8] sm:$0xff] }
 0x829   : > { %9486 = vmatprep.subr.mxu0 %v10297_v49  ;;  %v7492_v48 = vrot.slane %v19086_v28, %v14390_v29 }
 0x82a   : > { %v7478_v57 = vsel %vm19083_vm12, %v7477_v54, %v7473_v19  ;;  %9487 = vmatpush3.msra.mxu0 %v10298_v1  ;;  %v15775_v13 = vpop.permute.xlu1 %6711  ;;  %6897 = vperm.xlu1 %9763, %v9983_v22   ;;  %v5646_v54 = vsub.f32 %v19087_v56, %v15751_v43  ;;  %v10304_v19 = vld [vmem:[%s10637_s11 + $0x250] sm:$0xff]  ;;  %v9987_v49 = vpop.eup %9986  ;;  %10002 = vpow2.f32 %v6029_v26  ;;  %vm19101_vm12 = vcmask 1048512  }
 0x82b   : > { %v6649_v11 = vpop.permute.xlu0 %6648  ;;  %9488 = vmatprep.subr.mxu0 %v10299_v4  ;;  %v7483_v2 = vsel %vm4177_vm3, %v7482_v30, %v7478_v57  ;;  %v19088_v57 = vld [vmem:[#allocation318_spill] sm:$0xff]  ;;  %v9989_v4 = vpop.eup %9988 }
 0x82c   : > { %v7487_v38 = vrot.slane %v6649_v11, %v14379_v24  ;;  %6834 = vperm.xlu0 %9762, %v9981_v8   ;;  %9489 = vmatpush3.msra.mxu0 %v10300_v42  ;;  %v5627_v1 = vsub.f32 %v19088_v57, %v15545_v53  ;;  %v5991_v8 = vmul.f32 1.442695, %v5625_v12  ;;  %v10306_v11 = vld [vmem:[%s10637_s11 + $0x248] sm:$0xff]  ;;  %v6033_v22 = vmul.f32 1.442695, %v5646_v54  ;;  %v10312_v57 = vld [vmem:[%s10637_s11 + $0x230] sm:$0xff] }
 0x82d   : > { %9490 = vmatprep.subr.mxu0 %v10301_v25  ;;  %v10308_v25 = vld [vmem:[%s10637_s11 + $0x240] sm:$0xff]  ;;  %v9991_v37 = vpop.eup %9990  ;;  %v7512_v54 = vrot.slane %v15628_v36, %v14414_v23 }
 0x82e   : > { %v7488_v34 = vsel %vm4184_vm4, %v7487_v38, %v7483_v2  ;;  %9491 = vmatpush3.msra.mxu0 %v10302_v60  ;;  %v15790_v63 = vpop.permute.xlu1 %6717  ;;  %6903 = vperm.xlu1 %9763, %v9987_v49   ;;  %v19089_v38 = vld [vmem:[#allocation114_spill] sm:$0xff]  ;;  %10004 = vpow2.f32 %v5991_v8 }
 0x82f   : > { %v6655_v16 = vpop.permute.xlu0 %6654  ;;  %9492 = vmatprep.subr.mxu0 %v10303_v55  ;;  %v7493_v14 = vsel %vm4191_vm5, %v7492_v48, %v7488_v34  ;;  %v5659_v42 = vsub.f32 %v19089_v38, %v15751_v43  ;;  %v19090_v34 = vld [vmem:[#allocation320_spill] sm:$0xff]  ;;  %v10310_v48 = vld [vmem:[%s10637_s11 + $0x238] sm:$0xff]  ;;  %10006 = vpow2.f32 %v6033_v22 }
 0x830   : > { %v7497_v52 = vrot.slane %v6655_v16, %v14402_v7  ;;  %6840 = vperm.xlu0 %9762, %v9985_v18   ;;  %9493 = vmatpush3.msra.mxu0 %v10304_v19  ;;  %v5629_v60 = vsub.f32 %v19090_v34, %v15545_v53  ;;  %v5995_v18 = vmul.f32 1.442695, %v5627_v1  ;;  %v9993_v16 = vpop.eup %9992  ;;  %v19091_v55 = vld [vmem:[#allocation312_spill] sm:$0xff]  ;;  %v19092_v19 = vld [vmem:[#allocation353_spill] sm:$0xff]  ;;  %v10316_v34 = vld [vmem:[%s10637_s11 + $0x220] sm:$0xff] }
 0x831   : > { %9494 = vmatprep.subr.mxu0 %v10305_v46  ;;  %v15815_v56 = vrot.slane %v15333_v6, %v19091_v55  ;;  %v5661_v49 = vsub.f32 %v19092_v19, %v15751_v43  ;;  %v9995_v1 = vpop.eup %9994  ;;  %v7532_v19 = vrot.slane %v15670_v35, %v14464_v51 }
 0x832   : > { %v7498_v30 = vsel %vm4198_vm6, %v7497_v52, %v7493_v14  ;;  %9495 = vmatpush3.msra.mxu0 %v10306_v11  ;;  %v15805_v12 = vpop.permute.xlu1 %6723  ;;  %6909 = vperm.xlu1 %9763, %v9991_v37   ;;  %v10311_v52 = vld [vmem:[%s10637_s11 + $0x2b0] sm:$0xff]  ;;  %v6059_v14 = vmul.f32 1.442695, %v5659_v42  ;;  %v19093_v11 = vld [vmem:[#allocation322_spill] sm:$0xff]  ;;  %10008 = vpow2.f32 %v5995_v18  ;;  %v9997_v38 = vpop.eup %9996  ;;  %v7522_v42 = vrot.slane %v15649_v47, %v14433_v61 }
 0x833   : > { %v6661_v50 = vpop.permute.xlu0 %6660  ;;  %9496 = vmatprep.subr.mxu0 %v10307_v58  ;;  %v7503_v59 = vsel %vm4205_vm7, %v7502_v17, %v7498_v30  ;;  %v10313_v30 = vld [vmem:[%s10637_s11 + $0x2a8] sm:$0xff]  ;;  %v5999_v17 = vmul.f32 1.442695, %v5629_v60  ;;  %v9999_v60 = vpop.eup %9998 }
 0x834   : > { %v7507_v2 = vrot.slane %v6661_v50, %v14427_v20  ;;  %6846 = vperm.xlu0 %9762, %v9989_v4   ;;  %9497 = vmatpush3.msra.mxu0 %v10308_v25  ;;  %v5631_v4 = vsub.f32 %v19093_v11, %v15545_v53  ;;  %v10314_v58 = vld [vmem:[%s10637_s11 + $0x228] sm:$0xff]  ;;  %10010 = vpow2.f32 %v6059_v14  ;;  %v10319_v14 = vld [vmem:[%s10637_s11 + $0x290] sm:$0xff] }
 0x835   : > { %9498 = vmatprep.subr.mxu0 %v10309_v9  ;;  %v19095_v25 = vld [vmem:[#allocation380_spill] sm:$0xff]  ;;  %10012 = vpow2.f32 %v5999_v17 }
 0x836   : > { %v7508_v28 = vsel %vm4212_vm8, %v7507_v2, %v7503_v59  ;;  %9499 = vmatpush3.msra.mxu0 %v10310_v48  ;;  %v15824_v8 = vpop.permute.xlu1 %6729  ;;  %6915 = vperm.xlu1 %9763, %v9995_v1   ;;  %v10315_v2 = vld [vmem:[%s10637_s11 + $0x2a0] sm:$0xff]  ;;  %v5692_v37 = vsub.f32 %v19095_v25, %v15815_v56  ;;  %v6063_v59 = vmul.f32 1.442695, %v5661_v49  ;;  %v19097_v48 = vld [vmem:[#allocation324_spill] sm:$0xff]  ;;  %v6003_v55 = vmul.f32 1.442695, %v5631_v4 }
 0x837   : > { %v6667_v26 = vpop.permute.xlu0 %6666  ;;  %9500 = vmatprep.subr.mxu0 %v10311_v52  ;;  %v7513_v36 = vsel %vm4219_vm9, %v7512_v54, %v7508_v28  ;;  %v10317_v28 = vld [vmem:[%s10637_s11 + $0x298] sm:$0xff]  ;;  %v10001_v52 = vpop.eup %10000  ;;  %v7542_v4 = vrot.slane %v15687_v44, %v14503_v0 }
 0x838   : > { %v7517_v46 = vrot.slane %v6667_v26, %v14451_v27  ;;  %6852 = vperm.xlu0 %9762, %v9993_v16   ;;  %9501 = vmatpush3.msra.mxu0 %v10312_v57  ;;  %v5633_v16 = vsub.f32 %v19097_v48, %v15545_v53  ;;  %v10318_v26 = vld [vmem:[%s10637_s11 + $0x218] sm:$0xff]  ;;  %v6125_v1 = vmul.f32 1.442695, %v5692_v37  ;;  %10014 = vpow2.f32 %v6063_v59  ;;  %v10003_v11 = vpop.eup %10002  ;;  %v10323_v59 = vld [vmem:[%s10637_s11 + $0x280] sm:$0xff] }
 0x839   : > { %9502 = vmatprep.subr.mxu0 %v10313_v30  ;;  %v10320_v30 = vld [vmem:[%s10637_s11 + $0x210] sm:$0xff]  ;;  %10016 = vpow2.f32 %v6003_v55 }
 0x83a   : > { %v7518_v50 = vsel %vm19094_vm2, %v7517_v46, %v7513_v36  ;;  %9503 = vmatpush3.msra.mxu0 %v10314_v58  ;;  %v15839_v18 = vpop.permute.xlu1 %6735  ;;  %6921 = vperm.xlu1 %9763, %v9999_v60   ;;  %v19099_v46 = vld [vmem:[#allocation130_spill] sm:$0xff]  ;;  %10018 = vpow2.f32 %v6125_v1  ;;  %vm19103_vm2 = vcmask 1041409  }
 0x83b   : > { %v6673_v22 = vpop.permute.xlu0 %6672  ;;  %9504 = vmatprep.subr.mxu0 %v10315_v2  ;;  %v7523_v47 = vsel %vm19096_vm11, %v7522_v42, %v7518_v50  ;;  %v5675_v57 = vsub.f32 %v19099_v46, %v15815_v56  ;;  %v10321_v50 = vld [vmem:[%s10637_s11 + $0x288] sm:$0xff]  ;;  %v19100_v58 = vld [vmem:[#allocation326_spill] sm:$0xff]  ;;  %v6007_v42 = vmul.f32 1.442695, %v5633_v16  ;;  %v10005_v25 = vpop.eup %10004  ;;  %vm19106_vm11 = vcmask 130112  }
 0x83c   : > { %v7527_v9 = vrot.slane %v6673_v22, %v14484_v5  ;;  %6858 = vperm.xlu0 %9762, %v9997_v38   ;;  %9505 = vmatpush3.msra.mxu0 %v10316_v34  ;;  %v5635_v38 = vsub.f32 %v19100_v58, %v15545_v53  ;;  %v10322_v2 = vld [vmem:[%s10637_s11 + $0x208] sm:$0xff]  ;;  %v10007_v48 = vpop.eup %10006 }
 0x83d   : > { %9506 = vmatprep.subr.mxu0 %v10317_v28  ;;  %v6091_v60 = vmul.f32 1.442695, %v5675_v57  ;;  %v10324_v28 = vld [vmem:[%s10637_s11 + $0x200] sm:$0xff]  ;;  %10020 = vpow2.f32 %v6007_v42  ;;  %v19105_v46 = vld [vmem:[#allocation132_spill] sm:$0xff]  ;;  %v7561_v42 = vrot.slane %v15726_v33, %v14368_v40 }
 0x83e   : > { %v7528_v54 = vsel %vm19098_vm10, %v7527_v9, %v7523_v47  ;;  %9507 = vmatpush3.msra.mxu0 %v10318_v26  ;;  %v15856_v35 = vpop.permute.xlu1 %6741  ;;  %6927 = vperm.xlu1 %9763, %v10003_v11   ;;  %v19102_v9 = vld [vmem:[#allocation148_spill] sm:$0xff]  ;;  %v5677_v57 = vsub.f32 %v19105_v46, %v15815_v56  ;;  %vm19108_vm10 = vcmask 195712  }
 0x83f   : > { %v6679_v49 = vpop.permute.xlu0 %6678  ;;  %9508 = vmatprep.subr.mxu0 %v10319_v14  ;;  %v7533_v17 = vsel %vm4247_vm13, %v7532_v19, %v7528_v54  ;;  %v5693_v34 = vsub.f32 %v19102_v9, %v15815_v56  ;;  %v10325_v54 = vld [vmem:[%s10637_s11 + $0x4f8] sm:$0xff]  ;;  %v19104_v26 = vld [vmem:[#allocation328_spill] sm:$0xff]  ;;  %v6011_v19 = vmul.f32 1.442695, %v5635_v38  ;;  %10022 = vpow2.f32 %v6091_v60 }
 0x840   : > { %v7537_v36 = vrot.slane %v6679_v49, %v14521_v41  ;;  %6864 = vperm.xlu0 %9762, %v10001_v52   ;;  %9509 = vmatpush3.msra.mxu0 %v10320_v30  ;;  %v5637_v52 = vsub.f32 %v19104_v26, %v15545_v53  ;;  %v10009_v49 = vpop.eup %10008  ;;  %v7571_v26 = vrot.slane %v15742_v3, %v14390_v29 }
 0x841   : > { %9510 = vmatprep.subr.mxu0 %v10321_v50  ;;  %v6127_v1 = vmul.f32 1.442695, %v5693_v34  ;;  %v10011_v30 = vpop.eup %10010  ;;  %10024 = vpow2.f32 %v6011_v19  ;;  %v19111_v19 = vld [vmem:[#allocation388_spill] sm:$0xff] }
 0x842   : > { %v7538_v22 = vsel %vm4254_vm14, %v7537_v36, %v7533_v17  ;;  %9511 = vmatpush3.msra.mxu0 %v10322_v2  ;;  %v15876_v16 = vpop.permute.xlu1 %6747  ;;  %6933 = vperm.xlu1 %9763, %v10007_v48   ;;  %v19107_v17 = vld [vmem:[#allocation330_spill] sm:$0xff]  ;;  %v6015_v58 = vmul.f32 1.442695, %v5637_v52  ;;  %v10013_v38 = vpop.eup %10012  ;;  %v19109_v2 = vld [vmem:[#allocation117_spill] sm:$0xff] }
 0x843   : > { %v6685_v44 = vpop.permute.xlu0 %6684  ;;  %v15865_v37 = vsel %vm19101_vm12, %v7542_v4, %v7538_v22  ;;  %9512 = vmatprep.subr.mxu0 %v10323_v59  ;;  %v5639_v50 = vsub.f32 %v19107_v17, %v15545_v53  ;;  %10026 = vpow2.f32 %v6127_v1  ;;  %v19112_v1 = vld [vmem:[#allocation334_spill] sm:$0xff]  ;;  %v7581_v17 = vrot.slane %v15760_v31, %v14397_v45 }
 0x844   : > { %6870 = vperm.xlu0 %9762, %v10005_v25   ;;  %v15873_v47 = vsel %vm19103_vm2, %v15865_v37, %v15740_v15  ;;  %9513 = vmatpush3.msra.mxu0 %v10324_v28  ;;  %v7547_v55 = vrot.slane %v6685_v44, %v14357_v62  ;;  %v7551_v15 = vrot.slane %v15710_v21, %v14339_v39  ;;  %v6095_v44 = vmul.f32 1.442695, %v5677_v57  ;;  %v19110_v28 = vld [vmem:[#allocation332_spill] sm:$0xff] }
 0x845   : > { %9552 = vmatprep.subr.mxu0 %v10325_v54  ;;  %v5664_v25 = vsub.f32 %v19109_v2, %v15751_v43  ;;  %v10015_v9 = vpop.eup %10014  ;;  %v5641_v48 = vsub.f32 %v19110_v28, %v15545_v53  ;;  %10028 = vpow2.f32 %v6015_v58  ;;  %v19113_v58 = vld [vmem:[#allocation356_spill] sm:$0xff]  ;;  %v7591_v28 = vrot.slane %v15775_v13, %v14414_v23 }
 0x846   : > { %v15887_v11 = vpop.permute.xlu1 %6753  ;;  %v7552_v4 = vsel %vm19106_vm11, %v7551_v15, %v7547_v55  ;;  %6972 = vperm.xlu1 %9763, %v10011_v30   ;;  %v6019_v55 = vmul.f32 1.442695, %v5639_v50  ;;  %v10017_v54 = vpop.eup %10016  ;;  %10030 = vpow2.f32 %v6095_v44  ;;  %v19114_v44 = vld [vmem:[#allocation336_spill] sm:$0xff]  ;;  %vm19117_vm12 = vcmask 720512  }
 0x847   : > { %v6691_v14 = vpop.permute.xlu0 %6690  ;;  %v6069_v15 = vmul.f32 1.442695, %v5664_v25  ;;  %v10019_v46 = vpop.eup %10018  ;;  %v6023_v30 = vmul.f32 1.442695, %v5641_v48  ;;  %vm19119_vm2 = vcmask 786112   ;;  %vm19121_vm11 = vcmask 851712  }
 0x848   : > { %v7556_v36 = vrot.slane %v6691_v14, %v14347_v32  ;;  %6876 = vperm.xlu0 %9762, %v10009_v49   ;;  %v5695_v49 = vsub.f32 %v19111_v19, %v15815_v56  ;;  %10032 = vpow2.f32 %v6019_v55  ;;  %v19115_v55 = vld [vmem:[#allocation384_spill] sm:$0xff] }
 0x849   : > { %10034 = vpow2.f32 %v6069_v15  ;;  %v19116_v15 = vld [vmem:[#allocation102_spill] sm:$0xff] }
 0x84a   : > { %v7557_v21 = vsel %vm19108_vm10, %v7556_v36, %v7552_v4  ;;  %v15898_v34 = vpop.permute.xlu1 %6759  ;;  %6978 = vperm.xlu1 %9763, %v10015_v9   ;;  %v5643_v36 = vsub.f32 %v19112_v1, %v15751_v43  ;;  %v10021_v4 = vpop.eup %10020  ;;  %10036 = vpow2.f32 %v6023_v30  ;;  %v7601_v1 = vrot.slane %v15790_v63, %v14433_v61  ;;  %v19118_v30 = vld [vmem:[#allocation119_spill] sm:$0xff] }
 0x84b   : > { %v6697_v22 = vpop.permute.xlu0 %6696  ;;  %v7562_v60 = vsel %vm4177_vm3, %v7561_v42, %v7557_v21  ;;  %v5665_v21 = vsub.f32 %v19113_v58, %v15751_v43  ;;  %vm19124_vm10 = vcmask 1048512  }
 0x84c   : > { %v7566_v59 = vrot.slane %v6697_v22, %v14379_v24  ;;  %6882 = vperm.xlu0 %9762, %v10013_v38   ;;  %v6131_v38 = vmul.f32 1.442695, %v5695_v49  ;;  %v10023_v22 = vpop.eup %10022  ;;  %v6027_v9 = vmul.f32 1.442695, %v5643_v36 }
 0x84e   : > { %v7567_v33 = vsel %vm4184_vm4, %v7566_v59, %v7562_v60  ;;  %v15909_v53 = vpop.permute.xlu1 %6765  ;;  %7071 = vperm.xlu1 %9763, %v10019_v46   ;;  %v5645_v59 = vsub.f32 %v19114_v44, %v15751_v43  ;;  %v10025_v60 = vpop.eup %10024  ;;  %10038 = vpow2.f32 %v6131_v38  ;;  %v19120_v38 = vld [vmem:[#allocation349_spill] sm:$0xff]  ;;  %v7611_v44 = vrot.slane %v15805_v12, %v14464_v51 }
 0x84f   : > { %v6703_v52 = vpop.permute.xlu0 %6702  ;;  %v7572_v57 = vsel %vm4191_vm5, %v7571_v26, %v7567_v33  ;;  %v5696_v33 = vsub.f32 %v19115_v55, %v15815_v56  ;;  %10040 = vpow2.f32 %v6027_v9  ;;  %v19122_v9 = vld [vmem:[#allocation390_spill] sm:$0xff]  ;;  %v7621_v55 = vrot.slane %v15824_v8, %v14503_v0 }
 0x850   : > { %v7576_v14 = vrot.slane %v6703_v52, %v14402_v7  ;;  %6888 = vperm.xlu0 %9762, %v10017_v54   ;;  %v6071_v54 = vmul.f32 1.442695, %v5665_v21  ;;  %v10027_v52 = vpop.eup %10026  ;;  %v6031_v46 = vmul.f32 1.442695, %v5645_v59 }
 0x852   : > { %v7577_v3 = vsel %vm4198_vm6, %v7576_v14, %v7572_v57  ;;  %v15920_v2 = vpop.permute.xlu1 %6771  ;;  %7020 = vperm.xlu1 %9763, %v10023_v22   ;;  %v5647_v14 = vsub.f32 %v19116_v15, %v15751_v43  ;;  %v10029_v57 = vpop.eup %10028  ;;  %10042 = vpow2.f32 %v6071_v54 }
 0x853   : > { %v6709_v50 = vpop.permute.xlu0 %6708  ;;  %v7582_v25 = vsel %vm4205_vm7, %v7581_v17, %v7577_v3  ;;  %v5666_v3 = vsub.f32 %v19118_v30, %v15751_v43  ;;  %10044 = vpow2.f32 %v6031_v46 }
 0x854   : > { %v7586_v42 = vrot.slane %v6709_v50, %v14427_v20  ;;  %6894 = vperm.xlu0 %9762, %v10021_v4   ;;  %v6133_v4 = vmul.f32 1.442695, %v5696_v33  ;;  %v10031_v50 = vpop.eup %10030  ;;  %v6035_v22 = vmul.f32 1.442695, %v5647_v14 }
 0x856   : > { %v7587_v31 = vsel %vm4212_vm8, %v7586_v42, %v7582_v25  ;;  %v15931_v19 = vpop.permute.xlu1 %6777  ;;  %7074 = vperm.xlu1 %9763, %v10027_v52   ;;  %v5660_v42 = vsub.f32 %v19120_v38, %v15751_v43  ;;  %v10033_v25 = vpop.eup %10032  ;;  %10046 = vpow2.f32 %v6133_v4  ;;  %v19127_v4 = vld [vmem:[#allocation351_spill] sm:$0xff]  ;;  %v7630_v38 = vrot.slane %v15839_v18, %v14339_v39 }
 0x857   : > { %v6715_v48 = vpop.permute.xlu0 %6714  ;;  %v7592_v49 = vsel %vm4219_vm9, %v7591_v28, %v7587_v31  ;;  %v5697_v31 = vsub.f32 %v19122_v9, %v15815_v56  ;;  %10048 = vpow2.f32 %v6035_v22  ;;  %v10327_v22 = vld [vmem:[%s10637_s11 + $0x3f0] sm:$0xff] }
 0x858   : > { %v7596_v26 = vrot.slane %v6715_v48, %v14451_v27  ;;  %6900 = vperm.xlu0 %9762, %v10025_v60   ;;  %v6073_v60 = vmul.f32 1.442695, %v5666_v3  ;;  %v10035_v48 = vpop.eup %10034  ;;  %v6061_v52 = vmul.f32 1.442695, %v5660_v42 }
 0x859   : > { %v10037_v15 = vpop.eup %10036 }
 0x85a   : > { %v7597_v13 = vsel %vm19117_vm12, %v7596_v26, %v7592_v49  ;;  %v15942_v58 = vpop.permute.xlu1 %6783  ;;  %7026 = vperm.xlu1 %9763, %v10031_v50   ;;  %v19123_v26 = vld [vmem:[#allocation385_spill] sm:$0xff]  ;;  %10050 = vpow2.f32 %v6073_v60  ;;  %vm19126_vm12 = vcmask 1041409   ;;  %v10329_v60 = vld [vmem:[%s10637_s11 + $0x3e8] sm:$0xff] }
 0x85b   : > { %v6721_v36 = vpop.permute.xlu0 %6720  ;;  %v7602_v21 = vsel %vm19119_vm2, %v7601_v1, %v7597_v13  ;;  %v5691_v12 = vsub.f32 %v19123_v26, %v15815_v56  ;;  %v19125_v13 = vld [vmem:[#allocation358_spill] sm:$0xff]  ;;  %10052 = vpow2.f32 %v6061_v52  ;;  %vm19129_vm2 = vcmask 130112   ;;  %v10330_v26 = vld [vmem:[%s10637_s11 + $0x368] sm:$0xff] }
 0x85c   : > { %v7606_v17 = vrot.slane %v6721_v36, %v14484_v5  ;;  %6906 = vperm.xlu0 %9762, %v10029_v57   ;;  %v5667_v8 = vsub.f32 %v19125_v13, %v15751_v43  ;;  %v6135_v57 = vmul.f32 1.442695, %v5697_v31  ;;  %v10039_v36 = vpop.eup %10038  ;;  %v7640_v52 = vrot.slane %v15856_v35, %v14368_v40 }
 0x85d   : > { %v6123_v50 = vmul.f32 1.442695, %v5691_v12 }
 0x85e   : > { %v7607_v63 = vsel %vm19121_vm11, %v7606_v17, %v7602_v21  ;;  %v15955_v33 = vpop.permute.xlu1 %6789  ;;  %6987 = vperm.xlu1 %9763, %v10035_v48   ;;  %v5662_v17 = vsub.f32 %v19127_v4, %v15751_v43  ;;  %v10326_v21 = vld [vmem:[%s10637_s11 + $0x378] sm:$0xff]  ;;  %10054 = vpow2.f32 %v6135_v57  ;;  %vm19131_vm11 = vcmask 195712   ;;  %v10332_v57 = vld [vmem:[%s10637_s11 + $0x360] sm:$0xff] }
 0x85f   : > { %v6727_v59 = vpop.permute.xlu0 %6726  ;;  %v7612_v54 = vsel %vm4247_vm13, %v7611_v44, %v7607_v63  ;;  %v19128_v63 = vld [vmem:[#allocation150_spill] sm:$0xff]  ;;  %10056 = vpow2.f32 %v6123_v50 }
 0x860   : > { %v7616_v28 = vrot.slane %v6727_v59, %v14521_v41  ;;  %6912 = vperm.xlu0 %9762, %v10033_v25   ;;  %v6075_v25 = vmul.f32 1.442695, %v5667_v8  ;;  %v10328_v59 = vld [vmem:[%s10637_s11 + $0x370] sm:$0xff]  ;;  %v10333_v4 = vld [vmem:[%s10637_s11 + $0x3d8] sm:$0xff] }
 0x862   : > { %v7617_v49 = vsel %vm4254_vm14, %v7616_v28, %v7612_v54  ;;  %v15968_v30 = vpop.permute.xlu1 %6795  ;;  %7080 = vperm.xlu1 %9763, %v10039_v36   ;;  %v19130_v28 = vld [vmem:[#allocation129_spill] sm:$0xff]  ;;  %10058 = vpow2.f32 %v6075_v25 }
 0x863   : > { %v6733_v14 = vpop.permute.xlu0 %6732  ;;  %v7622_v46 = vsel %vm19124_vm10, %v7621_v55, %v7617_v49  ;;  %v5676_v48 = vsub.f32 %v19130_v28, %v15815_v56  ;;  %v6065_v55 = vmul.f32 1.442695, %v5662_v17  ;;  %v19133_v17 = vld [vmem:[#allocation355_spill] sm:$0xff]  ;;  %v19134_v25 = vld [vmem:[#allocation153_spill] sm:$0xff]  ;;  %vm19140_vm10 = vcmask 720512  }
 0x864   : > { %6918 = vperm.xlu0 %9762, %v10037_v15   ;;  %v15966_v1 = vsel %vm19126_vm12, %v7622_v46, %v15734_v10  ;;  %8728 = vmatprep.mubr.f32.mxu1 %v7622_v46  ;;  %v7626_v3 = vrot.slane %v6733_v14, %v14357_v62  ;;  %v10041_v10 = vpop.eup %10040  ;;  %v10331_v15 = vld [vmem:[%s10637_s11 + $0x3e0] sm:$0xff]  ;;  %v19132_v14 = vld [vmem:[#allocation121_spill] sm:$0xff]  ;;  %v5663_v50 = vsub.f32 %v19133_v17, %v15751_v43  ;;  %vm19142_vm12 = vcmask 786112  }
 0x865   : > { %8729 = vmatmul.mubr.f32.vlgmr.msra.gmra.mxu1 %v15865_v37  ;;  %v5698_v37 = vsub.f32 %v19128_v63, %v15815_v56  ;;  %v10043_v9 = vpop.eup %10042  ;;  %v5668_v46 = vsub.f32 %v19132_v14, %v15751_v43  ;;  %10060 = vpow2.f32 %v6065_v55  ;;  %v19135_v55 = vld [vmem:[#allocation146_spill] sm:$0xff] }
 0x866   : > { %9518 = vmatpush3.msra.mxu1 %v10326_v21  ;;  %v15982_v31 = vpop.permute.xlu1 %6801  ;;  %v7631_v18 = vsel %vm19129_vm2, %v7630_v38, %v7626_v3  ;;  %6990 = vperm.xlu1 %9763, %v10043_v9   ;;  %v10045_v12 = vpop.eup %10044  ;;  %v6093_v21 = vmul.f32 1.442695, %v5676_v48  ;;  %v10334_v38 = vld [vmem:[%s10637_s11 + $0x358] sm:$0xff]  ;;  %v10337_v48 = vld [vmem:[%s10637_s11 + $0x3c8] sm:$0xff]  ;;  %vm19144_vm2 = vcmask 851712  }
 0x867   : > { %v6739_v42 = vpop.permute.xlu0 %6738  ;;  %9519 = vmatprep.subr.mxu1 %v10327_v22  ;;  %v6137_v13 = vmul.f32 1.442695, %v5698_v37  ;;  %v10047_v36 = vpop.eup %10046  ;;  %v7650_v22 = vrot.slane %v15876_v16, %v14390_v29  ;;  %v10335_v37 = vld [vmem:[%s10637_s11 + $0x3d0] sm:$0xff] }
 0x868   : > { %v7635_v44 = vrot.slane %v6739_v42, %v14347_v32  ;;  %6924 = vperm.xlu0 %9762, %v10041_v10   ;;  %9520 = vmatpush3.msra.mxu1 %v10328_v59  ;;  %v10049_v42 = vpop.eup %10048  ;;  %v6077_v59 = vmul.f32 1.442695, %v5668_v46  ;;  %v10339_v46 = vld [vmem:[%s10637_s11 + $0x3c0] sm:$0xff] }
 0x869   : > { %9521 = vmatprep.subr.mxu1 %v10329_v60  ;;  %10062 = vpow2.f32 %v6137_v13  ;;  %v10051_v60 = vpop.eup %10050  ;;  %v19136_v13 = vld [vmem:[#allocation360_spill] sm:$0xff] }
 0x86a   : > { %v7636_v54 = vsel %vm19131_vm11, %v7635_v44, %v7631_v18  ;;  %9522 = vmatpush3.msra.mxu1 %v10330_v26  ;;  %v15997_v3 = vpop.permute.xlu1 %6807  ;;  %7083 = vperm.xlu1 %9763, %v10047_v36   ;;  %v5699_v44 = vsub.f32 %v19134_v25, %v15815_v56  ;;  %v10336_v18 = vld [vmem:[%s10637_s11 + $0x350] sm:$0xff]  ;;  %v6067_v26 = vmul.f32 1.442695, %v5663_v50  ;;  %10064 = vpow2.f32 %v6093_v21  ;;  %v10341_v50 = vld [vmem:[%s10637_s11 + $0x3b8] sm:$0xff] }
 0x86b   : > { %v6745_v49 = vpop.permute.xlu0 %6744  ;;  %9523 = vmatprep.subr.mxu1 %v10331_v15  ;;  %v7641_v35 = vsel %vm4177_vm3, %v7640_v52, %v7636_v54  ;;  %v5694_v54 = vsub.f32 %v19135_v55, %v15815_v56  ;;  %v10338_v52 = vld [vmem:[%s10637_s11 + $0x348] sm:$0xff]  ;;  %v7660_v15 = vrot.slane %v15887_v11, %v14397_v45  ;;  %10066 = vpow2.f32 %v6077_v59  ;;  %v19137_v21 = vld [vmem:[#allocation366_spill] sm:$0xff] }
 0x86c   : > { %v7645_v8 = vrot.slane %v6745_v49, %v14379_v24  ;;  %6930 = vperm.xlu0 %9762, %v10045_v12   ;;  %9524 = vmatpush3.msra.mxu1 %v10332_v57  ;;  %v10053_v49 = vpop.eup %10052  ;;  %v6139_v57 = vmul.f32 1.442695, %v5699_v44  ;;  %10068 = vpow2.f32 %v6067_v26  ;;  %v10343_v44 = vld [vmem:[%s10637_s11 + $0x3b0] sm:$0xff]  ;;  %v19138_v59 = vld [vmem:[#allocation152_spill] sm:$0xff]  ;;  %vm19147_vm11 = vcmask 1048512  }
 0x86d   : > { %9525 = vmatprep.subr.mxu1 %v10333_v4  ;;  %v10055_v4 = vpop.eup %10054  ;;  %v19139_v26 = vld [vmem:[#allocation101_spill] sm:$0xff] }
 0x86e   : > { %v7646_v10 = vsel %vm4184_vm4, %v7645_v8, %v7641_v35  ;;  %9526 = vmatpush3.msra.mxu1 %v10334_v38  ;;  %v16012_v28 = vpop.permute.xlu1 %6813  ;;  %6993 = vperm.xlu1 %9763, %v10051_v60   ;;  %v5669_v8 = vsub.f32 %v19136_v13, %v15751_v43  ;;  %v10340_v35 = vld [vmem:[%s10637_s11 + $0x340] sm:$0xff]  ;;  %v6129_v38 = vmul.f32 1.442695, %v5694_v54  ;;  %10070 = vpow2.f32 %v6139_v57  ;;  %v10345_v54 = vld [vmem:[%s10637_s11 + $0x3a8] sm:$0xff] }
 0x86f   : > { %v6751_v63 = vpop.permute.xlu0 %6750  ;;  %9527 = vmatprep.subr.mxu1 %v10335_v37  ;;  %v7651_v16 = vsel %vm4191_vm5, %v7650_v22, %v7646_v10  ;;  %v5678_v10 = vsub.f32 %v19137_v21, %v15815_v56  ;;  %v10342_v22 = vld [vmem:[%s10637_s11 + $0x338] sm:$0xff]  ;;  %v7670_v37 = vrot.slane %v15898_v34, %v14414_v23  ;;  %v19141_v57 = vld [vmem:[#allocation123_spill] sm:$0xff] }
 0x870   : > { %v7655_v9 = vrot.slane %v6751_v63, %v14402_v7  ;;  %6936 = vperm.xlu0 %9762, %v10049_v42   ;;  %9528 = vmatpush3.msra.mxu1 %v10336_v18  ;;  %v10057_v63 = vpop.eup %10056  ;;  %v6079_v18 = vmul.f32 1.442695, %v5669_v8  ;;  %10072 = vpow2.f32 %v6129_v38  ;;  %v10347_v8 = vld [vmem:[%s10637_s11 + $0x3a0] sm:$0xff]  ;;  %v19143_v38 = vld [vmem:[#allocation373_spill] sm:$0xff] }
 0x871   : > { %9529 = vmatprep.subr.mxu1 %v10337_v48  ;;  %v10059_v48 = vpop.eup %10058 }
 0x872   : > { %v7656_v12 = vsel %vm4198_vm6, %v7655_v9, %v7651_v16  ;;  %9530 = vmatpush3.msra.mxu1 %v10338_v52  ;;  %v16027_v17 = vpop.permute.xlu1 %6819  ;;  %7086 = vperm.xlu1 %9763, %v10055_v4   ;;  %v5700_v9 = vsub.f32 %v19138_v59, %v15815_v56  ;;  %v10344_v16 = vld [vmem:[%s10637_s11 + $0x330] sm:$0xff]  ;;  %v6097_v52 = vmul.f32 1.442695, %v5678_v10  ;;  %10074 = vpow2.f32 %v6079_v18  ;;  %v10349_v10 = vld [vmem:[%s10637_s11 + $0x398] sm:$0xff]  ;;  %v19145_v18 = vld [vmem:[#allocation155_spill] sm:$0xff] }
 0x873   : > { %v6757_v14 = vpop.permute.xlu0 %6756  ;;  %9531 = vmatprep.subr.mxu1 %v10339_v46  ;;  %v7661_v11 = vsel %vm4205_vm7, %v7660_v15, %v7656_v12  ;;  %v5648_v12 = vsub.f32 %v19139_v26, %v15751_v43  ;;  %v10346_v15 = vld [vmem:[%s10637_s11 + $0x328] sm:$0xff]  ;;  %v7680_v46 = vrot.slane %v15909_v53, %v14433_v61  ;;  %v7700_v26 = vrot.slane %v15931_v19, %v14503_v0 }
 0x874   : > { %v7665_v36 = vrot.slane %v6757_v14, %v14427_v20  ;;  %6975 = vperm.xlu0 %9762, %v10053_v49   ;;  %9532 = vmatpush3.msra.mxu1 %v10340_v35  ;;  %v10061_v14 = vpop.eup %10060  ;;  %v6141_v35 = vmul.f32 1.442695, %v5700_v9  ;;  %10076 = vpow2.f32 %v6097_v52  ;;  %v10351_v9 = vld [vmem:[%s10637_s11 + $0x390] sm:$0xff]  ;;  %v10353_v52 = vld [vmem:[%s10637_s11 + $0x388] sm:$0xff] }
 0x875   : > { %9533 = vmatprep.subr.mxu1 %v10341_v50 }
 0x876   : > { %v7666_v42 = vsel %vm4212_vm8, %v7665_v36, %v7661_v11  ;;  %9534 = vmatpush3.msra.mxu1 %v10342_v22  ;;  %v16042_v55 = vpop.permute.xlu1 %6825  ;;  %6996 = vperm.xlu1 %9763, %v10059_v48   ;;  %v5670_v36 = vsub.f32 %v19141_v57, %v15751_v43  ;;  %v10348_v11 = vld [vmem:[%s10637_s11 + $0x320] sm:$0xff]  ;;  %v10063_v50 = vpop.eup %10062  ;;  %v6037_v22 = vmul.f32 1.442695, %v5648_v12  ;;  %10078 = vpow2.f32 %v6141_v35  ;;  %v19148_v35 = vld [vmem:[#allocation362_spill] sm:$0xff] }
 0x877   : > { %v6763_v25 = vpop.permute.xlu0 %6762  ;;  %9535 = vmatprep.subr.mxu1 %v10343_v44  ;;  %v7671_v34 = vsel %vm4219_vm9, %v7670_v37, %v7666_v42  ;;  %v5679_v42 = vsub.f32 %v19143_v38, %v15815_v56  ;;  %v10350_v37 = vld [vmem:[%s10637_s11 + $0x318] sm:$0xff]  ;;  %v7690_v44 = vrot.slane %v15920_v2, %v14464_v51 }
 0x878   : > { %v7675_v60 = vrot.slane %v6763_v25, %v14451_v27  ;;  %7068 = vperm.xlu0 %9762, %v10057_v63   ;;  %9536 = vmatpush3.msra.mxu1 %v10344_v16  ;;  %v10065_v25 = vpop.eup %10064  ;;  %v6081_v16 = vmul.f32 1.442695, %v5670_v36  ;;  %10080 = vpow2.f32 %v6037_v22  ;;  %v10355_v36 = vld [vmem:[%s10637_s11 + $0x380] sm:$0xff]  ;;  %v10357_v22 = vld [vmem:[%s10637_s11 + $0x5f8] sm:$0xff] }
 0x879   : > { %9537 = vmatprep.subr.mxu1 %v10345_v54  ;;  %v10067_v54 = vpop.eup %10066 }
 0x87a   : > { %v7676_v49 = vsel %vm19140_vm10, %v7675_v60, %v7671_v34  ;;  %9538 = vmatpush3.msra.mxu1 %v10346_v15  ;;  %v16057_v21 = vpop.permute.xlu1 %6831  ;;  %7089 = vperm.xlu1 %9763, %v10063_v50   ;;  %v5701_v60 = vsub.f32 %v19145_v18, %v15815_v56  ;;  %v10352_v34 = vld [vmem:[%s10637_s11 + $0x310] sm:$0xff]  ;;  %10082 = vpow2.f32 %v6081_v16  ;;  %vm19149_vm10 = vcmask 1042434  }
 0x87b   : > { %v6769_v13 = vpop.permute.xlu0 %6768  ;;  %9539 = vmatprep.subr.mxu1 %v10347_v8  ;;  %v7681_v53 = vsel %vm19142_vm12, %v7680_v46, %v7676_v49  ;;  %v19146_v49 = vld [vmem:[#allocation104_spill] sm:$0xff]  ;;  %v10069_v8 = vpop.eup %10068  ;;  %vm19152_vm12 = vcmask 130112  }
 0x87c   : > { %v7685_v4 = vrot.slane %v6769_v13, %v14484_v5  ;;  %6981 = vperm.xlu0 %9762, %v10061_v14   ;;  %9540 = vmatpush3.msra.mxu1 %v10348_v11  ;;  %v5649_v15 = vsub.f32 %v19146_v49, %v15751_v43  ;;  %v6099_v14 = vmul.f32 1.442695, %v5679_v42  ;;  %v10354_v13 = vld [vmem:[%s10637_s11 + $0x308] sm:$0xff]  ;;  %v6143_v11 = vmul.f32 1.442695, %v5701_v60 }
 0x87d   : > { %9541 = vmatprep.subr.mxu1 %v10349_v10  ;;  %v10071_v10 = vpop.eup %10070 }
 0x87e   : > { %v7686_v63 = vsel %vm19144_vm2, %v7685_v4, %v7681_v53  ;;  %9542 = vmatpush3.msra.mxu1 %v10350_v37  ;;  %v16074_v2 = vpop.permute.xlu1 %6837  ;;  %6999 = vperm.xlu1 %9763, %v10067_v54   ;;  %v5671_v4 = vsub.f32 %v19148_v35, %v15751_v43  ;;  %v10356_v53 = vld [vmem:[%s10637_s11 + $0x300] sm:$0xff]  ;;  %10084 = vpow2.f32 %v6099_v14  ;;  %vm19154_vm2 = vcmask 195712  }
 0x87f   : > { %v6775_v59 = vpop.permute.xlu0 %6774  ;;  %9543 = vmatprep.subr.mxu1 %v10351_v9  ;;  %v7691_v12 = vsel %vm4247_vm13, %v7690_v44, %v7686_v63  ;;  %v19150_v63 = vld [vmem:[#allocation368_spill] sm:$0xff]  ;;  %v10073_v44 = vpop.eup %10072  ;;  %10086 = vpow2.f32 %v6143_v11 }
 0x880   : > { %v7695_v48 = vrot.slane %v6775_v59, %v14521_v41  ;;  %7023 = vperm.xlu0 %9762, %v10065_v25   ;;  %9544 = vmatpush3.msra.mxu1 %v10352_v34  ;;  %v5680_v37 = vsub.f32 %v19150_v63, %v15815_v56  ;;  %v6039_v25 = vmul.f32 1.442695, %v5649_v15  ;;  %v19151_v9 = vld [vmem:[#allocation392_spill] sm:$0xff]  ;;  %v6083_v60 = vmul.f32 1.442695, %v5671_v4 }
 0x881   : > { %9545 = vmatprep.subr.mxu1 %v10353_v52  ;;  %v5702_v18 = vsub.f32 %v19151_v9, %v15815_v56  ;;  %v7719_v15 = vrot.slane %v15955_v33, %v14368_v40  ;;  %v19156_v11 = vld [vmem:[#allocation136_spill] sm:$0xff] }
 0x882   : > { %v7696_v46 = vsel %vm4254_vm14, %v7695_v48, %v7691_v12  ;;  %9546 = vmatpush3.msra.mxu1 %v10354_v13  ;;  %v16094_v38 = vpop.permute.xlu1 %6843  ;;  %7092 = vperm.xlu1 %9763, %v10071_v10   ;;  %v10075_v48 = vpop.eup %10074  ;;  %v6101_v52 = vmul.f32 1.442695, %v5680_v37  ;;  %10088 = vpow2.f32 %v6039_v25  ;;  %v19157_v37 = vld [vmem:[#allocation395_spill] sm:$0xff] }
 0x883   : > { %v6781_v19 = vpop.permute.xlu0 %6780  ;;  %v16083_v57 = vsel %vm19147_vm11, %v7700_v26, %v7696_v46  ;;  %9547 = vmatprep.subr.mxu1 %v10355_v36  ;;  %v19153_v26 = vld [vmem:[#allocation338_spill] sm:$0xff]  ;;  %v10077_v49 = vpop.eup %10076  ;;  %v19155_v46 = vld [vmem:[#allocation125_spill] sm:$0xff]  ;;  %10090 = vpow2.f32 %v6083_v60  ;;  %v5703_v25 = vsub.f32 %v19157_v37, %v15815_v56  ;;  %vm19163_vm11 = vcmask 720512  }
 0x884   : > { %6984 = vperm.xlu0 %9762, %v10069_v8   ;;  %v16091_v50 = vsel %vm19149_vm10, %v16083_v57, %v15873_v47  ;;  %9548 = vmatpush3.msra.mxu1 %v10356_v53  ;;  %v7705_v42 = vrot.slane %v6781_v19, %v14357_v62  ;;  %v7709_v47 = vrot.slane %v15942_v58, %v14339_v39  ;;  %v6145_v8 = vmul.f32 1.442695, %v5702_v18  ;;  %v10079_v36 = vpop.eup %10078  ;;  %v19158_v60 = vld [vmem:[#allocation106_spill] sm:$0xff] }
 0x885   : > { %9587 = vmatprep.subr.mxu1 %v10357_v22  ;;  %v5650_v12 = vsub.f32 %v19153_v26, %v15751_v43  ;;  %v5672_v13 = vsub.f32 %v19155_v46, %v15751_v43  ;;  %v5681_v53 = vsub.f32 %v19156_v11, %v15815_v56  ;;  %10092 = vpow2.f32 %v6101_v52  ;;  %v19159_v52 = vld [vmem:[#allocation364_spill] sm:$0xff] }
 0x886   : > { %v16105_v34 = vpop.permute.xlu1 %6849  ;;  %v7710_v54 = vsel %vm19152_vm12, %v7709_v47, %v7705_v42  ;;  %7002 = vperm.xlu1 %9763, %v10075_v48   ;;  %v10081_v42 = vpop.eup %10080  ;;  %v7729_v22 = vrot.slane %v15968_v30, %v14390_v29  ;;  %10094 = vpow2.f32 %v6145_v8  ;;  %v7739_v26 = vrot.slane %v15982_v31, %v14397_v45  ;;  %v19160_v8 = vld [vmem:[#allocation134_spill] sm:$0xff] }
 0x887   : > { %v6787_v59 = vpop.permute.xlu0 %6786  ;;  %v6041_v10 = vmul.f32 1.442695, %v5650_v12  ;;  %v6103_v48 = vmul.f32 1.442695, %v5681_v53  ;;  %v7749_v11 = vrot.slane %v15997_v3, %v14414_v23  ;;  %vm19165_vm10 = vcmask 786112  }
 0x888   : > { %v7714_v16 = vrot.slane %v6787_v59, %v14347_v32  ;;  %7077 = vperm.xlu0 %9762, %v10073_v44   ;;  %v6085_v44 = vmul.f32 1.442695, %v5672_v13  ;;  %v10083_v59 = vpop.eup %10082  ;;  %vm19167_vm12 = vcmask 851712  }
 0x889   : > { %10096 = vpow2.f32 %v6041_v10  ;;  %v19161_v10 = vld [vmem:[#allocation156_spill] sm:$0xff] }
 0x88a   : > { %v7715_v58 = vsel %vm19154_vm2, %v7714_v16, %v7710_v54  ;;  %v16116_v35 = vpop.permute.xlu1 %6855  ;;  %7095 = vperm.xlu1 %9763, %v10079_v36   ;;  %v5651_v16 = vsub.f32 %v19158_v60, %v15751_v43  ;;  %10098 = vpow2.f32 %v6085_v44  ;;  %v19162_v44 = vld [vmem:[#allocation340_spill] sm:$0xff]  ;;  %v7759_v60 = vrot.slane %v16012_v28, %v14433_v61 }
 0x88b   : > { %v6793_v14 = vpop.permute.xlu0 %6792  ;;  %v7720_v4 = vsel %vm4177_vm3, %v7719_v15, %v7715_v58  ;;  %v10085_v54 = vpop.eup %10084  ;;  %v5673_v58 = vsub.f32 %v19159_v52, %v15751_v43  ;;  %10100 = vpow2.f32 %v6103_v48  ;;  %v19164_v48 = vld [vmem:[#allocation127_spill] sm:$0xff]  ;;  %vm19170_vm2 = vcmask 1048512  }
 0x88c   : > { %v7724_v19 = vrot.slane %v6793_v14, %v14379_v24  ;;  %7029 = vperm.xlu0 %9762, %v10077_v49   ;;  %v6147_v49 = vmul.f32 1.442695, %v5703_v25  ;;  %v10087_v14 = vpop.eup %10086  ;;  %v6043_v36 = vmul.f32 1.442695, %v5651_v16 }
 0x88e   : > { %v7725_v33 = vsel %vm4184_vm4, %v7724_v19, %v7720_v4  ;;  %v16127_v9 = vpop.permute.xlu1 %6861  ;;  %7005 = vperm.xlu1 %9763, %v10083_v59   ;;  %v5682_v19 = vsub.f32 %v19160_v8, %v15815_v56  ;;  %10102 = vpow2.f32 %v6147_v49  ;;  %v19166_v49 = vld [vmem:[#allocation138_spill] sm:$0xff]  ;;  %v7769_v8 = vrot.slane %v16027_v17, %v14464_v51 }
 0x88f   : > { %v6799_v63 = vpop.permute.xlu0 %6798  ;;  %v7730_v18 = vsel %vm4191_vm5, %v7729_v22, %v7725_v33  ;;  %v10089_v4 = vpop.eup %10088  ;;  %v5704_v33 = vsub.f32 %v19161_v10, %v15815_v56  ;;  %10104 = vpow2.f32 %v6043_v36  ;;  %v19168_v36 = vld [vmem:[#allocation159_spill] sm:$0xff]  ;;  %v7779_v10 = vrot.slane %v16042_v55, %v14503_v0 }
 0x890   : > { %v7734_v47 = vrot.slane %v6799_v63, %v14402_v7  ;;  %6939 = vperm.xlu0 %9762, %v10081_v42   ;;  %v6087_v42 = vmul.f32 1.442695, %v5673_v58  ;;  %v10091_v63 = vpop.eup %10090  ;;  %v6105_v59 = vmul.f32 1.442695, %v5682_v19 }
 0x892   : > { %v7735_v30 = vsel %vm4198_vm6, %v7734_v47, %v7730_v18  ;;  %v16138_v46 = vpop.permute.xlu1 %6867  ;;  %7098 = vperm.xlu1 %9763, %v10087_v14   ;;  %v5652_v47 = vsub.f32 %v19162_v44, %v15751_v43  ;;  %v10093_v18 = vpop.eup %10092  ;;  %10106 = vpow2.f32 %v6087_v42 }
 0x893   : > { %v6805_v12 = vpop.permute.xlu0 %6804  ;;  %v7740_v13 = vsel %vm4205_vm7, %v7739_v26, %v7735_v30  ;;  %v5674_v30 = vsub.f32 %v19164_v48, %v15751_v43  ;;  %10108 = vpow2.f32 %v6105_v59 }
 0x894   : > { %v7744_v15 = vrot.slane %v6805_v12, %v14427_v20  ;;  %7032 = vperm.xlu0 %9762, %v10085_v54   ;;  %v6149_v54 = vmul.f32 1.442695, %v5704_v33  ;;  %v10095_v12 = vpop.eup %10094  ;;  %v6045_v14 = vmul.f32 1.442695, %v5652_v47 }
 0x896   : > { %v7745_v31 = vsel %vm4212_vm8, %v7744_v15, %v7740_v13  ;;  %v16149_v37 = vpop.permute.xlu1 %6873  ;;  %7008 = vperm.xlu1 %9763, %v10091_v63   ;;  %v5683_v15 = vsub.f32 %v19166_v49, %v15815_v56  ;;  %v10097_v13 = vpop.eup %10096  ;;  %10110 = vpow2.f32 %v6149_v54  ;;  %v19173_v54 = vld [vmem:[#allocation372_spill] sm:$0xff]  ;;  %v19174_v49 = vld [vmem:[#allocation345_spill] sm:$0xff] }
 0x897   : > { %v6811_v53 = vpop.permute.xlu0 %6810  ;;  %v7750_v25 = vsel %vm4219_vm9, %v7749_v11, %v7745_v31  ;;  %v5705_v31 = vsub.f32 %v19168_v36, %v15815_v56  ;;  %10112 = vpow2.f32 %v6045_v14  ;;  %v7788_v14 = vrot.slane %v16057_v21, %v14339_v39 }
 0x898   : > { %v7754_v22 = vrot.slane %v6811_v53, %v14451_v27  ;;  %6942 = vperm.xlu0 %9762, %v10089_v4   ;;  %v6089_v4 = vmul.f32 1.442695, %v5674_v30  ;;  %v10099_v53 = vpop.eup %10098  ;;  %v6107_v63 = vmul.f32 1.442695, %v5683_v15  ;;  %v16195_v15 = vrot.slane %v15333_v6, %v19174_v49 }
 0x899   : > { %v10101_v44 = vpop.eup %10100 }
 0x89a   : > { %v7755_v3 = vsel %vm19163_vm11, %v7754_v22, %v7750_v25  ;;  %v16160_v52 = vpop.permute.xlu1 %6879  ;;  %7101 = vperm.xlu1 %9763, %v10095_v12   ;;  %v19169_v22 = vld [vmem:[#allocation108_spill] sm:$0xff]  ;;  %10114 = vpow2.f32 %v6089_v4  ;;  %vm19172_vm11 = vcmask 1042434  }
 0x89b   : > { %v6817_v16 = vpop.permute.xlu0 %6816  ;;  %v7760_v58 = vsel %vm19165_vm10, %v7759_v60, %v7755_v3  ;;  %v5653_v17 = vsub.f32 %v19169_v22, %v15751_v43  ;;  %v19171_v3 = vld [vmem:[#allocation144_spill] sm:$0xff]  ;;  %10116 = vpow2.f32 %v6107_v63  ;;  %vm19176_vm10 = vcmask 130112  }
 0x89c   : > { %v7764_v26 = vrot.slane %v6817_v16, %v14484_v5  ;;  %7035 = vperm.xlu0 %9762, %v10093_v18   ;;  %v5689_v55 = vsub.f32 %v19171_v3, %v15815_v56  ;;  %v6151_v18 = vmul.f32 1.442695, %v5705_v31  ;;  %v10103_v16 = vpop.eup %10102  ;;  %v10360_v31 = vld [vmem:[%s10637_s11 + $0x470] sm:$0xff]  ;;  %v10362_v63 = vld [vmem:[%s10637_s11 + $0x468] sm:$0xff] }
 0x89d   : > { %v6047_v12 = vmul.f32 1.442695, %v5653_v17  ;;  %v19179_v3 = vld [vmem:[#allocation404_spill] sm:$0xff] }
 0x89e   : > { %v7765_v28 = vsel %vm19167_vm12, %v7764_v26, %v7760_v58  ;;  %v16173_v33 = vpop.permute.xlu1 %6885  ;;  %7011 = vperm.xlu1 %9763, %v10099_v53   ;;  %v5684_v26 = vsub.f32 %v19173_v54, %v15815_v56  ;;  %v10358_v58 = vld [vmem:[%s10637_s11 + $0x478] sm:$0xff]  ;;  %10118 = vpow2.f32 %v6151_v18  ;;  %v10361_v53 = vld [vmem:[%s10637_s11 + $0x4e8] sm:$0xff]  ;;  %vm19178_vm12 = vcmask 195712  }
 0x89f   : > { %v6823_v19 = vpop.permute.xlu0 %6822  ;;  %v7770_v42 = vsel %vm4247_vm13, %v7769_v8, %v7765_v28  ;;  %10120 = vpow2.f32 %v6047_v12  ;;  %v10365_v12 = vld [vmem:[%s10637_s11 + $0x4d8] sm:$0xff] }
 0x8a0   : > { %v7774_v11 = vrot.slane %v6823_v19, %v14521_v41  ;;  %6945 = vperm.xlu0 %9762, %v10097_v13   ;;  %v19175_v13 = vld [vmem:[#allocation378_spill] sm:$0xff]  ;;  %v6119_v19 = vmul.f32 1.442695, %v5689_v55  ;;  %v6109_v22 = vmul.f32 1.442695, %v5684_v26  ;;  %v5724_v55 = vsub.f32 %v19179_v3, %v16195_v15 }
 0x8a1   : > { %v5690_v8 = vsub.f32 %v19175_v13, %v15815_v56  ;;  %v19181_v13 = vld [vmem:[#allocation376_spill] sm:$0xff] }
 0x8a2   : > { %v7775_v25 = vsel %vm4254_vm14, %v7774_v11, %v7770_v42  ;;  %v16186_v48 = vpop.permute.xlu1 %6891  ;;  %7104 = vperm.xlu1 %9763, %v10103_v16   ;;  %10122 = vpow2.f32 %v6119_v19  ;;  %v7808_v19 = vrot.slane %v16094_v38, %v14390_v29 }
 0x8a3   : > { %v6829_v47 = vpop.permute.xlu0 %6828  ;;  %v7780_v59 = vsel %vm19170_vm2, %v7779_v10, %v7775_v25  ;;  %v19177_v10 = vld [vmem:[#allocation342_spill] sm:$0xff]  ;;  %v6121_v18 = vmul.f32 1.442695, %v5690_v8  ;;  %10124 = vpow2.f32 %v6109_v22  ;;  %v16229_v8 = vrot.slane %v15333_v6, %v19181_v13 }
 0x8a4   : > { %7038 = vperm.xlu0 %9762, %v10101_v44   ;;  %v16184_v60 = vsel %vm19172_vm11, %v7780_v59, %v15966_v1  ;;  %8800 = vmatprep.mubr.f32.mxu0 %v7780_v59  ;;  %v7784_v30 = vrot.slane %v6829_v47, %v14357_v62  ;;  %v10105_v1 = vpop.eup %10104  ;;  %v5654_v42 = vsub.f32 %v19177_v10, %v15751_v43  ;;  %v10363_v59 = vld [vmem:[%s10637_s11 + $0x4e0] sm:$0xff]  ;;  %vm19188_vm2 = vcmask 720512  }
 0x8a5   : > { %8801 = vmatmul.mubr.f32.vlgmr.msra.gmra.mxu0 %v16083_v57  ;;  %v10359_v57 = vld [vmem:[%s10637_s11 + $0x4f0] sm:$0xff]  ;;  %v10107_v4 = vpop.eup %10106  ;;  %v7798_v44 = vrot.slane %v16074_v2, %v14368_v40  ;;  %10126 = vpow2.f32 %v6121_v18  ;;  %vm19190_vm11 = vcmask 786112  }
 0x8a6   : > { %9553 = vmatpush3.msra.mxu0 %v10358_v58  ;;  %v16204_v11 = vpop.permute.xlu1 %6897  ;;  %v7789_v21 = vsel %vm19176_vm10, %v7788_v14, %v7784_v30  ;;  %7014 = vperm.xlu1 %9763, %v10107_v4   ;;  %v10109_v25 = vpop.eup %10108  ;;  %v10364_v30 = vld [vmem:[%s10637_s11 + $0x460] sm:$0xff]  ;;  %v19180_v58 = vld [vmem:[#allocation140_spill] sm:$0xff]  ;;  %v6049_v49 = vmul.f32 1.442695, %v5654_v42  ;;  %v19182_v4 = vld [vmem:[#allocation397_spill] sm:$0xff]  ;;  %vm19192_vm10 = vcmask 851712  }
 0x8a7   : > { %v6835_v28 = vpop.permute.xlu0 %6834  ;;  %9554 = vmatprep.subr.mxu0 %v10359_v57  ;;  %v10111_v54 = vpop.eup %10110  ;;  %v10368_v42 = vld [vmem:[%s10637_s11 + $0x450] sm:$0xff] }
 0x8a8   : > { %v7793_v36 = vrot.slane %v6835_v28, %v14347_v32  ;;  %6948 = vperm.xlu0 %9762, %v10105_v1   ;;  %9555 = vmatpush3.msra.mxu0 %v10360_v31  ;;  %v5685_v1 = vsub.f32 %v19180_v58, %v15815_v56  ;;  %v10366_v28 = vld [vmem:[%s10637_s11 + $0x458] sm:$0xff]  ;;  %v10113_v57 = vpop.eup %10112  ;;  %v10367_v31 = vld [vmem:[%s10637_s11 + $0x4d0] sm:$0xff]  ;;  %10128 = vpow2.f32 %v6049_v49  ;;  %v10372_v58 = vld [vmem:[%s10637_s11 + $0x440] sm:$0xff] }
 0x8a9   : > { %9556 = vmatprep.subr.mxu0 %v10361_v53  ;;  %v6189_v53 = vmul.f32 1.442695, %v5724_v55  ;;  %v10115_v6 = vpop.eup %10114  ;;  %v7818_v55 = vrot.slane %v16105_v34, %v14397_v45 }
 0x8aa   : > { %v7794_v17 = vsel %vm19178_vm12, %v7793_v36, %v7789_v21  ;;  %9557 = vmatpush3.msra.mxu0 %v10362_v63  ;;  %v16219_v26 = vpop.permute.xlu1 %6903  ;;  %7107 = vperm.xlu1 %9763, %v10111_v54   ;;  %v5708_v21 = vsub.f32 %v19182_v4, %v16195_v15  ;;  %v19183_v63 = vld [vmem:[#allocation110_spill] sm:$0xff]  ;;  %v10117_v3 = vpop.eup %10116  ;;  %v7828_v4 = vrot.slane %v16116_v35, %v14414_v23  ;;  %vm19195_vm12 = vcmask 1048512  }
 0x8ab   : > { %v6841_v47 = vpop.permute.xlu0 %6840  ;;  %9558 = vmatprep.subr.mxu0 %v10363_v59  ;;  %v7799_v2 = vsel %vm4177_vm3, %v7798_v44, %v7794_v17  ;;  %v10369_v17 = vld [vmem:[%s10637_s11 + $0x4c8] sm:$0xff]  ;;  %v6111_v44 = vmul.f32 1.442695, %v5685_v1  ;;  %10130 = vpow2.f32 %v6189_v53  ;;  %v10119_v1 = vpop.eup %10118  ;;  %v10375_v53 = vld [vmem:[%s10637_s11 + $0x4b0] sm:$0xff] }
 0x8ac   : > { %v7803_v16 = vrot.slane %v6841_v47, %v14379_v24  ;;  %7041 = vperm.xlu0 %9762, %v10109_v25   ;;  %9559 = vmatpush3.msra.mxu0 %v10364_v30  ;;  %v5655_v25 = vsub.f32 %v19183_v63, %v15751_v43  ;;  %v10370_v59 = vld [vmem:[%s10637_s11 + $0x448] sm:$0xff]  ;;  %v19184_v30 = vld [vmem:[#allocation223_spill] sm:$0xff] }
 0x8ad   : > { %9560 = vmatprep.subr.mxu0 %v10365_v12  ;;  %v5755_v54 = vsub.f32 %v19184_v30, %v16229_v8  ;;  %10132 = vpow2.f32 %v6111_v44  ;;  %v10377_v44 = vld [vmem:[%s10637_s11 + $0x4a8] sm:$0xff]  ;;  %v7838_v30 = vrot.slane %v16127_v9, %v14433_v61 }
 0x8ae   : > { %v7804_v14 = vsel %vm4184_vm4, %v7803_v16, %v7799_v2  ;;  %9561 = vmatpush3.msra.mxu0 %v10366_v28  ;;  %v16238_v22 = vpop.permute.xlu1 %6909  ;;  %7017 = vperm.xlu1 %9763, %v10115_v6   ;;  %v10371_v16 = vld [vmem:[%s10637_s11 + $0x4c0] sm:$0xff]  ;;  %v6157_v2 = vmul.f32 1.442695, %v5708_v21  ;;  %v19185_v28 = vld [vmem:[#allocation374_spill] sm:$0xff]  ;;  %v6051_v13 = vmul.f32 1.442695, %v5655_v25 }
 0x8af   : > { %v6847_v36 = vpop.permute.xlu0 %6846  ;;  %9562 = vmatprep.subr.mxu0 %v10367_v31  ;;  %v7809_v38 = vsel %vm4191_vm5, %v7808_v19, %v7804_v14  ;;  %v10373_v14 = vld [vmem:[%s10637_s11 + $0x4b8] sm:$0xff]  ;;  %v10121_v31 = vpop.eup %10120  ;;  %v6251_v6 = vmul.f32 1.442695, %v5755_v54 }
 0x8b0   : > { %v7813_v10 = vrot.slane %v6847_v36, %v14402_v7  ;;  %6951 = vperm.xlu0 %9762, %v10113_v57   ;;  %9563 = vmatpush3.msra.mxu0 %v10368_v42  ;;  %v5686_v57 = vsub.f32 %v19185_v28, %v15815_v56  ;;  %v10374_v36 = vld [vmem:[%s10637_s11 + $0x438] sm:$0xff]  ;;  %10134 = vpow2.f32 %v6157_v2  ;;  %v10123_v63 = vpop.eup %10122  ;;  %v10379_v2 = vld [vmem:[%s10637_s11 + $0x4a0] sm:$0xff] }
 0x8b1   : > { %9564 = vmatprep.subr.mxu0 %v10369_v17  ;;  %v10376_v17 = vld [vmem:[%s10637_s11 + $0x430] sm:$0xff]  ;;  %10136 = vpow2.f32 %v6051_v13  ;;  %v10381_v13 = vld [vmem:[%s10637_s11 + $0x498] sm:$0xff] }
 0x8b2   : > { %v7814_v47 = vsel %vm4198_vm6, %v7813_v10, %v7809_v38  ;;  %9565 = vmatpush3.msra.mxu0 %v10370_v59  ;;  %v16253_v49 = vpop.permute.xlu1 %6915  ;;  %7110 = vperm.xlu1 %9763, %v10119_v1   ;;  %v19186_v10 = vld [vmem:[#allocation161_spill] sm:$0xff]  ;;  %10138 = vpow2.f32 %v6251_v6 }
 0x8b3   : > { %v6853_v18 = vpop.permute.xlu0 %6852  ;;  %9566 = vmatprep.subr.mxu0 %v10371_v16  ;;  %v7819_v34 = vsel %vm4205_vm7, %v7818_v55, %v7814_v47  ;;  %v5709_v42 = vsub.f32 %v19186_v10, %v16195_v15  ;;  %v19187_v47 = vld [vmem:[#allocation344_spill] sm:$0xff]  ;;  %v10125_v16 = vpop.eup %10124  ;;  %v7848_v10 = vrot.slane %v16138_v46, %v14464_v51  ;;  %v10383_v6 = vld [vmem:[%s10637_s11 + $0x490] sm:$0xff] }
 0x8b4   : > { %v7823_v12 = vrot.slane %v6853_v18, %v14427_v20  ;;  %7044 = vperm.xlu0 %9762, %v10117_v3   ;;  %9567 = vmatpush3.msra.mxu0 %v10372_v58  ;;  %v5656_v59 = vsub.f32 %v19187_v47, %v15751_v43  ;;  %v6113_v3 = vmul.f32 1.442695, %v5686_v57  ;;  %v10378_v18 = vld [vmem:[%s10637_s11 + $0x428] sm:$0xff]  ;;  %v10127_v28 = vpop.eup %10126 }
 0x8b5   : > { %9568 = vmatprep.subr.mxu0 %v10373_v14  ;;  %v6159_v1 = vmul.f32 1.442695, %v5709_v42  ;;  %v10380_v14 = vld [vmem:[%s10637_s11 + $0x420] sm:$0xff] }
 0x8b6   : > { %v7824_v19 = vsel %vm4212_vm8, %v7823_v12, %v7819_v34  ;;  %9569 = vmatpush3.msra.mxu0 %v10374_v36  ;;  %v16268_v25 = vpop.permute.xlu1 %6921  ;;  %7062 = vperm.xlu1 %9763, %v10123_v63   ;;  %v19189_v12 = vld [vmem:[#allocation202_spill] sm:$0xff]  ;;  %10140 = vpow2.f32 %v6113_v3 }
 0x8b7   : > { %v6859_v21 = vpop.permute.xlu0 %6858  ;;  %9570 = vmatprep.subr.mxu0 %v10375_v53  ;;  %v7829_v35 = vsel %vm4219_vm9, %v7828_v4, %v7824_v19  ;;  %v5739_v58 = vsub.f32 %v19189_v12, %v16229_v8  ;;  %v19191_v19 = vld [vmem:[#allocation142_spill] sm:$0xff]  ;;  %v10129_v53 = vpop.eup %10128  ;;  %10142 = vpow2.f32 %v6159_v1  ;;  %v10387_v1 = vld [vmem:[%s10637_s11 + $0x480] sm:$0xff] }
 0x8b8   : > { %v7833_v38 = vrot.slane %v6859_v21, %v14451_v27  ;;  %6954 = vperm.xlu0 %9762, %v10121_v31   ;;  %9571 = vmatpush3.msra.mxu0 %v10376_v17  ;;  %v5687_v36 = vsub.f32 %v19191_v19, %v15815_v56  ;;  %v6053_v31 = vmul.f32 1.442695, %v5656_v59  ;;  %v10382_v21 = vld [vmem:[%s10637_s11 + $0x418] sm:$0xff]  ;;  %v10131_v47 = vpop.eup %10130  ;;  %v7858_v59 = vrot.slane %v16149_v37, %v14503_v0 }
 0x8b9   : > { %9572 = vmatprep.subr.mxu0 %v10377_v44  ;;  %v6219_v63 = vmul.f32 1.442695, %v5739_v58  ;;  %v10384_v44 = vld [vmem:[%s10637_s11 + $0x410] sm:$0xff] }
 0x8ba   : > { %v7834_v55 = vsel %vm19188_vm2, %v7833_v38, %v7829_v35  ;;  %9573 = vmatpush3.msra.mxu0 %v10378_v18  ;;  %v16283_v57 = vpop.permute.xlu1 %6927  ;;  %7065 = vperm.xlu1 %9763, %v10127_v28   ;;  %v19193_v38 = vld [vmem:[#allocation225_spill] sm:$0xff]  ;;  %v19194_v18 = vld [vmem:[#allocation112_spill] sm:$0xff]  ;;  %10144 = vpow2.f32 %v6053_v31  ;;  %v10133_v12 = vpop.eup %10132  ;;  %vm19197_vm2 = vcmask 1043459  }
 0x8bb   : > { %v6865_v54 = vpop.permute.xlu0 %6864  ;;  %9574 = vmatprep.subr.mxu0 %v10379_v2  ;;  %v7839_v9 = vsel %vm19190_vm11, %v7838_v30, %v7834_v55  ;;  %v5757_v17 = vsub.f32 %v19193_v38, %v16229_v8  ;;  %v10385_v55 = vld [vmem:[%s10637_s11 + $0x488] sm:$0xff]  ;;  %v6115_v30 = vmul.f32 1.442695, %v5687_v36  ;;  %10146 = vpow2.f32 %v6219_v63  ;;  %v19199_v38 = vld [vmem:[#allocation15_spill] sm:$0xff] }
 0x8bc   : > { %v7843_v34 = vrot.slane %v6865_v54, %v14484_v5  ;;  %7047 = vperm.xlu0 %9762, %v10125_v16   ;;  %9575 = vmatpush3.msra.mxu0 %v10380_v14  ;;  %v5657_v16 = vsub.f32 %v19194_v18, %v15751_v43  ;;  %v10386_v2 = vld [vmem:[%s10637_s11 + $0x408] sm:$0xff]  ;;  %vm19200_vm11 = vcmask 130112  }
 0x8bd   : > { %9576 = vmatprep.subr.mxu0 %v10381_v13  ;;  %v6255_v28 = vmul.f32 1.442695, %v5757_v17  ;;  %v10388_v13 = vld [vmem:[%s10637_s11 + $0x400] sm:$0xff]  ;;  %v10135_v19 = vpop.eup %10134  ;;  %10148 = vpow2.f32 %v6115_v30  ;;  %v5758_v17 = vsub.f32 %v19199_v38, %v16229_v8  ;;  %v7877_v30 = vrot.slane %v16173_v33, %v14368_v40 }
 0x8be   : > { %v7844_v4 = vsel %vm19192_vm10, %v7843_v34, %v7839_v9  ;;  %9577 = vmatpush3.msra.mxu0 %v10382_v21  ;;  %v16300_v46 = vpop.permute.xlu1 %6933  ;;  %7167 = vperm.xlu1 %9763, %v10131_v47   ;;  %v19196_v34 = vld [vmem:[#allocation180_spill] sm:$0xff]  ;;  %v19198_v21 = vld [vmem:[#allocation375_spill] sm:$0xff]  ;;  %vm19202_vm10 = vcmask 195712  }
 0x8bf   : > { %v6871_v42 = vpop.permute.xlu0 %6870  ;;  %9578 = vmatprep.subr.mxu0 %v10383_v6  ;;  %v7849_v3 = vsel %vm4247_vm13, %v7848_v10, %v7844_v4  ;;  %v5727_v14 = vsub.f32 %v19196_v34, %v16195_v15  ;;  %v10389_v4 = vld [vmem:[%s10637_s11 + $0x6f8] sm:$0xff]  ;;  %v6055_v10 = vmul.f32 1.442695, %v5657_v16  ;;  %10150 = vpow2.f32 %v6255_v28 }
 0x8c0   : > { %v7853_v35 = vrot.slane %v6871_v42, %v14521_v41  ;;  %6957 = vperm.xlu0 %9762, %v10129_v53   ;;  %9579 = vmatpush3.msra.mxu0 %v10384_v44  ;;  %v5688_v53 = vsub.f32 %v19198_v21, %v15815_v56  ;;  %v10137_v42 = vpop.eup %10136  ;;  %v19204_v28 = vld [vmem:[#allocation158_spill] sm:$0xff] }
 0x8c1   : > { %9580 = vmatprep.subr.mxu0 %v10385_v55  ;;  %v6195_v63 = vmul.f32 1.442695, %v5727_v14  ;;  %v10139_v44 = vpop.eup %10138  ;;  %10152 = vpow2.f32 %v6055_v10 }
 0x8c2   : > { %v7854_v54 = vsel %vm4254_vm14, %v7853_v35, %v7849_v3  ;;  %9581 = vmatpush3.msra.mxu0 %v10386_v2  ;;  %v16320_v36 = vpop.permute.xlu1 %6972  ;;  %7119 = vperm.xlu1 %9763, %v10135_v19   ;;  %v19201_v3 = vld [vmem:[#allocation347_spill] sm:$0xff]  ;;  %v6117_v18 = vmul.f32 1.442695, %v5688_v53  ;;  %v19203_v2 = vld [vmem:[#allocation178_spill] sm:$0xff] }
 0x8c3   : > { %v6877_v37 = vpop.permute.xlu0 %6876  ;;  %v16309_v58 = vsel %vm19195_vm12, %v7858_v59, %v7854_v54  ;;  %9582 = vmatprep.subr.mxu0 %v10387_v1  ;;  %v5658_v55 = vsub.f32 %v19201_v3, %v15751_v43  ;;  %v10141_v16 = vpop.eup %10140  ;;  %10154 = vpow2.f32 %v6195_v63  ;;  %v19205_v53 = vld [vmem:[#allocation227_spill] sm:$0xff]  ;;  %vm19211_vm12 = vcmask 720512  }
 0x8c4   : > { %7050 = vperm.xlu0 %9762, %v10133_v12   ;;  %v16317_v9 = vsel %vm19197_vm2, %v16309_v58, %v16091_v50  ;;  %9583 = vmatpush3.msra.mxu0 %v10388_v13  ;;  %v7863_v31 = vrot.slane %v6877_v37, %v14357_v62  ;;  %v7867_v50 = vrot.slane %v16160_v52, %v14339_v39  ;;  %v6257_v37 = vmul.f32 1.442695, %v5758_v17  ;;  %v10143_v34 = vpop.eup %10142  ;;  %v19206_v17 = vld [vmem:[#allocation175_spill] sm:$0xff] }
 0x8c5   : > { %9622 = vmatprep.subr.mxu0 %v10389_v4  ;;  %v5728_v12 = vsub.f32 %v19203_v2, %v16195_v15  ;;  %v5706_v13 = vsub.f32 %v19204_v28, %v15815_v56  ;;  %v6057_v19 = vmul.f32 1.442695, %v5658_v55  ;;  %10156 = vpow2.f32 %v6117_v18  ;;  %v19207_v55 = vld [vmem:[#allocation183_spill] sm:$0xff] }
 0x8c6   : > { %v16331_v47 = vpop.permute.xlu1 %6978  ;;  %v7868_v59 = vsel %vm19200_vm11, %v7867_v50, %v7863_v31  ;;  %7260 = vperm.xlu1 %9763, %v10139_v44   ;;  %v7887_v4 = vrot.slane %v16186_v48, %v14390_v29  ;;  %v5759_v10 = vsub.f32 %v19205_v53, %v16229_v8  ;;  %10158 = vpow2.f32 %v6257_v37 }
 0x8c7   : > { %v6883_v6 = vpop.permute.xlu0 %6882  ;;  %v10145_v31 = vpop.eup %10144  ;;  %v5723_v63 = vsub.f32 %v19206_v17, %v16195_v15  ;;  %10160 = vpow2.f32 %v6057_v19  ;;  %v5729_v18 = vsub.f32 %v19207_v55, %v16195_v15  ;;  %vm19213_vm2 = vcmask 786112  }
 0x8c8   : > { %v7872_v35 = vrot.slane %v6883_v6, %v14347_v32  ;;  %6960 = vperm.xlu0 %9762, %v10137_v42   ;;  %v6197_v42 = vmul.f32 1.442695, %v5728_v12  ;;  %v10147_v6 = vpop.eup %10146  ;;  %v19208_v12 = vld [vmem:[#allocation160_spill] sm:$0xff]  ;;  %vm19215_vm11 = vcmask 851712  }
 0x8c9   : > { %v5707_v37 = vsub.f32 %v19208_v12, %v16195_v15 }
 0x8ca   : > { %v7873_v52 = vsel %vm19202_vm10, %v7872_v35, %v7868_v59  ;;  %v16342_v43 = vpop.permute.xlu1 %7071  ;;  %7122 = vperm.xlu1 %9763, %v10143_v34   ;;  %v6153_v35 = vmul.f32 1.442695, %v5706_v13  ;;  %v10149_v44 = vpop.eup %10148  ;;  %v7897_v59 = vrot.slane %v16204_v11, %v14397_v45  ;;  %10162 = vpow2.f32 %v6197_v42  ;;  %v19209_v13 = vld [vmem:[#allocation250_spill] sm:$0xff] }
 0x8cb   : > { %v6889_v54 = vpop.permute.xlu0 %6888  ;;  %v7878_v14 = vsel %vm4177_vm3, %v7877_v30, %v7873_v52  ;;  %v6259_v52 = vmul.f32 1.442695, %v5759_v10  ;;  %v5760_v19 = vsub.f32 %v19209_v13, %v16229_v8  ;;  %v19210_v10 = vld [vmem:[#allocation177_spill] sm:$0xff]  ;;  %vm19218_vm10 = vcmask 1048512  }
 0x8cc   : > { %v7882_v1 = vrot.slane %v6889_v54, %v14379_v24  ;;  %7053 = vperm.xlu0 %9762, %v10141_v16   ;;  %v10151_v30 = vpop.eup %10150  ;;  %10164 = vpow2.f32 %v6153_v35  ;;  %v5725_v42 = vsub.f32 %v19210_v10, %v16195_v15 }
 0x8cd   : > { %10166 = vpow2.f32 %v6259_v52 }
 0x8ce   : > { %v7883_v33 = vsel %vm4184_vm4, %v7882_v1, %v7878_v14  ;;  %v16353_v56 = vpop.permute.xlu1 %7020  ;;  %7212 = vperm.xlu1 %9763, %v10147_v6   ;;  %v6187_v1 = vmul.f32 1.442695, %v5723_v63  ;;  %v10153_v34 = vpop.eup %10152  ;;  %v7907_v14 = vrot.slane %v16219_v26, %v14414_v23  ;;  %v19212_v63 = vld [vmem:[#allocation181_spill] sm:$0xff] }
 0x8cf   : > { %v6895_v21 = vpop.permute.xlu0 %6894  ;;  %v7888_v38 = vsel %vm4191_vm5, %v7887_v4, %v7883_v33  ;;  %v6199_v33 = vmul.f32 1.442695, %v5729_v18  ;;  %v5730_v35 = vsub.f32 %v19212_v63, %v16195_v15  ;;  %v19214_v18 = vld [vmem:[#allocation251_spill] sm:$0xff]  ;;  %v19221_v63 = vld [vmem:[#allocation200_spill] sm:$0xff] }
 0x8d0   : > { %v7892_v50 = vrot.slane %v6895_v21, %v14402_v7  ;;  %6963 = vperm.xlu0 %9762, %v10145_v31   ;;  %v10155_v4 = vpop.eup %10154  ;;  %10168 = vpow2.f32 %v6187_v1  ;;  %v5756_v52 = vsub.f32 %v19214_v18, %v16229_v8  ;;  %v19222_v18 = vld [vmem:[#allocation252_spill] sm:$0xff] }
 0x8d1   : > { %10170 = vpow2.f32 %v6199_v33  ;;  %v19217_v33 = vld [vmem:[#allocation176_spill] sm:$0xff] }
 0x8d2   : > { %v7893_v48 = vsel %vm4198_vm6, %v7892_v50, %v7888_v38  ;;  %v16364_v54 = vpop.permute.xlu1 %7074  ;;  %7266 = vperm.xlu1 %9763, %v10151_v30   ;;  %v6155_v50 = vmul.f32 1.442695, %v5707_v37  ;;  %v10157_v6 = vpop.eup %10156  ;;  %v7917_v38 = vrot.slane %v16238_v22, %v14433_v61  ;;  %v19216_v37 = vld [vmem:[#allocation229_spill] sm:$0xff] }
 0x8d3   : > { %v6901_v3 = vpop.permute.xlu0 %6900  ;;  %v7898_v2 = vsel %vm4205_vm7, %v7897_v59, %v7893_v48  ;;  %v6261_v48 = vmul.f32 1.442695, %v5760_v19  ;;  %v10159_v59 = vpop.eup %10158  ;;  %v5761_v1 = vsub.f32 %v19216_v37, %v16229_v8 }
 0x8d4   : > { %v7902_v16 = vrot.slane %v6901_v3, %v14427_v20  ;;  %7056 = vperm.xlu0 %9762, %v10149_v44   ;;  %10172 = vpow2.f32 %v6155_v50  ;;  %v10161_v30 = vpop.eup %10160 }
 0x8d5   : > { %10174 = vpow2.f32 %v6261_v48 }
 0x8d6   : > { %v7903_v11 = vsel %vm4212_vm8, %v7902_v16, %v7898_v2  ;;  %v16375_v21 = vpop.permute.xlu1 %7026  ;;  %7176 = vperm.xlu1 %9763, %v10155_v4   ;;  %v6191_v16 = vmul.f32 1.442695, %v5725_v42  ;;  %v7927_v2 = vrot.slane %v16253_v49, %v14464_v51  ;;  %v5726_v49 = vsub.f32 %v19217_v33, %v16195_v15 }
 0x8d7   : > { %v6907_v28 = vpop.permute.xlu0 %6906  ;;  %v7908_v53 = vsel %vm4219_vm9, %v7907_v14, %v7903_v11  ;;  %v6201_v11 = vmul.f32 1.442695, %v5730_v35  ;;  %v10163_v14 = vpop.eup %10162  ;;  %v5740_v35 = vsub.f32 %v19221_v63, %v16229_v8 }
 0x8d8   : > { %v7912_v31 = vrot.slane %v6907_v28, %v14451_v27  ;;  %6966 = vperm.xlu0 %9762, %v10153_v34   ;;  %v7937_v28 = vrot.slane %v16268_v25, %v14503_v0  ;;  %10176 = vpow2.f32 %v6191_v16  ;;  %v19219_v25 = vld [vmem:[#allocation187_spill] sm:$0xff]  ;;  %v6193_v48 = vmul.f32 1.442695, %v5726_v49 }
 0x8d9   : > { %v5731_v50 = vsub.f32 %v19219_v25, %v16195_v15  ;;  %10178 = vpow2.f32 %v6201_v11  ;;  %v10394_v11 = vld [vmem:[%s10637_s11 + $0x568] sm:$0xff]  ;;  %v19225_v25 = vld [vmem:[#allocation207_spill] sm:$0xff] }
 0x8da   : > { %v7913_v26 = vsel %vm19211_vm12, %v7912_v31, %v7908_v53  ;;  %v16386_v3 = vpop.permute.xlu1 %6987  ;;  %7269 = vperm.xlu1 %9763, %v10159_v59   ;;  %v6253_v31 = vmul.f32 1.442695, %v5756_v52  ;;  %v10165_v53 = vpop.eup %10164  ;;  %vm19220_vm12 = vcmask 1043459   ;;  %v5762_v52 = vsub.f32 %v19222_v18, %v16229_v8  ;;  %v10400_v18 = vld [vmem:[%s10637_s11 + $0x550] sm:$0xff] }
 0x8db   : > { %v6913_v17 = vpop.permute.xlu0 %6912  ;;  %v7918_v55 = vsel %vm19213_vm2, %v7917_v38, %v7913_v26  ;;  %v6263_v26 = vmul.f32 1.442695, %v5761_v1  ;;  %v10167_v38 = vpop.eup %10166  ;;  %v6203_v16 = vmul.f32 1.442695, %v5731_v50  ;;  %v6221_v1 = vmul.f32 1.442695, %v5740_v35 }
 0x8dc   : > { %v7922_v44 = vrot.slane %v6913_v17, %v14484_v5  ;;  %7059 = vperm.xlu0 %9762, %v10157_v6   ;;  %10180 = vpow2.f32 %v6253_v31  ;;  %v6265_v49 = vmul.f32 1.442695, %v5762_v52  ;;  %v10396_v31 = vld [vmem:[%s10637_s11 + $0x560] sm:$0xff]  ;;  %v5741_v50 = vsub.f32 %v19225_v25, %v16229_v8 }
 0x8dd   : > { %v10169_v59 = vpop.eup %10168  ;;  %10182 = vpow2.f32 %v6263_v26  ;;  %v19229_v25 = vld [vmem:[#allocation203_spill] sm:$0xff]  ;;  %vm19236_vm2 = vcmask 130112  }
 0x8de   : > { %v7923_v22 = vsel %vm19215_vm11, %v7922_v44, %v7918_v55  ;;  %v16399_v13 = vpop.permute.xlu1 %7080  ;;  %7179 = vperm.xlu1 %9763, %v10163_v14   ;;  %v10390_v44 = vld [vmem:[%s10637_s11 + $0x578] sm:$0xff]  ;;  %10184 = vpow2.f32 %v6193_v48  ;;  %v10399_v48 = vld [vmem:[%s10637_s11 + $0x5d0] sm:$0xff]  ;;  %vm19239_vm11 = vcmask 195712  }
 0x8df   : > { %v6919_v12 = vpop.permute.xlu0 %6918  ;;  %v7928_v19 = vsel %vm4247_vm13, %v7927_v2, %v7923_v22  ;;  %v10171_v22 = vpop.eup %10170  ;;  %v10393_v2 = vld [vmem:[%s10637_s11 + $0x5e8] sm:$0xff]  ;;  %10186 = vpow2.f32 %v6203_v16 }
 0x8e0   : > { %v7932_v34 = vrot.slane %v6919_v12, %v14521_v41  ;;  %6969 = vperm.xlu0 %9762, %v10161_v30   ;;  %v19223_v12 = vld [vmem:[#allocation394_spill] sm:$0xff]  ;;  %10188 = vpow2.f32 %v6221_v1 }
 0x8e1   : > { %v5710_v37 = vsub.f32 %v19223_v12, %v16195_v15  ;;  %10190 = vpow2.f32 %v6265_v49  ;;  %v6223_v12 = vmul.f32 1.442695, %v5741_v50  ;;  %v10404_v49 = vld [vmem:[%s10637_s11 + $0x540] sm:$0xff]  ;;  %v5742_v50 = vsub.f32 %v19229_v25, %v16229_v8 }
 0x8e2   : > { %v7933_v4 = vsel %vm4254_vm14, %v7932_v34, %v7928_v19  ;;  %v16414_v17 = vpop.permute.xlu1 %6990  ;;  %7272 = vperm.xlu1 %9763, %v10167_v38   ;;  %v10173_v34 = vpop.eup %10172  ;;  %v19224_v19 = vld [vmem:[#allocation184_spill] sm:$0xff]  ;;  %v10398_v38 = vld [vmem:[%s10637_s11 + $0x558] sm:$0xff]  ;;  %v10412_v25 = vld [vmem:[%s10637_s11 + $0x520] sm:$0xff] }
 0x8e3   : > { %v16405_v10 = vpop.permute.xlu0 %6924  ;;  %v7938_v42 = vsel %vm19218_vm10, %v7937_v28, %v7933_v4  ;;  %v10395_v28 = vld [vmem:[%s10637_s11 + $0x5e0] sm:$0xff]  ;;  %v5732_v33 = vsub.f32 %v19224_v19, %v16195_v15  ;;  %v10175_v4 = vpop.eup %10174  ;;  %v6161_v26 = vmul.f32 1.442695, %v5710_v37  ;;  %v10402_v37 = vld [vmem:[%s10637_s11 + $0x548] sm:$0xff]  ;;  %vm19246_vm10 = vmmov %vm19236_vm2 }
 0x8e4   : > { %7113 = vperm.xlu0 %9762, %v10165_v53   ;;  %v16412_v6 = vsel %vm19220_vm12, %v7938_v42, %v16184_v60  ;;  %8872 = vmatprep.mubr.f32.mxu1 %v7938_v42  ;;  %v10391_v60 = vld [vmem:[%s10637_s11 + $0x5f0] sm:$0xff]  ;;  %v10397_v42 = vld [vmem:[%s10637_s11 + $0x5d8] sm:$0xff]  ;;  %vm19248_vm12 = vcmask 720512  }
 0x8e5   : > { %8873 = vmatmul.mubr.f32.vlgmr.msra.gmra.mxu1 %v16309_v58  ;;  %v10392_v58 = vld [vmem:[%s10637_s11 + $0x570] sm:$0xff]  ;;  %v10177_v63 = vpop.eup %10176  ;;  %10192 = vpow2.f32 %v6161_v26 }
 0x8e6   : > { %9588 = vmatpush3.msra.mxu1 %v10390_v44  ;;  %v16426_v30 = vpop.permute.xlu1 %7083  ;;  %7182 = vperm.xlu1 %9763, %v10171_v22   ;;  %v19226_v44 = vld [vmem:[#allocation231_spill] sm:$0xff]  ;;  %v10179_v52 = vpop.eup %10178  ;;  %v19227_v22 = vld [vmem:[#allocation162_spill] sm:$0xff] }
 0x8e7   : > { %v16420_v55 = vpop.permute.xlu0 %6930  ;;  %9589 = vmatprep.subr.mxu1 %v10391_v60  ;;  %v6205_v60 = vmul.f32 1.442695, %v5732_v33 }
 0x8e8   : > { %7164 = vperm.xlu0 %9762, %v10169_v59   ;;  %9590 = vmatpush3.msra.mxu1 %v10392_v58  ;;  %v5763_v59 = vsub.f32 %v19226_v44, %v16229_v8  ;;  %v10401_v58 = vld [vmem:[%s10637_s11 + $0x5c8] sm:$0xff]  ;;  %v10407_v44 = vld [vmem:[%s10637_s11 + $0x5b0] sm:$0xff] }
 0x8e9   : > { %9591 = vmatprep.subr.mxu1 %v10393_v2  ;;  %v5711_v2 = vsub.f32 %v19227_v22, %v16195_v15  ;;  %v10181_v1 = vpop.eup %10180  ;;  %10194 = vpow2.f32 %v6205_v60 }
 0x8ea   : > { %9592 = vmatpush3.msra.mxu1 %v10394_v11  ;;  %v16438_v53 = vpop.permute.xlu1 %6993  ;;  %7275 = vperm.xlu1 %9763, %v10175_v4   ;;  %v6267_v33 = vmul.f32 1.442695, %v5763_v59  ;;  %10196 = vpow2.f32 %v6223_v12  ;;  %v19230_v59 = vld [vmem:[#allocation254_spill] sm:$0xff]  ;;  %v19231_v12 = vld [vmem:[#allocation399_spill] sm:$0xff] }
 0x8eb   : > { %v16432_v14 = vpop.permute.xlu0 %6936  ;;  %9593 = vmatprep.subr.mxu1 %v10395_v28  ;;  %v19228_v28 = vld [vmem:[#allocation191_spill] sm:$0xff]  ;;  %v6163_v26 = vmul.f32 1.442695, %v5711_v2  ;;  %v5764_v60 = vsub.f32 %v19230_v59, %v16229_v8  ;;  %v10409_v2 = vld [vmem:[%s10637_s11 + $0x5a8] sm:$0xff] }
 0x8ec   : > { %7116 = vperm.xlu0 %9762, %v10173_v34   ;;  %9594 = vmatpush3.msra.mxu1 %v10396_v31  ;;  %v10403_v34 = vld [vmem:[%s10637_s11 + $0x5c0] sm:$0xff]  ;;  %v5733_v19 = vsub.f32 %v19228_v28, %v16195_v15  ;;  %v10183_v31 = vpop.eup %10182  ;;  %10198 = vpow2.f32 %v6267_v33 }
 0x8ed   : > { %9595 = vmatprep.subr.mxu1 %v10397_v42  ;;  %v10405_v42 = vld [vmem:[%s10637_s11 + $0x5b8] sm:$0xff]  ;;  %10200 = vpow2.f32 %v6163_v26  ;;  %v10411_v33 = vld [vmem:[%s10637_s11 + $0x5a0] sm:$0xff] }
 0x8ee   : > { %9596 = vmatpush3.msra.mxu1 %v10398_v38  ;;  %v16450_v16 = vpop.permute.xlu1 %7086  ;;  %7185 = vperm.xlu1 %9763, %v10179_v52   ;;  %v10406_v38 = vld [vmem:[%s10637_s11 + $0x538] sm:$0xff]  ;;  %v10408_v52 = vld [vmem:[%s10637_s11 + $0x530] sm:$0xff] }
 0x8ef   : > { %v16444_v35 = vpop.permute.xlu0 %6975  ;;  %9597 = vmatprep.subr.mxu1 %v10399_v48 }
 0x8f0   : > { %7170 = vperm.xlu0 %9762, %v10177_v63   ;;  %9598 = vmatpush3.msra.mxu1 %v10400_v18  ;;  %v10185_v63 = vpop.eup %10184  ;;  %v6207_v18 = vmul.f32 1.442695, %v5733_v19 }
 0x8f1   : > { %9599 = vmatprep.subr.mxu1 %v10401_v58  ;;  %v10187_v58 = vpop.eup %10186 }
 0x8f2   : > { %9600 = vmatpush3.msra.mxu1 %v10402_v37  ;;  %v16462_v4 = vpop.permute.xlu1 %6996  ;;  %7278 = vperm.xlu1 %9763, %v10183_v31   ;;  %v5712_v37 = vsub.f32 %v19231_v12, %v16195_v15  ;;  %v10189_v28 = vpop.eup %10188  ;;  %10202 = vpow2.f32 %v6207_v18  ;;  %v19234_v12 = vld [vmem:[#allocation169_spill] sm:$0xff] }
 0x8f3   : > { %v16456_v11 = vpop.permute.xlu0 %7068  ;;  %9601 = vmatprep.subr.mxu1 %v10403_v34  ;;  %v10410_v34 = vld [vmem:[%s10637_s11 + $0x528] sm:$0xff] }
 0x8f4   : > { %7263 = vperm.xlu0 %9762, %v10181_v1   ;;  %9602 = vmatpush3.msra.mxu1 %v10404_v49  ;;  %v6225_v1 = vmul.f32 1.442695, %v5742_v50  ;;  %v19232_v49 = vld [vmem:[#allocation188_spill] sm:$0xff]  ;;  %v10191_v50 = vpop.eup %10190  ;;  %v6165_v59 = vmul.f32 1.442695, %v5712_v37  ;;  %v8183_v37 = vrot.slane %v16342_v43, %v14339_v39 }
 0x8f5   : > { %9603 = vmatprep.subr.mxu1 %v10405_v42  ;;  %v5734_v31 = vsub.f32 %v19232_v49, %v16195_v15  ;;  %v6269_v42 = vmul.f32 1.442695, %v5764_v60  ;;  %v10414_v60 = vld [vmem:[%s10637_s11 + $0x518] sm:$0xff]  ;;  %v10193_v18 = vpop.eup %10192  ;;  %v10417_v49 = vld [vmem:[%s10637_s11 + $0x588] sm:$0xff] }
 0x8f6   : > { %9604 = vmatpush3.msra.mxu1 %v10406_v38  ;;  %v16474_v22 = vpop.permute.xlu1 %7089  ;;  %7188 = vperm.xlu1 %9763, %v10187_v58   ;;  %v10413_v38 = vld [vmem:[%s10637_s11 + $0x598] sm:$0xff]  ;;  %10204 = vpow2.f32 %v6225_v1  ;;  %v10195_v1 = vpop.eup %10194 }
 0x8f7   : > { %v16468_v48 = vpop.permute.xlu0 %6981  ;;  %9605 = vmatprep.subr.mxu1 %v10407_v44  ;;  %10206 = vpow2.f32 %v6269_v42  ;;  %v10418_v42 = vld [vmem:[%s10637_s11 + $0x508] sm:$0xff]  ;;  %v10197_v43 = vpop.eup %10196 }
 0x8f8   : > { %7173 = vperm.xlu0 %9762, %v10185_v63   ;;  %9606 = vmatpush3.msra.mxu1 %v10408_v52  ;;  %v19233_v63 = vld [vmem:[#allocation211_spill] sm:$0xff]  ;;  %v8179_v52 = vrot.slane %v16456_v11, %v14357_v62  ;;  %v10416_v11 = vld [vmem:[%s10637_s11 + $0x510] sm:$0xff]  ;;  %10208 = vpow2.f32 %v6165_v59 }
 0x8f9   : > { %9607 = vmatprep.subr.mxu1 %v10409_v2  ;;  %v5743_v44 = vsub.f32 %v19233_v63, %v16229_v8  ;;  %v10415_v2 = vld [vmem:[%s10637_s11 + $0x590] sm:$0xff]  ;;  %v8188_v63 = vrot.slane %v16364_v54, %v14347_v32  ;;  %v10420_v59 = vld [vmem:[%s10637_s11 + $0x500] sm:$0xff]  ;;  %v8198_v54 = vrot.slane %v16399_v13, %v14379_v24  ;;  %v8208_v13 = vrot.slane %v16450_v16, %v14402_v7 }
 0x8fa   : > { %9608 = vmatpush3.msra.mxu1 %v10410_v34  ;;  %v16486_v26 = vpop.permute.xlu1 %6999  ;;  %7281 = vperm.xlu1 %9763, %v10191_v50   ;;  %v5765_v34 = vsub.f32 %v19234_v12, %v16229_v8 }
 0x8fb   : > { %v16480_v19 = vpop.permute.xlu0 %7023  ;;  %9609 = vmatprep.subr.mxu1 %v10411_v33 }
 0x8fc   : > { %7215 = vperm.xlu0 %9762, %v10189_v28   ;;  %9610 = vmatpush3.msra.mxu1 %v10412_v25  ;;  %v6209_v28 = vmul.f32 1.442695, %v5734_v31  ;;  %v19235_v25 = vld [vmem:[#allocation164_spill] sm:$0xff]  ;;  %v8184_v31 = vsel %vm19236_vm2, %v8183_v37, %v8179_v52  ;;  %v10199_v52 = vpop.eup %10198  ;;  %vm19249_vm2 = vmmov %vm19239_vm11 }
 0x8fd   : > { %9611 = vmatprep.subr.mxu1 %v10413_v38  ;;  %v5713_v50 = vsub.f32 %v19235_v25, %v16195_v15  ;;  %v6227_v38 = vmul.f32 1.442695, %v5743_v44  ;;  %v19238_v37 = vld [vmem:[#allocation208_spill] sm:$0xff]  ;;  %v8189_v25 = vsel %vm19239_vm11, %v8188_v63, %v8184_v31  ;;  %vm19254_vm11 = vcmask 786112  }
 0x8fe   : > { %9612 = vmatpush3.msra.mxu1 %v10414_v60  ;;  %v7093_v33 = vpop.permute.xlu1 %7092  ;;  %7191 = vperm.xlu1 %9763, %v10195_v1   ;;  %10210 = vpow2.f32 %v6209_v28  ;;  %v5744_v1 = vsub.f32 %v19238_v37, %v16229_v8  ;;  %v8203_v28 = vrot.slane %v16426_v30, %v14390_v29 }
 0x8ff   : > { %v16494_v58 = vpop.permute.xlu0 %6984  ;;  %9613 = vmatprep.subr.mxu1 %v10415_v2  ;;  %v19237_v2 = vld [vmem:[#allocation195_spill] sm:$0xff]  ;;  %10212 = vpow2.f32 %v6227_v38  ;;  %v8218_v37 = vrot.slane %v7093_v33, %v14427_v20 }
 0x900   : > { %7125 = vperm.xlu0 %9762, %v10193_v18   ;;  %9614 = vmatpush3.msra.mxu1 %v10416_v11  ;;  %v10419_v18 = vld [vmem:[%s10637_s11 + $0x580] sm:$0xff]  ;;  %v5735_v12 = vsub.f32 %v19237_v2, %v16195_v15  ;;  %v6271_v11 = vmul.f32 1.442695, %v5765_v34  ;;  %v6167_v34 = vmul.f32 1.442695, %v5713_v50  ;;  %v8213_v50 = vrot.slane %v16474_v22, %v14397_v45 }
 0x901   : > { %9615 = vmatprep.subr.mxu1 %v10417_v49 }
 0x902   : > { %9616 = vmatpush3.msra.mxu1 %v10418_v42  ;;  %v16518_v49 = vpop.permute.xlu1 %7002  ;;  %v10421_v42 = vld [vmem:[%s10637_s11 + $0x7f8] sm:$0xff]  ;;  %7284 = vperm.xlu1 %9763, %v10199_v52   ;;  %v6211_v63 = vmul.f32 1.442695, %v5735_v12  ;;  %10214 = vpow2.f32 %v6271_v11 }
 0x903   : > { %v7078_v60 = vpop.permute.xlu0 %7077  ;;  %9617 = vmatprep.subr.mxu1 %v10419_v18  ;;  %v19240_v18 = vld [vmem:[#allocation256_spill] sm:$0xff]  ;;  %10216 = vpow2.f32 %v6167_v34  ;;  %v19243_v34 = vld [vmem:[#allocation213_spill] sm:$0xff] }
 0x904   : > { %v8193_v44 = vrot.slane %v7078_v60, %v14368_v40  ;;  %7218 = vperm.xlu0 %9762, %v10197_v43   ;;  %9618 = vmatpush3.msra.mxu1 %v10420_v59  ;;  %v10201_v60 = vpop.eup %10200  ;;  %v5766_v2 = vsub.f32 %v19240_v18, %v16229_v8  ;;  %10218 = vpow2.f32 %v6211_v63 }
 0x905   : > { %9657 = vmatprep.subr.mxu1 %v10421_v42  ;;  %v10203_v38 = vpop.eup %10202 }
 0x906   : > { %v8194_v43 = vsel %vm4177_vm3, %v8193_v44, %v8189_v25  ;;  %v19241_v44 = vld [vmem:[#allocation396_spill] sm:$0xff]  ;;  %v7096_v25 = vpop.permute.xlu1 %7095  ;;  %7194 = vperm.xlu1 %9763, %v10203_v38   ;;  %v10205_v22 = vpop.eup %10204  ;;  %v6273_v18 = vmul.f32 1.442695, %v5766_v2  ;;  %v19244_v2 = vld [vmem:[#allocation30_spill] sm:$0xff] }
 0x907   : > { %v8199_v59 = vsel %vm4184_vm4, %v8198_v54, %v8194_v43  ;;  %v16530_v31 = vpop.permute.xlu0 %7029  ;;  %v5714_v52 = vsub.f32 %v19241_v44, %v16195_v15  ;;  %v6229_v54 = vmul.f32 1.442695, %v5744_v1  ;;  %v8223_v12 = vrot.slane %v7096_v25, %v14414_v23  ;;  %v19242_v43 = vld [vmem:[#allocation192_spill] sm:$0xff]  ;;  %v10207_v1 = vpop.eup %10206 }
 0x908   : > { %v8204_v30 = vsel %vm4191_vm5, %v8203_v28, %v8199_v59  ;;  %7128 = vperm.xlu0 %9762, %v10201_v60   ;;  %v5736_v60 = vsub.f32 %v19242_v43, %v16195_v15  ;;  %v10209_v38 = vpop.eup %10208  ;;  %v5767_v63 = vsub.f32 %v19244_v2, %v16229_v8  ;;  %v8021_v25 = vrot.slane %v16320_v36, %v14357_v62 }
 0x909   : > { %v8209_v16 = vsel %vm4198_vm6, %v8208_v13, %v8204_v30  ;;  %v5745_v13 = vsub.f32 %v19243_v34, %v16229_v8  ;;  %10220 = vpow2.f32 %v6229_v54  ;;  %v8025_v30 = vrot.slane %v16444_v35, %v14339_v39 }
 0x90a   : > { %v8214_v11 = vsel %vm4205_vm7, %v8213_v50, %v8209_v16  ;;  %v16549_v59 = vpop.permute.xlu1 %7005  ;;  %v6169_v50 = vmul.f32 1.442695, %v5714_v52  ;;  %7287 = vperm.xlu1 %9763, %v10207_v1   ;;  %10222 = vpow2.f32 %v6273_v18  ;;  %v19245_v52 = vld [vmem:[#allocation402_spill] sm:$0xff]  ;;  %v8030_v36 = vrot.slane %v16331_v47, %v14347_v32  ;;  %v19247_v1 = vld [vmem:[#allocation199_spill] sm:$0xff]  ;;  %v19250_v47 = vld [vmem:[#allocation212_spill] sm:$0xff] }
 0x90b   : > { %v8219_v42 = vsel %vm4212_vm8, %v8218_v37, %v8214_v11  ;;  %v16542_v28 = vpop.permute.xlu0 %6939  ;;  %v6213_v37 = vmul.f32 1.442695, %v5736_v60  ;;  %v10211_v16 = vpop.eup %10210  ;;  %v5715_v54 = vsub.f32 %v19245_v52, %v16195_v15  ;;  %v8026_v35 = vsel %vm19246_vm10, %v8025_v30, %v8021_v25  ;;  %vm19262_vm10 = vmmov %vm19248_vm12 }
 0x90c   : > { %v8224_v33 = vsel %vm4219_vm9, %v8223_v12, %v8219_v42  ;;  %7221 = vperm.xlu0 %9762, %v10205_v22   ;;  %v6231_v12 = vmul.f32 1.442695, %v5745_v13  ;;  %10224 = vpow2.f32 %v6169_v50  ;;  %v8035_v22 = vrot.slane %v16468_v48, %v14368_v40  ;;  %v10213_v43 = vpop.eup %10212 }
 0x90d   : > { %v8040_v60 = vrot.slane %v16494_v58, %v14379_v24  ;;  %v5737_v34 = vsub.f32 %v19247_v1, %v16195_v15  ;;  %v6275_v13 = vmul.f32 1.442695, %v5767_v63  ;;  %10226 = vpow2.f32 %v6213_v37 }
 0x90e   : > { %v7099_v11 = vpop.permute.xlu1 %7098  ;;  %7197 = vperm.xlu1 %9763, %v10211_v16   ;;  %v8031_v30 = vsel %vm19249_vm2, %v8030_v36, %v8026_v35  ;;  %v5746_v2 = vsub.f32 %v19250_v47, %v16229_v8  ;;  %v6171_v25 = vmul.f32 1.442695, %v5715_v54  ;;  %10228 = vpow2.f32 %v6231_v12  ;;  %v19252_v54 = vld [vmem:[#allocation398_spill] sm:$0xff] }
 0x90f   : > { %v16553_v44 = vpop.permute.xlu0 %7032  ;;  %v8228_v42 = vrot.slane %v7099_v11, %v14451_v27  ;;  %v10215_v48 = vpop.eup %10214  ;;  %v8036_v58 = vsel %vm4177_vm3, %v8035_v22, %v8031_v30  ;;  %v6215_v11 = vmul.f32 1.442695, %v5737_v34  ;;  %10230 = vpow2.f32 %v6275_v13 }
 0x910   : > { %7131 = vperm.xlu0 %9762, %v10209_v38   ;;  %v10217_v16 = vpop.eup %10216  ;;  %v8041_v63 = vsel %vm4184_vm4, %v8040_v60, %v8036_v58  ;;  %v8045_v35 = vrot.slane %v16386_v3, %v14390_v29  ;;  %v5716_v12 = vsub.f32 %v19252_v54, %v16195_v15  ;;  %10232 = vpow2.f32 %v6171_v25  ;;  %v19253_v3 = vld [vmem:[#allocation196_spill] sm:$0xff] }
 0x911   : > { %v8229_v50 = vsel %vm19248_vm12, %v8228_v42, %v8224_v33  ;;  %v19251_v33 = vld [vmem:[#allocation233_spill] sm:$0xff]  ;;  %v10219_v42 = vpop.eup %10218  ;;  %v8050_v34 = vrot.slane %v16414_v17, %v14402_v7  ;;  %10234 = vpow2.f32 %v6215_v11  ;;  %vm19263_vm12 = vmmov %vm19254_vm11  ;;  %vm19265_vm2 = vcmask 851712  }
 0x912   : > { %v16575_v38 = vpop.permute.xlu1 %7008  ;;  %7290 = vperm.xlu1 %9763, %v10215_v48   ;;  %v5768_v52 = vsub.f32 %v19251_v33, %v16229_v8  ;;  %v8046_v36 = vsel %vm4191_vm5, %v8045_v35, %v8041_v63  ;;  %v5738_v48 = vsub.f32 %v19253_v3, %v16195_v15  ;;  %v6173_v17 = vmul.f32 1.442695, %v5716_v12 }
 0x913   : > { %v16569_v18 = vpop.permute.xlu0 %6942  ;;  %v8051_v25 = vsel %vm4198_vm6, %v8050_v34, %v8046_v36  ;;  %v8055_v33 = vrot.slane %v16438_v53, %v14397_v45  ;;  %v8060_v12 = vrot.slane %v16462_v4, %v14427_v20  ;;  %v19257_v53 = vld [vmem:[#allocation168_spill] sm:$0xff]  ;;  %v8065_v4 = vrot.slane %v16486_v26, %v14414_v23 }
 0x914   : > { %7224 = vperm.xlu0 %9762, %v10213_v43   ;;  %v6233_v43 = vmul.f32 1.442695, %v5746_v2  ;;  %v6277_v30 = vmul.f32 1.442695, %v5768_v52  ;;  %v5717_v36 = vsub.f32 %v19257_v53, %v16195_v15  ;;  %v19261_v53 = vld [vmem:[#allocation166_spill] sm:$0xff] }
 0x915   : > { %v8056_v54 = vsel %vm4205_vm7, %v8055_v33, %v8051_v25 }
 0x916   : > { %v7102_v22 = vpop.permute.xlu1 %7101  ;;  %7200 = vperm.xlu1 %9763, %v10219_v42   ;;  %v10221_v1 = vpop.eup %10220  ;;  %10236 = vpow2.f32 %v6233_v43  ;;  %v6217_v42 = vmul.f32 1.442695, %v5738_v48  ;;  %v8061_v34 = vsel %vm4212_vm8, %v8060_v12, %v8056_v54  ;;  %v19258_v48 = vld [vmem:[#allocation221_spill] sm:$0xff]  ;;  %v6175_v33 = vmul.f32 1.442695, %v5717_v36 }
 0x917   : > { %v16581_v37 = vpop.permute.xlu0 %7035  ;;  %v8233_v60 = vrot.slane %v7102_v22, %v14433_v61  ;;  %v10223_v2 = vpop.eup %10222  ;;  %10238 = vpow2.f32 %v6277_v30  ;;  %v5753_v30 = vsub.f32 %v19258_v48, %v16229_v8  ;;  %v8070_v54 = vrot.slane %v16518_v49, %v14451_v27 }
 0x918   : > { %7134 = vperm.xlu0 %9762, %v10217_v16   ;;  %v19255_v16 = vld [vmem:[#allocation215_spill] sm:$0xff]  ;;  %10240 = vpow2.f32 %v6173_v17  ;;  %v5718_v36 = vsub.f32 %v19261_v53, %v16195_v15  ;;  %v8075_v48 = vrot.slane %v16549_v59, %v14433_v61 }
 0x919   : > { %v16598_v47 = vsel %vm19254_vm11, %v8233_v60, %v8229_v50  ;;  %v5747_v63 = vsub.f32 %v19255_v16, %v16229_v8  ;;  %v10225_v52 = vpop.eup %10224  ;;  %v19256_v50 = vld [vmem:[#allocation27_spill] sm:$0xff]  ;;  %10242 = vpow2.f32 %v6217_v42  ;;  %v19260_v42 = vld [vmem:[#allocation220_spill] sm:$0xff]  ;;  %vm19266_vm11 = vcmask 1048512  }
 0x91a   : > { %v16601_v58 = vpop.permute.xlu1 %7011  ;;  %7293 = vperm.xlu1 %9763, %v10223_v2   ;;  %v5769_v35 = vsub.f32 %v19256_v50, %v16229_v8  ;;  %v10227_v22 = vpop.eup %10226  ;;  %v5754_v26 = vsub.f32 %v19260_v42, %v16229_v8 }
 0x91b   : > { %v16593_v13 = vpop.permute.xlu0 %6945  ;;  %v6235_v60 = vmul.f32 1.442695, %v5747_v63  ;;  %v19259_v63 = vld [vmem:[#allocation214_spill] sm:$0xff] }
 0x91c   : > { %7227 = vperm.xlu0 %9762, %v10221_v1   ;;  %v10229_v1 = vpop.eup %10228  ;;  %v6279_v2 = vmul.f32 1.442695, %v5769_v35  ;;  %v5748_v17 = vsub.f32 %v19259_v63, %v16229_v8  ;;  %v6249_v63 = vmul.f32 1.442695, %v5754_v26 }
 0x91d   : > { %v10231_v25 = vpop.eup %10230  ;;  %10244 = vpow2.f32 %v6235_v60 }
 0x91e   : > { %v16614_v43 = vpop.permute.xlu1 %7104  ;;  %7203 = vperm.xlu1 %9763, %v10227_v22   ;;  %v10233_v50 = vpop.eup %10232  ;;  %v6247_v22 = vmul.f32 1.442695, %v5753_v30  ;;  %10246 = vpow2.f32 %v6279_v2  ;;  %v6237_v49 = vmul.f32 1.442695, %v5748_v17  ;;  %v8085_v30 = vrot.slane %v16601_v58, %v14464_v51  ;;  %v19264_v17 = vld [vmem:[#allocation217_spill] sm:$0xff] }
 0x91f   : > { %v16607_v11 = vpop.permute.xlu0 %7038  ;;  %v10235_v12 = vpop.eup %10234  ;;  %10248 = vpow2.f32 %v6175_v33  ;;  %v5749_v33 = vsub.f32 %v19264_v17, %v16229_v8 }
 0x920   : > { %7137 = vperm.xlu0 %9762, %v10225_v52   ;;  %v8066_v52 = vsel %vm4219_vm9, %v8065_v4, %v8061_v34  ;;  %10250 = vpow2.f32 %v6247_v22 }
 0x921   : > { %v8071_v60 = vsel %vm19262_vm10, %v8070_v54, %v8066_v52  ;;  %v6177_v54 = vmul.f32 1.442695, %v5718_v36  ;;  %10252 = vpow2.f32 %v6237_v49  ;;  %vm19267_vm10 = vcmask 1044484  }
 0x922   : > { %v7015_v16 = vpop.permute.xlu1 %7014  ;;  %7296 = vperm.xlu1 %9763, %v10231_v25   ;;  %10254 = vpow2.f32 %v6249_v63 }
 0x923   : > { %v16619_v3 = vpop.permute.xlu0 %6948  ;;  %v10237_v2 = vpop.eup %10236  ;;  %v8090_v4 = vrot.slane %v7015_v16, %v14521_v41  ;;  %10256 = vpow2.f32 %v6177_v54  ;;  %v19270_v54 = vld [vmem:[#allocation401_spill] sm:$0xff] }
 0x924   : > { %7230 = vperm.xlu0 %9762, %v10229_v1   ;;  %v8080_v1 = vrot.slane %v16575_v38, %v14484_v5  ;;  %v8076_v38 = vsel %vm19263_vm12, %v8075_v48, %v8071_v60  ;;  %v10239_v52 = vpop.eup %10238  ;;  %v6239_v48 = vmul.f32 1.442695, %v5749_v33  ;;  %vm19279_vm12 = vcmask 130112  }
 0x925   : > { %v10241_v42 = vpop.eup %10240 }
 0x926   : > { %v16639_v34 = vpop.permute.xlu1 %7107  ;;  %7206 = vperm.xlu1 %9763, %v10235_v12   ;;  %v8081_v59 = vsel %vm19265_vm2, %v8080_v1, %v8076_v38  ;;  %v10243_v53 = vpop.eup %10242  ;;  %v19268_v1 = vld [vmem:[#allocation171_spill] sm:$0xff]  ;;  %v19269_v38 = vld [vmem:[#allocation216_spill] sm:$0xff]  ;;  %10258 = vpow2.f32 %v6239_v48  ;;  %vm19280_vm2 = vmmov %vm19279_vm12 }
 0x927   : > { %v16630_v35 = vpop.permute.xlu0 %7041  ;;  %v8086_v58 = vsel %vm4247_vm13, %v8085_v30, %v8081_v59  ;;  %v5719_v49 = vsub.f32 %v19268_v1, %v16195_v15  ;;  %v19272_v1 = vld [vmem:[#allocation219_spill] sm:$0xff] }
 0x928   : > { %7140 = vperm.xlu0 %9762, %v10233_v50   ;;  %v8091_v26 = vsel %vm4254_vm14, %v8090_v4, %v8086_v58  ;;  %v5720_v58 = vsub.f32 %v19270_v54, %v16195_v15 }
 0x929   : > { %v6179_v17 = vmul.f32 1.442695, %v5719_v49  ;;  %v5751_v49 = vsub.f32 %v19272_v1, %v16229_v8 }
 0x92a   : > { %v7018_v50 = vpop.permute.xlu1 %7017  ;;  %7299 = vperm.xlu1 %9763, %v10239_v52   ;;  %v10245_v30 = vpop.eup %10244  ;;  %v5750_v52 = vsub.f32 %v19269_v38, %v16229_v8  ;;  %v6181_v48 = vmul.f32 1.442695, %v5720_v58  ;;  %v19276_v58 = vld [vmem:[#allocation218_spill] sm:$0xff] }
 0x92b   : > { %v16646_v25 = vpop.permute.xlu0 %6951  ;;  %v8095_v16 = vrot.slane %v7018_v50, %v14503_v0  ;;  %v10247_v4 = vpop.eup %10246  ;;  %10260 = vpow2.f32 %v6179_v17 }
 0x92c   : > { %7233 = vperm.xlu0 %9762, %v10237_v2  }
 0x92d   : > { %v8096_v12 = vsel %vm19266_vm11, %v8095_v16, %v8091_v26  ;;  %v6241_v16 = vmul.f32 1.442695, %v5750_v52  ;;  %v19274_v52 = vld [vmem:[#allocation174_spill] sm:$0xff]  ;;  %vm19281_vm11 = vcmask 195712  }
 0x92e   : > { %v16658_v60 = vpop.permute.xlu1 %7110  ;;  %v16662_v36 = vsel %vm19267_vm10, %v8096_v12, %v16412_v6  ;;  %8944 = vmatprep.mubr.f32.mxu0 %v8096_v12  ;;  %7209 = vperm.xlu1 %9763, %v10243_v53   ;;  %v10249_v6 = vpop.eup %10248  ;;  %v5721_v17 = vsub.f32 %v19274_v52, %v16195_v15  ;;  %v19278_v52 = vld [vmem:[#allocation271_spill] sm:$0xff]  ;;  %vm19282_vm10 = vmmov %vm19281_vm11 }
 0x92f   : > { %v16655_v22 = vpop.permute.xlu0 %7044  ;;  %v10251_v33 = vpop.eup %10250  ;;  %10262 = vpow2.f32 %v6241_v16  ;;  %v5752_v16 = vsub.f32 %v19276_v58, %v16229_v8 }
 0x930   : > { %7143 = vperm.xlu0 %9762, %v10241_v42   ;;  %v10253_v42 = vpop.eup %10252  ;;  %10264 = vpow2.f32 %v6181_v48 }
 0x931   : > { %v10255_v12 = vpop.eup %10254 }
 0x932   : > { %v16668_v63 = vpop.permute.xlu1 %7062  ;;  %7302 = vperm.xlu1 %9763, %v10247_v4  }
 0x933   : > { %v16666_v2 = vpop.permute.xlu0 %6954 }
 0x934   : > { %7236 = vperm.xlu0 %9762, %v10245_v30   ;;  %v10257_v30 = vpop.eup %10256 }
 0x936   : > { %v16674_v50 = vpop.permute.xlu1 %7065  ;;  %7254 = vperm.xlu1 %9763, %v10251_v33   ;;  %v10259_v33 = vpop.eup %10258 }
 0x937   : > { %v16672_v59 = vpop.permute.xlu0 %7047 }
 0x938   : > { %7146 = vperm.xlu0 %9762, %v10249_v6   ;;  %v6243_v6 = vmul.f32 1.442695, %v5751_v49  ;;  %v10261_v1 = vpop.eup %10260  ;;  %v19277_v49 = vld [vmem:[#allocation403_spill] sm:$0xff] }
 0x939   : > { %v5722_v48 = vsub.f32 %v19277_v49, %v16195_v15  ;;  %v7946_v15 = vrot.slane %v16283_v57, %v14339_v39  ;;  %v8124_v57 = vrot.slane %v16581_v37, %v14390_v29  ;;  %v7966_v37 = vrot.slane %v16542_v28, %v14390_v29 }
 0x93a   : > { %v16680_v53 = vpop.permute.xlu1 %7167  ;;  %7257 = vperm.xlu1 %9763, %v10255_v12   ;;  %v6183_v12 = vmul.f32 1.442695, %v5721_v17  ;;  %10266 = vpow2.f32 %v6243_v6  ;;  %v8100_v17 = vrot.slane %v16353_v56, %v14357_v62  ;;  %v7942_v6 = vrot.slane %v16405_v10, %v14357_v62 }
 0x93b   : > { %v16678_v26 = vpop.permute.xlu0 %6957  ;;  %19271 = vst [vmem:[#allocation321_spill] sm:$0xff] %v16680_v53  ;;  %v8104_v53 = vrot.slane %v16480_v19, %v14339_v39  ;;  %v7951_v19 = vrot.slane %v16420_v55, %v14347_v32  ;;  %v8109_v56 = vrot.slane %v16375_v21, %v14347_v32  ;;  %v8119_v10 = vrot.slane %v16553_v44, %v14379_v24 }
 0x93c   : > { %7239 = vperm.xlu0 %9762, %v10253_v42   ;;  %10268 = vpow2.f32 %v6183_v12  ;;  %v10263_v58 = vpop.eup %10262  ;;  %v6185_v12 = vmul.f32 1.442695, %v5722_v48  ;;  %v7961_v48 = vrot.slane %v16432_v14, %v14379_v24  ;;  %v8129_v44 = vrot.slane %v16607_v11, %v14402_v7 }
 0x93d   : > { %v8139_v11 = vrot.slane %v16655_v22, %v14427_v20  ;;  %v7976_v28 = vrot.slane %v16593_v13, %v14397_v45  ;;  %v7981_v22 = vrot.slane %v16619_v3, %v14427_v20  ;;  %v7986_v13 = vrot.slane %v16646_v25, %v14414_v23 }
 0x93e   : > { %v16686_v38 = vpop.permute.xlu1 %7119  ;;  %v7991_v3 = vrot.slane %v16666_v2, %v14451_v27 }
 0x93f   : > { %v16684_v4 = vpop.permute.xlu0 %7050  ;;  %19273 = vst [vmem:[#allocation70_spill] sm:$0xff] %v16686_v38 }
 0x940   : > { %7149 = vperm.xlu0 %9762, %v10257_v30  }
 0x942   : > { %v16692_v42 = vpop.permute.xlu1 %7260 }
 0x943   : > { %v16690_v54 = vpop.permute.xlu0 %6960  ;;  %19275 = vst [vmem:[#allocation323_spill] sm:$0xff] %v16692_v42  ;;  %v6245_v42 = vmul.f32 1.442695, %v5752_v16  ;;  %v8114_v16 = vrot.slane %v16530_v31, %v14368_v40 }
 0x944   : > { %7242 = vperm.xlu0 %9762, %v10259_v33   ;;  %v5770_v33 = vsub.f32 %v19278_v52, %v16229_v8  ;;  %v8105_v8 = vsel %vm19279_vm12, %v8104_v53, %v8100_v17  ;;  %v7947_v52 = vsel %vm19280_vm2, %v7946_v15, %v7942_v6  ;;  %v10265_v53 = vpop.eup %10264  ;;  %v8134_v6 = vrot.slane %v16630_v35, %v14397_v45 }
 0x945   : > { %10270 = vpow2.f32 %v6245_v42  ;;  %v7952_v31 = vsel %vm19281_vm11, %v7951_v19, %v7947_v52  ;;  %v8110_v21 = vsel %vm19282_vm10, %v8109_v56, %v8105_v8  ;;  %v7956_v42 = vrot.slane %v16300_v46, %v14368_v40 }
 0x946   : > { %v16704_v38 = vpop.permute.xlu1 %7122  ;;  %v6281_v55 = vmul.f32 1.442695, %v5770_v33  ;;  %v8115_v33 = vsel %vm4177_vm3, %v8114_v16, %v8110_v21  ;;  %10272 = vpow2.f32 %v6185_v12  ;;  %v8144_v35 = vrot.slane %v16672_v59, %v14414_v23 }
 0x947   : > { %v16696_v30 = vpop.permute.xlu0 %7053  ;;  %v8120_v14 = vsel %vm4184_vm4, %v8119_v10, %v8115_v33  ;;  %v7957_v46 = vsel %vm4177_vm3, %v7956_v42, %v7952_v31  ;;  %v10267_v8 = vpop.eup %10266  ;;  %v8149_v12 = vrot.slane %v16684_v4, %v14451_v27  ;;  %vm19283_vm12 = vcmask 720512  }
 0x948   : > { %7152 = vperm.xlu0 %9762, %v10261_v1   ;;  %v8125_v15 = vsel %vm4191_vm5, %v8124_v57, %v8120_v14  ;;  %v7962_v16 = vsel %vm4184_vm4, %v7961_v48, %v7957_v46  ;;  %v8154_v59 = vrot.slane %v16696_v30, %v14433_v61  ;;  %10274 = vpow2.f32 %v6281_v55  ;;  %vm19285_vm11 = vmmov %vm19283_vm12 }
 0x949   : > { %v7967_v10 = vsel %vm4191_vm5, %v7966_v37, %v7962_v16  ;;  %v7996_v30 = vrot.slane %v16678_v26, %v14433_v61  ;;  %v10269_v21 = vpop.eup %10268  ;;  %v8001_v2 = vrot.slane %v16690_v54, %v14484_v5  ;;  %vm19284_vm2 = vcmask 786112  }
 0x94a   : > { %v16723_v49 = vpop.permute.xlu1 %7212  ;;  %vm19286_vm10 = vcmask 851712   ;;  %v8169_v54 = vrot.slane %v16668_v63, %v14521_v41  ;;  %v8243_v16 = vrot.slane %v16639_v34, %v14464_v51 }
 0x94b   : > { %v16712_v1 = vpop.permute.xlu0 %6963 }
 0x94c   : > { %7245 = vperm.xlu0 %9762, %v10263_v58   ;;  %v7971_v58 = vrot.slane %v16569_v18, %v14402_v7  ;;  %v8130_v18 = vsel %vm4198_vm6, %v8129_v44, %v8125_v15 }
 0x94d   : > { %v8135_v52 = vsel %vm4205_vm7, %v8134_v6, %v8130_v18 }
 0x94e   : > { %v16746_v19 = vpop.permute.xlu1 %7266  ;;  %v7972_v57 = vsel %vm4198_vm6, %v7971_v58, %v7967_v10 }
 0x94f   : > { %v7057_v17 = vpop.permute.xlu0 %7056  ;;  %v7977_v48 = vsel %vm4205_vm7, %v7976_v28, %v7972_v57 }
 0x950   : > { %7155 = vperm.xlu0 %9762, %v10265_v53   ;;  %v8140_v53 = vsel %vm4212_vm8, %v8139_v11, %v8135_v52  ;;  %v8159_v31 = vrot.slane %v7057_v17, %v14484_v5  ;;  %v7982_v44 = vsel %vm4212_vm8, %v7981_v22, %v7977_v48  ;;  %v8006_v17 = vrot.slane %v16712_v1, %v14464_v51  ;;  %v10423_v48 = vld [vmem:[%s10637_s11 + $0x6f0] sm:$0xff] }
 0x951   : > { %v8145_v25 = vsel %vm4219_vm9, %v8144_v35, %v8140_v53  ;;  %v7987_v37 = vsel %vm4219_vm9, %v7986_v13, %v7982_v44  ;;  %v8238_v1 = vrot.slane %v16614_v43, %v14484_v5  ;;  %v8174_v43 = vrot.slane %v16674_v50, %v14503_v0 }
 0x952   : > { %v16770_v4 = vpop.permute.xlu1 %7176  ;;  %v8150_v42 = vsel %vm19283_vm12, %v8149_v12, %v8145_v25  ;;  %v7992_v26 = vsel %vm19285_vm11, %v7991_v3, %v7987_v37  ;;  %vm19287_vm12 = vmmov %vm19284_vm2  ;;  %v10271_v28 = vpop.eup %10270  ;;  %v8248_v12 = vrot.slane %v16658_v60, %v14521_v41  ;;  %vm19289_vm11 = vcmask 1048512   ;;  %v10426_v37 = vld [vmem:[%s10637_s11 + $0x668] sm:$0xff] }
 0x953   : > { %v6967_v56 = vpop.permute.xlu0 %6966  ;;  %v8155_v55 = vsel %vm19284_vm2, %v8154_v59, %v8150_v42  ;;  %v7997_v46 = vsel %vm19287_vm12, %v7996_v30, %v7992_v26  ;;  %vm19288_vm2 = vmmov %vm19286_vm10  ;;  %v10273_v34 = vpop.eup %10272  ;;  %vm19291_vm12 = vcmask 1044484   ;;  %v10424_v30 = vld [vmem:[%s10637_s11 + $0x670] sm:$0xff]  ;;  %v10430_v26 = vld [vmem:[%s10637_s11 + $0x660] sm:$0xff] }
 0x954   : > { %7248 = vperm.xlu0 %9762, %v10267_v8   ;;  %v8160_v58 = vsel %vm19286_vm10, %v8159_v31, %v8155_v55  ;;  %v8011_v11 = vrot.slane %v6967_v56, %v14521_v41  ;;  %v8002_v35 = vsel %vm19288_vm2, %v8001_v2, %v7997_v46  ;;  %vm19290_vm10 = vmmov %vm19288_vm2  ;;  %v10422_v31 = vld [vmem:[%s10637_s11 + $0x678] sm:$0xff]  ;;  %v10425_v2 = vld [vmem:[%s10637_s11 + $0x6e8] sm:$0xff] }
 0x955   : > { %v8007_v18 = vsel %vm4247_vm13, %v8006_v17, %v8002_v35  ;;  %v8239_v13 = vsel %vm19290_vm10, %v8238_v1, %v16598_v47  ;;  %vm19292_vm2 = vmmov %vm19289_vm11  ;;  %v10427_v55 = vld [vmem:[%s10637_s11 + $0x778] sm:$0xff]  ;;  %v10428_v17 = vld [vmem:[%s10637_s11 + $0x6e0] sm:$0xff]  ;;  %v8267_v1 = vrot.slane %v16704_v38, %v14347_v32  ;;  %vm19295_vm10 = vcmask 130112  }
 0x956   : > { %v16787_v14 = vpop.permute.xlu1 %7269  ;;  %v8012_v10 = vsel %vm4254_vm14, %v8011_v11, %v8007_v18  ;;  %v8244_v50 = vsel %vm4247_vm13, %v8243_v16, %v8239_v13  ;;  %v19294_v11 = vld [vmem:[#allocation70_spill] sm:$0xff]  ;;  %v10435_v16 = vld [vmem:[%s10637_s11 + $0x768] sm:$0xff] }
 0x957   : > { %v7060_v33 = vpop.permute.xlu0 %7059 }
 0x958   : > { %v8164_v6 = vrot.slane %v7060_v33, %v14464_v51  ;;  %7158 = vperm.xlu0 %9762, %v10269_v21   ;;  %v10275_v21 = vpop.eup %10274 }
 0x95a   : > { %v8165_v15 = vsel %vm4247_vm13, %v8164_v6, %v8160_v58  ;;  %v16807_v56 = vpop.permute.xlu1 %7179  ;;  %v10431_v58 = vld [vmem:[%s10637_s11 + $0x770] sm:$0xff] }
 0x95b   : > { %v6970_v8 = vpop.permute.xlu0 %6969  ;;  %v8170_v63 = vsel %vm4254_vm14, %v8169_v54, %v8165_v15  ;;  %v8262_v54 = vrot.slane %v19294_v11, %v14339_v39  ;;  %v10432_v15 = vld [vmem:[%s10637_s11 + $0x6d8] sm:$0xff]  ;;  %v8356_v11 = vrot.slane %v16770_v4, %v14379_v24  ;;  %v10454_v4 = vld [vmem:[%s10637_s11 + $0x630] sm:$0xff] }
 0x95c   : > { %v8016_v22 = vrot.slane %v6970_v8, %v14503_v0  ;;  %7251 = vperm.xlu0 %9762, %v10271_v28   ;;  %v8175_v57 = vsel %vm19292_vm2, %v8174_v43, %v8170_v63  ;;  %v10433_v28 = vld [vmem:[%s10637_s11 + $0x7e8] sm:$0xff]  ;;  %v10434_v8 = vld [vmem:[%s10637_s11 + $0x658] sm:$0xff]  ;;  %v10437_v63 = vld [vmem:[%s10637_s11 + $0x7e0] sm:$0xff] }
 0x95d   : > { %v10438_v43 = vld [vmem:[%s10637_s11 + $0x650] sm:$0xff] }
 0x95e   : > { %v8017_v52 = vsel %vm19289_vm11, %v8016_v22, %v8012_v10  ;;  %v16822_v47 = vpop.permute.xlu1 %7272  ;;  %vm19293_vm11 = vmmov %vm19292_vm2  ;;  %v10436_v22 = vld [vmem:[%s10637_s11 + $0x6d0] sm:$0xff]  ;;  %v10439_v10 = vld [vmem:[%s10637_s11 + $0x760] sm:$0xff] }
 0x95f   : > { %v8574_v59 = vsel %vm19291_vm12, %v8017_v52, %v16317_v9  ;;  %8945 = vmatmul.mubr.f32.vlgmr.msra.gmra.mxu0 %v8017_v52  ;;  %v7114_v60 = vpop.permute.xlu0 %7113  ;;  %v8249_v9 = vsel %vm4254_vm14, %v8248_v12, %v8244_v50  ;;  %vm19296_vm12 = vcmask 195712   ;;  %v10441_v52 = vld [vmem:[%s10637_s11 + $0x7d8] sm:$0xff]  ;;  %v10445_v50 = vld [vmem:[%s10637_s11 + $0x7d0] sm:$0xff]  ;;  %vm19299_vm2 = vmmov %vm19295_vm10 }
 0x960   : > { %v8253_v53 = vrot.slane %v7114_v60, %v14503_v0  ;;  %7161 = vperm.xlu0 %9762, %v10273_v34   ;;  %v16819_v3 = vsel %vm5456_vm1, %v8175_v57, %v8574_v59  ;;  %9623 = vmatpush3.msra.mxu0 %v10422_v31  ;;  %v10440_v34 = vld [vmem:[%s10637_s11 + $0x6c8] sm:$0xff]  ;;  %v10443_v60 = vld [vmem:[%s10637_s11 + $0x758] sm:$0xff] }
 0x961   : > { %9624 = vmatprep.subr.mxu0 %v10423_v48  ;;  %v10442_v59 = vld [vmem:[%s10637_s11 + $0x648] sm:$0xff]  ;;  %v10447_v48 = vld [vmem:[%s10637_s11 + $0x750] sm:$0xff] }
 0x962   : > { %v8254_v25 = vsel %vm19293_vm11, %v8253_v53, %v8249_v9  ;;  %9625 = vmatpush3.msra.mxu0 %v10424_v30  ;;  %v16835_v33 = vpop.permute.xlu1 %7182  ;;  %v10446_v9 = vld [vmem:[%s10637_s11 + $0x640] sm:$0xff]  ;;  %vm19300_vm11 = vmmov %vm19299_vm2 }
 0x963   : > { %v16830_v44 = vsel %vm5456_vm1, %v8254_v25, %v16662_v36  ;;  %9016 = vmatprep.mubr.f32.mxu1 %v8254_v25  ;;  %v16832_v42 = vpop.permute.xlu0 %7164  ;;  %9626 = vmatprep.subr.mxu0 %v10425_v2  ;;  %v10429_v36 = vld [vmem:[%s10637_s11 + $0x7f0] sm:$0xff]  ;;  %v19297_v25 = vld [vmem:[#allocation323_spill] sm:$0xff]  ;;  %v10448_v2 = vld [vmem:[%s10637_s11 + $0x6b8] sm:$0xff] }
 0x964   : > { %7305 = vperm.xlu0 %9762, %v10275_v21   ;;  %9017 = vmatmul.mubr.f32.vlgmr.msra.gmra.mxu1 %v8175_v57  ;;  %v10444_v57 = vld [vmem:[%s10637_s11 + $0x6c0] sm:$0xff]  ;;  %v8337_v53 = vrot.slane %v16832_v42, %v14357_v62  ;;  %v8495_v30 = vrot.slane %v19297_v25, %v14357_v62  ;;  %v19298_v42 = vld [vmem:[#allocation321_spill] sm:$0xff] }
 0x965   : > { %9627 = vmatpush3.msra.mxu0 %v10426_v37  ;;  %9658 = vmatpush3.msra.mxu1 %v10427_v55  ;;  %v10449_v37 = vld [vmem:[%s10637_s11 + $0x7c8] sm:$0xff]  ;;  %v8341_v55 = vrot.slane %v19298_v42, %v14339_v39  ;;  %v10464_v42 = vld [vmem:[%s10637_s11 + $0x698] sm:$0xff] }
 0x966   : > { %9628 = vmatprep.subr.mxu0 %v10428_v17  ;;  %9659 = vmatprep.subr.mxu1 %v10429_v36  ;;  %v16850_v35 = vpop.permute.xlu1 %7275  ;;  %v8504_v17 = vrot.slane %v16746_v19, %v14347_v32  ;;  %v10452_v19 = vld [vmem:[%s10637_s11 + $0x6b0] sm:$0xff] }
 0x967   : > { %v7117_v6 = vpop.permute.xlu0 %7116  ;;  %9629 = vmatpush3.msra.mxu0 %v10430_v26  ;;  %9660 = vmatpush3.msra.mxu1 %v10431_v58  ;;  %v10450_v26 = vld [vmem:[%s10637_s11 + $0x638] sm:$0xff]  ;;  %v10451_v58 = vld [vmem:[%s10637_s11 + $0x748] sm:$0xff] }
 0x968   : > { %v8258_v46 = vrot.slane %v7117_v6, %v14357_v62  ;;  %9630 = vmatprep.subr.mxu0 %v10432_v15  ;;  %9661 = vmatprep.subr.mxu1 %v10433_v28  ;;  %v10453_v15 = vld [vmem:[%s10637_s11 + $0x7c0] sm:$0xff]  ;;  %v8514_v28 = vrot.slane %v16822_v47, %v14379_v24  ;;  %v10456_v47 = vld [vmem:[%s10637_s11 + $0x6a8] sm:$0xff] }
 0x969   : > { %9631 = vmatpush3.msra.mxu0 %v10434_v8  ;;  %9662 = vmatpush3.msra.mxu1 %v10435_v16 }
 0x96a   : > { %v8263_v18 = vsel %vm19295_vm10, %v8262_v54, %v8258_v46  ;;  %9632 = vmatprep.subr.mxu0 %v10436_v22  ;;  %9663 = vmatprep.subr.mxu1 %v10437_v63  ;;  %v16866_v13 = vpop.permute.xlu1 %7185  ;;  %v8509_v54 = vrot.slane %v16787_v14, %v14368_v40  ;;  %vm19301_vm10 = vmmov %vm19296_vm12  ;;  %v10455_v14 = vld [vmem:[%s10637_s11 + $0x740] sm:$0xff] }
 0x96b   : > { %v16857_v12 = vpop.permute.xlu0 %7170  ;;  %v16860_v38 = vsel %vm19296_vm12, %v8267_v1, %v8263_v18  ;;  %9633 = vmatpush3.msra.mxu0 %v10438_v43  ;;  %9664 = vmatpush3.msra.mxu1 %v10439_v10  ;;  %v8342_v1 = vsel %vm19300_vm11, %v8341_v55, %v8337_v53  ;;  %v8519_v18 = vrot.slane %v16850_v35, %v14390_v29  ;;  %vm19302_vm12 = vmmov %vm19301_vm10  ;;  %v10458_v35 = vld [vmem:[%s10637_s11 + $0x628] sm:$0xff]  ;;  %v10460_v53 = vld [vmem:[%s10637_s11 + $0x6a0] sm:$0xff] }
 0x96c   : > { %9634 = vmatprep.subr.mxu0 %v10440_v34  ;;  %9665 = vmatprep.subr.mxu1 %v10441_v52  ;;  %v8346_v6 = vrot.slane %v16857_v12, %v14347_v32  ;;  %v10457_v12 = vld [vmem:[%s10637_s11 + $0x7b8] sm:$0xff]  ;;  %v10465_v55 = vld [vmem:[%s10637_s11 + $0x7a8] sm:$0xff]  ;;  %vm19303_vm11 = vmmov %vm19301_vm10 }
 0x96d   : > { %9635 = vmatpush3.msra.mxu0 %v10442_v59  ;;  %9666 = vmatpush3.msra.mxu1 %v10443_v60  ;;  %v10459_v59 = vld [vmem:[%s10637_s11 + $0x738] sm:$0xff]  ;;  %v8361_v60 = vrot.slane %v16807_v56, %v14390_v29  ;;  %v10463_v56 = vld [vmem:[%s10637_s11 + $0x730] sm:$0xff] }
 0x96e   : > { %9636 = vmatprep.subr.mxu0 %v10444_v57  ;;  %9667 = vmatprep.subr.mxu1 %v10445_v50  ;;  %v7279_v36 = vpop.permute.xlu1 %7278  ;;  %v8347_v34 = vsel %vm19302_vm12, %v8346_v6, %v8342_v1  ;;  %v10467_v6 = vld [vmem:[%s10637_s11 + $0x728] sm:$0xff] }
 0x96f   : > { %v7264_v31 = vpop.permute.xlu0 %7263  ;;  %9637 = vmatpush3.msra.mxu0 %v10446_v9  ;;  %9668 = vmatpush3.msra.mxu1 %v10447_v48  ;;  %v8524_v43 = vrot.slane %v7279_v36, %v14402_v7  ;;  %v10466_v36 = vld [vmem:[%s10637_s11 + $0x618] sm:$0xff] }
 0x970   : > { %v8499_v21 = vrot.slane %v7264_v31, %v14339_v39  ;;  %9638 = vmatprep.subr.mxu0 %v10448_v2  ;;  %9669 = vmatprep.subr.mxu1 %v10449_v37  ;;  %v10461_v31 = vld [vmem:[%s10637_s11 + $0x7b0] sm:$0xff] }
 0x971   : > { %9639 = vmatpush3.msra.mxu0 %v10450_v26  ;;  %9670 = vmatpush3.msra.mxu1 %v10451_v58  ;;  %v10468_v26 = vld [vmem:[%s10637_s11 + $0x690] sm:$0xff] }
 0x972   : > { %v8500_v46 = vsel %vm19299_vm2, %v8499_v21, %v8495_v30  ;;  %9640 = vmatprep.subr.mxu0 %v10452_v19  ;;  %9671 = vmatprep.subr.mxu1 %v10453_v15  ;;  %v16909_v10 = vpop.permute.xlu1 %7188  ;;  %v10462_v30 = vld [vmem:[%s10637_s11 + $0x620] sm:$0xff]  ;;  %v8416_v21 = vrot.slane %v16723_v49, %v14357_v62  ;;  %v10472_v15 = vld [vmem:[%s10637_s11 + $0x688] sm:$0xff] }
 0x973   : > { %v8505_v8 = vsel %vm19301_vm10, %v8504_v17, %v8500_v46  ;;  %v7174_v16 = vpop.permute.xlu0 %7173  ;;  %9641 = vmatpush3.msra.mxu0 %v10454_v4  ;;  %9672 = vmatpush3.msra.mxu1 %v10455_v14  ;;  %v10476_v14 = vld [vmem:[%s10637_s11 + $0x680] sm:$0xff]  ;;  %vm19305_vm10 = vcmask 786112  }
 0x974   : > { %v8510_v22 = vsel %vm4177_vm3, %v8509_v54, %v8505_v8  ;;  %v8351_v63 = vrot.slane %v7174_v16, %v14368_v40  ;;  %9642 = vmatprep.subr.mxu0 %v10456_v47  ;;  %9673 = vmatprep.subr.mxu1 %v10457_v12  ;;  %v10471_v54 = vld [vmem:[%s10637_s11 + $0x720] sm:$0xff]  ;;  %v10474_v8 = vld [vmem:[%s10637_s11 + $0x608] sm:$0xff]  ;;  %v10475_v16 = vld [vmem:[%s10637_s11 + $0x718] sm:$0xff] }
 0x975   : > { %v8515_v52 = vsel %vm4184_vm4, %v8514_v28, %v8510_v22  ;;  %9643 = vmatpush3.msra.mxu0 %v10458_v35  ;;  %9674 = vmatpush3.msra.mxu1 %v10459_v59  ;;  %v10473_v28 = vld [vmem:[%s10637_s11 + $0x798] sm:$0xff]  ;;  %v10479_v47 = vld [vmem:[%s10637_s11 + $0x710] sm:$0xff]  ;;  %v10482_v59 = vld [vmem:[%s10637_s11 + $0x780] sm:$0xff] }
 0x976   : > { %v8352_v57 = vsel %vm4177_vm3, %v8351_v63, %v8347_v34  ;;  %v8520_v50 = vsel %vm4191_vm5, %v8519_v18, %v8515_v52  ;;  %9644 = vmatprep.subr.mxu0 %v10460_v53  ;;  %9675 = vmatprep.subr.mxu1 %v10461_v31  ;;  %v7282_v17 = vpop.permute.xlu1 %7281  ;;  %v10477_v18 = vld [vmem:[%s10637_s11 + $0x790] sm:$0xff]  ;;  %v10478_v63 = vld [vmem:[%s10637_s11 + $0x600] sm:$0xff]  ;;  %v10481_v52 = vld [vmem:[%s10637_s11 + $0x708] sm:$0xff] }
 0x977   : > { %v8357_v9 = vsel %vm4184_vm4, %v8356_v11, %v8352_v57  ;;  %v8525_v48 = vsel %vm4198_vm6, %v8524_v43, %v8520_v50  ;;  %v7216_v25 = vpop.permute.xlu0 %7215  ;;  %9645 = vmatpush3.msra.mxu0 %v10462_v30  ;;  %9676 = vmatpush3.msra.mxu1 %v10463_v56  ;;  %v8529_v62 = vrot.slane %v7282_v17, %v14397_v45  ;;  %v10470_v11 = vld [vmem:[%s10637_s11 + $0x610] sm:$0xff]  ;;  %v10480_v43 = vld [vmem:[%s10637_s11 + $0x788] sm:$0xff]  ;;  %v10483_v57 = vld [vmem:[%s10637_s11 + $0x700] sm:$0xff] }
 0x978   : > { %v16928_v2 = vsel %vm4191_vm5, %v8361_v60, %v8357_v9  ;;  %v8420_v37 = vrot.slane %v7216_v25, %v14339_v39  ;;  %9646 = vmatprep.subr.mxu0 %v10464_v42  ;;  %9677 = vmatprep.subr.mxu1 %v10465_v55  ;;  %v10469_v39 = vld [vmem:[%s10637_s11 + $0x7a0] sm:$0xff]  ;;  %vm19307_vm12 = vmmov %vm19305_vm10  ;;  %s9322_s11 = sshll.u32 %s235_s10, 4  ;;  %s9323_s11 = int_to_ptr.vmem [resolvable:$true] %s9322_s11 }
 0x979   : > { %9647 = vmatpush3.msra.mxu0 %v10466_v36  ;;  %9678 = vmatpush3.msra.mxu1 %v10467_v6  ;;  %v8530_v46 = vsel %vm4205_vm7, %v8529_v62, %v8525_v48  ;;  %s10484_s16 = scalar_lea.vmem %s9323_s11, 128  ;;  %p10491_p1 = scmp.lt.s32.totalorder %s9323_s11, %s10489_s22 }
 0x97a   : > { %v8421_v49 = vsel %vm19299_vm2, %v8420_v37, %v8416_v21  ;;  %9648 = vmatprep.subr.mxu0 %v10468_v26  ;;  %9679 = vmatprep.subr.mxu1 %v10469_v39  ;;  %v16945_v1 = vpop.permute.xlu1 %7191  ;;  %vm19308_vm2 = vcmask 851712   ;;  %p10485_p12 = scmp.ne.s32.totalorder %s9323_s11, %s10484_s16  ;;  %p10492_p2 = scmp.lt.s32.totalorder %s10490_s23, %s10484_s16 }
 0x97b   : > { %v7126_v58 = vpop.permute.xlu0 %7125  ;;  %9649 = vmatpush3.msra.mxu0 %v10470_v11  ;;  %9680 = vmatpush3.msra.mxu1 %v10471_v54 }
 0x97c   : > { %v8272_v19 = vrot.slane %v7126_v58, %v14368_v40  ;;  %9650 = vmatprep.subr.mxu0 %v10472_v15  ;;  %9681 = vmatprep.subr.mxu1 %v10473_v28  ;;  %p10486_p13 = pnand %p10485_p12, %p10618_p5  ;;  %p10493_p3 = por %p10492_p2, %p10491_p1 }
 0x97d   : > { %9651 = vmatpush3.msra.mxu0 %v10474_v8  ;;  %9682 = vmatpush3.msra.mxu1 %v10475_v16 }
 0x97e   : > { %v8273_v4 = vsel %vm4177_vm3, %v8272_v19, %v16860_v38  ;;  %9652 = vmatprep.subr.mxu0 %v10476_v14  ;;  %9683 = vmatprep.subr.mxu1 %v10477_v18  ;;  %v7285_v34 = vpop.permute.xlu1 %7284  ;;  %p10487_p0 = pneg %p10486_p13 }
 0x97f   : > { %v7219_v22 = vpop.permute.xlu0 %7218  ;;  %9653 = vmatpush3.msra.mxu0 %v10478_v63  ;;  %9684 = vmatpush3.msra.mxu1 %v10479_v47  ;;  %v8534_v38 = vrot.slane %v7285_v34, %v14427_v20 }
 0x980   : > { %v8425_v12 = vrot.slane %v7219_v22, %v14347_v32  ;;  %9685 = vmatprep.subr.mxu1 %v10480_v43  ;;  %v8376_v22 = vrot.slane %v16909_v10, %v14427_v20  ;;  %p10494_p4 = pnand %p10493_p3, %p10487_p0 }
 0x981   : > { %9686 = vmatpush3.msra.mxu1 %v10481_v52  ;;  %v8535_v50 = vsel %vm4212_vm8, %v8534_v38, %v8530_v46 }
 0x982   : > { %v8426_v35 = vsel %vm19303_vm11, %v8425_v12, %v8421_v49  ;;  %9687 = vmatprep.subr.mxu1 %v10482_v59  ;;  %v7195_v31 = vpop.permute.xlu1 %7194  ;;  %vm19309_vm11 = vcmask 1048512  }
 0x983   : > { %v7129_v60 = vpop.permute.xlu0 %7128  ;;  %9688 = vmatpush3.msra.mxu1 %v10483_v57 }
 0x984   : > { %v8277_v53 = vrot.slane %v7129_v60, %v14379_v24 }
 0x986   : > { %v8278_v32 = vsel %vm4184_vm4, %v8277_v53, %v8273_v4  ;;  %v7288_v25 = vpop.permute.xlu1 %7287  ;;  %v8371_v4 = vrot.slane %v16866_v13, %v14397_v45 }
 0x987   : > { %v7222_v9 = vpop.permute.xlu0 %7221  ;;  %v8539_v30 = vrot.slane %v7288_v25, %v14414_v23 }
 0x988   : > { %v8430_v48 = vrot.slane %v7222_v9, %v14368_v40 }
 0x989   : > { %v8540_v37 = vsel %vm4219_vm9, %v8539_v30, %v8535_v50 }
 0x98a   : > { %v8431_v56 = vsel %vm4177_vm3, %v8430_v48, %v8426_v35  ;;  %v7198_v55 = vpop.permute.xlu1 %7197  ;;  %vm19304_vm3 = vcmask 720512  }
 0x98b   : > { %v7132_v21 = vpop.permute.xlu0 %7131  ;;  %v8391_v13 = vrot.slane %v7198_v55, %v14433_v61 }
 0x98c   : > { %v8282_v42 = vrot.slane %v7132_v21, %v14390_v29 }
 0x98e   : > { %v16971_v17 = vsel %vm4191_vm5, %v8282_v42, %v8278_v32  ;;  %v7291_v62 = vpop.permute.xlu1 %7290 }
 0x98f   : > { %v7225_v36 = vpop.permute.xlu0 %7224  ;;  %v8544_v40 = vrot.slane %v7291_v62, %v14451_v27 }
 0x990   : > { %v8435_v6 = vrot.slane %v7225_v36, %v14379_v24  ;;  %v8366_v24 = vrot.slane %v16835_v33, %v14402_v7  ;;  %v8381_v33 = vrot.slane %v16945_v1, %v14414_v23 }
 0x991   : > { %v8545_v39 = vsel %vm19304_vm3, %v8544_v40, %v8540_v37 }
 0x992   : > { %v8436_v49 = vsel %vm4184_vm4, %v8435_v6, %v8431_v56  ;;  %v7201_v58 = vpop.permute.xlu1 %7200  ;;  %v8367_v8 = vsel %vm4198_vm6, %v8366_v24, %v16928_v2  ;;  %v8386_v2 = vrot.slane %v7195_v31, %v14451_v27  ;;  %vm19306_vm4 = vmmov %vm19304_vm3 }
 0x993   : > { %v16976_v26 = vpop.permute.xlu0 %7134  ;;  %v8372_v18 = vsel %vm4205_vm7, %v8371_v4, %v8367_v8  ;;  %v8396_v52 = vrot.slane %v7201_v58, %v14484_v5 }
 0x994   : > { %v8377_v47 = vsel %vm4212_vm8, %v8376_v22, %v8372_v18 }
 0x995   : > { %v8382_v34 = vsel %vm4219_vm9, %v8381_v33, %v8377_v47 }
 0x996   : > { %v7294_v54 = vpop.permute.xlu1 %7293  ;;  %v8387_v35 = vsel %vm19306_vm4, %v8386_v2, %v8382_v34  ;;  %vm19317_vm4 = vmmov %vm19308_vm2 }
 0x997   : > { %v7228_v11 = vpop.permute.xlu0 %7227  ;;  %v8549_v46 = vrot.slane %v7294_v54, %v14433_v61  ;;  %v8392_v1 = vsel %vm19307_vm12, %v8391_v13, %v8387_v35 }
 0x998   : > { %v8397_v57 = vsel %vm19308_vm2, %v8396_v52, %v8392_v1  ;;  %v8440_v6 = vrot.slane %v7228_v11, %v14390_v29 }
 0x999   : > { %v16983_v15 = vsel %vm19305_vm10, %v8549_v46, %v8545_v39 }
 0x99a   : > { %v7204_v28 = vpop.permute.xlu1 %7203  ;;  %v8441_v46 = vsel %vm4191_vm5, %v8440_v6, %v8436_v49  ;;  %vm19310_vm5 = vmmov %vm19304_vm3  ;;  %v10547_v6 = vmov 0.0  }
 0x99b   : > { %v16980_v19 = vpop.permute.xlu0 %7137  ;;  %v8401_v10 = vrot.slane %v7204_v28, %v14464_v51  ;;  %9701 = vmatprep.subr.mxu0 %v10547_v6 }
 0x99c   : > { %v8292_v24 = vrot.slane %v16980_v19, %v14397_v45 }
 0x99d   : > { %v8402_v53 = vsel %vm4247_vm13, %v8401_v10, %v8397_v57 }
 0x99e   : > { %v16991_v14 = vpop.permute.xlu1 %7296 }
 0x99f   : > { %v7231_v16 = vpop.permute.xlu0 %7230  ;;  %v8554_v1 = vrot.slane %v16991_v14, %v14484_v5 }
 0x9a0   : > { %v8445_v40 = vrot.slane %v7231_v16, %v14402_v7 }
 0x9a1   : > { %v8555_v14 = vsel %vm19317_vm4, %v8554_v1, %v16983_v15 }
 0x9a2   : > { %v7207_v12 = vpop.permute.xlu1 %7206  ;;  %v8446_v29 = vsel %vm4198_vm6, %v8445_v40, %v8441_v46  ;;  %v9202_v40 = vld [vmem:[%s17157_s3 + $0x20] sm:$0xff] }
 0x9a3   : > { %v7141_v63 = vpop.permute.xlu0 %7140  ;;  %v8406_v59 = vrot.slane %v7207_v12, %v14521_v41 }
 0x9a4   : > { %v8297_v11 = vrot.slane %v7141_v63, %v14427_v20 }
 0x9a5   : > { %v8407_v32 = vsel %vm4254_vm14, %v8406_v59, %v8402_v53 }
 0x9a6   : > { %v17003_v38 = vpop.permute.xlu1 %7299 }
 0x9a7   : > { %v7234_v43 = vpop.permute.xlu0 %7233  ;;  %v8559_v53 = vrot.slane %v17003_v38, %v14464_v51 }
 0x9a8   : > { %v8450_v58 = vrot.slane %v7234_v43, %v14397_v45 }
 0x9aa   : > { %v7210_v50 = vpop.permute.xlu1 %7209  ;;  %v8451_v4 = vsel %vm4205_vm7, %v8450_v58, %v8446_v29  ;;  %v9200_v58 = vld [vmem:[%s17157_s3 + $0x10] sm:$0xff]  ;;  %v9444_v29 = vpop.f32.mrf.mxu0 }
 0x9ab   : > { %v7144_v60 = vpop.permute.xlu0 %7143  ;;  %v8411_v31 = vrot.slane %v7210_v50, %v14503_v0 }
 0x9ad   : > { %v8412_v48 = vsel %vm19309_vm11, %v8411_v31, %v8407_v32 }
 0x9ae   : > { %v17016_v25 = vsel %vm5458_vm0, %v8412_v48, %v16830_v44  ;;  %9088 = vmatprep.mubr.f32.mxu0 %v8412_v48  ;;  %v7303_v62 = vpop.permute.xlu1 %7302  ;;  %v8287_v44 = vrot.slane %v16976_v26, %v14402_v7  ;;  %v8302_v7 = vrot.slane %v7144_v60, %v14414_v23 }
 0x9af   : > { %v7237_v9 = vpop.permute.xlu0 %7236  ;;  %v8564_v48 = vrot.slane %v7303_v62, %v14521_v41  ;;  %v9205_v62 = vld [vmem:[%s17157_s3 + $0x38] sm:$0xff] }
 0x9b0   : > { %v8455_v54 = vrot.slane %v7237_v9, %v14427_v20  ;;  %v8288_v49 = vsel %vm4198_vm6, %v8287_v44, %v16971_v17  ;;  %vm19311_vm6 = vmmov %vm19305_vm10  ;;  %v9199_v44 = vld [vmem:[%s17157_s3 + $0x8] sm:$0xff] }
 0x9b1   : > { %v8293_v20 = vsel %vm4205_vm7, %v8292_v24, %v8288_v49  ;;  %vm19312_vm7 = vmmov %vm19304_vm3 }
 0x9b2   : > { %v7255_v18 = vpop.permute.xlu1 %7254  ;;  %v8456_v45 = vsel %vm4212_vm8, %v8455_v54, %v8451_v4  ;;  %v8298_v12 = vsel %vm4212_vm8, %v8297_v11, %v8293_v20  ;;  %vm19313_vm3 = vmmov %vm19308_vm2  ;;  %v9198_v54 = vld [vmem:[%s17157_s3] sm:$0xff]  ;;  %v9445_v4 = vpop.f32.mrf.mxu0 }
 0x9b3   : > { %v7147_v30 = vpop.permute.xlu0 %7146  ;;  %v8303_v17 = vsel %vm4219_vm9, %v8302_v7, %v8298_v12  ;;  %v8485_v10 = vrot.slane %v7255_v18, %v14521_v41  ;;  %vm19314_vm8 = vmmov %vm19311_vm6 }
 0x9b4   : > { %v8307_v19 = vrot.slane %v7147_v30, %v14451_v27  ;;  %vm19316_vm10 = vmmov %vm19309_vm11  ;;  %v9514_v18 = vpop.f32.mrf.mxu0  ;;  %vm19321_vm11 = vcmask 1042434  }
 0x9b5   : > { %vm19318_vm12 = vmmov %vm19316_vm10 }
 0x9b6   : > { %v8308_v13 = vsel %vm19312_vm7, %v8307_v19, %v8303_v17  ;;  %v7258_v35 = vpop.permute.xlu1 %7257  ;;  %vm19324_vm7 = vcmask 523264  }
 0x9b7   : > { %v7240_v56 = vpop.permute.xlu0 %7239  ;;  %v8490_v30 = vrot.slane %v7258_v35, %v14503_v0 }
 0x9b8   : > { %v8460_v28 = vrot.slane %v7240_v56, %v14414_v23 }
 0x9ba   : > { %v8461_v63 = vsel %vm4219_vm9, %v8460_v28, %v8456_v45  ;;  %vm19315_vm9 = vmmov %vm19308_vm2 }
 0x9bb   : > { %v7150_v21 = vpop.permute.xlu0 %7149  ;;  %vm19319_vm2 = vmmov %vm19316_vm10 }
 0x9bc   : > { %v8312_v47 = vrot.slane %v7150_v21, %v14433_v61 }
 0x9be   : > { %v8313_v59 = vsel %vm19314_vm8, %v8312_v47, %v8308_v13 }
 0x9bf   : > { %v7243_v37 = vpop.permute.xlu0 %7242 }
 0x9c0   : > { %v8465_v8 = vrot.slane %v7243_v37, %v14451_v27  ;;  %v8560_v37 = vsel %vm4247_vm13, %v8559_v53, %v8555_v14 }
 0x9c2   : > { %v8466_v23 = vsel %vm19310_vm5, %v8465_v8, %v8461_v63  ;;  %v9479_v8 = vpop.f32.mrf.mxu1  ;;  %vm19322_vm5 = vcmask 1043459  }
 0x9c3   : > { %v7153_v42 = vpop.permute.xlu0 %7152 }
 0x9c4   : > { %v8317_v33 = vrot.slane %v7153_v42, %v14484_v5 }
 0x9c6   : > { %v8318_v57 = vsel %vm19315_vm9, %v8317_v33, %v8313_v59 }
 0x9c7   : > { %v7246_v55 = vpop.permute.xlu0 %7245 }
 0x9c8   : > { %v8470_v26 = vrot.slane %v7246_v55, %v14433_v61  ;;  %v8565_v55 = vsel %vm4254_vm14, %v8564_v48, %v8560_v37 }
 0x9ca   : > { %v8471_v43 = vsel %vm19311_vm6, %v8470_v26, %v8466_v23  ;;  %v9480_v26 = vpop.f32.mrf.mxu1  ;;  %vm19323_vm6 = vcmask 1044484  }
 0x9cb   : > { %v7156_v36 = vpop.permute.xlu0 %7155  ;;  %v9481_v19 = vadd.f32 %v9480_v26, %v9479_v8 }
 0x9cc   : > { %v8322_v27 = vrot.slane %v7156_v36, %v14464_v51  ;;  %v9549_v20 = vpop.f32.mrf.mxu1 }
 0x9ce   : > { %v8323_v31 = vsel %vm4247_vm13, %v8322_v27, %v8318_v57  ;;  %v9550_v17 = vpop.f32.mrf.mxu1  ;;  %v9446_v27 = vadd.f32 %v9445_v4, %v9444_v29 }
 0x9cf   : > { %v7249_v39 = vpop.permute.xlu0 %7248 }
 0x9d0   : > { %v8475_v22 = vrot.slane %v7249_v39, %v14484_v5  ;;  %v9201_v39 = vld [vmem:[%s17157_s3 + $0x18] sm:$0xff] }
 0x9d2   : > { %v8476_v52 = vsel %vm19313_vm3, %v8475_v22, %v8471_v43  ;;  %v9515_v22 = vpop.f32.mrf.mxu0 }
 0x9d3   : > { %v7159_v16 = vpop.permute.xlu0 %7158  ;;  %v9516_v23 = vadd.f32 %v9515_v22, %v9514_v18 }
 0x9d4   : > { %v8327_v61 = vrot.slane %v7159_v16, %v14521_v41 }
 0x9d6   : > { %v8328_v56 = vsel %vm4254_vm14, %v8327_v61, %v8323_v31  ;;  %v9551_v61 = vadd.f32 %v9550_v17, %v9549_v20 }
 0x9d7   : > { %v7252_v2 = vpop.permute.xlu0 %7251 }
 0x9d8   : > { %v8480_v34 = vrot.slane %v7252_v2, %v14464_v51 }
 0x9da   : > { %v8481_v60 = vsel %vm4247_vm13, %v8480_v34, %v8476_v52  ;;  %vm10548_vm13 = vmmov 0  }
 0x9db   : > { %v7162_v50 = vpop.permute.xlu0 %7161  ;;  %v8486_v9 = vsel %vm4254_vm14, %v8485_v10, %v8481_v60  ;;  %vm19320_vm14 = vcmask 1041409  }
 0x9dc   : > { %v8332_v32 = vrot.slane %v7162_v50, %v14503_v0  ;;  %v8491_v21 = vsel %vm19318_vm12, %v8490_v30, %v8486_v9 }
 0x9de   : > { %v8333_v5 = vsel %vm19316_vm10, %v8332_v32, %v8328_v56 }
 0x9df   : > { %v8576_v51 = vsel %vm5458_vm0, %v8333_v5, %v16819_v3  ;;  %9089 = vmatmul.mubr.f32.vlgmr.msra.gmra.mxu0 %v8333_v5  ;;  %v7306_v38 = vpop.permute.xlu0 %7305 }
 0x9e0   : > { %v8569_v41 = vrot.slane %v7306_v38, %v14503_v0  ;;  %v8577_v42 = vsel %vm5460_vm15, %v8491_v21, %v8576_v51  ;;  %9702 = vmatpush3.msra.mxu0 %v9205_v62  ;;  %v9204_v0 = vld [vmem:[%s17157_s3 + $0x30] sm:$0xff]  ;;  %9717 = vmatprep.mubr.msk.f32.mxu0 %vm10548_vm13, %v10547_v6 }
 0x9e1   : > { %9703 = vmatprep.subr.mxu0 %v10547_v6 }
 0x9e2   : > { %v8570_v36 = vsel %vm19319_vm2, %v8569_v41, %v8565_v55  ;;  %9704 = vmatpush3.msra.mxu0 %v9204_v0 }
 0x9e3   : > { %v8584_v15 = vsel %vm5460_vm15, %v8570_v36, %v17016_v25  ;;  %9160 = vmatprep.mubr.f32.mxu1 %v8570_v36  ;;  %v9203_v25 = vld [vmem:[%s17157_s3 + $0x28] sm:$0xff]  ;;  %9705 = vmatprep.subr.mxu0 %v10547_v6 }
 0x9e4   : > { %9161 = vmatmul.mubr.f32.vlgmr.msra.gmra.mxu1 %v8491_v21  ;;  %v8587_v3 = vadd.f32 %v8584_v15, %v8577_v42  ;;  %9706 = vmatpush3.msra.mxu0 %v9203_v25 }
 0x9e5   : > { %9707 = vmatprep.subr.mxu0 %v10547_v6 }
 0x9e6   : > { %8588 = vadd.xlane.f32.xlu0 %v8587_v3  ;;  %9708 = vmatpush3.msra.mxu0 %v9202_v40 }
 0x9e7   : > { %9709 = vmatprep.subr.mxu0 %v10547_v6 }
 0x9e8   : > { %9710 = vmatpush3.msra.mxu0 %v9201_v39 }
 0x9e9   : > { %9711 = vmatprep.subr.mxu0 %v10547_v6 }
 0x9ea   : > { %9712 = vmatpush3.msra.mxu0 %v9200_v58 }
 0x9eb   : > { %9713 = vmatprep.subr.mxu0 %v10547_v6 }
 0x9ec   : > { %9714 = vmatpush3.msra.mxu0 %v9199_v44  ;;  %v9404_v44 = vld [vmem:[%s17158_s4] ss:$0 sm:$0xff] }
 0x9ed   : > { %9715 = vmatprep.subr.mxu0 %v10547_v6 }
 0x9ee   : > { %9716 = vmatpush3.msra.mxu0 %v9198_v54 }
 0xa1f   : > { %v9584_v33 = vpop.f32.mrf.mxu0 }
 0xa21   : > { %v9585_v10 = vpop.f32.mrf.mxu0 }
 0xa22   : > { %v9586_v53 = vadd.f32 %v9585_v10, %v9584_v33 }
 0xa24   : > { %v9619_v52 = vpop.f32.mrf.mxu1 }
 0xa26   : > { %v9620_v31 = vpop.f32.mrf.mxu1 }
 0xa27   : > { %v9621_v14 = vadd.f32 %v9620_v31, %v9619_v52 }
 0xa6f   : > { %v8589_v46 = vpop.xlane.xlu0 %8588 }
 0xa70   : > { %v9167_v24 = vrot.slane %v8589_v46, 1  ;;  %v9168_v28 = vrot.slane %v8589_v46, 2  ;;  %v9169_v11 = vrot.slane %v8589_v46, 3  ;;  %v9170_v16 = vrot.slane %v8589_v46, 4 }
 0xa71   : > { %v9171_v7 = vrot.slane %v8589_v46, 5  ;;  %v9172_v49 = vrot.slane %v8589_v46, 6  ;;  %v9173_v47 = vrot.slane %v8589_v46, 7 }
 0xa72   : > { %10276 = vrcp.f32 %v9167_v24 }
 0xa73   : > { %10278 = vrcp.f32 %v9168_v28 }
 0xa74   : > { %10280 = vrcp.f32 %v8589_v46 }
 0xa75   : > { %10282 = vrcp.f32 %v9169_v11 }
 0xa76   : > { %10284 = vrcp.f32 %v9170_v16 }
 0xa77   : > { %10286 = vrcp.f32 %v9171_v7 }
 0xa78   : > { %10288 = vrcp.f32 %v9172_v49 }
 0xa79   : > { %10290 = vrcp.f32 %v9173_v47 }
 0xa7f   : > { %v10277_v45 = vpop.eup %10276 }
 0xa80   : > { %v10279_v63 = vpop.eup %10278  ;;  %v9185_v12 = vmul.f32 %v10277_v45, %v9481_v19 }
 0xa81   : > { %v10281_v2 = vpop.eup %10280  ;;  %v9187_v43 = vmul.f32 %v10279_v63, %v9516_v23 }
 0xa82   : > { %v9221_v34 = vrot.slane %v9185_v12, 7  ;;  %v10283_v13 = vpop.eup %10282  ;;  %v9183_v35 = vmul.f32 %v10281_v2, %v9446_v27 }
 0xa83   : > { %v9223_v59 = vrot.slane %v9187_v43, 6  ;;  %v10285_v60 = vpop.eup %10284  ;;  %v9189_v57 = vmul.f32 %v10283_v13, %v9551_v61 }
 0xa84   : > { %v9222_v50 = vsel %vm19320_vm14, %v9221_v34, %v9183_v35  ;;  %v10287_v9 = vpop.eup %10286  ;;  %v9191_v30 = vmul.f32 %v10285_v60, %v9586_v53 }
 0xa85   : > { %v9224_v56 = vsel %vm19321_vm11, %v9223_v59, %v9222_v50  ;;  %v10289_v5 = vpop.eup %10288  ;;  %v9225_v51 = vrot.slane %v9189_v57, 5  ;;  %v9193_v37 = vmul.f32 %v10287_v9, %v9621_v14 }
 0xa86   : > { %v9227_v42 = vrot.slane %v9191_v30, 4  ;;  %v10291_v15 = vpop.eup %10290 }
 0xa87   : > { %v9226_v41 = vsel %vm19322_vm5, %v9225_v51, %v9224_v56  ;;  %v9229_v62 = vrot.slane %v9193_v37, 3 }
 0xa88   : > { %v9228_v3 = vsel %vm19323_vm6, %v9227_v42, %v9226_v41 }
 0xa89   : > { %v9230_v25 = vsel %vm5456_vm1, %v9229_v62, %v9228_v3 }
 0xa9f   : > { %v9654_v1 = vpop.f32.mrf.mxu0 }
 0xaa1   : > { %v9655_v32 = vpop.f32.mrf.mxu0 }
 0xaa2   : > { %v9656_v48 = vadd.f32 %v9655_v32, %v9654_v1 }
 0xaa4   : > { %v9195_v38 = vmul.f32 %v10289_v5, %v9656_v48  ;;  %v9689_v21 = vpop.f32.mrf.mxu1 }
 0xaa6   : > { %v9690_v55 = vpop.f32.mrf.mxu1  ;;  %v9231_v6 = vrot.slane %v9195_v38, 2 }
 0xaa7   : > { %v9691_v36 = vadd.f32 %v9690_v55, %v9689_v21 }
 0xaa8   : > { %v9232_v39 = vsel %vm5458_vm0, %v9231_v6, %v9230_v25 }
 0xaa9   : > { %v9197_v0 = vmul.f32 %v10291_v15, %v9691_v36 }
 0xaab   : > { %v9233_v40 = vrot.slane %v9197_v0, 1 }
 0xaad   : > { %v9234_v58 = vsel %vm5460_vm15, %v9233_v40, %v9232_v39 }
 0xaae   : > { %9718 = vmatmul.mubr.msk.f32.vlgmr.msra.gmra.mxu0 %vm19324_vm7, %v9234_v58 }
 0xb6e   : > { %v9303_v54 = vpop.f32.mrf.mxu0 }
 0xb6f   : > { %v9304_v46 = vadd.f32 %v9404_v44, %v9303_v54 }
 0xb70   : > { %v9719_v24 = vpop.f32.mrf.mxu0 }
 0xb71   : > { %9307 = vst [vmem:[%s235_s10] sm:$0xff] %v9304_v46 }
 0xb72   : > { %10497 = shalt.err (!%p10494_p4)
}
 0xb73   : > { %s10498_s25 = scalar_lea.hbm %s17119_s14, 128  ;;  %s10502_s6 = scalar_lea.hbm %s17159_s5, 256 }
 0xb74   : > { %p10499_p7 = scmp.ne.s32.totalorder %s17119_s14, %s10498_s25  ;;  %p10503_p10 = scmp.lt.s32.totalorder %s17119_s14, %s17159_s5 }
 0xb75   : > { %p10504_p11 = scmp.lt.s32.totalorder %s10502_s6, %s10498_s25 }
 0xb76   : > { %p10500_p8 = pnand %p10499_p7, %p10618_p5 }
 0xb77   : > { %p10505_p12 = por %p10504_p11, %p10503_p10 }
 0xb78   : > { %p10501_p9 = pneg %p10500_p8 }
 0xb7a   : > { %p10506_p13 = pnand %p10505_p12, %p10501_p9 }
 0xb7c   : > { %10509 = shalt.err (!%p10506_p13)
}
 0xb7d   : > { %9720 = dma.vmem_to_hbm [thread:$0]  (%p10618_p5), %s9323_s11, 128, %s17119_s14, %s9309_s15  }
 0xb7e PF: > { %p9726_p0 = scmp.ge.s32.totalorder %s10544_s21, 2  ;;  %s9334_s9 = sand.u32 1, %s10532_s18  }
 0xb7f   : > { %s9335_s10 = scalar_lea.sflag [#allocation3], %s9334_s9 }
 0xb80   : > { %p9723_p1 = pnand %p9726_p0, %p10622_p6 }
 0xb82   : > { %p9724_p2 = pneg %p9723_p1 }
 0xb84   : > { %10527 = dma.done.wait (%p9724_p2), %s9335_s10, 128  }
 0xb85   : > { %10529 = vsyncadd (%p9724_p2), %s9335_s10, 4294967168  ;;  %p15_p3 = scmp.ge.s32.totalorder %s10605_s24, 4   ;;  %s19325_s18 = smov %s10536_s19 }
 0xb86   : > { %s19326_s19 = smov %s10540_s20  ;;  %s19327_s20 = smov %s10616_s27 }
 0xb87   : > { %s19328_s21 = smov %s10605_s24  ;;  %17 = sbr.rel (!%p15_p3) target bundleno = 3 (0x3), region = 78 }
 0xb8c   :  { %9340 = vsyncpa [#allocation3], 1 }
 0xb8d   :  { %9342 = vsyncpa [#allocation3 + $0x1], 1 }

</bundles_post_ra>
